<compile_context>
chip_gen: v7x
topology: tpu7x:2x2x1
jax: 0.10.0
libtpu: 0.0.40
codegen_flags: <defaults>
</compile_context>

<pallas_src>
import functools
import math

import jax
import jax.numpy as jnp
from jax.experimental import pallas as pl
from jax.experimental.pallas import tpu as pltpu


def _rup(v, m):
    return (v + m - 1) // m * m


# ----------------------------------------------------------------------------
# Kernel 1: fused 3x3 conv (no im2col) + bias + BatchNorm-stats epilogue
# ----------------------------------------------------------------------------
def _conv3x3_row_kernel(x_ref, w_ref, b_ref, y_ref, s_ref, *, ow, wp):
    """Grid = (B, OH); one output row per step.

    x_ref : (1, Hp*Wp, Cin)   padded input plane (resident across the row axis)
    w_ref : (9, Cin, Cout)    taps laid out (kh*3+kw, Cin, Cout)
    b_ref : (1, Cout)         conv bias
    y_ref : (1, 1, OW, Cout)  conv+bias output row
    s_ref : (1, 2, Cout)      per-image [sum, sum-of-squares] accumulator
    """
    r = pl.program_id(1)

    @pl.when(r == 0)
    def _():
        s_ref[...] = jnp.zeros_like(s_ref)

    cout = y_ref.shape[-1]
    acc = jnp.zeros((ow, cout), jnp.float32)
    # 3x3 conv = sum of 9 shifted row-matmuls: bf16 operands on the MXU, f32 acc.
    for t in range(9):
        di, dj = divmod(t, 3)
        a = x_ref[0, pl.ds((r + di) * wp + dj, ow), :].astype(jnp.bfloat16)
        w_t = w_ref[t].astype(jnp.bfloat16)
        acc = acc + jnp.dot(a, w_t, preferred_element_type=jnp.float32)
    acc = acc + b_ref[...]

    y_ref[0, 0, :, :] = acc
    s_ref[0, 0:1, :] = s_ref[0, 0:1, :] + jnp.sum(acc, axis=0, keepdims=True)
    s_ref[0, 1:2, :] = s_ref[0, 1:2, :] + jnp.sum(acc * acc, axis=0, keepdims=True)


def conv3x3(x, w, b, pads):
    """x: NHWC f32; w: (Cout, Cin, 3, 3) (PyTorch layout); b: (Cout,).
    pads = (top, bottom, left, right).  Returns (y NHWC, stats (B, 2, Cout))."""
    B, H, W, Cin = x.shape
    pt, pb, pleft, pright = pads
    xp = jnp.pad(x, ((0, 0), (pt, pb), (pleft, pright), (0, 0)))
    Hp, Wp = H + pt + pb, W + pleft + pright
    OH, OW = Hp - 2, Wp - 2
    Cout = w.shape[0]
    wk = jnp.transpose(w, (2, 3, 1, 0)).reshape(9, Cin, Cout).astype(jnp.float32)
    xf = xp.reshape(B, Hp * Wp, Cin)          # free reshape, C stays on lanes
    bias = b.reshape(1, Cout).astype(jnp.float32)

    kern = functools.partial(_conv3x3_row_kernel, ow=OW, wp=Wp)
    y, stats = pl.pallas_call(
        kern,
        out_shape=(jax.ShapeDtypeStruct((B, OH, OW, Cout), jnp.float32),
                   jax.ShapeDtypeStruct((B, 2, Cout), jnp.float32)),
        grid=(B, OH),
        in_specs=[
            pl.BlockSpec((1, Hp * Wp, Cin), lambda bb, rr: (bb, 0, 0)),
            pl.BlockSpec((9, Cin, Cout), lambda bb, rr: (0, 0, 0)),
            pl.BlockSpec((1, Cout), lambda bb, rr: (0, 0)),
        ],
        out_specs=(
            pl.BlockSpec((1, 1, OW, Cout), lambda bb, rr: (bb, rr, 0, 0)),
            pl.BlockSpec((1, 2, Cout), lambda bb, rr: (bb, 0, 0)),
        ),
        compiler_params=pltpu.CompilerParams(
            dimension_semantics=("parallel", "arbitrary"),
            vmem_limit_bytes=48 * 1024 * 1024),
    )(xf, wk, bias)
    return y, stats


# ----------------------------------------------------------------------------
# Kernel 2: per-channel affine (folded BatchNorm) + optional SiLU / residual add,
#           lane-dense (C<128 channels packed into 128-wide lanes)
# ----------------------------------------------------------------------------
def _affine_silu_kernel(x_ref, s_ref, t_ref, o_ref):
    y = x_ref[...] * s_ref[...] + t_ref[...]
    o_ref[...] = y * pl.reciprocal(1.0 + jnp.exp(-y), approx=True)


def _affine_kernel(x_ref, s_ref, t_ref, o_ref):
    o_ref[...] = x_ref[...] * s_ref[...] + t_ref[...]


def _affine_residual_kernel(x_ref, r_ref, s_ref, t_ref, o_ref):
    o_ref[...] = x_ref[...] * s_ref[...] + t_ref[...] + r_ref[...]


def affine_apply(x_flat, scale, shift, act, residual=None):
    M, C = x_flat.shape
    k = 128 // C if (C < 128 and 128 % C == 0) else 1
    rows = pl.cdiv(M, k)
    rows_per_block = min(256, _rup(rows, 8))
    rows_p = _rup(rows, rows_per_block)
    Mp = rows_p * k

    def pack(a):
        return jnp.pad(a.astype(jnp.float32), ((0, Mp - M), (0, 0))).reshape(
            rows_p, k * C)

    xp = pack(x_flat)
    sp = jnp.tile(scale.reshape(1, C).astype(jnp.float32), (1, k))
    tp = jnp.tile(shift.reshape(1, C).astype(jnp.float32), (1, k))

    row_spec = pl.BlockSpec((rows_per_block, k * C), lambda i: (i, 0))
    vec_spec = pl.BlockSpec((1, k * C), lambda i: (0, 0))

    if residual is not None:
        kern = _affine_residual_kernel
        args = (xp, pack(residual), sp, tp)
        in_specs = [row_spec, row_spec, vec_spec, vec_spec]
    else:
        kern = _affine_silu_kernel if act else _affine_kernel
        args = (xp, sp, tp)
        in_specs = [row_spec, vec_spec, vec_spec]

    out = pl.pallas_call(
        kern,
        out_shape=jax.ShapeDtypeStruct((rows_p, k * C), jnp.float32),
        grid=(rows_p // rows_per_block,),
        in_specs=in_specs,
        out_specs=row_spec,
        compiler_params=pltpu.CompilerParams(dimension_semantics=("parallel",)),
    )(*args)
    return out.reshape(Mp, C)[:M]


def bn_scale_shift(stats, count, gamma, beta, eps=1e-5):
    """Finish the BN reduction (tiny per-channel glue in plain JAX)."""
    s = jnp.sum(stats[:, 0, :], axis=0)
    ss = jnp.sum(stats[:, 1, :], axis=0)
    mean = s / count
    var = jnp.maximum(ss / count - mean * mean, 0.0)       # biased (training mode)
    scale = gamma / jnp.sqrt(var + eps)
    shift = beta - mean * scale
    return scale, shift


def conv_bn(x, p, pads, act=True, residual=None):
    y, stats = conv3x3(x, p['w'], p['b'], pads)
    B, OH, OW, C = y.shape
    scale, shift = bn_scale_shift(stats, B * OH * OW, p['g'], p['be'])
    res_flat = None if residual is None else residual.reshape(B * OH * OW, C)
    out = affine_apply(y.reshape(B * OH * OW, C), scale, shift, act=act,
                       residual=res_flat)
    return out.reshape(B, OH, OW, C)


def res_block(x, p):
    h = conv_bn(x, p['c1'], (1, 1, 1, 1), act=True)
    # second conv -> BN (no act) -> + x, with the residual add fused in the kernel
    return conv_bn(h, p['c2'], (1, 1, 1, 1), act=False, residual=x)


# ----------------------------------------------------------------------------
# Kernel 3: 2x bilinear upsampling (align_corners=True), transpose-free
# ----------------------------------------------------------------------------
def _bilinear_matrix(n_in, n_out):
    if n_in == 1:
        return jnp.ones((n_out, 1), jnp.float32)
    pos = jnp.arange(n_out, dtype=jnp.float32) * (n_in - 1) / (n_out - 1)
    lo = jnp.clip(jnp.floor(pos).astype(jnp.int32), 0, n_in - 2)
    frac = pos - lo.astype(jnp.float32)
    return ((1.0 - frac)[:, None] * jax.nn.one_hot(lo, n_in, dtype=jnp.float32)
            + frac[:, None] * jax.nn.one_hot(lo + 1, n_in, dtype=jnp.float32))


def _interp_rows_kernel(r_ref, x_ref, o_ref):
    o_ref[0, :, :] = jnp.dot(r_ref[...], x_ref[0, :, :],
                             preferred_element_type=jnp.float32)


def _interp_cols_kernel(r_ref, x_ref, o_ref, *, tb):
    rw = r_ref[...]
    for i in range(tb):
        o_ref[i, :, :] = jnp.dot(rw, x_ref[i, :, :],
                                 preferred_element_type=jnp.float32)


def upsample2x(x):
    """NHWC 2x bilinear upsample, align_corners=True (nn.UpsamplingBilinear2d)."""
    B, H, W, C = x.shape
    OH, OW = 2 * H, 2 * W
    Rh = _bilinear_matrix(H, OH)
    Rw = _bilinear_matrix(W, OW)

    # rows: per-image matmul (OH, H) @ (H, W*C); channels stay on lanes
    y1 = pl.pallas_call(
        _interp_rows_kernel,
        out_shape=jax.ShapeDtypeStruct((B, OH, W * C), jnp.float32),
        grid=(B,),
        in_specs=[pl.BlockSpec((OH, H), lambda b: (0, 0)),
                  pl.BlockSpec((1, H, W * C), lambda b: (b, 0, 0))],
        out_specs=pl.BlockSpec((1, OH, W * C), lambda b: (b, 0, 0)),
        compiler_params=pltpu.CompilerParams(dimension_semantics=("parallel",)),
    )(Rh, x.reshape(B, H, W * C))

    # cols: (OW, W) @ (W, C) per output row, tb rows per grid step
    M = B * OH
    tb = 4 if M % 4 == 0 else (2 if M % 2 == 0 else 1)
    y2 = pl.pallas_call(
        functools.partial(_interp_cols_kernel, tb=tb),
        out_shape=jax.ShapeDtypeStruct((M, OW, C), jnp.float32),
        grid=(M // tb,),
        in_specs=[pl.BlockSpec((OW, W), lambda m: (0, 0)),
                  pl.BlockSpec((tb, W, C), lambda m: (m, 0, 0))],
        out_specs=pl.BlockSpec((tb, OW, C), lambda m: (m, 0, 0)),
        compiler_params=pltpu.CompilerParams(dimension_semantics=("parallel",)),
    )(Rw, y1.reshape(M, W, C))
    return y2.reshape(B, OH, OW, C)


# ----------------------------------------------------------------------------
# decoder2 forward (ZeroPad2d layers folded into the following 3x3 conv's padding)
# ----------------------------------------------------------------------------
def decoder2_forward(x_nchw, P):
    x = jnp.transpose(x_nchw, (0, 2, 3, 1)).astype(jnp.float32)   # NCHW -> NHWC
    x = conv_bn(x, P['conv1'], (1, 1, 1, 1), act=True)            # conv1 + BN + SiLU
    x = upsample2x(x)                                             # up1
    x = res_block(x, P['res1'])
    x = res_block(x, P['res2'])
    x = conv_bn(x, P['conv2'], (1, 0, 1, 0), act=True)            # up1_2 pad + conv2
    x = upsample2x(x)                                             # up2
    x = res_block(x, P['res3'])
    x = res_block(x, P['res4'])
    x = conv_bn(x, P['conv3'], (1, 0, 1, 0), act=True)            # up2_3 pad + conv3
    x = upsample2x(x)                                             # up3
    x = res_block(x, P['res5'])
    x = res_block(x, P['res6'])
    x = conv_bn(x, P['conv4'], (1, 0, 1, 0), act=True)            # up3_4 pad + conv4
    return jnp.transpose(x, (0, 3, 1, 2))                         # NHWC -> NCHW


# ----------------------------------------------------------------------------
# Parameters (deterministic synthetic init; conv bias=0, BN gamma=1 beta=0)
# ----------------------------------------------------------------------------
# TODO(synk): nn.BatchNorm2d running-stats updates (a training-time side effect)
# are not modeled; the forward output uses batch statistics exactly as in train mode.
def init_params(key, in_channel):
    counter = [0]

    def nxt():
        counter[0] += 1
        return jax.random.fold_in(key, counter[0])

    def conv_bn_p(cout, cin):
        fan = cin * 9
        return {'w': jax.random.normal(nxt(), (cout, cin, 3, 3), jnp.float32)
                     / math.sqrt(fan),
                'b': jnp.zeros((cout,), jnp.float32),
                'g': jnp.ones((cout,), jnp.float32),
                'be': jnp.zeros((cout,), jnp.float32)}

    def res_p(dim):
        return {'c1': conv_bn_p(dim, dim), 'c2': conv_bn_p(dim, dim)}

    return {'conv1': conv_bn_p(64, in_channel),
            'res1': res_p(64), 'res2': res_p(64),
            'conv2': conv_bn_p(32, 64),
            'res3': res_p(32), 'res4': res_p(32),
            'conv3': conv_bn_p(32, 32),
            'res5': res_p(32), 'res6': res_p(32),
            'conv4': conv_bn_p(64, 32)}


if __name__ == "__main__":
    key = jax.random.PRNGKey(0)
    in_channel = 16
    P = init_params(key, in_channel)
    # Small test input: decoder2(in_channel=16) on a (2, 16, 4, 4) feature map.
    x = jax.random.normal(jax.random.fold_in(key, 1234),
                          (2, in_channel, 4, 4), jnp.float32)

    fwd = jax.jit(decoder2_forward)
    out = jax.block_until_ready(fwd(x, P))

    # 4 -> conv1:4 -> up:8 -> pad+conv2:7 -> up:14 -> pad+conv3:13 -> up:26 -> pad+conv4:25
    assert out.shape == (2, 64, 25, 25), out.shape
    assert bool(jnp.all(jnp.isfinite(out)))
    print("KERNEL_OK")
</pallas_src>

<mosaic_0001>
module attributes {stable_mosaic.version = 11 : i64} {
  func.func @_conv3x3_row_kernel(%arg0: i32, %arg1: i32, %arg2: memref<1x36x16xf32, #tpu.memory_space<vmem>>, %arg3: memref<9x16x64xf32, #tpu.memory_space<vmem>>, %arg4: memref<1x64xf32, #tpu.memory_space<vmem>>, %arg5: memref<1x1x4x64xf32, #tpu.memory_space<vmem>>, %arg6: memref<1x2x64xf32, #tpu.memory_space<vmem>>) attributes {dimension_semantics = [#tpu.dimension_semantics<parallel>, #tpu.dimension_semantics<arbitrary>], iteration_bounds = array<i64: 2, 4>, scalar_prefetch = 0 : i64, scratch_operands = 0 : i64, tpu.core_type = #tpu.core_type<tc>, window_params = [{transform_indices = @transform_0, window_bounds = array<i64: 1, 36, 16>}, {pipeline_mode = #tpu.pipeline_mode<synchronous>, transform_indices = @transform_1, window_bounds = array<i64: 9, 16, 64>}, {pipeline_mode = #tpu.pipeline_mode<synchronous>, transform_indices = @transform_2, window_bounds = array<i64: 1, 64>}, {transform_indices = @transform_3, window_bounds = array<i64: 1, 1, 4, 64>}, {transform_indices = @transform_4, window_bounds = array<i64: 1, 2, 64>}]} {
    %c0_i32 = arith.constant 0 : i32
    %0 = arith.cmpi eq, %arg1, %c0_i32 : i32
    %1 = arith.extui %0 : i1 to i32
    %c0_i32_0 = arith.constant 0 : i32
    %2 = arith.cmpi ne, %1, %c0_i32_0 : i32
    scf.if %2 {
      %cst_90 = arith.constant 0.000000e+00 : f32
      %135 = vector.broadcast %cst_90 : f32 to vector<1x2x64xf32>
      %c0_91 = arith.constant 0 : index
      %c0_92 = arith.constant 0 : index
      %c0_93 = arith.constant 0 : index
      %136 = vector.load %arg6[%c0_91, %c0_92, %c0_93] : memref<1x2x64xf32, #tpu.memory_space<vmem>>, vector<1x2x64xf32>
      tpu.vector_store %arg6[%c0_91, %c0_92, %c0_93], %135 {strides = array<i32>} : memref<1x2x64xf32, #tpu.memory_space<vmem>>, vector<1x2x64xf32>,
    } else {
    }
    %cst = arith.constant 0.000000e+00 : f32
    %3 = vector.broadcast %cst : f32 to vector<4x64xf32>
    %c0_i32_1 = arith.constant 0 : i32
    %4 = arith.addi %arg1, %c0_i32_1 : i32
    %c6_i32 = arith.constant 6 : i32
    %5 = arith.muli %4, %c6_i32 : i32
    %c0_i32_2 = arith.constant 0 : i32
    %6 = arith.addi %5, %c0_i32_2 : i32
    %c0 = arith.constant 0 : index
    %7 = arith.index_cast %6 : i32 to index
    %c0_3 = arith.constant 0 : index
    %8 = vector.load %arg2[%c0, %7, %c0_3] : memref<1x36x16xf32, #tpu.memory_space<vmem>>, vector<1x4x16xf32>
    %9 = vector.shape_cast %8 : vector<1x4x16xf32> to vector<4x16xf32>
    %10 = arith.truncf %9 : vector<4x16xf32> to vector<4x16xbf16>
    %c0_4 = arith.constant 0 : index
    %c0_5 = arith.constant 0 : index
    %c0_6 = arith.constant 0 : index
    %11 = vector.load %arg3[%c0_4, %c0_5, %c0_6] : memref<9x16x64xf32, #tpu.memory_space<vmem>>, vector<1x16x64xf32>
    %12 = vector.shape_cast %11 : vector<1x16x64xf32> to vector<16x64xf32>
    %13 = arith.truncf %12 : vector<16x64xf32> to vector<16x64xbf16>
    %cst_7 = arith.constant dense<0.000000e+00> : vector<4x64xf32>
    %14 = tpu.matmul %10, %13, %cst_7 {dimension_numbers = #tpu.dot_dimension_numbers<[1], [0], [0], [1], [0, 0, 1, 1], [], []>} : vector<4x16xbf16>, vector<16x64xbf16>, vector<4x64xf32> -> vector<4x64xf32>
    %15 = arith.addf %3, %14 : vector<4x64xf32>
    %c0_i32_8 = arith.constant 0 : i32
    %16 = arith.addi %arg1, %c0_i32_8 : i32
    %c6_i32_9 = arith.constant 6 : i32
    %17 = arith.muli %16, %c6_i32_9 : i32
    %c1_i32 = arith.constant 1 : i32
    %18 = arith.addi %17, %c1_i32 : i32
    %c0_10 = arith.constant 0 : index
    %19 = arith.index_cast %18 : i32 to index
    %c0_11 = arith.constant 0 : index
    %20 = vector.load %arg2[%c0_10, %19, %c0_11] : memref<1x36x16xf32, #tpu.memory_space<vmem>>, vector<1x4x16xf32>
    %21 = vector.shape_cast %20 : vector<1x4x16xf32> to vector<4x16xf32>
    %22 = arith.truncf %21 : vector<4x16xf32> to vector<4x16xbf16>
    %c1 = arith.constant 1 : index
    %c0_12 = arith.constant 0 : index
    %c0_13 = arith.constant 0 : index
    %23 = vector.load %arg3[%c1, %c0_12, %c0_13] : memref<9x16x64xf32, #tpu.memory_space<vmem>>, vector<1x16x64xf32>
    %24 = vector.shape_cast %23 : vector<1x16x64xf32> to vector<16x64xf32>
    %25 = arith.truncf %24 : vector<16x64xf32> to vector<16x64xbf16>
    %cst_14 = arith.constant dense<0.000000e+00> : vector<4x64xf32>
    %26 = tpu.matmul %22, %25, %cst_14 {dimension_numbers = #tpu.dot_dimension_numbers<[1], [0], [0], [1], [0, 0, 1, 1], [], []>} : vector<4x16xbf16>, vector<16x64xbf16>, vector<4x64xf32> -> vector<4x64xf32>
    %27 = arith.addf %15, %26 : vector<4x64xf32>
    %c0_i32_15 = arith.constant 0 : i32
    %28 = arith.addi %arg1, %c0_i32_15 : i32
    %c6_i32_16 = arith.constant 6 : i32
    %29 = arith.muli %28, %c6_i32_16 : i32
    %c2_i32 = arith.constant 2 : i32
    %30 = arith.addi %29, %c2_i32 : i32
    %c0_17 = arith.constant 0 : index
    %31 = arith.index_cast %30 : i32 to index
    %c0_18 = arith.constant 0 : index
    %32 = vector.load %arg2[%c0_17, %31, %c0_18] : memref<1x36x16xf32, #tpu.memory_space<vmem>>, vector<1x4x16xf32>
    %33 = vector.shape_cast %32 : vector<1x4x16xf32> to vector<4x16xf32>
    %34 = arith.truncf %33 : vector<4x16xf32> to vector<4x16xbf16>
    %c2 = arith.constant 2 : index
    %c0_19 = arith.constant 0 : index
    %c0_20 = arith.constant 0 : index
    %35 = vector.load %arg3[%c2, %c0_19, %c0_20] : memref<9x16x64xf32, #tpu.memory_space<vmem>>, vector<1x16x64xf32>
    %36 = vector.shape_cast %35 : vector<1x16x64xf32> to vector<16x64xf32>
    %37 = arith.truncf %36 : vector<16x64xf32> to vector<16x64xbf16>
    %cst_21 = arith.constant dense<0.000000e+00> : vector<4x64xf32>
    %38 = tpu.matmul %34, %37, %cst_21 {dimension_numbers = #tpu.dot_dimension_numbers<[1], [0], [0], [1], [0, 0, 1, 1], [], []>} : vector<4x16xbf16>, vector<16x64xbf16>, vector<4x64xf32> -> vector<4x64xf32>
    %39 = arith.addf %27, %38 : vector<4x64xf32>
    %c1_i32_22 = arith.constant 1 : i32
    %40 = arith.addi %arg1, %c1_i32_22 : i32
    %c6_i32_23 = arith.constant 6 : i32
    %41 = arith.muli %40, %c6_i32_23 : i32
    %c0_i32_24 = arith.constant 0 : i32
    %42 = arith.addi %41, %c0_i32_24 : i32
    %c0_25 = arith.constant 0 : index
    %43 = arith.index_cast %42 : i32 to index
    %c0_26 = arith.constant 0 : index
    %44 = vector.load %arg2[%c0_25, %43, %c0_26] : memref<1x36x16xf32, #tpu.memory_space<vmem>>, vector<1x4x16xf32>
    %45 = vector.shape_cast %44 : vector<1x4x16xf32> to vector<4x16xf32>
    %46 = arith.truncf %45 : vector<4x16xf32> to vector<4x16xbf16>
    %c3 = arith.constant 3 : index
    %c0_27 = arith.constant 0 : index
    %c0_28 = arith.constant 0 : index
    %47 = vector.load %arg3[%c3, %c0_27, %c0_28] : memref<9x16x64xf32, #tpu.memory_space<vmem>>, vector<1x16x64xf32>
    %48 = vector.shape_cast %47 : vector<1x16x64xf32> to vector<16x64xf32>
    %49 = arith.truncf %48 : vector<16x64xf32> to vector<16x64xbf16>
    %cst_29 = arith.constant dense<0.000000e+00> : vector<4x64xf32>
    %50 = tpu.matmul %46, %49, %cst_29 {dimension_numbers = #tpu.dot_dimension_numbers<[1], [0], [0], [1], [0, 0, 1, 1], [], []>} : vector<4x16xbf16>, vector<16x64xbf16>, vector<4x64xf32> -> vector<4x64xf32>
    %51 = arith.addf %39, %50 : vector<4x64xf32>
    %c1_i32_30 = arith.constant 1 : i32
    %52 = arith.addi %arg1, %c1_i32_30 : i32
    %c6_i32_31 = arith.constant 6 : i32
    %53 = arith.muli %52, %c6_i32_31 : i32
    %c1_i32_32 = arith.constant 1 : i32
    %54 = arith.addi %53, %c1_i32_32 : i32
    %c0_33 = arith.constant 0 : index
    %55 = arith.index_cast %54 : i32 to index
    %c0_34 = arith.constant 0 : index
    %56 = vector.load %arg2[%c0_33, %55, %c0_34] : memref<1x36x16xf32, #tpu.memory_space<vmem>>, vector<1x4x16xf32>
    %57 = vector.shape_cast %56 : vector<1x4x16xf32> to vector<4x16xf32>
    %58 = arith.truncf %57 : vector<4x16xf32> to vector<4x16xbf16>
    %c4 = arith.constant 4 : index
    %c0_35 = arith.constant 0 : index
    %c0_36 = arith.constant 0 : index
    %59 = vector.load %arg3[%c4, %c0_35, %c0_36] : memref<9x16x64xf32, #tpu.memory_space<vmem>>, vector<1x16x64xf32>
    %60 = vector.shape_cast %59 : vector<1x16x64xf32> to vector<16x64xf32>
    %61 = arith.truncf %60 : vector<16x64xf32> to vector<16x64xbf16>
    %cst_37 = arith.constant dense<0.000000e+00> : vector<4x64xf32>
    %62 = tpu.matmul %58, %61, %cst_37 {dimension_numbers = #tpu.dot_dimension_numbers<[1], [0], [0], [1], [0, 0, 1, 1], [], []>} : vector<4x16xbf16>, vector<16x64xbf16>, vector<4x64xf32> -> vector<4x64xf32>
    %63 = arith.addf %51, %62 : vector<4x64xf32>
    %c1_i32_38 = arith.constant 1 : i32
    %64 = arith.addi %arg1, %c1_i32_38 : i32
    %c6_i32_39 = arith.constant 6 : i32
    %65 = arith.muli %64, %c6_i32_39 : i32
    %c2_i32_40 = arith.constant 2 : i32
    %66 = arith.addi %65, %c2_i32_40 : i32
    %c0_41 = arith.constant 0 : index
    %67 = arith.index_cast %66 : i32 to index
    %c0_42 = arith.constant 0 : index
    %68 = vector.load %arg2[%c0_41, %67, %c0_42] : memref<1x36x16xf32, #tpu.memory_space<vmem>>, vector<1x4x16xf32>
    %69 = vector.shape_cast %68 : vector<1x4x16xf32> to vector<4x16xf32>
    %70 = arith.truncf %69 : vector<4x16xf32> to vector<4x16xbf16>
    %c5 = arith.constant 5 : index
    %c0_43 = arith.constant 0 : index
    %c0_44 = arith.constant 0 : index
    %71 = vector.load %arg3[%c5, %c0_43, %c0_44] : memref<9x16x64xf32, #tpu.memory_space<vmem>>, vector<1x16x64xf32>
    %72 = vector.shape_cast %71 : vector<1x16x64xf32> to vector<16x64xf32>
    %73 = arith.truncf %72 : vector<16x64xf32> to vector<16x64xbf16>
    %cst_45 = arith.constant dense<0.000000e+00> : vector<4x64xf32>
    %74 = tpu.matmul %70, %73, %cst_45 {dimension_numbers = #tpu.dot_dimension_numbers<[1], [0], [0], [1], [0, 0, 1, 1], [], []>} : vector<4x16xbf16>, vector<16x64xbf16>, vector<4x64xf32> -> vector<4x64xf32>
    %75 = arith.addf %63, %74 : vector<4x64xf32>
    %c2_i32_46 = arith.constant 2 : i32
    %76 = arith.addi %arg1, %c2_i32_46 : i32
    %c6_i32_47 = arith.constant 6 : i32
    %77 = arith.muli %76, %c6_i32_47 : i32
    %c0_i32_48 = arith.constant 0 : i32
    %78 = arith.addi %77, %c0_i32_48 : i32
    %c0_49 = arith.constant 0 : index
    %79 = arith.index_cast %78 : i32 to index
    %c0_50 = arith.constant 0 : index
    %80 = vector.load %arg2[%c0_49, %79, %c0_50] : memref<1x36x16xf32, #tpu.memory_space<vmem>>, vector<1x4x16xf32>
    %81 = vector.shape_cast %80 : vector<1x4x16xf32> to vector<4x16xf32>
    %82 = arith.truncf %81 : vector<4x16xf32> to vector<4x16xbf16>
    %c6 = arith.constant 6 : index
    %c0_51 = arith.constant 0 : index
    %c0_52 = arith.constant 0 : index
    %83 = vector.load %arg3[%c6, %c0_51, %c0_52] : memref<9x16x64xf32, #tpu.memory_space<vmem>>, vector<1x16x64xf32>
    %84 = vector.shape_cast %83 : vector<1x16x64xf32> to vector<16x64xf32>
    %85 = arith.truncf %84 : vector<16x64xf32> to vector<16x64xbf16>
    %cst_53 = arith.constant dense<0.000000e+00> : vector<4x64xf32>
    %86 = tpu.matmul %82, %85, %cst_53 {dimension_numbers = #tpu.dot_dimension_numbers<[1], [0], [0], [1], [0, 0, 1, 1], [], []>} : vector<4x16xbf16>, vector<16x64xbf16>, vector<4x64xf32> -> vector<4x64xf32>
    %87 = arith.addf %75, %86 : vector<4x64xf32>
    %c2_i32_54 = arith.constant 2 : i32
    %88 = arith.addi %arg1, %c2_i32_54 : i32
    %c6_i32_55 = arith.constant 6 : i32
    %89 = arith.muli %88, %c6_i32_55 : i32
    %c1_i32_56 = arith.constant 1 : i32
    %90 = arith.addi %89, %c1_i32_56 : i32
    %c0_57 = arith.constant 0 : index
    %91 = arith.index_cast %90 : i32 to index
    %c0_58 = arith.constant 0 : index
    %92 = vector.load %arg2[%c0_57, %91, %c0_58] : memref<1x36x16xf32, #tpu.memory_space<vmem>>, vector<1x4x16xf32>
    %93 = vector.shape_cast %92 : vector<1x4x16xf32> to vector<4x16xf32>
    %94 = arith.truncf %93 : vector<4x16xf32> to vector<4x16xbf16>
    %c7 = arith.constant 7 : index
    %c0_59 = arith.constant 0 : index
    %c0_60 = arith.constant 0 : index
    %95 = vector.load %arg3[%c7, %c0_59, %c0_60] : memref<9x16x64xf32, #tpu.memory_space<vmem>>, vector<1x16x64xf32>
    %96 = vector.shape_cast %95 : vector<1x16x64xf32> to vector<16x64xf32>
    %97 = arith.truncf %96 : vector<16x64xf32> to vector<16x64xbf16>
    %cst_61 = arith.constant dense<0.000000e+00> : vector<4x64xf32>
    %98 = tpu.matmul %94, %97, %cst_61 {dimension_numbers = #tpu.dot_dimension_numbers<[1], [0], [0], [1], [0, 0, 1, 1], [], []>} : vector<4x16xbf16>, vector<16x64xbf16>, vector<4x64xf32> -> vector<4x64xf32>
    %99 = arith.addf %87, %98 : vector<4x64xf32>
    %c2_i32_62 = arith.constant 2 : i32
    %100 = arith.addi %arg1, %c2_i32_62 : i32
    %c6_i32_63 = arith.constant 6 : i32
    %101 = arith.muli %100, %c6_i32_63 : i32
    %c2_i32_64 = arith.constant 2 : i32
    %102 = arith.addi %101, %c2_i32_64 : i32
    %c0_65 = arith.constant 0 : index
    %103 = arith.index_cast %102 : i32 to index
    %c0_66 = arith.constant 0 : index
    %104 = vector.load %arg2[%c0_65, %103, %c0_66] : memref<1x36x16xf32, #tpu.memory_space<vmem>>, vector<1x4x16xf32>
    %105 = vector.shape_cast %104 : vector<1x4x16xf32> to vector<4x16xf32>
    %106 = arith.truncf %105 : vector<4x16xf32> to vector<4x16xbf16>
    %c8 = arith.constant 8 : index
    %c0_67 = arith.constant 0 : index
    %c0_68 = arith.constant 0 : index
    %107 = vector.load %arg3[%c8, %c0_67, %c0_68] : memref<9x16x64xf32, #tpu.memory_space<vmem>>, vector<1x16x64xf32>
    %108 = vector.shape_cast %107 : vector<1x16x64xf32> to vector<16x64xf32>
    %109 = arith.truncf %108 : vector<16x64xf32> to vector<16x64xbf16>
    %cst_69 = arith.constant dense<0.000000e+00> : vector<4x64xf32>
    %110 = tpu.matmul %106, %109, %cst_69 {dimension_numbers = #tpu.dot_dimension_numbers<[1], [0], [0], [1], [0, 0, 1, 1], [], []>} : vector<4x16xbf16>, vector<16x64xbf16>, vector<4x64xf32> -> vector<4x64xf32>
    %111 = arith.addf %99, %110 : vector<4x64xf32>
    %c0_70 = arith.constant 0 : index
    %c0_71 = arith.constant 0 : index
    %112 = vector.load %arg4[%c0_70, %c0_71] : memref<1x64xf32, #tpu.memory_space<vmem>>, vector<1x64xf32>
    %113 = vector.broadcast %112 : vector<1x64xf32> to vector<4x64xf32>
    %114 = arith.addf %111, %113 : vector<4x64xf32>
    %c0_72 = arith.constant 0 : index
    %c0_73 = arith.constant 0 : index
    %c0_74 = arith.constant 0 : index
    %c0_75 = arith.constant 0 : index
    %115 = vector.load %arg5[%c0_72, %c0_73, %c0_74, %c0_75] : memref<1x1x4x64xf32, #tpu.memory_space<vmem>>, vector<1x1x4x64xf32>
    %116 = vector.shape_cast %115 : vector<1x1x4x64xf32> to vector<4x64xf32>
    %117 = vector.shape_cast %114 : vector<4x64xf32> to vector<1x1x4x64xf32>
    tpu.vector_store %arg5[%c0_72, %c0_73, %c0_74, %c0_75], %117 {strides = array<i32>} : memref<1x1x4x64xf32, #tpu.memory_space<vmem>>, vector<1x1x4x64xf32>,
    %c0_76 = arith.constant 0 : index
    %c0_77 = arith.constant 0 : index
    %c0_78 = arith.constant 0 : index
    %118 = vector.load %arg6[%c0_76, %c0_77, %c0_78] : memref<1x2x64xf32, #tpu.memory_space<vmem>>, vector<1x1x64xf32>
    %119 = vector.shape_cast %118 : vector<1x1x64xf32> to vector<1x64xf32>
    %cst_79 = arith.constant dense<0.000000e+00> : vector<64xf32>
    %120 = vector.multi_reduction <add>, %114, %cst_79 [0] : vector<4x64xf32> to vector<64xf32>
    %121 = vector.shape_cast %120 : vector<64xf32> to vector<1x64xf32>
    %122 = arith.addf %119, %121 : vector<1x64xf32>
    %c0_80 = arith.constant 0 : index
    %c0_81 = arith.constant 0 : index
    %c0_82 = arith.constant 0 : index
    %123 = vector.load %arg6[%c0_80, %c0_81, %c0_82] : memref<1x2x64xf32, #tpu.memory_space<vmem>>, vector<1x1x64xf32>
    %124 = vector.shape_cast %123 : vector<1x1x64xf32> to vector<1x64xf32>
    %125 = vector.shape_cast %122 : vector<1x64xf32> to vector<1x1x64xf32>
    tpu.vector_store %arg6[%c0_80, %c0_81, %c0_82], %125 {strides = array<i32>} : memref<1x2x64xf32, #tpu.memory_space<vmem>>, vector<1x1x64xf32>,
    %c0_83 = arith.constant 0 : index
    %c1_84 = arith.constant 1 : index
    %c0_85 = arith.constant 0 : index
    %126 = vector.load %arg6[%c0_83, %c1_84, %c0_85] : memref<1x2x64xf32, #tpu.memory_space<vmem>>, vector<1x1x64xf32>
    %127 = vector.shape_cast %126 : vector<1x1x64xf32> to vector<1x64xf32>
    %128 = arith.mulf %114, %114 : vector<4x64xf32>
    %cst_86 = arith.constant dense<0.000000e+00> : vector<64xf32>
    %129 = vector.multi_reduction <add>, %128, %cst_86 [0] : vector<4x64xf32> to vector<64xf32>
    %130 = vector.shape_cast %129 : vector<64xf32> to vector<1x64xf32>
    %131 = arith.addf %127, %130 : vector<1x64xf32>
    %c0_87 = arith.constant 0 : index
    %c1_88 = arith.constant 1 : index
    %c0_89 = arith.constant 0 : index
    %132 = vector.load %arg6[%c0_87, %c1_88, %c0_89] : memref<1x2x64xf32, #tpu.memory_space<vmem>>, vector<1x1x64xf32>
    %133 = vector.shape_cast %132 : vector<1x1x64xf32> to vector<1x64xf32>
    %134 = vector.shape_cast %131 : vector<1x64xf32> to vector<1x1x64xf32>
    tpu.vector_store %arg6[%c0_87, %c1_88, %c0_89], %134 {strides = array<i32>} : memref<1x2x64xf32, #tpu.memory_space<vmem>>, vector<1x1x64xf32>,
    return
  }
  func.func @transform_0(%arg0: i32, %arg1: i32) -> (i32, i32, i32) {
    %c0_i32 = arith.constant 0 : i32
    %c0_i32_0 = arith.constant 0 : i32
    %c0_i32_1 = arith.constant 0 : i32
    return %arg0, %c0_i32, %c0_i32_0 : i32, i32, i32
  }
  func.func @transform_1(%arg0: i32, %arg1: i32) -> (i32, i32, i32) {
    %c0_i32 = arith.constant 0 : i32
    %c0_i32_0 = arith.constant 0 : i32
    %c0_i32_1 = arith.constant 0 : i32
    %c0_i32_2 = arith.constant 0 : i32
    return %c0_i32, %c0_i32_0, %c0_i32_1 : i32, i32, i32
  }
  func.func @transform_2(%arg0: i32, %arg1: i32) -> (i32, i32) {
    %c0_i32 = arith.constant 0 : i32
    %c0_i32_0 = arith.constant 0 : i32
    %c0_i32_1 = arith.constant 0 : i32
    return %c0_i32, %c0_i32_0 : i32, i32
  }
  func.func @transform_3(%arg0: i32, %arg1: i32) -> (i32, i32, i32, i32) {
    %c0_i32 = arith.constant 0 : i32
    %c0_i32_0 = arith.constant 0 : i32
    %c0_i32_1 = arith.constant 0 : i32
    return %arg0, %arg1, %c0_i32, %c0_i32_0 : i32, i32, i32, i32
  }
  func.func @transform_4(%arg0: i32, %arg1: i32) -> (i32, i32, i32) {
    %c0_i32 = arith.constant 0 : i32
    %c0_i32_0 = arith.constant 0 : i32
    %c0_i32_1 = arith.constant 0 : i32
    return %arg0, %c0_i32, %c0_i32_0 : i32, i32, i32
  }
}

module attributes {stable_mosaic.version = 11 : i64} {
  func.func @_affine_silu_kernel(%arg0: i32, %arg1: memref<16x128xf32, #tpu.memory_space<vmem>>, %arg2: memref<1x128xf32, #tpu.memory_space<vmem>>, %arg3: memref<1x128xf32, #tpu.memory_space<vmem>>, %arg4: memref<16x128xf32, #tpu.memory_space<vmem>>) attributes {dimension_semantics = [#tpu.dimension_semantics<parallel>], iteration_bounds = array<i64: 1>, scalar_prefetch = 0 : i64, scratch_operands = 0 : i64, tpu.core_type = #tpu.core_type<tc>, window_params = [{transform_indices = @transform_0, window_bounds = array<i64: 16, 128>}, {pipeline_mode = #tpu.pipeline_mode<synchronous>, transform_indices = @transform_1, window_bounds = array<i64: 1, 128>}, {pipeline_mode = #tpu.pipeline_mode<synchronous>, transform_indices = @transform_2, window_bounds = array<i64: 1, 128>}, {transform_indices = @transform_3, window_bounds = array<i64: 16, 128>}]} {
    %c0 = arith.constant 0 : index
    %c0_0 = arith.constant 0 : index
    %0 = vector.load %arg1[%c0, %c0_0] : memref<16x128xf32, #tpu.memory_space<vmem>>, vector<16x128xf32>
    %c0_1 = arith.constant 0 : index
    %c0_2 = arith.constant 0 : index
    %1 = vector.load %arg2[%c0_1, %c0_2] : memref<1x128xf32, #tpu.memory_space<vmem>>, vector<1x128xf32>
    %2 = vector.broadcast %1 : vector<1x128xf32> to vector<16x128xf32>
    %3 = arith.mulf %0, %2 : vector<16x128xf32>
    %c0_3 = arith.constant 0 : index
    %c0_4 = arith.constant 0 : index
    %4 = vector.load %arg3[%c0_3, %c0_4] : memref<1x128xf32, #tpu.memory_space<vmem>>, vector<1x128xf32>
    %5 = vector.broadcast %4 : vector<1x128xf32> to vector<16x128xf32>
    %6 = arith.addf %3, %5 : vector<16x128xf32>
    %cst = arith.constant 0.000000e+00 : f32
    %7 = vector.broadcast %cst : f32 to vector<16x128xf32>
    %8 = arith.subf %7, %6 : vector<16x128xf32>
    %9 = math.exp %8 : vector<16x128xf32>
    %cst_5 = arith.constant 1.000000e+00 : f32
    %10 = vector.broadcast %cst_5 : f32 to vector<16x128xf32>
    %11 = arith.addf %10, %9 : vector<16x128xf32>
    %12 = tpu.reciprocal %11 {approx = true} : vector<16x128xf32> -> vector<16x128xf32>
    %13 = arith.mulf %6, %12 : vector<16x128xf32>
    %c0_6 = arith.constant 0 : index
    %c0_7 = arith.constant 0 : index
    %14 = vector.load %arg4[%c0_6, %c0_7] : memref<16x128xf32, #tpu.memory_space<vmem>>, vector<16x128xf32>
    tpu.vector_store %arg4[%c0_6, %c0_7], %13 {strides = array<i32>} : memref<16x128xf32, #tpu.memory_space<vmem>>, vector<16x128xf32>,
    return
  }
  func.func @transform_0(%arg0: i32) -> (i32, i32) {
    %c0_i32 = arith.constant 0 : i32
    %c0_i32_0 = arith.constant 0 : i32
    return %arg0, %c0_i32 : i32, i32
  }
  func.func @transform_1(%arg0: i32) -> (i32, i32) {
    %c0_i32 = arith.constant 0 : i32
    %c0_i32_0 = arith.constant 0 : i32
    %c0_i32_1 = arith.constant 0 : i32
    return %c0_i32, %c0_i32_0 : i32, i32
  }
  func.func @transform_2(%arg0: i32) -> (i32, i32) {
    %c0_i32 = arith.constant 0 : i32
    %c0_i32_0 = arith.constant 0 : i32
    %c0_i32_1 = arith.constant 0 : i32
    return %c0_i32, %c0_i32_0 : i32, i32
  }
  func.func @transform_3(%arg0: i32) -> (i32, i32) {
    %c0_i32 = arith.constant 0 : i32
    %c0_i32_0 = arith.constant 0 : i32
    return %arg0, %c0_i32 : i32, i32
  }
}

module attributes {stable_mosaic.version = 11 : i64} {
  func.func @_interp_rows_kernel(%arg0: i32, %arg1: memref<8x4xf32, #tpu.memory_space<vmem>>, %arg2: memref<1x4x256xf32, #tpu.memory_space<vmem>>, %arg3: memref<1x8x256xf32, #tpu.memory_space<vmem>>) attributes {dimension_semantics = [#tpu.dimension_semantics<parallel>], iteration_bounds = array<i64: 2>, scalar_prefetch = 0 : i64, scratch_operands = 0 : i64, tpu.core_type = #tpu.core_type<tc>, window_params = [{pipeline_mode = #tpu.pipeline_mode<synchronous>, transform_indices = @transform_0, window_bounds = array<i64: 8, 4>}, {transform_indices = @transform_1, window_bounds = array<i64: 1, 4, 256>}, {transform_indices = @transform_2, window_bounds = array<i64: 1, 8, 256>}]} {
    %c0 = arith.constant 0 : index
    %c0_0 = arith.constant 0 : index
    %0 = vector.load %arg1[%c0, %c0_0] : memref<8x4xf32, #tpu.memory_space<vmem>>, vector<8x4xf32>
    %c0_1 = arith.constant 0 : index
    %c0_2 = arith.constant 0 : index
    %c0_3 = arith.constant 0 : index
    %1 = vector.load %arg2[%c0_1, %c0_2, %c0_3] : memref<1x4x256xf32, #tpu.memory_space<vmem>>, vector<1x4x256xf32>
    %2 = vector.shape_cast %1 : vector<1x4x256xf32> to vector<4x256xf32>
    %cst = arith.constant dense<0.000000e+00> : vector<8x256xf32>
    %3 = tpu.matmul %0, %2, %cst {dimension_numbers = #tpu.dot_dimension_numbers<[1], [0], [0], [1], [0, 0, 1, 1], [], []>} : vector<8x4xf32>, vector<4x256xf32>, vector<8x256xf32> -> vector<8x256xf32>
    %c0_4 = arith.constant 0 : index
    %c0_5 = arith.constant 0 : index
    %c0_6 = arith.constant 0 : index
    %4 = vector.load %arg3[%c0_4, %c0_5, %c0_6] : memref<1x8x256xf32, #tpu.memory_space<vmem>>, vector<1x8x256xf32>
    %5 = vector.shape_cast %4 : vector<1x8x256xf32> to vector<8x256xf32>
    %6 = vector.shape_cast %3 : vector<8x256xf32> to vector<1x8x256xf32>
    tpu.vector_store %arg3[%c0_4, %c0_5, %c0_6], %6 {strides = array<i32>} : memref<1x8x256xf32, #tpu.memory_space<vmem>>, vector<1x8x256xf32>,
    return
  }
  func.func @transform_0(%arg0: i32) -> (i32, i32) {
    %c0_i32 = arith.constant 0 : i32
    %c0_i32_0 = arith.constant 0 : i32
    %c0_i32_1 = arith.constant 0 : i32
    return %c0_i32, %c0_i32_0 : i32, i32
  }
  func.func @transform_1(%arg0: i32) -> (i32, i32, i32) {
    %c0_i32 = arith.constant 0 : i32
    %c0_i32_0 = arith.constant 0 : i32
    %c0_i32_1 = arith.constant 0 : i32
    return %arg0, %c0_i32, %c0_i32_0 : i32, i32, i32
  }
  func.func @transform_2(%arg0: i32) -> (i32, i32, i32) {
    %c0_i32 = arith.constant 0 : i32
    %c0_i32_0 = arith.constant 0 : i32
    %c0_i32_1 = arith.constant 0 : i32
    return %arg0, %c0_i32, %c0_i32_0 : i32, i32, i32
  }
}

module attributes {stable_mosaic.version = 11 : i64} {
  func.func @_interp_cols_kernel(%arg0: i32, %arg1: memref<8x4xf32, #tpu.memory_space<vmem>>, %arg2: memref<4x4x64xf32, #tpu.memory_space<vmem>>, %arg3: memref<4x8x64xf32, #tpu.memory_space<vmem>>) attributes {dimension_semantics = [#tpu.dimension_semantics<parallel>], iteration_bounds = array<i64: 4>, scalar_prefetch = 0 : i64, scratch_operands = 0 : i64, tpu.core_type = #tpu.core_type<tc>, window_params = [{pipeline_mode = #tpu.pipeline_mode<synchronous>, transform_indices = @transform_0, window_bounds = array<i64: 8, 4>}, {transform_indices = @transform_1, window_bounds = array<i64: 4, 4, 64>}, {transform_indices = @transform_2, window_bounds = array<i64: 4, 8, 64>}]} {
    %c0 = arith.constant 0 : index
    %c0_0 = arith.constant 0 : index
    %0 = vector.load %arg1[%c0, %c0_0] : memref<8x4xf32, #tpu.memory_space<vmem>>, vector<8x4xf32>
    %c0_1 = arith.constant 0 : index
    %c0_2 = arith.constant 0 : index
    %c0_3 = arith.constant 0 : index
    %1 = vector.load %arg2[%c0_1, %c0_2, %c0_3] : memref<4x4x64xf32, #tpu.memory_space<vmem>>, vector<1x4x64xf32>
    %2 = vector.shape_cast %1 : vector<1x4x64xf32> to vector<4x64xf32>
    %cst = arith.constant dense<0.000000e+00> : vector<8x64xf32>
    %3 = tpu.matmul %0, %2, %cst {dimension_numbers = #tpu.dot_dimension_numbers<[1], [0], [0], [1], [0, 0, 1, 1], [], []>} : vector<8x4xf32>, vector<4x64xf32>, vector<8x64xf32> -> vector<8x64xf32>
    %c0_4 = arith.constant 0 : index
    %c0_5 = arith.constant 0 : index
    %c0_6 = arith.constant 0 : index
    %4 = vector.load %arg3[%c0_4, %c0_5, %c0_6] : memref<4x8x64xf32, #tpu.memory_space<vmem>>, vector<1x8x64xf32>
    %5 = vector.shape_cast %4 : vector<1x8x64xf32> to vector<8x64xf32>
    %6 = vector.shape_cast %3 : vector<8x64xf32> to vector<1x8x64xf32>
    tpu.vector_store %arg3[%c0_4, %c0_5, %c0_6], %6 {strides = array<i32>} : memref<4x8x64xf32, #tpu.memory_space<vmem>>, vector<1x8x64xf32>,
    %c1 = arith.constant 1 : index
    %c0_7 = arith.constant 0 : index
    %c0_8 = arith.constant 0 : index
    %7 = vector.load %arg2[%c1, %c0_7, %c0_8] : memref<4x4x64xf32, #tpu.memory_space<vmem>>, vector<1x4x64xf32>
    %8 = vector.shape_cast %7 : vector<1x4x64xf32> to vector<4x64xf32>
    %cst_9 = arith.constant dense<0.000000e+00> : vector<8x64xf32>
    %9 = tpu.matmul %0, %8, %cst_9 {dimension_numbers = #tpu.dot_dimension_numbers<[1], [0], [0], [1], [0, 0, 1, 1], [], []>} : vector<8x4xf32>, vector<4x64xf32>, vector<8x64xf32> -> vector<8x64xf32>
    %c1_10 = arith.constant 1 : index
    %c0_11 = arith.constant 0 : index
    %c0_12 = arith.constant 0 : index
    %10 = vector.load %arg3[%c1_10, %c0_11, %c0_12] : memref<4x8x64xf32, #tpu.memory_space<vmem>>, vector<1x8x64xf32>
    %11 = vector.shape_cast %10 : vector<1x8x64xf32> to vector<8x64xf32>
    %12 = vector.shape_cast %9 : vector<8x64xf32> to vector<1x8x64xf32>
    tpu.vector_store %arg3[%c1_10, %c0_11, %c0_12], %12 {strides = array<i32>} : memref<4x8x64xf32, #tpu.memory_space<vmem>>, vector<1x8x64xf32>,
    %c2 = arith.constant 2 : index
    %c0_13 = arith.constant 0 : index
    %c0_14 = arith.constant 0 : index
    %13 = vector.load %arg2[%c2, %c0_13, %c0_14] : memref<4x4x64xf32, #tpu.memory_space<vmem>>, vector<1x4x64xf32>
    %14 = vector.shape_cast %13 : vector<1x4x64xf32> to vector<4x64xf32>
    %cst_15 = arith.constant dense<0.000000e+00> : vector<8x64xf32>
    %15 = tpu.matmul %0, %14, %cst_15 {dimension_numbers = #tpu.dot_dimension_numbers<[1], [0], [0], [1], [0, 0, 1, 1], [], []>} : vector<8x4xf32>, vector<4x64xf32>, vector<8x64xf32> -> vector<8x64xf32>
    %c2_16 = arith.constant 2 : index
    %c0_17 = arith.constant 0 : index
    %c0_18 = arith.constant 0 : index
    %16 = vector.load %arg3[%c2_16, %c0_17, %c0_18] : memref<4x8x64xf32, #tpu.memory_space<vmem>>, vector<1x8x64xf32>
    %17 = vector.shape_cast %16 : vector<1x8x64xf32> to vector<8x64xf32>
    %18 = vector.shape_cast %15 : vector<8x64xf32> to vector<1x8x64xf32>
    tpu.vector_store %arg3[%c2_16, %c0_17, %c0_18], %18 {strides = array<i32>} : memref<4x8x64xf32, #tpu.memory_space<vmem>>, vector<1x8x64xf32>,
    %c3 = arith.constant 3 : index
    %c0_19 = arith.constant 0 : index
    %c0_20 = arith.constant 0 : index
    %19 = vector.load %arg2[%c3, %c0_19, %c0_20] : memref<4x4x64xf32, #tpu.memory_space<vmem>>, vector<1x4x64xf32>
    %20 = vector.shape_cast %19 : vector<1x4x64xf32> to vector<4x64xf32>
    %cst_21 = arith.constant dense<0.000000e+00> : vector<8x64xf32>
    %21 = tpu.matmul %0, %20, %cst_21 {dimension_numbers = #tpu.dot_dimension_numbers<[1], [0], [0], [1], [0, 0, 1, 1], [], []>} : vector<8x4xf32>, vector<4x64xf32>, vector<8x64xf32> -> vector<8x64xf32>
    %c3_22 = arith.constant 3 : index
    %c0_23 = arith.constant 0 : index
    %c0_24 = arith.constant 0 : index
    %22 = vector.load %arg3[%c3_22, %c0_23, %c0_24] : memref<4x8x64xf32, #tpu.memory_space<vmem>>, vector<1x8x64xf32>
    %23 = vector.shape_cast %22 : vector<1x8x64xf32> to vector<8x64xf32>
    %24 = vector.shape_cast %21 : vector<8x64xf32> to vector<1x8x64xf32>
    tpu.vector_store %arg3[%c3_22, %c0_23, %c0_24], %24 {strides = array<i32>} : memref<4x8x64xf32, #tpu.memory_space<vmem>>, vector<1x8x64xf32>,
    return
  }
  func.func @transform_0(%arg0: i32) -> (i32, i32) {
    %c0_i32 = arith.constant 0 : i32
    %c0_i32_0 = arith.constant 0 : i32
    %c0_i32_1 = arith.constant 0 : i32
    return %c0_i32, %c0_i32_0 : i32, i32
  }
  func.func @transform_1(%arg0: i32) -> (i32, i32, i32) {
    %c0_i32 = arith.constant 0 : i32
    %c0_i32_0 = arith.constant 0 : i32
    %c0_i32_1 = arith.constant 0 : i32
    return %arg0, %c0_i32, %c0_i32_0 : i32, i32, i32
  }
  func.func @transform_2(%arg0: i32) -> (i32, i32, i32) {
    %c0_i32 = arith.constant 0 : i32
    %c0_i32_0 = arith.constant 0 : i32
    %c0_i32_1 = arith.constant 0 : i32
    return %arg0, %c0_i32, %c0_i32_0 : i32, i32, i32
  }
}

module attributes {stable_mosaic.version = 11 : i64} {
  func.func @_conv3x3_row_kernel(%arg0: i32, %arg1: i32, %arg2: memref<1x100x64xf32, #tpu.memory_space<vmem>>, %arg3: memref<9x64x64xf32, #tpu.memory_space<vmem>>, %arg4: memref<1x64xf32, #tpu.memory_space<vmem>>, %arg5: memref<1x1x8x64xf32, #tpu.memory_space<vmem>>, %arg6: memref<1x2x64xf32, #tpu.memory_space<vmem>>) attributes {dimension_semantics = [#tpu.dimension_semantics<parallel>, #tpu.dimension_semantics<arbitrary>], iteration_bounds = array<i64: 2, 8>, scalar_prefetch = 0 : i64, scratch_operands = 0 : i64, tpu.core_type = #tpu.core_type<tc>, window_params = [{transform_indices = @transform_0, window_bounds = array<i64: 1, 100, 64>}, {pipeline_mode = #tpu.pipeline_mode<synchronous>, transform_indices = @transform_1, window_bounds = array<i64: 9, 64, 64>}, {pipeline_mode = #tpu.pipeline_mode<synchronous>, transform_indices = @transform_2, window_bounds = array<i64: 1, 64>}, {transform_indices = @transform_3, window_bounds = array<i64: 1, 1, 8, 64>}, {transform_indices = @transform_4, window_bounds = array<i64: 1, 2, 64>}]} {
    %c0_i32 = arith.constant 0 : i32
    %0 = arith.cmpi eq, %arg1, %c0_i32 : i32
    %1 = arith.extui %0 : i1 to i32
    %c0_i32_0 = arith.constant 0 : i32
    %2 = arith.cmpi ne, %1, %c0_i32_0 : i32
    scf.if %2 {
      %cst_90 = arith.constant 0.000000e+00 : f32
      %135 = vector.broadcast %cst_90 : f32 to vector<1x2x64xf32>
      %c0_91 = arith.constant 0 : index
      %c0_92 = arith.constant 0 : index
      %c0_93 = arith.constant 0 : index
      %136 = vector.load %arg6[%c0_91, %c0_92, %c0_93] : memref<1x2x64xf32, #tpu.memory_space<vmem>>, vector<1x2x64xf32>
      tpu.vector_store %arg6[%c0_91, %c0_92, %c0_93], %135 {strides = array<i32>} : memref<1x2x64xf32, #tpu.memory_space<vmem>>, vector<1x2x64xf32>,
    } else {
    }
    %cst = arith.constant 0.000000e+00 : f32
    %3 = vector.broadcast %cst : f32 to vector<8x64xf32>
    %c0_i32_1 = arith.constant 0 : i32
    %4 = arith.addi %arg1, %c0_i32_1 : i32
    %c10_i32 = arith.constant 10 : i32
    %5 = arith.muli %4, %c10_i32 : i32
    %c0_i32_2 = arith.constant 0 : i32
    %6 = arith.addi %5, %c0_i32_2 : i32
    %c0 = arith.constant 0 : index
    %7 = arith.index_cast %6 : i32 to index
    %c0_3 = arith.constant 0 : index
    %8 = vector.load %arg2[%c0, %7, %c0_3] : memref<1x100x64xf32, #tpu.memory_space<vmem>>, vector<1x8x64xf32>
    %9 = vector.shape_cast %8 : vector<1x8x64xf32> to vector<8x64xf32>
    %10 = arith.truncf %9 : vector<8x64xf32> to vector<8x64xbf16>
    %c0_4 = arith.constant 0 : index
    %c0_5 = arith.constant 0 : index
    %c0_6 = arith.constant 0 : index
    %11 = vector.load %arg3[%c0_4, %c0_5, %c0_6] : memref<9x64x64xf32, #tpu.memory_space<vmem>>, vector<1x64x64xf32>
    %12 = vector.shape_cast %11 : vector<1x64x64xf32> to vector<64x64xf32>
    %13 = arith.truncf %12 : vector<64x64xf32> to vector<64x64xbf16>
    %cst_7 = arith.constant dense<0.000000e+00> : vector<8x64xf32>
    %14 = tpu.matmul %10, %13, %cst_7 {dimension_numbers = #tpu.dot_dimension_numbers<[1], [0], [0], [1], [0, 0, 1, 1], [], []>} : vector<8x64xbf16>, vector<64x64xbf16>, vector<8x64xf32> -> vector<8x64xf32>
    %15 = arith.addf %3, %14 : vector<8x64xf32>
    %c0_i32_8 = arith.constant 0 : i32
    %16 = arith.addi %arg1, %c0_i32_8 : i32
    %c10_i32_9 = arith.constant 10 : i32
    %17 = arith.muli %16, %c10_i32_9 : i32
    %c1_i32 = arith.constant 1 : i32
    %18 = arith.addi %17, %c1_i32 : i32
    %c0_10 = arith.constant 0 : index
    %19 = arith.index_cast %18 : i32 to index
    %c0_11 = arith.constant 0 : index
    %20 = vector.load %arg2[%c0_10, %19, %c0_11] : memref<1x100x64xf32, #tpu.memory_space<vmem>>, vector<1x8x64xf32>
    %21 = vector.shape_cast %20 : vector<1x8x64xf32> to vector<8x64xf32>
    %22 = arith.truncf %21 : vector<8x64xf32> to vector<8x64xbf16>
    %c1 = arith.constant 1 : index
    %c0_12 = arith.constant 0 : index
    %c0_13 = arith.constant 0 : index
    %23 = vector.load %arg3[%c1, %c0_12, %c0_13] : memref<9x64x64xf32, #tpu.memory_space<vmem>>, vector<1x64x64xf32>
    %24 = vector.shape_cast %23 : vector<1x64x64xf32> to vector<64x64xf32>
    %25 = arith.truncf %24 : vector<64x64xf32> to vector<64x64xbf16>
    %cst_14 = arith.constant dense<0.000000e+00> : vector<8x64xf32>
    %26 = tpu.matmul %22, %25, %cst_14 {dimension_numbers = #tpu.dot_dimension_numbers<[1], [0], [0], [1], [0, 0, 1, 1], [], []>} : vector<8x64xbf16>, vector<64x64xbf16>, vector<8x64xf32> -> vector<8x64xf32>
    %27 = arith.addf %15, %26 : vector<8x64xf32>
    %c0_i32_15 = arith.constant 0 : i32
    %28 = arith.addi %arg1, %c0_i32_15 : i32
    %c10_i32_16 = arith.constant 10 : i32
    %29 = arith.muli %28, %c10_i32_16 : i32
    %c2_i32 = arith.constant 2 : i32
    %30 = arith.addi %29, %c2_i32 : i32
    %c0_17 = arith.constant 0 : index
    %31 = arith.index_cast %30 : i32 to index
    %c0_18 = arith.constant 0 : index
    %32 = vector.load %arg2[%c0_17, %31, %c0_18] : memref<1x100x64xf32, #tpu.memory_space<vmem>>, vector<1x8x64xf32>
    %33 = vector.shape_cast %32 : vector<1x8x64xf32> to vector<8x64xf32>
    %34 = arith.truncf %33 : vector<8x64xf32> to vector<8x64xbf16>
    %c2 = arith.constant 2 : index
    %c0_19 = arith.constant 0 : index
    %c0_20 = arith.constant 0 : index
    %35 = vector.load %arg3[%c2, %c0_19, %c0_20] : memref<9x64x64xf32, #tpu.memory_space<vmem>>, vector<1x64x64xf32>
    %36 = vector.shape_cast %35 : vector<1x64x64xf32> to vector<64x64xf32>
    %37 = arith.truncf %36 : vector<64x64xf32> to vector<64x64xbf16>
    %cst_21 = arith.constant dense<0.000000e+00> : vector<8x64xf32>
    %38 = tpu.matmul %34, %37, %cst_21 {dimension_numbers = #tpu.dot_dimension_numbers<[1], [0], [0], [1], [0, 0, 1, 1], [], []>} : vector<8x64xbf16>, vector<64x64xbf16>, vector<8x64xf32> -> vector<8x64xf32>
    %39 = arith.addf %27, %38 : vector<8x64xf32>
    %c1_i32_22 = arith.constant 1 : i32
    %40 = arith.addi %arg1, %c1_i32_22 : i32
    %c10_i32_23 = arith.constant 10 : i32
    %41 = arith.muli %40, %c10_i32_23 : i32
    %c0_i32_24 = arith.constant 0 : i32
    %42 = arith.addi %41, %c0_i32_24 : i32
    %c0_25 = arith.constant 0 : index
    %43 = arith.index_cast %42 : i32 to index
    %c0_26 = arith.constant 0 : index
    %44 = vector.load %arg2[%c0_25, %43, %c0_26] : memref<1x100x64xf32, #tpu.memory_space<vmem>>, vector<1x8x64xf32>
    %45 = vector.shape_cast %44 : vector<1x8x64xf32> to vector<8x64xf32>
    %46 = arith.truncf %45 : vector<8x64xf32> to vector<8x64xbf16>
    %c3 = arith.constant 3 : index
    %c0_27 = arith.constant 0 : index
    %c0_28 = arith.constant 0 : index
    %47 = vector.load %arg3[%c3, %c0_27, %c0_28] : memref<9x64x64xf32, #tpu.memory_space<vmem>>, vector<1x64x64xf32>
    %48 = vector.shape_cast %47 : vector<1x64x64xf32> to vector<64x64xf32>
    %49 = arith.truncf %48 : vector<64x64xf32> to vector<64x64xbf16>
    %cst_29 = arith.constant dense<0.000000e+00> : vector<8x64xf32>
    %50 = tpu.matmul %46, %49, %cst_29 {dimension_numbers = #tpu.dot_dimension_numbers<[1], [0], [0], [1], [0, 0, 1, 1], [], []>} : vector<8x64xbf16>, vector<64x64xbf16>, vector<8x64xf32> -> vector<8x64xf32>
    %51 = arith.addf %39, %50 : vector<8x64xf32>
    %c1_i32_30 = arith.constant 1 : i32
    %52 = arith.addi %arg1, %c1_i32_30 : i32
    %c10_i32_31 = arith.constant 10 : i32
    %53 = arith.muli %52, %c10_i32_31 : i32
    %c1_i32_32 = arith.constant 1 : i32
    %54 = arith.addi %53, %c1_i32_32 : i32
    %c0_33 = arith.constant 0 : index
    %55 = arith.index_cast %54 : i32 to index
    %c0_34 = arith.constant 0 : index
    %56 = vector.load %arg2[%c0_33, %55, %c0_34] : memref<1x100x64xf32, #tpu.memory_space<vmem>>, vector<1x8x64xf32>
    %57 = vector.shape_cast %56 : vector<1x8x64xf32> to vector<8x64xf32>
    %58 = arith.truncf %57 : vector<8x64xf32> to vector<8x64xbf16>
    %c4 = arith.constant 4 : index
    %c0_35 = arith.constant 0 : index
    %c0_36 = arith.constant 0 : index
    %59 = vector.load %arg3[%c4, %c0_35, %c0_36] : memref<9x64x64xf32, #tpu.memory_space<vmem>>, vector<1x64x64xf32>
    %60 = vector.shape_cast %59 : vector<1x64x64xf32> to vector<64x64xf32>
    %61 = arith.truncf %60 : vector<64x64xf32> to vector<64x64xbf16>
    %cst_37 = arith.constant dense<0.000000e+00> : vector<8x64xf32>
    %62 = tpu.matmul %58, %61, %cst_37 {dimension_numbers = #tpu.dot_dimension_numbers<[1], [0], [0], [1], [0, 0, 1, 1], [], []>} : vector<8x64xbf16>, vector<64x64xbf16>, vector<8x64xf32> -> vector<8x64xf32>
    %63 = arith.addf %51, %62 : vector<8x64xf32>
    %c1_i32_38 = arith.constant 1 : i32
    %64 = arith.addi %arg1, %c1_i32_38 : i32
    %c10_i32_39 = arith.constant 10 : i32
    %65 = arith.muli %64, %c10_i32_39 : i32
    %c2_i32_40 = arith.constant 2 : i32
    %66 = arith.addi %65, %c2_i32_40 : i32
    %c0_41 = arith.constant 0 : index
    %67 = arith.index_cast %66 : i32 to index
    %c0_42 = arith.constant 0 : index
    %68 = vector.load %arg2[%c0_41, %67, %c0_42] : memref<1x100x64xf32, #tpu.memory_space<vmem>>, vector<1x8x64xf32>
    %69 = vector.shape_cast %68 : vector<1x8x64xf32> to vector<8x64xf32>
    %70 = arith.truncf %69 : vector<8x64xf32> to vector<8x64xbf16>
    %c5 = arith.constant 5 : index
    %c0_43 = arith.constant 0 : index
    %c0_44 = arith.constant 0 : index
    %71 = vector.load %arg3[%c5, %c0_43, %c0_44] : memref<9x64x64xf32, #tpu.memory_space<vmem>>, vector<1x64x64xf32>
    %72 = vector.shape_cast %71 : vector<1x64x64xf32> to vector<64x64xf32>
    %73 = arith.truncf %72 : vector<64x64xf32> to vector<64x64xbf16>
    %cst_45 = arith.constant dense<0.000000e+00> : vector<8x64xf32>
    %74 = tpu.matmul %70, %73, %cst_45 {dimension_numbers = #tpu.dot_dimension_numbers<[1], [0], [0], [1], [0, 0, 1, 1], [], []>} : vector<8x64xbf16>, vector<64x64xbf16>, vector<8x64xf32> -> vector<8x64xf32>
    %75 = arith.addf %63, %74 : vector<8x64xf32>
    %c2_i32_46 = arith.constant 2 : i32
    %76 = arith.addi %arg1, %c2_i32_46 : i32
    %c10_i32_47 = arith.constant 10 : i32
    %77 = arith.muli %76, %c10_i32_47 : i32
    %c0_i32_48 = arith.constant 0 : i32
    %78 = arith.addi %77, %c0_i32_48 : i32
    %c0_49 = arith.constant 0 : index
    %79 = arith.index_cast %78 : i32 to index
    %c0_50 = arith.constant 0 : index
    %80 = vector.load %arg2[%c0_49, %79, %c0_50] : memref<1x100x64xf32, #tpu.memory_space<vmem>>, vector<1x8x64xf32>
    %81 = vector.shape_cast %80 : vector<1x8x64xf32> to vector<8x64xf32>
    %82 = arith.truncf %81 : vector<8x64xf32> to vector<8x64xbf16>
    %c6 = arith.constant 6 : index
    %c0_51 = arith.constant 0 : index
    %c0_52 = arith.constant 0 : index
    %83 = vector.load %arg3[%c6, %c0_51, %c0_52] : memref<9x64x64xf32, #tpu.memory_space<vmem>>, vector<1x64x64xf32>
    %84 = vector.shape_cast %83 : vector<1x64x64xf32> to vector<64x64xf32>
    %85 = arith.truncf %84 : vector<64x64xf32> to vector<64x64xbf16>
    %cst_53 = arith.constant dense<0.000000e+00> : vector<8x64xf32>
    %86 = tpu.matmul %82, %85, %cst_53 {dimension_numbers = #tpu.dot_dimension_numbers<[1], [0], [0], [1], [0, 0, 1, 1], [], []>} : vector<8x64xbf16>, vector<64x64xbf16>, vector<8x64xf32> -> vector<8x64xf32>
    %87 = arith.addf %75, %86 : vector<8x64xf32>
    %c2_i32_54 = arith.constant 2 : i32
    %88 = arith.addi %arg1, %c2_i32_54 : i32
    %c10_i32_55 = arith.constant 10 : i32
    %89 = arith.muli %88, %c10_i32_55 : i32
    %c1_i32_56 = arith.constant 1 : i32
    %90 = arith.addi %89, %c1_i32_56 : i32
    %c0_57 = arith.constant 0 : index
    %91 = arith.index_cast %90 : i32 to index
    %c0_58 = arith.constant 0 : index
    %92 = vector.load %arg2[%c0_57, %91, %c0_58] : memref<1x100x64xf32, #tpu.memory_space<vmem>>, vector<1x8x64xf32>
    %93 = vector.shape_cast %92 : vector<1x8x64xf32> to vector<8x64xf32>
    %94 = arith.truncf %93 : vector<8x64xf32> to vector<8x64xbf16>
    %c7 = arith.constant 7 : index
    %c0_59 = arith.constant 0 : index
    %c0_60 = arith.constant 0 : index
    %95 = vector.load %arg3[%c7, %c0_59, %c0_60] : memref<9x64x64xf32, #tpu.memory_space<vmem>>, vector<1x64x64xf32>
    %96 = vector.shape_cast %95 : vector<1x64x64xf32> to vector<64x64xf32>
    %97 = arith.truncf %96 : vector<64x64xf32> to vector<64x64xbf16>
    %cst_61 = arith.constant dense<0.000000e+00> : vector<8x64xf32>
    %98 = tpu.matmul %94, %97, %cst_61 {dimension_numbers = #tpu.dot_dimension_numbers<[1], [0], [0], [1], [0, 0, 1, 1], [], []>} : vector<8x64xbf16>, vector<64x64xbf16>, vector<8x64xf32> -> vector<8x64xf32>
    %99 = arith.addf %87, %98 : vector<8x64xf32>
    %c2_i32_62 = arith.constant 2 : i32
    %100 = arith.addi %arg1, %c2_i32_62 : i32
    %c10_i32_63 = arith.constant 10 : i32
    %101 = arith.muli %100, %c10_i32_63 : i32
    %c2_i32_64 = arith.constant 2 : i32
    %102 = arith.addi %101, %c2_i32_64 : i32
    %c0_65 = arith.constant 0 : index
    %103 = arith.index_cast %102 : i32 to index
    %c0_66 = arith.constant 0 : index
    %104 = vector.load %arg2[%c0_65, %103, %c0_66] : memref<1x100x64xf32, #tpu.memory_space<vmem>>, vector<1x8x64xf32>
    %105 = vector.shape_cast %104 : vector<1x8x64xf32> to vector<8x64xf32>
    %106 = arith.truncf %105 : vector<8x64xf32> to vector<8x64xbf16>
    %c8 = arith.constant 8 : index
    %c0_67 = arith.constant 0 : index
    %c0_68 = arith.constant 0 : index
    %107 = vector.load %arg3[%c8, %c0_67, %c0_68] : memref<9x64x64xf32, #tpu.memory_space<vmem>>, vector<1x64x64xf32>
    %108 = vector.shape_cast %107 : vector<1x64x64xf32> to vector<64x64xf32>
    %109 = arith.truncf %108 : vector<64x64xf32> to vector<64x64xbf16>
    %cst_69 = arith.constant dense<0.000000e+00> : vector<8x64xf32>
    %110 = tpu.matmul %106, %109, %cst_69 {dimension_numbers = #tpu.dot_dimension_numbers<[1], [0], [0], [1], [0, 0, 1, 1], [], []>} : vector<8x64xbf16>, vector<64x64xbf16>, vector<8x64xf32> -> vector<8x64xf32>
    %111 = arith.addf %99, %110 : vector<8x64xf32>
    %c0_70 = arith.constant 0 : index
    %c0_71 = arith.constant 0 : index
    %112 = vector.load %arg4[%c0_70, %c0_71] : memref<1x64xf32, #tpu.memory_space<vmem>>, vector<1x64xf32>
    %113 = vector.broadcast %112 : vector<1x64xf32> to vector<8x64xf32>
    %114 = arith.addf %111, %113 : vector<8x64xf32>
    %c0_72 = arith.constant 0 : index
    %c0_73 = arith.constant 0 : index
    %c0_74 = arith.constant 0 : index
    %c0_75 = arith.constant 0 : index
    %115 = vector.load %arg5[%c0_72, %c0_73, %c0_74, %c0_75] : memref<1x1x8x64xf32, #tpu.memory_space<vmem>>, vector<1x1x8x64xf32>
    %116 = vector.shape_cast %115 : vector<1x1x8x64xf32> to vector<8x64xf32>
    %117 = vector.shape_cast %114 : vector<8x64xf32> to vector<1x1x8x64xf32>
    tpu.vector_store %arg5[%c0_72, %c0_73, %c0_74, %c0_75], %117 {strides = array<i32>} : memref<1x1x8x64xf32, #tpu.memory_space<vmem>>, vector<1x1x8x64xf32>,
    %c0_76 = arith.constant 0 : index
    %c0_77 = arith.constant 0 : index
    %c0_78 = arith.constant 0 : index
    %118 = vector.load %arg6[%c0_76, %c0_77, %c0_78] : memref<1x2x64xf32, #tpu.memory_space<vmem>>, vector<1x1x64xf32>
    %119 = vector.shape_cast %118 : vector<1x1x64xf32> to vector<1x64xf32>
    %cst_79 = arith.constant dense<0.000000e+00> : vector<64xf32>
    %120 = vector.multi_reduction <add>, %114, %cst_79 [0] : vector<8x64xf32> to vector<64xf32>
    %121 = vector.shape_cast %120 : vector<64xf32> to vector<1x64xf32>
    %122 = arith.addf %119, %121 : vector<1x64xf32>
    %c0_80 = arith.constant 0 : index
    %c0_81 = arith.constant 0 : index
    %c0_82 = arith.constant 0 : index
    %123 = vector.load %arg6[%c0_80, %c0_81, %c0_82] : memref<1x2x64xf32, #tpu.memory_space<vmem>>, vector<1x1x64xf32>
    %124 = vector.shape_cast %123 : vector<1x1x64xf32> to vector<1x64xf32>
    %125 = vector.shape_cast %122 : vector<1x64xf32> to vector<1x1x64xf32>
    tpu.vector_store %arg6[%c0_80, %c0_81, %c0_82], %125 {strides = array<i32>} : memref<1x2x64xf32, #tpu.memory_space<vmem>>, vector<1x1x64xf32>,
    %c0_83 = arith.constant 0 : index
    %c1_84 = arith.constant 1 : index
    %c0_85 = arith.constant 0 : index
    %126 = vector.load %arg6[%c0_83, %c1_84, %c0_85] : memref<1x2x64xf32, #tpu.memory_space<vmem>>, vector<1x1x64xf32>
    %127 = vector.shape_cast %126 : vector<1x1x64xf32> to vector<1x64xf32>
    %128 = arith.mulf %114, %114 : vector<8x64xf32>
    %cst_86 = arith.constant dense<0.000000e+00> : vector<64xf32>
    %129 = vector.multi_reduction <add>, %128, %cst_86 [0] : vector<8x64xf32> to vector<64xf32>
    %130 = vector.shape_cast %129 : vector<64xf32> to vector<1x64xf32>
    %131 = arith.addf %127, %130 : vector<1x64xf32>
    %c0_87 = arith.constant 0 : index
    %c1_88 = arith.constant 1 : index
    %c0_89 = arith.constant 0 : index
    %132 = vector.load %arg6[%c0_87, %c1_88, %c0_89] : memref<1x2x64xf32, #tpu.memory_space<vmem>>, vector<1x1x64xf32>
    %133 = vector.shape_cast %132 : vector<1x1x64xf32> to vector<1x64xf32>
    %134 = vector.shape_cast %131 : vector<1x64xf32> to vector<1x1x64xf32>
    tpu.vector_store %arg6[%c0_87, %c1_88, %c0_89], %134 {strides = array<i32>} : memref<1x2x64xf32, #tpu.memory_space<vmem>>, vector<1x1x64xf32>,
    return
  }
  func.func @transform_0(%arg0: i32, %arg1: i32) -> (i32, i32, i32) {
    %c0_i32 = arith.constant 0 : i32
    %c0_i32_0 = arith.constant 0 : i32
    %c0_i32_1 = arith.constant 0 : i32
    return %arg0, %c0_i32, %c0_i32_0 : i32, i32, i32
  }
  func.func @transform_1(%arg0: i32, %arg1: i32) -> (i32, i32, i32) {
    %c0_i32 = arith.constant 0 : i32
    %c0_i32_0 = arith.constant 0 : i32
    %c0_i32_1 = arith.constant 0 : i32
    %c0_i32_2 = arith.constant 0 : i32
    return %c0_i32, %c0_i32_0, %c0_i32_1 : i32, i32, i32
  }
  func.func @transform_2(%arg0: i32, %arg1: i32) -> (i32, i32) {
    %c0_i32 = arith.constant 0 : i32
    %c0_i32_0 = arith.constant 0 : i32
    %c0_i32_1 = arith.constant 0 : i32
    return %c0_i32, %c0_i32_0 : i32, i32
  }
  func.func @transform_3(%arg0: i32, %arg1: i32) -> (i32, i32, i32, i32) {
    %c0_i32 = arith.constant 0 : i32
    %c0_i32_0 = arith.constant 0 : i32
    %c0_i32_1 = arith.constant 0 : i32
    return %arg0, %arg1, %c0_i32, %c0_i32_0 : i32, i32, i32, i32
  }
  func.func @transform_4(%arg0: i32, %arg1: i32) -> (i32, i32, i32) {
    %c0_i32 = arith.constant 0 : i32
    %c0_i32_0 = arith.constant 0 : i32
    %c0_i32_1 = arith.constant 0 : i32
    return %arg0, %c0_i32, %c0_i32_0 : i32, i32, i32
  }
}

module attributes {stable_mosaic.version = 11 : i64} {
  func.func @_affine_silu_kernel(%arg0: i32, %arg1: memref<64x128xf32, #tpu.memory_space<vmem>>, %arg2: memref<1x128xf32, #tpu.memory_space<vmem>>, %arg3: memref<1x128xf32, #tpu.memory_space<vmem>>, %arg4: memref<64x128xf32, #tpu.memory_space<vmem>>) attributes {dimension_semantics = [#tpu.dimension_semantics<parallel>], iteration_bounds = array<i64: 1>, scalar_prefetch = 0 : i64, scratch_operands = 0 : i64, tpu.core_type = #tpu.core_type<tc>, window_params = [{transform_indices = @transform_0, window_bounds = array<i64: 64, 128>}, {pipeline_mode = #tpu.pipeline_mode<synchronous>, transform_indices = @transform_1, window_bounds = array<i64: 1, 128>}, {pipeline_mode = #tpu.pipeline_mode<synchronous>, transform_indices = @transform_2, window_bounds = array<i64: 1, 128>}, {transform_indices = @transform_3, window_bounds = array<i64: 64, 128>}]} {
    %c0 = arith.constant 0 : index
    %c0_0 = arith.constant 0 : index
    %0 = vector.load %arg1[%c0, %c0_0] : memref<64x128xf32, #tpu.memory_space<vmem>>, vector<64x128xf32>
    %c0_1 = arith.constant 0 : index
    %c0_2 = arith.constant 0 : index
    %1 = vector.load %arg2[%c0_1, %c0_2] : memref<1x128xf32, #tpu.memory_space<vmem>>, vector<1x128xf32>
    %2 = vector.broadcast %1 : vector<1x128xf32> to vector<64x128xf32>
    %3 = arith.mulf %0, %2 : vector<64x128xf32>
    %c0_3 = arith.constant 0 : index
    %c0_4 = arith.constant 0 : index
    %4 = vector.load %arg3[%c0_3, %c0_4] : memref<1x128xf32, #tpu.memory_space<vmem>>, vector<1x128xf32>
    %5 = vector.broadcast %4 : vector<1x128xf32> to vector<64x128xf32>
    %6 = arith.addf %3, %5 : vector<64x128xf32>
    %cst = arith.constant 0.000000e+00 : f32
    %7 = vector.broadcast %cst : f32 to vector<64x128xf32>
    %8 = arith.subf %7, %6 : vector<64x128xf32>
    %9 = math.exp %8 : vector<64x128xf32>
    %cst_5 = arith.constant 1.000000e+00 : f32
    %10 = vector.broadcast %cst_5 : f32 to vector<64x128xf32>
    %11 = arith.addf %10, %9 : vector<64x128xf32>
    %12 = tpu.reciprocal %11 {approx = true} : vector<64x128xf32> -> vector<64x128xf32>
    %13 = arith.mulf %6, %12 : vector<64x128xf32>
    %c0_6 = arith.constant 0 : index
    %c0_7 = arith.constant 0 : index
    %14 = vector.load %arg4[%c0_6, %c0_7] : memref<64x128xf32, #tpu.memory_space<vmem>>, vector<64x128xf32>
    tpu.vector_store %arg4[%c0_6, %c0_7], %13 {strides = array<i32>} : memref<64x128xf32, #tpu.memory_space<vmem>>, vector<64x128xf32>,
    return
  }
  func.func @transform_0(%arg0: i32) -> (i32, i32) {
    %c0_i32 = arith.constant 0 : i32
    %c0_i32_0 = arith.constant 0 : i32
    return %arg0, %c0_i32 : i32, i32
  }
  func.func @transform_1(%arg0: i32) -> (i32, i32) {
    %c0_i32 = arith.constant 0 : i32
    %c0_i32_0 = arith.constant 0 : i32
    %c0_i32_1 = arith.constant 0 : i32
    return %c0_i32, %c0_i32_0 : i32, i32
  }
  func.func @transform_2(%arg0: i32) -> (i32, i32) {
    %c0_i32 = arith.constant 0 : i32
    %c0_i32_0 = arith.constant 0 : i32
    %c0_i32_1 = arith.constant 0 : i32
    return %c0_i32, %c0_i32_0 : i32, i32
  }
  func.func @transform_3(%arg0: i32) -> (i32, i32) {
    %c0_i32 = arith.constant 0 : i32
    %c0_i32_0 = arith.constant 0 : i32
    return %arg0, %c0_i32 : i32, i32
  }
}

module attributes {stable_mosaic.version = 11 : i64} {
  func.func @_affine_residual_kernel(%arg0: i32, %arg1: memref<64x128xf32, #tpu.memory_space<vmem>>, %arg2: memref<64x128xf32, #tpu.memory_space<vmem>>, %arg3: memref<1x128xf32, #tpu.memory_space<vmem>>, %arg4: memref<1x128xf32, #tpu.memory_space<vmem>>, %arg5: memref<64x128xf32, #tpu.memory_space<vmem>>) attributes {dimension_semantics = [#tpu.dimension_semantics<parallel>], iteration_bounds = array<i64: 1>, scalar_prefetch = 0 : i64, scratch_operands = 0 : i64, tpu.core_type = #tpu.core_type<tc>, window_params = [{transform_indices = @transform_0, window_bounds = array<i64: 64, 128>}, {transform_indices = @transform_1, window_bounds = array<i64: 64, 128>}, {pipeline_mode = #tpu.pipeline_mode<synchronous>, transform_indices = @transform_2, window_bounds = array<i64: 1, 128>}, {pipeline_mode = #tpu.pipeline_mode<synchronous>, transform_indices = @transform_3, window_bounds = array<i64: 1, 128>}, {transform_indices = @transform_4, window_bounds = array<i64: 64, 128>}]} {
    %c0 = arith.constant 0 : index
    %c0_0 = arith.constant 0 : index
    %0 = vector.load %arg1[%c0, %c0_0] : memref<64x128xf32, #tpu.memory_space<vmem>>, vector<64x128xf32>
    %c0_1 = arith.constant 0 : index
    %c0_2 = arith.constant 0 : index
    %1 = vector.load %arg3[%c0_1, %c0_2] : memref<1x128xf32, #tpu.memory_space<vmem>>, vector<1x128xf32>
    %2 = vector.broadcast %1 : vector<1x128xf32> to vector<64x128xf32>
    %3 = arith.mulf %0, %2 : vector<64x128xf32>
    %c0_3 = arith.constant 0 : index
    %c0_4 = arith.constant 0 : index
    %4 = vector.load %arg4[%c0_3, %c0_4] : memref<1x128xf32, #tpu.memory_space<vmem>>, vector<1x128xf32>
    %5 = vector.broadcast %4 : vector<1x128xf32> to vector<64x128xf32>
    %6 = arith.addf %3, %5 : vector<64x128xf32>
    %c0_5 = arith.constant 0 : index
    %c0_6 = arith.constant 0 : index
    %7 = vector.load %arg2[%c0_5, %c0_6] : memref<64x128xf32, #tpu.memory_space<vmem>>, vector<64x128xf32>
    %8 = arith.addf %6, %7 : vector<64x128xf32>
    %c0_7 = arith.constant 0 : index
    %c0_8 = arith.constant 0 : index
    %9 = vector.load %arg5[%c0_7, %c0_8] : memref<64x128xf32, #tpu.memory_space<vmem>>, vector<64x128xf32>
    tpu.vector_store %arg5[%c0_7, %c0_8], %8 {strides = array<i32>} : memref<64x128xf32, #tpu.memory_space<vmem>>, vector<64x128xf32>,
    return
  }
  func.func @transform_0(%arg0: i32) -> (i32, i32) {
    %c0_i32 = arith.constant 0 : i32
    %c0_i32_0 = arith.constant 0 : i32
    return %arg0, %c0_i32 : i32, i32
  }
  func.func @transform_1(%arg0: i32) -> (i32, i32) {
    %c0_i32 = arith.constant 0 : i32
    %c0_i32_0 = arith.constant 0 : i32
    return %arg0, %c0_i32 : i32, i32
  }
  func.func @transform_2(%arg0: i32) -> (i32, i32) {
    %c0_i32 = arith.constant 0 : i32
    %c0_i32_0 = arith.constant 0 : i32
    %c0_i32_1 = arith.constant 0 : i32
    return %c0_i32, %c0_i32_0 : i32, i32
  }
  func.func @transform_3(%arg0: i32) -> (i32, i32) {
    %c0_i32 = arith.constant 0 : i32
    %c0_i32_0 = arith.constant 0 : i32
    %c0_i32_1 = arith.constant 0 : i32
    return %c0_i32, %c0_i32_0 : i32, i32
  }
  func.func @transform_4(%arg0: i32) -> (i32, i32) {
    %c0_i32 = arith.constant 0 : i32
    %c0_i32_0 = arith.constant 0 : i32
    return %arg0, %c0_i32 : i32, i32
  }
}

module attributes {stable_mosaic.version = 11 : i64} {
  func.func @_conv3x3_row_kernel(%arg0: i32, %arg1: i32, %arg2: memref<1x81x64xf32, #tpu.memory_space<vmem>>, %arg3: memref<9x64x32xf32, #tpu.memory_space<vmem>>, %arg4: memref<1x32xf32, #tpu.memory_space<vmem>>, %arg5: memref<1x1x7x32xf32, #tpu.memory_space<vmem>>, %arg6: memref<1x2x32xf32, #tpu.memory_space<vmem>>) attributes {dimension_semantics = [#tpu.dimension_semantics<parallel>, #tpu.dimension_semantics<arbitrary>], iteration_bounds = array<i64: 2, 7>, scalar_prefetch = 0 : i64, scratch_operands = 0 : i64, tpu.core_type = #tpu.core_type<tc>, window_params = [{transform_indices = @transform_0, window_bounds = array<i64: 1, 81, 64>}, {pipeline_mode = #tpu.pipeline_mode<synchronous>, transform_indices = @transform_1, window_bounds = array<i64: 9, 64, 32>}, {pipeline_mode = #tpu.pipeline_mode<synchronous>, transform_indices = @transform_2, window_bounds = array<i64: 1, 32>}, {transform_indices = @transform_3, window_bounds = array<i64: 1, 1, 7, 32>}, {transform_indices = @transform_4, window_bounds = array<i64: 1, 2, 32>}]} {
    %c0_i32 = arith.constant 0 : i32
    %0 = arith.cmpi eq, %arg1, %c0_i32 : i32
    %1 = arith.extui %0 : i1 to i32
    %c0_i32_0 = arith.constant 0 : i32
    %2 = arith.cmpi ne, %1, %c0_i32_0 : i32
    scf.if %2 {
      %cst_90 = arith.constant 0.000000e+00 : f32
      %135 = vector.broadcast %cst_90 : f32 to vector<1x2x32xf32>
      %c0_91 = arith.constant 0 : index
      %c0_92 = arith.constant 0 : index
      %c0_93 = arith.constant 0 : index
      %136 = vector.load %arg6[%c0_91, %c0_92, %c0_93] : memref<1x2x32xf32, #tpu.memory_space<vmem>>, vector<1x2x32xf32>
      tpu.vector_store %arg6[%c0_91, %c0_92, %c0_93], %135 {strides = array<i32>} : memref<1x2x32xf32, #tpu.memory_space<vmem>>, vector<1x2x32xf32>,
    } else {
    }
    %cst = arith.constant 0.000000e+00 : f32
    %3 = vector.broadcast %cst : f32 to vector<7x32xf32>
    %c0_i32_1 = arith.constant 0 : i32
    %4 = arith.addi %arg1, %c0_i32_1 : i32
    %c9_i32 = arith.constant 9 : i32
    %5 = arith.muli %4, %c9_i32 : i32
    %c0_i32_2 = arith.constant 0 : i32
    %6 = arith.addi %5, %c0_i32_2 : i32
    %c0 = arith.constant 0 : index
    %7 = arith.index_cast %6 : i32 to index
    %c0_3 = arith.constant 0 : index
    %8 = vector.load %arg2[%c0, %7, %c0_3] : memref<1x81x64xf32, #tpu.memory_space<vmem>>, vector<1x7x64xf32>
    %9 = vector.shape_cast %8 : vector<1x7x64xf32> to vector<7x64xf32>
    %10 = arith.truncf %9 : vector<7x64xf32> to vector<7x64xbf16>
    %c0_4 = arith.constant 0 : index
    %c0_5 = arith.constant 0 : index
    %c0_6 = arith.constant 0 : index
    %11 = vector.load %arg3[%c0_4, %c0_5, %c0_6] : memref<9x64x32xf32, #tpu.memory_space<vmem>>, vector<1x64x32xf32>
    %12 = vector.shape_cast %11 : vector<1x64x32xf32> to vector<64x32xf32>
    %13 = arith.truncf %12 : vector<64x32xf32> to vector<64x32xbf16>
    %cst_7 = arith.constant dense<0.000000e+00> : vector<7x32xf32>
    %14 = tpu.matmul %10, %13, %cst_7 {dimension_numbers = #tpu.dot_dimension_numbers<[1], [0], [0], [1], [0, 0, 1, 1], [], []>} : vector<7x64xbf16>, vector<64x32xbf16>, vector<7x32xf32> -> vector<7x32xf32>
    %15 = arith.addf %3, %14 : vector<7x32xf32>
    %c0_i32_8 = arith.constant 0 : i32
    %16 = arith.addi %arg1, %c0_i32_8 : i32
    %c9_i32_9 = arith.constant 9 : i32
    %17 = arith.muli %16, %c9_i32_9 : i32
    %c1_i32 = arith.constant 1 : i32
    %18 = arith.addi %17, %c1_i32 : i32
    %c0_10 = arith.constant 0 : index
    %19 = arith.index_cast %18 : i32 to index
    %c0_11 = arith.constant 0 : index
    %20 = vector.load %arg2[%c0_10, %19, %c0_11] : memref<1x81x64xf32, #tpu.memory_space<vmem>>, vector<1x7x64xf32>
    %21 = vector.shape_cast %20 : vector<1x7x64xf32> to vector<7x64xf32>
    %22 = arith.truncf %21 : vector<7x64xf32> to vector<7x64xbf16>
    %c1 = arith.constant 1 : index
    %c0_12 = arith.constant 0 : index
    %c0_13 = arith.constant 0 : index
    %23 = vector.load %arg3[%c1, %c0_12, %c0_13] : memref<9x64x32xf32, #tpu.memory_space<vmem>>, vector<1x64x32xf32>
    %24 = vector.shape_cast %23 : vector<1x64x32xf32> to vector<64x32xf32>
    %25 = arith.truncf %24 : vector<64x32xf32> to vector<64x32xbf16>
    %cst_14 = arith.constant dense<0.000000e+00> : vector<7x32xf32>
    %26 = tpu.matmul %22, %25, %cst_14 {dimension_numbers = #tpu.dot_dimension_numbers<[1], [0], [0], [1], [0, 0, 1, 1], [], []>} : vector<7x64xbf16>, vector<64x32xbf16>, vector<7x32xf32> -> vector<7x32xf32>
    %27 = arith.addf %15, %26 : vector<7x32xf32>
    %c0_i32_15 = arith.constant 0 : i32
    %28 = arith.addi %arg1, %c0_i32_15 : i32
    %c9_i32_16 = arith.constant 9 : i32
    %29 = arith.muli %28, %c9_i32_16 : i32
    %c2_i32 = arith.constant 2 : i32
    %30 = arith.addi %29, %c2_i32 : i32
    %c0_17 = arith.constant 0 : index
    %31 = arith.index_cast %30 : i32 to index
    %c0_18 = arith.constant 0 : index
    %32 = vector.load %arg2[%c0_17, %31, %c0_18] : memref<1x81x64xf32, #tpu.memory_space<vmem>>, vector<1x7x64xf32>
    %33 = vector.shape_cast %32 : vector<1x7x64xf32> to vector<7x64xf32>
    %34 = arith.truncf %33 : vector<7x64xf32> to vector<7x64xbf16>
    %c2 = arith.constant 2 : index
    %c0_19 = arith.constant 0 : index
    %c0_20 = arith.constant 0 : index
    %35 = vector.load %arg3[%c2, %c0_19, %c0_20] : memref<9x64x32xf32, #tpu.memory_space<vmem>>, vector<1x64x32xf32>
    %36 = vector.shape_cast %35 : vector<1x64x32xf32> to vector<64x32xf32>
    %37 = arith.truncf %36 : vector<64x32xf32> to vector<64x32xbf16>
    %cst_21 = arith.constant dense<0.000000e+00> : vector<7x32xf32>
    %38 = tpu.matmul %34, %37, %cst_21 {dimension_numbers = #tpu.dot_dimension_numbers<[1], [0], [0], [1], [0, 0, 1, 1], [], []>} : vector<7x64xbf16>, vector<64x32xbf16>, vector<7x32xf32> -> vector<7x32xf32>
    %39 = arith.addf %27, %38 : vector<7x32xf32>
    %c1_i32_22 = arith.constant 1 : i32
    %40 = arith.addi %arg1, %c1_i32_22 : i32
    %c9_i32_23 = arith.constant 9 : i32
    %41 = arith.muli %40, %c9_i32_23 : i32
    %c0_i32_24 = arith.constant 0 : i32
    %42 = arith.addi %41, %c0_i32_24 : i32
    %c0_25 = arith.constant 0 : index
    %43 = arith.index_cast %42 : i32 to index
    %c0_26 = arith.constant 0 : index
    %44 = vector.load %arg2[%c0_25, %43, %c0_26] : memref<1x81x64xf32, #tpu.memory_space<vmem>>, vector<1x7x64xf32>
    %45 = vector.shape_cast %44 : vector<1x7x64xf32> to vector<7x64xf32>
    %46 = arith.truncf %45 : vector<7x64xf32> to vector<7x64xbf16>
    %c3 = arith.constant 3 : index
    %c0_27 = arith.constant 0 : index
    %c0_28 = arith.constant 0 : index
    %47 = vector.load %arg3[%c3, %c0_27, %c0_28] : memref<9x64x32xf32, #tpu.memory_space<vmem>>, vector<1x64x32xf32>
    %48 = vector.shape_cast %47 : vector<1x64x32xf32> to vector<64x32xf32>
    %49 = arith.truncf %48 : vector<64x32xf32> to vector<64x32xbf16>
    %cst_29 = arith.constant dense<0.000000e+00> : vector<7x32xf32>
    %50 = tpu.matmul %46, %49, %cst_29 {dimension_numbers = #tpu.dot_dimension_numbers<[1], [0], [0], [1], [0, 0, 1, 1], [], []>} : vector<7x64xbf16>, vector<64x32xbf16>, vector<7x32xf32> -> vector<7x32xf32>
    %51 = arith.addf %39, %50 : vector<7x32xf32>
    %c1_i32_30 = arith.constant 1 : i32
    %52 = arith.addi %arg1, %c1_i32_30 : i32
    %c9_i32_31 = arith.constant 9 : i32
    %53 = arith.muli %52, %c9_i32_31 : i32
    %c1_i32_32 = arith.constant 1 : i32
    %54 = arith.addi %53, %c1_i32_32 : i32
    %c0_33 = arith.constant 0 : index
    %55 = arith.index_cast %54 : i32 to index
    %c0_34 = arith.constant 0 : index
    %56 = vector.load %arg2[%c0_33, %55, %c0_34] : memref<1x81x64xf32, #tpu.memory_space<vmem>>, vector<1x7x64xf32>
    %57 = vector.shape_cast %56 : vector<1x7x64xf32> to vector<7x64xf32>
    %58 = arith.truncf %57 : vector<7x64xf32> to vector<7x64xbf16>
    %c4 = arith.constant 4 : index
    %c0_35 = arith.constant 0 : index
    %c0_36 = arith.constant 0 : index
    %59 = vector.load %arg3[%c4, %c0_35, %c0_36] : memref<9x64x32xf32, #tpu.memory_space<vmem>>, vector<1x64x32xf32>
    %60 = vector.shape_cast %59 : vector<1x64x32xf32> to vector<64x32xf32>
    %61 = arith.truncf %60 : vector<64x32xf32> to vector<64x32xbf16>
    %cst_37 = arith.constant dense<0.000000e+00> : vector<7x32xf32>
    %62 = tpu.matmul %58, %61, %cst_37 {dimension_numbers = #tpu.dot_dimension_numbers<[1], [0], [0], [1], [0, 0, 1, 1], [], []>} : vector<7x64xbf16>, vector<64x32xbf16>, vector<7x32xf32> -> vector<7x32xf32>
    %63 = arith.addf %51, %62 : vector<7x32xf32>
    %c1_i32_38 = arith.constant 1 : i32
    %64 = arith.addi %arg1, %c1_i32_38 : i32
    %c9_i32_39 = arith.constant 9 : i32
    %65 = arith.muli %64, %c9_i32_39 : i32
    %c2_i32_40 = arith.constant 2 : i32
    %66 = arith.addi %65, %c2_i32_40 : i32
    %c0_41 = arith.constant 0 : index
    %67 = arith.index_cast %66 : i32 to index
    %c0_42 = arith.constant 0 : index
    %68 = vector.load %arg2[%c0_41, %67, %c0_42] : memref<1x81x64xf32, #tpu.memory_space<vmem>>, vector<1x7x64xf32>
    %69 = vector.shape_cast %68 : vector<1x7x64xf32> to vector<7x64xf32>
    %70 = arith.truncf %69 : vector<7x64xf32> to vector<7x64xbf16>
    %c5 = arith.constant 5 : index
    %c0_43 = arith.constant 0 : index
    %c0_44 = arith.constant 0 : index
    %71 = vector.load %arg3[%c5, %c0_43, %c0_44] : memref<9x64x32xf32, #tpu.memory_space<vmem>>, vector<1x64x32xf32>
    %72 = vector.shape_cast %71 : vector<1x64x32xf32> to vector<64x32xf32>
    %73 = arith.truncf %72 : vector<64x32xf32> to vector<64x32xbf16>
    %cst_45 = arith.constant dense<0.000000e+00> : vector<7x32xf32>
    %74 = tpu.matmul %70, %73, %cst_45 {dimension_numbers = #tpu.dot_dimension_numbers<[1], [0], [0], [1], [0, 0, 1, 1], [], []>} : vector<7x64xbf16>, vector<64x32xbf16>, vector<7x32xf32> -> vector<7x32xf32>
    %75 = arith.addf %63, %74 : vector<7x32xf32>
    %c2_i32_46 = arith.constant 2 : i32
    %76 = arith.addi %arg1, %c2_i32_46 : i32
    %c9_i32_47 = arith.constant 9 : i32
    %77 = arith.muli %76, %c9_i32_47 : i32
    %c0_i32_48 = arith.constant 0 : i32
    %78 = arith.addi %77, %c0_i32_48 : i32
    %c0_49 = arith.constant 0 : index
    %79 = arith.index_cast %78 : i32 to index
    %c0_50 = arith.constant 0 : index
    %80 = vector.load %arg2[%c0_49, %79, %c0_50] : memref<1x81x64xf32, #tpu.memory_space<vmem>>, vector<1x7x64xf32>
    %81 = vector.shape_cast %80 : vector<1x7x64xf32> to vector<7x64xf32>
    %82 = arith.truncf %81 : vector<7x64xf32> to vector<7x64xbf16>
    %c6 = arith.constant 6 : index
    %c0_51 = arith.constant 0 : index
    %c0_52 = arith.constant 0 : index
    %83 = vector.load %arg3[%c6, %c0_51, %c0_52] : memref<9x64x32xf32, #tpu.memory_space<vmem>>, vector<1x64x32xf32>
    %84 = vector.shape_cast %83 : vector<1x64x32xf32> to vector<64x32xf32>
    %85 = arith.truncf %84 : vector<64x32xf32> to vector<64x32xbf16>
    %cst_53 = arith.constant dense<0.000000e+00> : vector<7x32xf32>
    %86 = tpu.matmul %82, %85, %cst_53 {dimension_numbers = #tpu.dot_dimension_numbers<[1], [0], [0], [1], [0, 0, 1, 1], [], []>} : vector<7x64xbf16>, vector<64x32xbf16>, vector<7x32xf32> -> vector<7x32xf32>
    %87 = arith.addf %75, %86 : vector<7x32xf32>
    %c2_i32_54 = arith.constant 2 : i32
    %88 = arith.addi %arg1, %c2_i32_54 : i32
    %c9_i32_55 = arith.constant 9 : i32
    %89 = arith.muli %88, %c9_i32_55 : i32
    %c1_i32_56 = arith.constant 1 : i32
    %90 = arith.addi %89, %c1_i32_56 : i32
    %c0_57 = arith.constant 0 : index
    %91 = arith.index_cast %90 : i32 to index
    %c0_58 = arith.constant 0 : index
    %92 = vector.load %arg2[%c0_57, %91, %c0_58] : memref<1x81x64xf32, #tpu.memory_space<vmem>>, vector<1x7x64xf32>
    %93 = vector.shape_cast %92 : vector<1x7x64xf32> to vector<7x64xf32>
    %94 = arith.truncf %93 : vector<7x64xf32> to vector<7x64xbf16>
    %c7 = arith.constant 7 : index
    %c0_59 = arith.constant 0 : index
    %c0_60 = arith.constant 0 : index
    %95 = vector.load %arg3[%c7, %c0_59, %c0_60] : memref<9x64x32xf32, #tpu.memory_space<vmem>>, vector<1x64x32xf32>
    %96 = vector.shape_cast %95 : vector<1x64x32xf32> to vector<64x32xf32>
    %97 = arith.truncf %96 : vector<64x32xf32> to vector<64x32xbf16>
    %cst_61 = arith.constant dense<0.000000e+00> : vector<7x32xf32>
    %98 = tpu.matmul %94, %97, %cst_61 {dimension_numbers = #tpu.dot_dimension_numbers<[1], [0], [0], [1], [0, 0, 1, 1], [], []>} : vector<7x64xbf16>, vector<64x32xbf16>, vector<7x32xf32> -> vector<7x32xf32>
    %99 = arith.addf %87, %98 : vector<7x32xf32>
    %c2_i32_62 = arith.constant 2 : i32
    %100 = arith.addi %arg1, %c2_i32_62 : i32
    %c9_i32_63 = arith.constant 9 : i32
    %101 = arith.muli %100, %c9_i32_63 : i32
    %c2_i32_64 = arith.constant 2 : i32
    %102 = arith.addi %101, %c2_i32_64 : i32
    %c0_65 = arith.constant 0 : index
    %103 = arith.index_cast %102 : i32 to index
    %c0_66 = arith.constant 0 : index
    %104 = vector.load %arg2[%c0_65, %103, %c0_66] : memref<1x81x64xf32, #tpu.memory_space<vmem>>, vector<1x7x64xf32>
    %105 = vector.shape_cast %104 : vector<1x7x64xf32> to vector<7x64xf32>
    %106 = arith.truncf %105 : vector<7x64xf32> to vector<7x64xbf16>
    %c8 = arith.constant 8 : index
    %c0_67 = arith.constant 0 : index
    %c0_68 = arith.constant 0 : index
    %107 = vector.load %arg3[%c8, %c0_67, %c0_68] : memref<9x64x32xf32, #tpu.memory_space<vmem>>, vector<1x64x32xf32>
    %108 = vector.shape_cast %107 : vector<1x64x32xf32> to vector<64x32xf32>
    %109 = arith.truncf %108 : vector<64x32xf32> to vector<64x32xbf16>
    %cst_69 = arith.constant dense<0.000000e+00> : vector<7x32xf32>
    %110 = tpu.matmul %106, %109, %cst_69 {dimension_numbers = #tpu.dot_dimension_numbers<[1], [0], [0], [1], [0, 0, 1, 1], [], []>} : vector<7x64xbf16>, vector<64x32xbf16>, vector<7x32xf32> -> vector<7x32xf32>
    %111 = arith.addf %99, %110 : vector<7x32xf32>
    %c0_70 = arith.constant 0 : index
    %c0_71 = arith.constant 0 : index
    %112 = vector.load %arg4[%c0_70, %c0_71] : memref<1x32xf32, #tpu.memory_space<vmem>>, vector<1x32xf32>
    %113 = vector.broadcast %112 : vector<1x32xf32> to vector<7x32xf32>
    %114 = arith.addf %111, %113 : vector<7x32xf32>
    %c0_72 = arith.constant 0 : index
    %c0_73 = arith.constant 0 : index
    %c0_74 = arith.constant 0 : index
    %c0_75 = arith.constant 0 : index
    %115 = vector.load %arg5[%c0_72, %c0_73, %c0_74, %c0_75] : memref<1x1x7x32xf32, #tpu.memory_space<vmem>>, vector<1x1x7x32xf32>
    %116 = vector.shape_cast %115 : vector<1x1x7x32xf32> to vector<7x32xf32>
    %117 = vector.shape_cast %114 : vector<7x32xf32> to vector<1x1x7x32xf32>
    tpu.vector_store %arg5[%c0_72, %c0_73, %c0_74, %c0_75], %117 {strides = array<i32>} : memref<1x1x7x32xf32, #tpu.memory_space<vmem>>, vector<1x1x7x32xf32>,
    %c0_76 = arith.constant 0 : index
    %c0_77 = arith.constant 0 : index
    %c0_78 = arith.constant 0 : index
    %118 = vector.load %arg6[%c0_76, %c0_77, %c0_78] : memref<1x2x32xf32, #tpu.memory_space<vmem>>, vector<1x1x32xf32>
    %119 = vector.shape_cast %118 : vector<1x1x32xf32> to vector<1x32xf32>
    %cst_79 = arith.constant dense<0.000000e+00> : vector<32xf32>
    %120 = vector.multi_reduction <add>, %114, %cst_79 [0] : vector<7x32xf32> to vector<32xf32>
    %121 = vector.shape_cast %120 : vector<32xf32> to vector<1x32xf32>
    %122 = arith.addf %119, %121 : vector<1x32xf32>
    %c0_80 = arith.constant 0 : index
    %c0_81 = arith.constant 0 : index
    %c0_82 = arith.constant 0 : index
    %123 = vector.load %arg6[%c0_80, %c0_81, %c0_82] : memref<1x2x32xf32, #tpu.memory_space<vmem>>, vector<1x1x32xf32>
    %124 = vector.shape_cast %123 : vector<1x1x32xf32> to vector<1x32xf32>
    %125 = vector.shape_cast %122 : vector<1x32xf32> to vector<1x1x32xf32>
    tpu.vector_store %arg6[%c0_80, %c0_81, %c0_82], %125 {strides = array<i32>} : memref<1x2x32xf32, #tpu.memory_space<vmem>>, vector<1x1x32xf32>,
    %c0_83 = arith.constant 0 : index
    %c1_84 = arith.constant 1 : index
    %c0_85 = arith.constant 0 : index
    %126 = vector.load %arg6[%c0_83, %c1_84, %c0_85] : memref<1x2x32xf32, #tpu.memory_space<vmem>>, vector<1x1x32xf32>
    %127 = vector.shape_cast %126 : vector<1x1x32xf32> to vector<1x32xf32>
    %128 = arith.mulf %114, %114 : vector<7x32xf32>
    %cst_86 = arith.constant dense<0.000000e+00> : vector<32xf32>
    %129 = vector.multi_reduction <add>, %128, %cst_86 [0] : vector<7x32xf32> to vector<32xf32>
    %130 = vector.shape_cast %129 : vector<32xf32> to vector<1x32xf32>
    %131 = arith.addf %127, %130 : vector<1x32xf32>
    %c0_87 = arith.constant 0 : index
    %c1_88 = arith.constant 1 : index
    %c0_89 = arith.constant 0 : index
    %132 = vector.load %arg6[%c0_87, %c1_88, %c0_89] : memref<1x2x32xf32, #tpu.memory_space<vmem>>, vector<1x1x32xf32>
    %133 = vector.shape_cast %132 : vector<1x1x32xf32> to vector<1x32xf32>
    %134 = vector.shape_cast %131 : vector<1x32xf32> to vector<1x1x32xf32>
    tpu.vector_store %arg6[%c0_87, %c1_88, %c0_89], %134 {strides = array<i32>} : memref<1x2x32xf32, #tpu.memory_space<vmem>>, vector<1x1x32xf32>,
    return
  }
  func.func @transform_0(%arg0: i32, %arg1: i32) -> (i32, i32, i32) {
    %c0_i32 = arith.constant 0 : i32
    %c0_i32_0 = arith.constant 0 : i32
    %c0_i32_1 = arith.constant 0 : i32
    return %arg0, %c0_i32, %c0_i32_0 : i32, i32, i32
  }
  func.func @transform_1(%arg0: i32, %arg1: i32) -> (i32, i32, i32) {
    %c0_i32 = arith.constant 0 : i32
    %c0_i32_0 = arith.constant 0 : i32
    %c0_i32_1 = arith.constant 0 : i32
    %c0_i32_2 = arith.constant 0 : i32
    return %c0_i32, %c0_i32_0, %c0_i32_1 : i32, i32, i32
  }
  func.func @transform_2(%arg0: i32, %arg1: i32) -> (i32, i32) {
    %c0_i32 = arith.constant 0 : i32
    %c0_i32_0 = arith.constant 0 : i32
    %c0_i32_1 = arith.constant 0 : i32
    return %c0_i32, %c0_i32_0 : i32, i32
  }
  func.func @transform_3(%arg0: i32, %arg1: i32) -> (i32, i32, i32, i32) {
    %c0_i32 = arith.constant 0 : i32
    %c0_i32_0 = arith.constant 0 : i32
    %c0_i32_1 = arith.constant 0 : i32
    return %arg0, %arg1, %c0_i32, %c0_i32_0 : i32, i32, i32, i32
  }
  func.func @transform_4(%arg0: i32, %arg1: i32) -> (i32, i32, i32) {
    %c0_i32 = arith.constant 0 : i32
    %c0_i32_0 = arith.constant 0 : i32
    %c0_i32_1 = arith.constant 0 : i32
    return %arg0, %c0_i32, %c0_i32_0 : i32, i32, i32
  }
}

module attributes {stable_mosaic.version = 11 : i64} {
  func.func @_interp_rows_kernel(%arg0: i32, %arg1: memref<14x7xf32, #tpu.memory_space<vmem>>, %arg2: memref<1x7x224xf32, #tpu.memory_space<vmem>>, %arg3: memref<1x14x224xf32, #tpu.memory_space<vmem>>) attributes {dimension_semantics = [#tpu.dimension_semantics<parallel>], iteration_bounds = array<i64: 2>, scalar_prefetch = 0 : i64, scratch_operands = 0 : i64, tpu.core_type = #tpu.core_type<tc>, window_params = [{pipeline_mode = #tpu.pipeline_mode<synchronous>, transform_indices = @transform_0, window_bounds = array<i64: 14, 7>}, {transform_indices = @transform_1, window_bounds = array<i64: 1, 7, 224>}, {transform_indices = @transform_2, window_bounds = array<i64: 1, 14, 224>}]} {
    %c0 = arith.constant 0 : index
    %c0_0 = arith.constant 0 : index
    %0 = vector.load %arg1[%c0, %c0_0] : memref<14x7xf32, #tpu.memory_space<vmem>>, vector<14x7xf32>
    %c0_1 = arith.constant 0 : index
    %c0_2 = arith.constant 0 : index
    %c0_3 = arith.constant 0 : index
    %1 = vector.load %arg2[%c0_1, %c0_2, %c0_3] : memref<1x7x224xf32, #tpu.memory_space<vmem>>, vector<1x7x224xf32>
    %2 = vector.shape_cast %1 : vector<1x7x224xf32> to vector<7x224xf32>
    %cst = arith.constant dense<0.000000e+00> : vector<14x224xf32>
    %3 = tpu.matmul %0, %2, %cst {dimension_numbers = #tpu.dot_dimension_numbers<[1], [0], [0], [1], [0, 0, 1, 1], [], []>} : vector<14x7xf32>, vector<7x224xf32>, vector<14x224xf32> -> vector<14x224xf32>
    %c0_4 = arith.constant 0 : index
    %c0_5 = arith.constant 0 : index
    %c0_6 = arith.constant 0 : index
    %4 = vector.load %arg3[%c0_4, %c0_5, %c0_6] : memref<1x14x224xf32, #tpu.memory_space<vmem>>, vector<1x14x224xf32>
    %5 = vector.shape_cast %4 : vector<1x14x224xf32> to vector<14x224xf32>
    %6 = vector.shape_cast %3 : vector<14x224xf32> to vector<1x14x224xf32>
    tpu.vector_store %arg3[%c0_4, %c0_5, %c0_6], %6 {strides = array<i32>} : memref<1x14x224xf32, #tpu.memory_space<vmem>>, vector<1x14x224xf32>,
    return
  }
  func.func @transform_0(%arg0: i32) -> (i32, i32) {
    %c0_i32 = arith.constant 0 : i32
    %c0_i32_0 = arith.constant 0 : i32
    %c0_i32_1 = arith.constant 0 : i32
    return %c0_i32, %c0_i32_0 : i32, i32
  }
  func.func @transform_1(%arg0: i32) -> (i32, i32, i32) {
    %c0_i32 = arith.constant 0 : i32
    %c0_i32_0 = arith.constant 0 : i32
    %c0_i32_1 = arith.constant 0 : i32
    return %arg0, %c0_i32, %c0_i32_0 : i32, i32, i32
  }
  func.func @transform_2(%arg0: i32) -> (i32, i32, i32) {
    %c0_i32 = arith.constant 0 : i32
    %c0_i32_0 = arith.constant 0 : i32
    %c0_i32_1 = arith.constant 0 : i32
    return %arg0, %c0_i32, %c0_i32_0 : i32, i32, i32
  }
}

module attributes {stable_mosaic.version = 11 : i64} {
  func.func @_affine_silu_kernel(%arg0: i32, %arg1: memref<32x128xf32, #tpu.memory_space<vmem>>, %arg2: memref<1x128xf32, #tpu.memory_space<vmem>>, %arg3: memref<1x128xf32, #tpu.memory_space<vmem>>, %arg4: memref<32x128xf32, #tpu.memory_space<vmem>>) attributes {dimension_semantics = [#tpu.dimension_semantics<parallel>], iteration_bounds = array<i64: 1>, scalar_prefetch = 0 : i64, scratch_operands = 0 : i64, tpu.core_type = #tpu.core_type<tc>, window_params = [{transform_indices = @transform_0, window_bounds = array<i64: 32, 128>}, {pipeline_mode = #tpu.pipeline_mode<synchronous>, transform_indices = @transform_1, window_bounds = array<i64: 1, 128>}, {pipeline_mode = #tpu.pipeline_mode<synchronous>, transform_indices = @transform_2, window_bounds = array<i64: 1, 128>}, {transform_indices = @transform_3, window_bounds = array<i64: 32, 128>}]} {
    %c0 = arith.constant 0 : index
    %c0_0 = arith.constant 0 : index
    %0 = vector.load %arg1[%c0, %c0_0] : memref<32x128xf32, #tpu.memory_space<vmem>>, vector<32x128xf32>
    %c0_1 = arith.constant 0 : index
    %c0_2 = arith.constant 0 : index
    %1 = vector.load %arg2[%c0_1, %c0_2] : memref<1x128xf32, #tpu.memory_space<vmem>>, vector<1x128xf32>
    %2 = vector.broadcast %1 : vector<1x128xf32> to vector<32x128xf32>
    %3 = arith.mulf %0, %2 : vector<32x128xf32>
    %c0_3 = arith.constant 0 : index
    %c0_4 = arith.constant 0 : index
    %4 = vector.load %arg3[%c0_3, %c0_4] : memref<1x128xf32, #tpu.memory_space<vmem>>, vector<1x128xf32>
    %5 = vector.broadcast %4 : vector<1x128xf32> to vector<32x128xf32>
    %6 = arith.addf %3, %5 : vector<32x128xf32>
    %cst = arith.constant 0.000000e+00 : f32
    %7 = vector.broadcast %cst : f32 to vector<32x128xf32>
    %8 = arith.subf %7, %6 : vector<32x128xf32>
    %9 = math.exp %8 : vector<32x128xf32>
    %cst_5 = arith.constant 1.000000e+00 : f32
    %10 = vector.broadcast %cst_5 : f32 to vector<32x128xf32>
    %11 = arith.addf %10, %9 : vector<32x128xf32>
    %12 = tpu.reciprocal %11 {approx = true} : vector<32x128xf32> -> vector<32x128xf32>
    %13 = arith.mulf %6, %12 : vector<32x128xf32>
    %c0_6 = arith.constant 0 : index
    %c0_7 = arith.constant 0 : index
    %14 = vector.load %arg4[%c0_6, %c0_7] : memref<32x128xf32, #tpu.memory_space<vmem>>, vector<32x128xf32>
    tpu.vector_store %arg4[%c0_6, %c0_7], %13 {strides = array<i32>} : memref<32x128xf32, #tpu.memory_space<vmem>>, vector<32x128xf32>,
    return
  }
  func.func @transform_0(%arg0: i32) -> (i32, i32) {
    %c0_i32 = arith.constant 0 : i32
    %c0_i32_0 = arith.constant 0 : i32
    return %arg0, %c0_i32 : i32, i32
  }
  func.func @transform_1(%arg0: i32) -> (i32, i32) {
    %c0_i32 = arith.constant 0 : i32
    %c0_i32_0 = arith.constant 0 : i32
    %c0_i32_1 = arith.constant 0 : i32
    return %c0_i32, %c0_i32_0 : i32, i32
  }
  func.func @transform_2(%arg0: i32) -> (i32, i32) {
    %c0_i32 = arith.constant 0 : i32
    %c0_i32_0 = arith.constant 0 : i32
    %c0_i32_1 = arith.constant 0 : i32
    return %c0_i32, %c0_i32_0 : i32, i32
  }
  func.func @transform_3(%arg0: i32) -> (i32, i32) {
    %c0_i32 = arith.constant 0 : i32
    %c0_i32_0 = arith.constant 0 : i32
    return %arg0, %c0_i32 : i32, i32
  }
}

module attributes {stable_mosaic.version = 11 : i64} {
  func.func @_interp_cols_kernel(%arg0: i32, %arg1: memref<14x7xf32, #tpu.memory_space<vmem>>, %arg2: memref<4x7x32xf32, #tpu.memory_space<vmem>>, %arg3: memref<4x14x32xf32, #tpu.memory_space<vmem>>) attributes {dimension_semantics = [#tpu.dimension_semantics<parallel>], iteration_bounds = array<i64: 7>, scalar_prefetch = 0 : i64, scratch_operands = 0 : i64, tpu.core_type = #tpu.core_type<tc>, window_params = [{pipeline_mode = #tpu.pipeline_mode<synchronous>, transform_indices = @transform_0, window_bounds = array<i64: 14, 7>}, {transform_indices = @transform_1, window_bounds = array<i64: 4, 7, 32>}, {transform_indices = @transform_2, window_bounds = array<i64: 4, 14, 32>}]} {
    %c0 = arith.constant 0 : index
    %c0_0 = arith.constant 0 : index
    %0 = vector.load %arg1[%c0, %c0_0] : memref<14x7xf32, #tpu.memory_space<vmem>>, vector<14x7xf32>
    %c0_1 = arith.constant 0 : index
    %c0_2 = arith.constant 0 : index
    %c0_3 = arith.constant 0 : index
    %1 = vector.load %arg2[%c0_1, %c0_2, %c0_3] : memref<4x7x32xf32, #tpu.memory_space<vmem>>, vector<1x7x32xf32>
    %2 = vector.shape_cast %1 : vector<1x7x32xf32> to vector<7x32xf32>
    %cst = arith.constant dense<0.000000e+00> : vector<14x32xf32>
    %3 = tpu.matmul %0, %2, %cst {dimension_numbers = #tpu.dot_dimension_numbers<[1], [0], [0], [1], [0, 0, 1, 1], [], []>} : vector<14x7xf32>, vector<7x32xf32>, vector<14x32xf32> -> vector<14x32xf32>
    %c0_4 = arith.constant 0 : index
    %c0_5 = arith.constant 0 : index
    %c0_6 = arith.constant 0 : index
    %4 = vector.load %arg3[%c0_4, %c0_5, %c0_6] : memref<4x14x32xf32, #tpu.memory_space<vmem>>, vector<1x14x32xf32>
    %5 = vector.shape_cast %4 : vector<1x14x32xf32> to vector<14x32xf32>
    %6 = vector.shape_cast %3 : vector<14x32xf32> to vector<1x14x32xf32>
    tpu.vector_store %arg3[%c0_4, %c0_5, %c0_6], %6 {strides = array<i32>} : memref<4x14x32xf32, #tpu.memory_space<vmem>>, vector<1x14x32xf32>,
    %c1 = arith.constant 1 : index
    %c0_7 = arith.constant 0 : index
    %c0_8 = arith.constant 0 : index
    %7 = vector.load %arg2[%c1, %c0_7, %c0_8] : memref<4x7x32xf32, #tpu.memory_space<vmem>>, vector<1x7x32xf32>
    %8 = vector.shape_cast %7 : vector<1x7x32xf32> to vector<7x32xf32>
    %cst_9 = arith.constant dense<0.000000e+00> : vector<14x32xf32>
    %9 = tpu.matmul %0, %8, %cst_9 {dimension_numbers = #tpu.dot_dimension_numbers<[1], [0], [0], [1], [0, 0, 1, 1], [], []>} : vector<14x7xf32>, vector<7x32xf32>, vector<14x32xf32> -> vector<14x32xf32>
    %c1_10 = arith.constant 1 : index
    %c0_11 = arith.constant 0 : index
    %c0_12 = arith.constant 0 : index
    %10 = vector.load %arg3[%c1_10, %c0_11, %c0_12] : memref<4x14x32xf32, #tpu.memory_space<vmem>>, vector<1x14x32xf32>
    %11 = vector.shape_cast %10 : vector<1x14x32xf32> to vector<14x32xf32>
    %12 = vector.shape_cast %9 : vector<14x32xf32> to vector<1x14x32xf32>
    tpu.vector_store %arg3[%c1_10, %c0_11, %c0_12], %12 {strides = array<i32>} : memref<4x14x32xf32, #tpu.memory_space<vmem>>, vector<1x14x32xf32>,
    %c2 = arith.constant 2 : index
    %c0_13 = arith.constant 0 : index
    %c0_14 = arith.constant 0 : index
    %13 = vector.load %arg2[%c2, %c0_13, %c0_14] : memref<4x7x32xf32, #tpu.memory_space<vmem>>, vector<1x7x32xf32>
    %14 = vector.shape_cast %13 : vector<1x7x32xf32> to vector<7x32xf32>
    %cst_15 = arith.constant dense<0.000000e+00> : vector<14x32xf32>
    %15 = tpu.matmul %0, %14, %cst_15 {dimension_numbers = #tpu.dot_dimension_numbers<[1], [0], [0], [1], [0, 0, 1, 1], [], []>} : vector<14x7xf32>, vector<7x32xf32>, vector<14x32xf32> -> vector<14x32xf32>
    %c2_16 = arith.constant 2 : index
    %c0_17 = arith.constant 0 : index
    %c0_18 = arith.constant 0 : index
    %16 = vector.load %arg3[%c2_16, %c0_17, %c0_18] : memref<4x14x32xf32, #tpu.memory_space<vmem>>, vector<1x14x32xf32>
    %17 = vector.shape_cast %16 : vector<1x14x32xf32> to vector<14x32xf32>
    %18 = vector.shape_cast %15 : vector<14x32xf32> to vector<1x14x32xf32>
    tpu.vector_store %arg3[%c2_16, %c0_17, %c0_18], %18 {strides = array<i32>} : memref<4x14x32xf32, #tpu.memory_space<vmem>>, vector<1x14x32xf32>,
    %c3 = arith.constant 3 : index
    %c0_19 = arith.constant 0 : index
    %c0_20 = arith.constant 0 : index
    %19 = vector.load %arg2[%c3, %c0_19, %c0_20] : memref<4x7x32xf32, #tpu.memory_space<vmem>>, vector<1x7x32xf32>
    %20 = vector.shape_cast %19 : vector<1x7x32xf32> to vector<7x32xf32>
    %cst_21 = arith.constant dense<0.000000e+00> : vector<14x32xf32>
    %21 = tpu.matmul %0, %20, %cst_21 {dimension_numbers = #tpu.dot_dimension_numbers<[1], [0], [0], [1], [0, 0, 1, 1], [], []>} : vector<14x7xf32>, vector<7x32xf32>, vector<14x32xf32> -> vector<14x32xf32>
    %c3_22 = arith.constant 3 : index
    %c0_23 = arith.constant 0 : index
    %c0_24 = arith.constant 0 : index
    %22 = vector.load %arg3[%c3_22, %c0_23, %c0_24] : memref<4x14x32xf32, #tpu.memory_space<vmem>>, vector<1x14x32xf32>
    %23 = vector.shape_cast %22 : vector<1x14x32xf32> to vector<14x32xf32>
    %24 = vector.shape_cast %21 : vector<14x32xf32> to vector<1x14x32xf32>
    tpu.vector_store %arg3[%c3_22, %c0_23, %c0_24], %24 {strides = array<i32>} : memref<4x14x32xf32, #tpu.memory_space<vmem>>, vector<1x14x32xf32>,
    return
  }
  func.func @transform_0(%arg0: i32) -> (i32, i32) {
    %c0_i32 = arith.constant 0 : i32
    %c0_i32_0 = arith.constant 0 : i32
    %c0_i32_1 = arith.constant 0 : i32
    return %c0_i32, %c0_i32_0 : i32, i32
  }
  func.func @transform_1(%arg0: i32) -> (i32, i32, i32) {
    %c0_i32 = arith.constant 0 : i32
    %c0_i32_0 = arith.constant 0 : i32
    %c0_i32_1 = arith.constant 0 : i32
    return %arg0, %c0_i32, %c0_i32_0 : i32, i32, i32
  }
  func.func @transform_2(%arg0: i32) -> (i32, i32, i32) {
    %c0_i32 = arith.constant 0 : i32
    %c0_i32_0 = arith.constant 0 : i32
    %c0_i32_1 = arith.constant 0 : i32
    return %arg0, %c0_i32, %c0_i32_0 : i32, i32, i32
  }
}

module attributes {stable_mosaic.version = 11 : i64} {
  func.func @_conv3x3_row_kernel(%arg0: i32, %arg1: i32, %arg2: memref<1x256x32xf32, #tpu.memory_space<vmem>>, %arg3: memref<9x32x32xf32, #tpu.memory_space<vmem>>, %arg4: memref<1x32xf32, #tpu.memory_space<vmem>>, %arg5: memref<1x1x14x32xf32, #tpu.memory_space<vmem>>, %arg6: memref<1x2x32xf32, #tpu.memory_space<vmem>>) attributes {dimension_semantics = [#tpu.dimension_semantics<parallel>, #tpu.dimension_semantics<arbitrary>], iteration_bounds = array<i64: 2, 14>, scalar_prefetch = 0 : i64, scratch_operands = 0 : i64, tpu.core_type = #tpu.core_type<tc>, window_params = [{transform_indices = @transform_0, window_bounds = array<i64: 1, 256, 32>}, {pipeline_mode = #tpu.pipeline_mode<synchronous>, transform_indices = @transform_1, window_bounds = array<i64: 9, 32, 32>}, {pipeline_mode = #tpu.pipeline_mode<synchronous>, transform_indices = @transform_2, window_bounds = array<i64: 1, 32>}, {transform_indices = @transform_3, window_bounds = array<i64: 1, 1, 14, 32>}, {transform_indices = @transform_4, window_bounds = array<i64: 1, 2, 32>}]} {
    %c0_i32 = arith.constant 0 : i32
    %0 = arith.cmpi eq, %arg1, %c0_i32 : i32
    %1 = arith.extui %0 : i1 to i32
    %c0_i32_0 = arith.constant 0 : i32
    %2 = arith.cmpi ne, %1, %c0_i32_0 : i32
    scf.if %2 {
      %cst_90 = arith.constant 0.000000e+00 : f32
      %135 = vector.broadcast %cst_90 : f32 to vector<1x2x32xf32>
      %c0_91 = arith.constant 0 : index
      %c0_92 = arith.constant 0 : index
      %c0_93 = arith.constant 0 : index
      %136 = vector.load %arg6[%c0_91, %c0_92, %c0_93] : memref<1x2x32xf32, #tpu.memory_space<vmem>>, vector<1x2x32xf32>
      tpu.vector_store %arg6[%c0_91, %c0_92, %c0_93], %135 {strides = array<i32>} : memref<1x2x32xf32, #tpu.memory_space<vmem>>, vector<1x2x32xf32>,
    } else {
    }
    %cst = arith.constant 0.000000e+00 : f32
    %3 = vector.broadcast %cst : f32 to vector<14x32xf32>
    %c0_i32_1 = arith.constant 0 : i32
    %4 = arith.addi %arg1, %c0_i32_1 : i32
    %c16_i32 = arith.constant 16 : i32
    %5 = arith.muli %4, %c16_i32 : i32
    %c0_i32_2 = arith.constant 0 : i32
    %6 = arith.addi %5, %c0_i32_2 : i32
    %c0 = arith.constant 0 : index
    %7 = arith.index_cast %6 : i32 to index
    %c0_3 = arith.constant 0 : index
    %8 = vector.load %arg2[%c0, %7, %c0_3] : memref<1x256x32xf32, #tpu.memory_space<vmem>>, vector<1x14x32xf32>
    %9 = vector.shape_cast %8 : vector<1x14x32xf32> to vector<14x32xf32>
    %10 = arith.truncf %9 : vector<14x32xf32> to vector<14x32xbf16>
    %c0_4 = arith.constant 0 : index
    %c0_5 = arith.constant 0 : index
    %c0_6 = arith.constant 0 : index
    %11 = vector.load %arg3[%c0_4, %c0_5, %c0_6] : memref<9x32x32xf32, #tpu.memory_space<vmem>>, vector<1x32x32xf32>
    %12 = vector.shape_cast %11 : vector<1x32x32xf32> to vector<32x32xf32>
    %13 = arith.truncf %12 : vector<32x32xf32> to vector<32x32xbf16>
    %cst_7 = arith.constant dense<0.000000e+00> : vector<14x32xf32>
    %14 = tpu.matmul %10, %13, %cst_7 {dimension_numbers = #tpu.dot_dimension_numbers<[1], [0], [0], [1], [0, 0, 1, 1], [], []>} : vector<14x32xbf16>, vector<32x32xbf16>, vector<14x32xf32> -> vector<14x32xf32>
    %15 = arith.addf %3, %14 : vector<14x32xf32>
    %c0_i32_8 = arith.constant 0 : i32
    %16 = arith.addi %arg1, %c0_i32_8 : i32
    %c16_i32_9 = arith.constant 16 : i32
    %17 = arith.muli %16, %c16_i32_9 : i32
    %c1_i32 = arith.constant 1 : i32
    %18 = arith.addi %17, %c1_i32 : i32
    %c0_10 = arith.constant 0 : index
    %19 = arith.index_cast %18 : i32 to index
    %c0_11 = arith.constant 0 : index
    %20 = vector.load %arg2[%c0_10, %19, %c0_11] : memref<1x256x32xf32, #tpu.memory_space<vmem>>, vector<1x14x32xf32>
    %21 = vector.shape_cast %20 : vector<1x14x32xf32> to vector<14x32xf32>
    %22 = arith.truncf %21 : vector<14x32xf32> to vector<14x32xbf16>
    %c1 = arith.constant 1 : index
    %c0_12 = arith.constant 0 : index
    %c0_13 = arith.constant 0 : index
    %23 = vector.load %arg3[%c1, %c0_12, %c0_13] : memref<9x32x32xf32, #tpu.memory_space<vmem>>, vector<1x32x32xf32>
    %24 = vector.shape_cast %23 : vector<1x32x32xf32> to vector<32x32xf32>
    %25 = arith.truncf %24 : vector<32x32xf32> to vector<32x32xbf16>
    %cst_14 = arith.constant dense<0.000000e+00> : vector<14x32xf32>
    %26 = tpu.matmul %22, %25, %cst_14 {dimension_numbers = #tpu.dot_dimension_numbers<[1], [0], [0], [1], [0, 0, 1, 1], [], []>} : vector<14x32xbf16>, vector<32x32xbf16>, vector<14x32xf32> -> vector<14x32xf32>
    %27 = arith.addf %15, %26 : vector<14x32xf32>
    %c0_i32_15 = arith.constant 0 : i32
    %28 = arith.addi %arg1, %c0_i32_15 : i32
    %c16_i32_16 = arith.constant 16 : i32
    %29 = arith.muli %28, %c16_i32_16 : i32
    %c2_i32 = arith.constant 2 : i32
    %30 = arith.addi %29, %c2_i32 : i32
    %c0_17 = arith.constant 0 : index
    %31 = arith.index_cast %30 : i32 to index
    %c0_18 = arith.constant 0 : index
    %32 = vector.load %arg2[%c0_17, %31, %c0_18] : memref<1x256x32xf32, #tpu.memory_space<vmem>>, vector<1x14x32xf32>
    %33 = vector.shape_cast %32 : vector<1x14x32xf32> to vector<14x32xf32>
    %34 = arith.truncf %33 : vector<14x32xf32> to vector<14x32xbf16>
    %c2 = arith.constant 2 : index
    %c0_19 = arith.constant 0 : index
    %c0_20 = arith.constant 0 : index
    %35 = vector.load %arg3[%c2, %c0_19, %c0_20] : memref<9x32x32xf32, #tpu.memory_space<vmem>>, vector<1x32x32xf32>
    %36 = vector.shape_cast %35 : vector<1x32x32xf32> to vector<32x32xf32>
    %37 = arith.truncf %36 : vector<32x32xf32> to vector<32x32xbf16>
    %cst_21 = arith.constant dense<0.000000e+00> : vector<14x32xf32>
    %38 = tpu.matmul %34, %37, %cst_21 {dimension_numbers = #tpu.dot_dimension_numbers<[1], [0], [0], [1], [0, 0, 1, 1], [], []>} : vector<14x32xbf16>, vector<32x32xbf16>, vector<14x32xf32> -> vector<14x32xf32>
    %39 = arith.addf %27, %38 : vector<14x32xf32>
    %c1_i32_22 = arith.constant 1 : i32
    %40 = arith.addi %arg1, %c1_i32_22 : i32
    %c16_i32_23 = arith.constant 16 : i32
    %41 = arith.muli %40, %c16_i32_23 : i32
    %c0_i32_24 = arith.constant 0 : i32
    %42 = arith.addi %41, %c0_i32_24 : i32
    %c0_25 = arith.constant 0 : index
    %43 = arith.index_cast %42 : i32 to index
    %c0_26 = arith.constant 0 : index
    %44 = vector.load %arg2[%c0_25, %43, %c0_26] : memref<1x256x32xf32, #tpu.memory_space<vmem>>, vector<1x14x32xf32>
    %45 = vector.shape_cast %44 : vector<1x14x32xf32> to vector<14x32xf32>
    %46 = arith.truncf %45 : vector<14x32xf32> to vector<14x32xbf16>
    %c3 = arith.constant 3 : index
    %c0_27 = arith.constant 0 : index
    %c0_28 = arith.constant 0 : index
    %47 = vector.load %arg3[%c3, %c0_27, %c0_28] : memref<9x32x32xf32, #tpu.memory_space<vmem>>, vector<1x32x32xf32>
    %48 = vector.shape_cast %47 : vector<1x32x32xf32> to vector<32x32xf32>
    %49 = arith.truncf %48 : vector<32x32xf32> to vector<32x32xbf16>
    %cst_29 = arith.constant dense<0.000000e+00> : vector<14x32xf32>
    %50 = tpu.matmul %46, %49, %cst_29 {dimension_numbers = #tpu.dot_dimension_numbers<[1], [0], [0], [1], [0, 0, 1, 1], [], []>} : vector<14x32xbf16>, vector<32x32xbf16>, vector<14x32xf32> -> vector<14x32xf32>
    %51 = arith.addf %39, %50 : vector<14x32xf32>
    %c1_i32_30 = arith.constant 1 : i32
    %52 = arith.addi %arg1, %c1_i32_30 : i32
    %c16_i32_31 = arith.constant 16 : i32
    %53 = arith.muli %52, %c16_i32_31 : i32
    %c1_i32_32 = arith.constant 1 : i32
    %54 = arith.addi %53, %c1_i32_32 : i32
    %c0_33 = arith.constant 0 : index
    %55 = arith.index_cast %54 : i32 to index
    %c0_34 = arith.constant 0 : index
    %56 = vector.load %arg2[%c0_33, %55, %c0_34] : memref<1x256x32xf32, #tpu.memory_space<vmem>>, vector<1x14x32xf32>
    %57 = vector.shape_cast %56 : vector<1x14x32xf32> to vector<14x32xf32>
    %58 = arith.truncf %57 : vector<14x32xf32> to vector<14x32xbf16>
    %c4 = arith.constant 4 : index
    %c0_35 = arith.constant 0 : index
    %c0_36 = arith.constant 0 : index
    %59 = vector.load %arg3[%c4, %c0_35, %c0_36] : memref<9x32x32xf32, #tpu.memory_space<vmem>>, vector<1x32x32xf32>
    %60 = vector.shape_cast %59 : vector<1x32x32xf32> to vector<32x32xf32>
    %61 = arith.truncf %60 : vector<32x32xf32> to vector<32x32xbf16>
    %cst_37 = arith.constant dense<0.000000e+00> : vector<14x32xf32>
    %62 = tpu.matmul %58, %61, %cst_37 {dimension_numbers = #tpu.dot_dimension_numbers<[1], [0], [0], [1], [0, 0, 1, 1], [], []>} : vector<14x32xbf16>, vector<32x32xbf16>, vector<14x32xf32> -> vector<14x32xf32>
    %63 = arith.addf %51, %62 : vector<14x32xf32>
    %c1_i32_38 = arith.constant 1 : i32
    %64 = arith.addi %arg1, %c1_i32_38 : i32
    %c16_i32_39 = arith.constant 16 : i32
    %65 = arith.muli %64, %c16_i32_39 : i32
    %c2_i32_40 = arith.constant 2 : i32
    %66 = arith.addi %65, %c2_i32_40 : i32
    %c0_41 = arith.constant 0 : index
    %67 = arith.index_cast %66 : i32 to index
    %c0_42 = arith.constant 0 : index
    %68 = vector.load %arg2[%c0_41, %67, %c0_42] : memref<1x256x32xf32, #tpu.memory_space<vmem>>, vector<1x14x32xf32>
    %69 = vector.shape_cast %68 : vector<1x14x32xf32> to vector<14x32xf32>
    %70 = arith.truncf %69 : vector<14x32xf32> to vector<14x32xbf16>
    %c5 = arith.constant 5 : index
    %c0_43 = arith.constant 0 : index
    %c0_44 = arith.constant 0 : index
    %71 = vector.load %arg3[%c5, %c0_43, %c0_44] : memref<9x32x32xf32, #tpu.memory_space<vmem>>, vector<1x32x32xf32>
    %72 = vector.shape_cast %71 : vector<1x32x32xf32> to vector<32x32xf32>
    %73 = arith.truncf %72 : vector<32x32xf32> to vector<32x32xbf16>
    %cst_45 = arith.constant dense<0.000000e+00> : vector<14x32xf32>
    %74 = tpu.matmul %70, %73, %cst_45 {dimension_numbers = #tpu.dot_dimension_numbers<[1], [0], [0], [1], [0, 0, 1, 1], [], []>} : vector<14x32xbf16>, vector<32x32xbf16>, vector<14x32xf32> -> vector<14x32xf32>
    %75 = arith.addf %63, %74 : vector<14x32xf32>
    %c2_i32_46 = arith.constant 2 : i32
    %76 = arith.addi %arg1, %c2_i32_46 : i32
    %c16_i32_47 = arith.constant 16 : i32
    %77 = arith.muli %76, %c16_i32_47 : i32
    %c0_i32_48 = arith.constant 0 : i32
    %78 = arith.addi %77, %c0_i32_48 : i32
    %c0_49 = arith.constant 0 : index
    %79 = arith.index_cast %78 : i32 to index
    %c0_50 = arith.constant 0 : index
    %80 = vector.load %arg2[%c0_49, %79, %c0_50] : memref<1x256x32xf32, #tpu.memory_space<vmem>>, vector<1x14x32xf32>
    %81 = vector.shape_cast %80 : vector<1x14x32xf32> to vector<14x32xf32>
    %82 = arith.truncf %81 : vector<14x32xf32> to vector<14x32xbf16>
    %c6 = arith.constant 6 : index
    %c0_51 = arith.constant 0 : index
    %c0_52 = arith.constant 0 : index
    %83 = vector.load %arg3[%c6, %c0_51, %c0_52] : memref<9x32x32xf32, #tpu.memory_space<vmem>>, vector<1x32x32xf32>
    %84 = vector.shape_cast %83 : vector<1x32x32xf32> to vector<32x32xf32>
    %85 = arith.truncf %84 : vector<32x32xf32> to vector<32x32xbf16>
    %cst_53 = arith.constant dense<0.000000e+00> : vector<14x32xf32>
    %86 = tpu.matmul %82, %85, %cst_53 {dimension_numbers = #tpu.dot_dimension_numbers<[1], [0], [0], [1], [0, 0, 1, 1], [], []>} : vector<14x32xbf16>, vector<32x32xbf16>, vector<14x32xf32> -> vector<14x32xf32>
    %87 = arith.addf %75, %86 : vector<14x32xf32>
    %c2_i32_54 = arith.constant 2 : i32
    %88 = arith.addi %arg1, %c2_i32_54 : i32
    %c16_i32_55 = arith.constant 16 : i32
    %89 = arith.muli %88, %c16_i32_55 : i32
    %c1_i32_56 = arith.constant 1 : i32
    %90 = arith.addi %89, %c1_i32_56 : i32
    %c0_57 = arith.constant 0 : index
    %91 = arith.index_cast %90 : i32 to index
    %c0_58 = arith.constant 0 : index
    %92 = vector.load %arg2[%c0_57, %91, %c0_58] : memref<1x256x32xf32, #tpu.memory_space<vmem>>, vector<1x14x32xf32>
    %93 = vector.shape_cast %92 : vector<1x14x32xf32> to vector<14x32xf32>
    %94 = arith.truncf %93 : vector<14x32xf32> to vector<14x32xbf16>
    %c7 = arith.constant 7 : index
    %c0_59 = arith.constant 0 : index
    %c0_60 = arith.constant 0 : index
    %95 = vector.load %arg3[%c7, %c0_59, %c0_60] : memref<9x32x32xf32, #tpu.memory_space<vmem>>, vector<1x32x32xf32>
    %96 = vector.shape_cast %95 : vector<1x32x32xf32> to vector<32x32xf32>
    %97 = arith.truncf %96 : vector<32x32xf32> to vector<32x32xbf16>
    %cst_61 = arith.constant dense<0.000000e+00> : vector<14x32xf32>
    %98 = tpu.matmul %94, %97, %cst_61 {dimension_numbers = #tpu.dot_dimension_numbers<[1], [0], [0], [1], [0, 0, 1, 1], [], []>} : vector<14x32xbf16>, vector<32x32xbf16>, vector<14x32xf32> -> vector<14x32xf32>
    %99 = arith.addf %87, %98 : vector<14x32xf32>
    %c2_i32_62 = arith.constant 2 : i32
    %100 = arith.addi %arg1, %c2_i32_62 : i32
    %c16_i32_63 = arith.constant 16 : i32
    %101 = arith.muli %100, %c16_i32_63 : i32
    %c2_i32_64 = arith.constant 2 : i32
    %102 = arith.addi %101, %c2_i32_64 : i32
    %c0_65 = arith.constant 0 : index
    %103 = arith.index_cast %102 : i32 to index
    %c0_66 = arith.constant 0 : index
    %104 = vector.load %arg2[%c0_65, %103, %c0_66] : memref<1x256x32xf32, #tpu.memory_space<vmem>>, vector<1x14x32xf32>
    %105 = vector.shape_cast %104 : vector<1x14x32xf32> to vector<14x32xf32>
    %106 = arith.truncf %105 : vector<14x32xf32> to vector<14x32xbf16>
    %c8 = arith.constant 8 : index
    %c0_67 = arith.constant 0 : index
    %c0_68 = arith.constant 0 : index
    %107 = vector.load %arg3[%c8, %c0_67, %c0_68] : memref<9x32x32xf32, #tpu.memory_space<vmem>>, vector<1x32x32xf32>
    %108 = vector.shape_cast %107 : vector<1x32x32xf32> to vector<32x32xf32>
    %109 = arith.truncf %108 : vector<32x32xf32> to vector<32x32xbf16>
    %cst_69 = arith.constant dense<0.000000e+00> : vector<14x32xf32>
    %110 = tpu.matmul %106, %109, %cst_69 {dimension_numbers = #tpu.dot_dimension_numbers<[1], [0], [0], [1], [0, 0, 1, 1], [], []>} : vector<14x32xbf16>, vector<32x32xbf16>, vector<14x32xf32> -> vector<14x32xf32>
    %111 = arith.addf %99, %110 : vector<14x32xf32>
    %c0_70 = arith.constant 0 : index
    %c0_71 = arith.constant 0 : index
    %112 = vector.load %arg4[%c0_70, %c0_71] : memref<1x32xf32, #tpu.memory_space<vmem>>, vector<1x32xf32>
    %113 = vector.broadcast %112 : vector<1x32xf32> to vector<14x32xf32>
    %114 = arith.addf %111, %113 : vector<14x32xf32>
    %c0_72 = arith.constant 0 : index
    %c0_73 = arith.constant 0 : index
    %c0_74 = arith.constant 0 : index
    %c0_75 = arith.constant 0 : index
    %115 = vector.load %arg5[%c0_72, %c0_73, %c0_74, %c0_75] : memref<1x1x14x32xf32, #tpu.memory_space<vmem>>, vector<1x1x14x32xf32>
    %116 = vector.shape_cast %115 : vector<1x1x14x32xf32> to vector<14x32xf32>
    %117 = vector.shape_cast %114 : vector<14x32xf32> to vector<1x1x14x32xf32>
    tpu.vector_store %arg5[%c0_72, %c0_73, %c0_74, %c0_75], %117 {strides = array<i32>} : memref<1x1x14x32xf32, #tpu.memory_space<vmem>>, vector<1x1x14x32xf32>,
    %c0_76 = arith.constant 0 : index
    %c0_77 = arith.constant 0 : index
    %c0_78 = arith.constant 0 : index
    %118 = vector.load %arg6[%c0_76, %c0_77, %c0_78] : memref<1x2x32xf32, #tpu.memory_space<vmem>>, vector<1x1x32xf32>
    %119 = vector.shape_cast %118 : vector<1x1x32xf32> to vector<1x32xf32>
    %cst_79 = arith.constant dense<0.000000e+00> : vector<32xf32>
    %120 = vector.multi_reduction <add>, %114, %cst_79 [0] : vector<14x32xf32> to vector<32xf32>
    %121 = vector.shape_cast %120 : vector<32xf32> to vector<1x32xf32>
    %122 = arith.addf %119, %121 : vector<1x32xf32>
    %c0_80 = arith.constant 0 : index
    %c0_81 = arith.constant 0 : index
    %c0_82 = arith.constant 0 : index
    %123 = vector.load %arg6[%c0_80, %c0_81, %c0_82] : memref<1x2x32xf32, #tpu.memory_space<vmem>>, vector<1x1x32xf32>
    %124 = vector.shape_cast %123 : vector<1x1x32xf32> to vector<1x32xf32>
    %125 = vector.shape_cast %122 : vector<1x32xf32> to vector<1x1x32xf32>
    tpu.vector_store %arg6[%c0_80, %c0_81, %c0_82], %125 {strides = array<i32>} : memref<1x2x32xf32, #tpu.memory_space<vmem>>, vector<1x1x32xf32>,
    %c0_83 = arith.constant 0 : index
    %c1_84 = arith.constant 1 : index
    %c0_85 = arith.constant 0 : index
    %126 = vector.load %arg6[%c0_83, %c1_84, %c0_85] : memref<1x2x32xf32, #tpu.memory_space<vmem>>, vector<1x1x32xf32>
    %127 = vector.shape_cast %126 : vector<1x1x32xf32> to vector<1x32xf32>
    %128 = arith.mulf %114, %114 : vector<14x32xf32>
    %cst_86 = arith.constant dense<0.000000e+00> : vector<32xf32>
    %129 = vector.multi_reduction <add>, %128, %cst_86 [0] : vector<14x32xf32> to vector<32xf32>
    %130 = vector.shape_cast %129 : vector<32xf32> to vector<1x32xf32>
    %131 = arith.addf %127, %130 : vector<1x32xf32>
    %c0_87 = arith.constant 0 : index
    %c1_88 = arith.constant 1 : index
    %c0_89 = arith.constant 0 : index
    %132 = vector.load %arg6[%c0_87, %c1_88, %c0_89] : memref<1x2x32xf32, #tpu.memory_space<vmem>>, vector<1x1x32xf32>
    %133 = vector.shape_cast %132 : vector<1x1x32xf32> to vector<1x32xf32>
    %134 = vector.shape_cast %131 : vector<1x32xf32> to vector<1x1x32xf32>
    tpu.vector_store %arg6[%c0_87, %c1_88, %c0_89], %134 {strides = array<i32>} : memref<1x2x32xf32, #tpu.memory_space<vmem>>, vector<1x1x32xf32>,
    return
  }
  func.func @transform_0(%arg0: i32, %arg1: i32) -> (i32, i32, i32) {
    %c0_i32 = arith.constant 0 : i32
    %c0_i32_0 = arith.constant 0 : i32
    %c0_i32_1 = arith.constant 0 : i32
    return %arg0, %c0_i32, %c0_i32_0 : i32, i32, i32
  }
  func.func @transform_1(%arg0: i32, %arg1: i32) -> (i32, i32, i32) {
    %c0_i32 = arith.constant 0 : i32
    %c0_i32_0 = arith.constant 0 : i32
    %c0_i32_1 = arith.constant 0 : i32
    %c0_i32_2 = arith.constant 0 : i32
    return %c0_i32, %c0_i32_0, %c0_i32_1 : i32, i32, i32
  }
  func.func @transform_2(%arg0: i32, %arg1: i32) -> (i32, i32) {
    %c0_i32 = arith.constant 0 : i32
    %c0_i32_0 = arith.constant 0 : i32
    %c0_i32_1 = arith.constant 0 : i32
    return %c0_i32, %c0_i32_0 : i32, i32
  }
  func.func @transform_3(%arg0: i32, %arg1: i32) -> (i32, i32, i32, i32) {
    %c0_i32 = arith.constant 0 : i32
    %c0_i32_0 = arith.constant 0 : i32
    %c0_i32_1 = arith.constant 0 : i32
    return %arg0, %arg1, %c0_i32, %c0_i32_0 : i32, i32, i32, i32
  }
  func.func @transform_4(%arg0: i32, %arg1: i32) -> (i32, i32, i32) {
    %c0_i32 = arith.constant 0 : i32
    %c0_i32_0 = arith.constant 0 : i32
    %c0_i32_1 = arith.constant 0 : i32
    return %arg0, %c0_i32, %c0_i32_0 : i32, i32, i32
  }
}

module attributes {stable_mosaic.version = 11 : i64} {
  func.func @_affine_silu_kernel(%arg0: i32, %arg1: memref<104x128xf32, #tpu.memory_space<vmem>>, %arg2: memref<1x128xf32, #tpu.memory_space<vmem>>, %arg3: memref<1x128xf32, #tpu.memory_space<vmem>>, %arg4: memref<104x128xf32, #tpu.memory_space<vmem>>) attributes {dimension_semantics = [#tpu.dimension_semantics<parallel>], iteration_bounds = array<i64: 1>, scalar_prefetch = 0 : i64, scratch_operands = 0 : i64, tpu.core_type = #tpu.core_type<tc>, window_params = [{transform_indices = @transform_0, window_bounds = array<i64: 104, 128>}, {pipeline_mode = #tpu.pipeline_mode<synchronous>, transform_indices = @transform_1, window_bounds = array<i64: 1, 128>}, {pipeline_mode = #tpu.pipeline_mode<synchronous>, transform_indices = @transform_2, window_bounds = array<i64: 1, 128>}, {transform_indices = @transform_3, window_bounds = array<i64: 104, 128>}]} {
    %c0 = arith.constant 0 : index
    %c0_0 = arith.constant 0 : index
    %0 = vector.load %arg1[%c0, %c0_0] : memref<104x128xf32, #tpu.memory_space<vmem>>, vector<104x128xf32>
    %c0_1 = arith.constant 0 : index
    %c0_2 = arith.constant 0 : index
    %1 = vector.load %arg2[%c0_1, %c0_2] : memref<1x128xf32, #tpu.memory_space<vmem>>, vector<1x128xf32>
    %2 = vector.broadcast %1 : vector<1x128xf32> to vector<104x128xf32>
    %3 = arith.mulf %0, %2 : vector<104x128xf32>
    %c0_3 = arith.constant 0 : index
    %c0_4 = arith.constant 0 : index
    %4 = vector.load %arg3[%c0_3, %c0_4] : memref<1x128xf32, #tpu.memory_space<vmem>>, vector<1x128xf32>
    %5 = vector.broadcast %4 : vector<1x128xf32> to vector<104x128xf32>
    %6 = arith.addf %3, %5 : vector<104x128xf32>
    %cst = arith.constant 0.000000e+00 : f32
    %7 = vector.broadcast %cst : f32 to vector<104x128xf32>
    %8 = arith.subf %7, %6 : vector<104x128xf32>
    %9 = math.exp %8 : vector<104x128xf32>
    %cst_5 = arith.constant 1.000000e+00 : f32
    %10 = vector.broadcast %cst_5 : f32 to vector<104x128xf32>
    %11 = arith.addf %10, %9 : vector<104x128xf32>
    %12 = tpu.reciprocal %11 {approx = true} : vector<104x128xf32> -> vector<104x128xf32>
    %13 = arith.mulf %6, %12 : vector<104x128xf32>
    %c0_6 = arith.constant 0 : index
    %c0_7 = arith.constant 0 : index
    %14 = vector.load %arg4[%c0_6, %c0_7] : memref<104x128xf32, #tpu.memory_space<vmem>>, vector<104x128xf32>
    tpu.vector_store %arg4[%c0_6, %c0_7], %13 {strides = array<i32>} : memref<104x128xf32, #tpu.memory_space<vmem>>, vector<104x128xf32>,
    return
  }
  func.func @transform_0(%arg0: i32) -> (i32, i32) {
    %c0_i32 = arith.constant 0 : i32
    %c0_i32_0 = arith.constant 0 : i32
    return %arg0, %c0_i32 : i32, i32
  }
  func.func @transform_1(%arg0: i32) -> (i32, i32) {
    %c0_i32 = arith.constant 0 : i32
    %c0_i32_0 = arith.constant 0 : i32
    %c0_i32_1 = arith.constant 0 : i32
    return %c0_i32, %c0_i32_0 : i32, i32
  }
  func.func @transform_2(%arg0: i32) -> (i32, i32) {
    %c0_i32 = arith.constant 0 : i32
    %c0_i32_0 = arith.constant 0 : i32
    %c0_i32_1 = arith.constant 0 : i32
    return %c0_i32, %c0_i32_0 : i32, i32
  }
  func.func @transform_3(%arg0: i32) -> (i32, i32) {
    %c0_i32 = arith.constant 0 : i32
    %c0_i32_0 = arith.constant 0 : i32
    return %arg0, %c0_i32 : i32, i32
  }
}

module attributes {stable_mosaic.version = 11 : i64} {
  func.func @_affine_residual_kernel(%arg0: i32, %arg1: memref<104x128xf32, #tpu.memory_space<vmem>>, %arg2: memref<104x128xf32, #tpu.memory_space<vmem>>, %arg3: memref<1x128xf32, #tpu.memory_space<vmem>>, %arg4: memref<1x128xf32, #tpu.memory_space<vmem>>, %arg5: memref<104x128xf32, #tpu.memory_space<vmem>>) attributes {dimension_semantics = [#tpu.dimension_semantics<parallel>], iteration_bounds = array<i64: 1>, scalar_prefetch = 0 : i64, scratch_operands = 0 : i64, tpu.core_type = #tpu.core_type<tc>, window_params = [{transform_indices = @transform_0, window_bounds = array<i64: 104, 128>}, {transform_indices = @transform_1, window_bounds = array<i64: 104, 128>}, {pipeline_mode = #tpu.pipeline_mode<synchronous>, transform_indices = @transform_2, window_bounds = array<i64: 1, 128>}, {pipeline_mode = #tpu.pipeline_mode<synchronous>, transform_indices = @transform_3, window_bounds = array<i64: 1, 128>}, {transform_indices = @transform_4, window_bounds = array<i64: 104, 128>}]} {
    %c0 = arith.constant 0 : index
    %c0_0 = arith.constant 0 : index
    %0 = vector.load %arg1[%c0, %c0_0] : memref<104x128xf32, #tpu.memory_space<vmem>>, vector<104x128xf32>
    %c0_1 = arith.constant 0 : index
    %c0_2 = arith.constant 0 : index
    %1 = vector.load %arg3[%c0_1, %c0_2] : memref<1x128xf32, #tpu.memory_space<vmem>>, vector<1x128xf32>
    %2 = vector.broadcast %1 : vector<1x128xf32> to vector<104x128xf32>
    %3 = arith.mulf %0, %2 : vector<104x128xf32>
    %c0_3 = arith.constant 0 : index
    %c0_4 = arith.constant 0 : index
    %4 = vector.load %arg4[%c0_3, %c0_4] : memref<1x128xf32, #tpu.memory_space<vmem>>, vector<1x128xf32>
    %5 = vector.broadcast %4 : vector<1x128xf32> to vector<104x128xf32>
    %6 = arith.addf %3, %5 : vector<104x128xf32>
    %c0_5 = arith.constant 0 : index
    %c0_6 = arith.constant 0 : index
    %7 = vector.load %arg2[%c0_5, %c0_6] : memref<104x128xf32, #tpu.memory_space<vmem>>, vector<104x128xf32>
    %8 = arith.addf %6, %7 : vector<104x128xf32>
    %c0_7 = arith.constant 0 : index
    %c0_8 = arith.constant 0 : index
    %9 = vector.load %arg5[%c0_7, %c0_8] : memref<104x128xf32, #tpu.memory_space<vmem>>, vector<104x128xf32>
    tpu.vector_store %arg5[%c0_7, %c0_8], %8 {strides = array<i32>} : memref<104x128xf32, #tpu.memory_space<vmem>>, vector<104x128xf32>,
    return
  }
  func.func @transform_0(%arg0: i32) -> (i32, i32) {
    %c0_i32 = arith.constant 0 : i32
    %c0_i32_0 = arith.constant 0 : i32
    return %arg0, %c0_i32 : i32, i32
  }
  func.func @transform_1(%arg0: i32) -> (i32, i32) {
    %c0_i32 = arith.constant 0 : i32
    %c0_i32_0 = arith.constant 0 : i32
    return %arg0, %c0_i32 : i32, i32
  }
  func.func @transform_2(%arg0: i32) -> (i32, i32) {
    %c0_i32 = arith.constant 0 : i32
    %c0_i32_0 = arith.constant 0 : i32
    %c0_i32_1 = arith.constant 0 : i32
    return %c0_i32, %c0_i32_0 : i32, i32
  }
  func.func @transform_3(%arg0: i32) -> (i32, i32) {
    %c0_i32 = arith.constant 0 : i32
    %c0_i32_0 = arith.constant 0 : i32
    %c0_i32_1 = arith.constant 0 : i32
    return %c0_i32, %c0_i32_0 : i32, i32
  }
  func.func @transform_4(%arg0: i32) -> (i32, i32) {
    %c0_i32 = arith.constant 0 : i32
    %c0_i32_0 = arith.constant 0 : i32
    return %arg0, %c0_i32 : i32, i32
  }
}

module attributes {stable_mosaic.version = 11 : i64} {
  func.func @_conv3x3_row_kernel(%arg0: i32, %arg1: i32, %arg2: memref<1x225x32xf32, #tpu.memory_space<vmem>>, %arg3: memref<9x32x32xf32, #tpu.memory_space<vmem>>, %arg4: memref<1x32xf32, #tpu.memory_space<vmem>>, %arg5: memref<1x1x13x32xf32, #tpu.memory_space<vmem>>, %arg6: memref<1x2x32xf32, #tpu.memory_space<vmem>>) attributes {dimension_semantics = [#tpu.dimension_semantics<parallel>, #tpu.dimension_semantics<arbitrary>], iteration_bounds = array<i64: 2, 13>, scalar_prefetch = 0 : i64, scratch_operands = 0 : i64, tpu.core_type = #tpu.core_type<tc>, window_params = [{transform_indices = @transform_0, window_bounds = array<i64: 1, 225, 32>}, {pipeline_mode = #tpu.pipeline_mode<synchronous>, transform_indices = @transform_1, window_bounds = array<i64: 9, 32, 32>}, {pipeline_mode = #tpu.pipeline_mode<synchronous>, transform_indices = @transform_2, window_bounds = array<i64: 1, 32>}, {transform_indices = @transform_3, window_bounds = array<i64: 1, 1, 13, 32>}, {transform_indices = @transform_4, window_bounds = array<i64: 1, 2, 32>}]} {
    %c0_i32 = arith.constant 0 : i32
    %0 = arith.cmpi eq, %arg1, %c0_i32 : i32
    %1 = arith.extui %0 : i1 to i32
    %c0_i32_0 = arith.constant 0 : i32
    %2 = arith.cmpi ne, %1, %c0_i32_0 : i32
    scf.if %2 {
      %cst_90 = arith.constant 0.000000e+00 : f32
      %135 = vector.broadcast %cst_90 : f32 to vector<1x2x32xf32>
      %c0_91 = arith.constant 0 : index
      %c0_92 = arith.constant 0 : index
      %c0_93 = arith.constant 0 : index
      %136 = vector.load %arg6[%c0_91, %c0_92, %c0_93] : memref<1x2x32xf32, #tpu.memory_space<vmem>>, vector<1x2x32xf32>
      tpu.vector_store %arg6[%c0_91, %c0_92, %c0_93], %135 {strides = array<i32>} : memref<1x2x32xf32, #tpu.memory_space<vmem>>, vector<1x2x32xf32>,
    } else {
    }
    %cst = arith.constant 0.000000e+00 : f32
    %3 = vector.broadcast %cst : f32 to vector<13x32xf32>
    %c0_i32_1 = arith.constant 0 : i32
    %4 = arith.addi %arg1, %c0_i32_1 : i32
    %c15_i32 = arith.constant 15 : i32
    %5 = arith.muli %4, %c15_i32 : i32
    %c0_i32_2 = arith.constant 0 : i32
    %6 = arith.addi %5, %c0_i32_2 : i32
    %c0 = arith.constant 0 : index
    %7 = arith.index_cast %6 : i32 to index
    %c0_3 = arith.constant 0 : index
    %8 = vector.load %arg2[%c0, %7, %c0_3] : memref<1x225x32xf32, #tpu.memory_space<vmem>>, vector<1x13x32xf32>
    %9 = vector.shape_cast %8 : vector<1x13x32xf32> to vector<13x32xf32>
    %10 = arith.truncf %9 : vector<13x32xf32> to vector<13x32xbf16>
    %c0_4 = arith.constant 0 : index
    %c0_5 = arith.constant 0 : index
    %c0_6 = arith.constant 0 : index
    %11 = vector.load %arg3[%c0_4, %c0_5, %c0_6] : memref<9x32x32xf32, #tpu.memory_space<vmem>>, vector<1x32x32xf32>
    %12 = vector.shape_cast %11 : vector<1x32x32xf32> to vector<32x32xf32>
    %13 = arith.truncf %12 : vector<32x32xf32> to vector<32x32xbf16>
    %cst_7 = arith.constant dense<0.000000e+00> : vector<13x32xf32>
    %14 = tpu.matmul %10, %13, %cst_7 {dimension_numbers = #tpu.dot_dimension_numbers<[1], [0], [0], [1], [0, 0, 1, 1], [], []>} : vector<13x32xbf16>, vector<32x32xbf16>, vector<13x32xf32> -> vector<13x32xf32>
    %15 = arith.addf %3, %14 : vector<13x32xf32>
    %c0_i32_8 = arith.constant 0 : i32
    %16 = arith.addi %arg1, %c0_i32_8 : i32
    %c15_i32_9 = arith.constant 15 : i32
    %17 = arith.muli %16, %c15_i32_9 : i32
    %c1_i32 = arith.constant 1 : i32
    %18 = arith.addi %17, %c1_i32 : i32
    %c0_10 = arith.constant 0 : index
    %19 = arith.index_cast %18 : i32 to index
    %c0_11 = arith.constant 0 : index
    %20 = vector.load %arg2[%c0_10, %19, %c0_11] : memref<1x225x32xf32, #tpu.memory_space<vmem>>, vector<1x13x32xf32>
    %21 = vector.shape_cast %20 : vector<1x13x32xf32> to vector<13x32xf32>
    %22 = arith.truncf %21 : vector<13x32xf32> to vector<13x32xbf16>
    %c1 = arith.constant 1 : index
    %c0_12 = arith.constant 0 : index
    %c0_13 = arith.constant 0 : index
    %23 = vector.load %arg3[%c1, %c0_12, %c0_13] : memref<9x32x32xf32, #tpu.memory_space<vmem>>, vector<1x32x32xf32>
    %24 = vector.shape_cast %23 : vector<1x32x32xf32> to vector<32x32xf32>
    %25 = arith.truncf %24 : vector<32x32xf32> to vector<32x32xbf16>
    %cst_14 = arith.constant dense<0.000000e+00> : vector<13x32xf32>
    %26 = tpu.matmul %22, %25, %cst_14 {dimension_numbers = #tpu.dot_dimension_numbers<[1], [0], [0], [1], [0, 0, 1, 1], [], []>} : vector<13x32xbf16>, vector<32x32xbf16>, vector<13x32xf32> -> vector<13x32xf32>
    %27 = arith.addf %15, %26 : vector<13x32xf32>
    %c0_i32_15 = arith.constant 0 : i32
    %28 = arith.addi %arg1, %c0_i32_15 : i32
    %c15_i32_16 = arith.constant 15 : i32
    %29 = arith.muli %28, %c15_i32_16 : i32
    %c2_i32 = arith.constant 2 : i32
    %30 = arith.addi %29, %c2_i32 : i32
    %c0_17 = arith.constant 0 : index
    %31 = arith.index_cast %30 : i32 to index
    %c0_18 = arith.constant 0 : index
    %32 = vector.load %arg2[%c0_17, %31, %c0_18] : memref<1x225x32xf32, #tpu.memory_space<vmem>>, vector<1x13x32xf32>
    %33 = vector.shape_cast %32 : vector<1x13x32xf32> to vector<13x32xf32>
    %34 = arith.truncf %33 : vector<13x32xf32> to vector<13x32xbf16>
    %c2 = arith.constant 2 : index
    %c0_19 = arith.constant 0 : index
    %c0_20 = arith.constant 0 : index
    %35 = vector.load %arg3[%c2, %c0_19, %c0_20] : memref<9x32x32xf32, #tpu.memory_space<vmem>>, vector<1x32x32xf32>
    %36 = vector.shape_cast %35 : vector<1x32x32xf32> to vector<32x32xf32>
    %37 = arith.truncf %36 : vector<32x32xf32> to vector<32x32xbf16>
    %cst_21 = arith.constant dense<0.000000e+00> : vector<13x32xf32>
    %38 = tpu.matmul %34, %37, %cst_21 {dimension_numbers = #tpu.dot_dimension_numbers<[1], [0], [0], [1], [0, 0, 1, 1], [], []>} : vector<13x32xbf16>, vector<32x32xbf16>, vector<13x32xf32> -> vector<13x32xf32>
    %39 = arith.addf %27, %38 : vector<13x32xf32>
    %c1_i32_22 = arith.constant 1 : i32
    %40 = arith.addi %arg1, %c1_i32_22 : i32
    %c15_i32_23 = arith.constant 15 : i32
    %41 = arith.muli %40, %c15_i32_23 : i32
    %c0_i32_24 = arith.constant 0 : i32
    %42 = arith.addi %41, %c0_i32_24 : i32
    %c0_25 = arith.constant 0 : index
    %43 = arith.index_cast %42 : i32 to index
    %c0_26 = arith.constant 0 : index
    %44 = vector.load %arg2[%c0_25, %43, %c0_26] : memref<1x225x32xf32, #tpu.memory_space<vmem>>, vector<1x13x32xf32>
    %45 = vector.shape_cast %44 : vector<1x13x32xf32> to vector<13x32xf32>
    %46 = arith.truncf %45 : vector<13x32xf32> to vector<13x32xbf16>
    %c3 = arith.constant 3 : index
    %c0_27 = arith.constant 0 : index
    %c0_28 = arith.constant 0 : index
    %47 = vector.load %arg3[%c3, %c0_27, %c0_28] : memref<9x32x32xf32, #tpu.memory_space<vmem>>, vector<1x32x32xf32>
    %48 = vector.shape_cast %47 : vector<1x32x32xf32> to vector<32x32xf32>
    %49 = arith.truncf %48 : vector<32x32xf32> to vector<32x32xbf16>
    %cst_29 = arith.constant dense<0.000000e+00> : vector<13x32xf32>
    %50 = tpu.matmul %46, %49, %cst_29 {dimension_numbers = #tpu.dot_dimension_numbers<[1], [0], [0], [1], [0, 0, 1, 1], [], []>} : vector<13x32xbf16>, vector<32x32xbf16>, vector<13x32xf32> -> vector<13x32xf32>
    %51 = arith.addf %39, %50 : vector<13x32xf32>
    %c1_i32_30 = arith.constant 1 : i32
    %52 = arith.addi %arg1, %c1_i32_30 : i32
    %c15_i32_31 = arith.constant 15 : i32
    %53 = arith.muli %52, %c15_i32_31 : i32
    %c1_i32_32 = arith.constant 1 : i32
    %54 = arith.addi %53, %c1_i32_32 : i32
    %c0_33 = arith.constant 0 : index
    %55 = arith.index_cast %54 : i32 to index
    %c0_34 = arith.constant 0 : index
    %56 = vector.load %arg2[%c0_33, %55, %c0_34] : memref<1x225x32xf32, #tpu.memory_space<vmem>>, vector<1x13x32xf32>
    %57 = vector.shape_cast %56 : vector<1x13x32xf32> to vector<13x32xf32>
    %58 = arith.truncf %57 : vector<13x32xf32> to vector<13x32xbf16>
    %c4 = arith.constant 4 : index
    %c0_35 = arith.constant 0 : index
    %c0_36 = arith.constant 0 : index
    %59 = vector.load %arg3[%c4, %c0_35, %c0_36] : memref<9x32x32xf32, #tpu.memory_space<vmem>>, vector<1x32x32xf32>
    %60 = vector.shape_cast %59 : vector<1x32x32xf32> to vector<32x32xf32>
    %61 = arith.truncf %60 : vector<32x32xf32> to vector<32x32xbf16>
    %cst_37 = arith.constant dense<0.000000e+00> : vector<13x32xf32>
    %62 = tpu.matmul %58, %61, %cst_37 {dimension_numbers = #tpu.dot_dimension_numbers<[1], [0], [0], [1], [0, 0, 1, 1], [], []>} : vector<13x32xbf16>, vector<32x32xbf16>, vector<13x32xf32> -> vector<13x32xf32>
    %63 = arith.addf %51, %62 : vector<13x32xf32>
    %c1_i32_38 = arith.constant 1 : i32
    %64 = arith.addi %arg1, %c1_i32_38 : i32
    %c15_i32_39 = arith.constant 15 : i32
    %65 = arith.muli %64, %c15_i32_39 : i32
    %c2_i32_40 = arith.constant 2 : i32
    %66 = arith.addi %65, %c2_i32_40 : i32
    %c0_41 = arith.constant 0 : index
    %67 = arith.index_cast %66 : i32 to index
    %c0_42 = arith.constant 0 : index
    %68 = vector.load %arg2[%c0_41, %67, %c0_42] : memref<1x225x32xf32, #tpu.memory_space<vmem>>, vector<1x13x32xf32>
    %69 = vector.shape_cast %68 : vector<1x13x32xf32> to vector<13x32xf32>
    %70 = arith.truncf %69 : vector<13x32xf32> to vector<13x32xbf16>
    %c5 = arith.constant 5 : index
    %c0_43 = arith.constant 0 : index
    %c0_44 = arith.constant 0 : index
    %71 = vector.load %arg3[%c5, %c0_43, %c0_44] : memref<9x32x32xf32, #tpu.memory_space<vmem>>, vector<1x32x32xf32>
    %72 = vector.shape_cast %71 : vector<1x32x32xf32> to vector<32x32xf32>
    %73 = arith.truncf %72 : vector<32x32xf32> to vector<32x32xbf16>
    %cst_45 = arith.constant dense<0.000000e+00> : vector<13x32xf32>
    %74 = tpu.matmul %70, %73, %cst_45 {dimension_numbers = #tpu.dot_dimension_numbers<[1], [0], [0], [1], [0, 0, 1, 1], [], []>} : vector<13x32xbf16>, vector<32x32xbf16>, vector<13x32xf32> -> vector<13x32xf32>
    %75 = arith.addf %63, %74 : vector<13x32xf32>
    %c2_i32_46 = arith.constant 2 : i32
    %76 = arith.addi %arg1, %c2_i32_46 : i32
    %c15_i32_47 = arith.constant 15 : i32
    %77 = arith.muli %76, %c15_i32_47 : i32
    %c0_i32_48 = arith.constant 0 : i32
    %78 = arith.addi %77, %c0_i32_48 : i32
    %c0_49 = arith.constant 0 : index
    %79 = arith.index_cast %78 : i32 to index
    %c0_50 = arith.constant 0 : index
    %80 = vector.load %arg2[%c0_49, %79, %c0_50] : memref<1x225x32xf32, #tpu.memory_space<vmem>>, vector<1x13x32xf32>
    %81 = vector.shape_cast %80 : vector<1x13x32xf32> to vector<13x32xf32>
    %82 = arith.truncf %81 : vector<13x32xf32> to vector<13x32xbf16>
    %c6 = arith.constant 6 : index
    %c0_51 = arith.constant 0 : index
    %c0_52 = arith.constant 0 : index
    %83 = vector.load %arg3[%c6, %c0_51, %c0_52] : memref<9x32x32xf32, #tpu.memory_space<vmem>>, vector<1x32x32xf32>
    %84 = vector.shape_cast %83 : vector<1x32x32xf32> to vector<32x32xf32>
    %85 = arith.truncf %84 : vector<32x32xf32> to vector<32x32xbf16>
    %cst_53 = arith.constant dense<0.000000e+00> : vector<13x32xf32>
    %86 = tpu.matmul %82, %85, %cst_53 {dimension_numbers = #tpu.dot_dimension_numbers<[1], [0], [0], [1], [0, 0, 1, 1], [], []>} : vector<13x32xbf16>, vector<32x32xbf16>, vector<13x32xf32> -> vector<13x32xf32>
    %87 = arith.addf %75, %86 : vector<13x32xf32>
    %c2_i32_54 = arith.constant 2 : i32
    %88 = arith.addi %arg1, %c2_i32_54 : i32
    %c15_i32_55 = arith.constant 15 : i32
    %89 = arith.muli %88, %c15_i32_55 : i32
    %c1_i32_56 = arith.constant 1 : i32
    %90 = arith.addi %89, %c1_i32_56 : i32
    %c0_57 = arith.constant 0 : index
    %91 = arith.index_cast %90 : i32 to index
    %c0_58 = arith.constant 0 : index
    %92 = vector.load %arg2[%c0_57, %91, %c0_58] : memref<1x225x32xf32, #tpu.memory_space<vmem>>, vector<1x13x32xf32>
    %93 = vector.shape_cast %92 : vector<1x13x32xf32> to vector<13x32xf32>
    %94 = arith.truncf %93 : vector<13x32xf32> to vector<13x32xbf16>
    %c7 = arith.constant 7 : index
    %c0_59 = arith.constant 0 : index
    %c0_60 = arith.constant 0 : index
    %95 = vector.load %arg3[%c7, %c0_59, %c0_60] : memref<9x32x32xf32, #tpu.memory_space<vmem>>, vector<1x32x32xf32>
    %96 = vector.shape_cast %95 : vector<1x32x32xf32> to vector<32x32xf32>
    %97 = arith.truncf %96 : vector<32x32xf32> to vector<32x32xbf16>
    %cst_61 = arith.constant dense<0.000000e+00> : vector<13x32xf32>
    %98 = tpu.matmul %94, %97, %cst_61 {dimension_numbers = #tpu.dot_dimension_numbers<[1], [0], [0], [1], [0, 0, 1, 1], [], []>} : vector<13x32xbf16>, vector<32x32xbf16>, vector<13x32xf32> -> vector<13x32xf32>
    %99 = arith.addf %87, %98 : vector<13x32xf32>
    %c2_i32_62 = arith.constant 2 : i32
    %100 = arith.addi %arg1, %c2_i32_62 : i32
    %c15_i32_63 = arith.constant 15 : i32
    %101 = arith.muli %100, %c15_i32_63 : i32
    %c2_i32_64 = arith.constant 2 : i32
    %102 = arith.addi %101, %c2_i32_64 : i32
    %c0_65 = arith.constant 0 : index
    %103 = arith.index_cast %102 : i32 to index
    %c0_66 = arith.constant 0 : index
    %104 = vector.load %arg2[%c0_65, %103, %c0_66] : memref<1x225x32xf32, #tpu.memory_space<vmem>>, vector<1x13x32xf32>
    %105 = vector.shape_cast %104 : vector<1x13x32xf32> to vector<13x32xf32>
    %106 = arith.truncf %105 : vector<13x32xf32> to vector<13x32xbf16>
    %c8 = arith.constant 8 : index
    %c0_67 = arith.constant 0 : index
    %c0_68 = arith.constant 0 : index
    %107 = vector.load %arg3[%c8, %c0_67, %c0_68] : memref<9x32x32xf32, #tpu.memory_space<vmem>>, vector<1x32x32xf32>
    %108 = vector.shape_cast %107 : vector<1x32x32xf32> to vector<32x32xf32>
    %109 = arith.truncf %108 : vector<32x32xf32> to vector<32x32xbf16>
    %cst_69 = arith.constant dense<0.000000e+00> : vector<13x32xf32>
    %110 = tpu.matmul %106, %109, %cst_69 {dimension_numbers = #tpu.dot_dimension_numbers<[1], [0], [0], [1], [0, 0, 1, 1], [], []>} : vector<13x32xbf16>, vector<32x32xbf16>, vector<13x32xf32> -> vector<13x32xf32>
    %111 = arith.addf %99, %110 : vector<13x32xf32>
    %c0_70 = arith.constant 0 : index
    %c0_71 = arith.constant 0 : index
    %112 = vector.load %arg4[%c0_70, %c0_71] : memref<1x32xf32, #tpu.memory_space<vmem>>, vector<1x32xf32>
    %113 = vector.broadcast %112 : vector<1x32xf32> to vector<13x32xf32>
    %114 = arith.addf %111, %113 : vector<13x32xf32>
    %c0_72 = arith.constant 0 : index
    %c0_73 = arith.constant 0 : index
    %c0_74 = arith.constant 0 : index
    %c0_75 = arith.constant 0 : index
    %115 = vector.load %arg5[%c0_72, %c0_73, %c0_74, %c0_75] : memref<1x1x13x32xf32, #tpu.memory_space<vmem>>, vector<1x1x13x32xf32>
    %116 = vector.shape_cast %115 : vector<1x1x13x32xf32> to vector<13x32xf32>
    %117 = vector.shape_cast %114 : vector<13x32xf32> to vector<1x1x13x32xf32>
    tpu.vector_store %arg5[%c0_72, %c0_73, %c0_74, %c0_75], %117 {strides = array<i32>} : memref<1x1x13x32xf32, #tpu.memory_space<vmem>>, vector<1x1x13x32xf32>,
    %c0_76 = arith.constant 0 : index
    %c0_77 = arith.constant 0 : index
    %c0_78 = arith.constant 0 : index
    %118 = vector.load %arg6[%c0_76, %c0_77, %c0_78] : memref<1x2x32xf32, #tpu.memory_space<vmem>>, vector<1x1x32xf32>
    %119 = vector.shape_cast %118 : vector<1x1x32xf32> to vector<1x32xf32>
    %cst_79 = arith.constant dense<0.000000e+00> : vector<32xf32>
    %120 = vector.multi_reduction <add>, %114, %cst_79 [0] : vector<13x32xf32> to vector<32xf32>
    %121 = vector.shape_cast %120 : vector<32xf32> to vector<1x32xf32>
    %122 = arith.addf %119, %121 : vector<1x32xf32>
    %c0_80 = arith.constant 0 : index
    %c0_81 = arith.constant 0 : index
    %c0_82 = arith.constant 0 : index
    %123 = vector.load %arg6[%c0_80, %c0_81, %c0_82] : memref<1x2x32xf32, #tpu.memory_space<vmem>>, vector<1x1x32xf32>
    %124 = vector.shape_cast %123 : vector<1x1x32xf32> to vector<1x32xf32>
    %125 = vector.shape_cast %122 : vector<1x32xf32> to vector<1x1x32xf32>
    tpu.vector_store %arg6[%c0_80, %c0_81, %c0_82], %125 {strides = array<i32>} : memref<1x2x32xf32, #tpu.memory_space<vmem>>, vector<1x1x32xf32>,
    %c0_83 = arith.constant 0 : index
    %c1_84 = arith.constant 1 : index
    %c0_85 = arith.constant 0 : index
    %126 = vector.load %arg6[%c0_83, %c1_84, %c0_85] : memref<1x2x32xf32, #tpu.memory_space<vmem>>, vector<1x1x32xf32>
    %127 = vector.shape_cast %126 : vector<1x1x32xf32> to vector<1x32xf32>
    %128 = arith.mulf %114, %114 : vector<13x32xf32>
    %cst_86 = arith.constant dense<0.000000e+00> : vector<32xf32>
    %129 = vector.multi_reduction <add>, %128, %cst_86 [0] : vector<13x32xf32> to vector<32xf32>
    %130 = vector.shape_cast %129 : vector<32xf32> to vector<1x32xf32>
    %131 = arith.addf %127, %130 : vector<1x32xf32>
    %c0_87 = arith.constant 0 : index
    %c1_88 = arith.constant 1 : index
    %c0_89 = arith.constant 0 : index
    %132 = vector.load %arg6[%c0_87, %c1_88, %c0_89] : memref<1x2x32xf32, #tpu.memory_space<vmem>>, vector<1x1x32xf32>
    %133 = vector.shape_cast %132 : vector<1x1x32xf32> to vector<1x32xf32>
    %134 = vector.shape_cast %131 : vector<1x32xf32> to vector<1x1x32xf32>
    tpu.vector_store %arg6[%c0_87, %c1_88, %c0_89], %134 {strides = array<i32>} : memref<1x2x32xf32, #tpu.memory_space<vmem>>, vector<1x1x32xf32>,
    return
  }
  func.func @transform_0(%arg0: i32, %arg1: i32) -> (i32, i32, i32) {
    %c0_i32 = arith.constant 0 : i32
    %c0_i32_0 = arith.constant 0 : i32
    %c0_i32_1 = arith.constant 0 : i32
    return %arg0, %c0_i32, %c0_i32_0 : i32, i32, i32
  }
  func.func @transform_1(%arg0: i32, %arg1: i32) -> (i32, i32, i32) {
    %c0_i32 = arith.constant 0 : i32
    %c0_i32_0 = arith.constant 0 : i32
    %c0_i32_1 = arith.constant 0 : i32
    %c0_i32_2 = arith.constant 0 : i32
    return %c0_i32, %c0_i32_0, %c0_i32_1 : i32, i32, i32
  }
  func.func @transform_2(%arg0: i32, %arg1: i32) -> (i32, i32) {
    %c0_i32 = arith.constant 0 : i32
    %c0_i32_0 = arith.constant 0 : i32
    %c0_i32_1 = arith.constant 0 : i32
    return %c0_i32, %c0_i32_0 : i32, i32
  }
  func.func @transform_3(%arg0: i32, %arg1: i32) -> (i32, i32, i32, i32) {
    %c0_i32 = arith.constant 0 : i32
    %c0_i32_0 = arith.constant 0 : i32
    %c0_i32_1 = arith.constant 0 : i32
    return %arg0, %arg1, %c0_i32, %c0_i32_0 : i32, i32, i32, i32
  }
  func.func @transform_4(%arg0: i32, %arg1: i32) -> (i32, i32, i32) {
    %c0_i32 = arith.constant 0 : i32
    %c0_i32_0 = arith.constant 0 : i32
    %c0_i32_1 = arith.constant 0 : i32
    return %arg0, %c0_i32, %c0_i32_0 : i32, i32, i32
  }
}

module attributes {stable_mosaic.version = 11 : i64} {
  func.func @_affine_silu_kernel(%arg0: i32, %arg1: memref<88x128xf32, #tpu.memory_space<vmem>>, %arg2: memref<1x128xf32, #tpu.memory_space<vmem>>, %arg3: memref<1x128xf32, #tpu.memory_space<vmem>>, %arg4: memref<88x128xf32, #tpu.memory_space<vmem>>) attributes {dimension_semantics = [#tpu.dimension_semantics<parallel>], iteration_bounds = array<i64: 1>, scalar_prefetch = 0 : i64, scratch_operands = 0 : i64, tpu.core_type = #tpu.core_type<tc>, window_params = [{transform_indices = @transform_0, window_bounds = array<i64: 88, 128>}, {pipeline_mode = #tpu.pipeline_mode<synchronous>, transform_indices = @transform_1, window_bounds = array<i64: 1, 128>}, {pipeline_mode = #tpu.pipeline_mode<synchronous>, transform_indices = @transform_2, window_bounds = array<i64: 1, 128>}, {transform_indices = @transform_3, window_bounds = array<i64: 88, 128>}]} {
    %c0 = arith.constant 0 : index
    %c0_0 = arith.constant 0 : index
    %0 = vector.load %arg1[%c0, %c0_0] : memref<88x128xf32, #tpu.memory_space<vmem>>, vector<88x128xf32>
    %c0_1 = arith.constant 0 : index
    %c0_2 = arith.constant 0 : index
    %1 = vector.load %arg2[%c0_1, %c0_2] : memref<1x128xf32, #tpu.memory_space<vmem>>, vector<1x128xf32>
    %2 = vector.broadcast %1 : vector<1x128xf32> to vector<88x128xf32>
    %3 = arith.mulf %0, %2 : vector<88x128xf32>
    %c0_3 = arith.constant 0 : index
    %c0_4 = arith.constant 0 : index
    %4 = vector.load %arg3[%c0_3, %c0_4] : memref<1x128xf32, #tpu.memory_space<vmem>>, vector<1x128xf32>
    %5 = vector.broadcast %4 : vector<1x128xf32> to vector<88x128xf32>
    %6 = arith.addf %3, %5 : vector<88x128xf32>
    %cst = arith.constant 0.000000e+00 : f32
    %7 = vector.broadcast %cst : f32 to vector<88x128xf32>
    %8 = arith.subf %7, %6 : vector<88x128xf32>
    %9 = math.exp %8 : vector<88x128xf32>
    %cst_5 = arith.constant 1.000000e+00 : f32
    %10 = vector.broadcast %cst_5 : f32 to vector<88x128xf32>
    %11 = arith.addf %10, %9 : vector<88x128xf32>
    %12 = tpu.reciprocal %11 {approx = true} : vector<88x128xf32> -> vector<88x128xf32>
    %13 = arith.mulf %6, %12 : vector<88x128xf32>
    %c0_6 = arith.constant 0 : index
    %c0_7 = arith.constant 0 : index
    %14 = vector.load %arg4[%c0_6, %c0_7] : memref<88x128xf32, #tpu.memory_space<vmem>>, vector<88x128xf32>
    tpu.vector_store %arg4[%c0_6, %c0_7], %13 {strides = array<i32>} : memref<88x128xf32, #tpu.memory_space<vmem>>, vector<88x128xf32>,
    return
  }
  func.func @transform_0(%arg0: i32) -> (i32, i32) {
    %c0_i32 = arith.constant 0 : i32
    %c0_i32_0 = arith.constant 0 : i32
    return %arg0, %c0_i32 : i32, i32
  }
  func.func @transform_1(%arg0: i32) -> (i32, i32) {
    %c0_i32 = arith.constant 0 : i32
    %c0_i32_0 = arith.constant 0 : i32
    %c0_i32_1 = arith.constant 0 : i32
    return %c0_i32, %c0_i32_0 : i32, i32
  }
  func.func @transform_2(%arg0: i32) -> (i32, i32) {
    %c0_i32 = arith.constant 0 : i32
    %c0_i32_0 = arith.constant 0 : i32
    %c0_i32_1 = arith.constant 0 : i32
    return %c0_i32, %c0_i32_0 : i32, i32
  }
  func.func @transform_3(%arg0: i32) -> (i32, i32) {
    %c0_i32 = arith.constant 0 : i32
    %c0_i32_0 = arith.constant 0 : i32
    return %arg0, %c0_i32 : i32, i32
  }
}

module attributes {stable_mosaic.version = 11 : i64} {
  func.func @_interp_rows_kernel(%arg0: i32, %arg1: memref<26x13xf32, #tpu.memory_space<vmem>>, %arg2: memref<1x13x416xf32, #tpu.memory_space<vmem>>, %arg3: memref<1x26x416xf32, #tpu.memory_space<vmem>>) attributes {dimension_semantics = [#tpu.dimension_semantics<parallel>], iteration_bounds = array<i64: 2>, scalar_prefetch = 0 : i64, scratch_operands = 0 : i64, tpu.core_type = #tpu.core_type<tc>, window_params = [{pipeline_mode = #tpu.pipeline_mode<synchronous>, transform_indices = @transform_0, window_bounds = array<i64: 26, 13>}, {transform_indices = @transform_1, window_bounds = array<i64: 1, 13, 416>}, {transform_indices = @transform_2, window_bounds = array<i64: 1, 26, 416>}]} {
    %c0 = arith.constant 0 : index
    %c0_0 = arith.constant 0 : index
    %0 = vector.load %arg1[%c0, %c0_0] : memref<26x13xf32, #tpu.memory_space<vmem>>, vector<26x13xf32>
    %c0_1 = arith.constant 0 : index
    %c0_2 = arith.constant 0 : index
    %c0_3 = arith.constant 0 : index
    %1 = vector.load %arg2[%c0_1, %c0_2, %c0_3] : memref<1x13x416xf32, #tpu.memory_space<vmem>>, vector<1x13x416xf32>
    %2 = vector.shape_cast %1 : vector<1x13x416xf32> to vector<13x416xf32>
    %cst = arith.constant dense<0.000000e+00> : vector<26x416xf32>
    %3 = tpu.matmul %0, %2, %cst {dimension_numbers = #tpu.dot_dimension_numbers<[1], [0], [0], [1], [0, 0, 1, 1], [], []>} : vector<26x13xf32>, vector<13x416xf32>, vector<26x416xf32> -> vector<26x416xf32>
    %c0_4 = arith.constant 0 : index
    %c0_5 = arith.constant 0 : index
    %c0_6 = arith.constant 0 : index
    %4 = vector.load %arg3[%c0_4, %c0_5, %c0_6] : memref<1x26x416xf32, #tpu.memory_space<vmem>>, vector<1x26x416xf32>
    %5 = vector.shape_cast %4 : vector<1x26x416xf32> to vector<26x416xf32>
    %6 = vector.shape_cast %3 : vector<26x416xf32> to vector<1x26x416xf32>
    tpu.vector_store %arg3[%c0_4, %c0_5, %c0_6], %6 {strides = array<i32>} : memref<1x26x416xf32, #tpu.memory_space<vmem>>, vector<1x26x416xf32>,
    return
  }
  func.func @transform_0(%arg0: i32) -> (i32, i32) {
    %c0_i32 = arith.constant 0 : i32
    %c0_i32_0 = arith.constant 0 : i32
    %c0_i32_1 = arith.constant 0 : i32
    return %c0_i32, %c0_i32_0 : i32, i32
  }
  func.func @transform_1(%arg0: i32) -> (i32, i32, i32) {
    %c0_i32 = arith.constant 0 : i32
    %c0_i32_0 = arith.constant 0 : i32
    %c0_i32_1 = arith.constant 0 : i32
    return %arg0, %c0_i32, %c0_i32_0 : i32, i32, i32
  }
  func.func @transform_2(%arg0: i32) -> (i32, i32, i32) {
    %c0_i32 = arith.constant 0 : i32
    %c0_i32_0 = arith.constant 0 : i32
    %c0_i32_1 = arith.constant 0 : i32
    return %arg0, %c0_i32, %c0_i32_0 : i32, i32, i32
  }
}

module attributes {stable_mosaic.version = 11 : i64} {
  func.func @_interp_cols_kernel(%arg0: i32, %arg1: memref<26x13xf32, #tpu.memory_space<vmem>>, %arg2: memref<4x13x32xf32, #tpu.memory_space<vmem>>, %arg3: memref<4x26x32xf32, #tpu.memory_space<vmem>>) attributes {dimension_semantics = [#tpu.dimension_semantics<parallel>], iteration_bounds = array<i64: 13>, scalar_prefetch = 0 : i64, scratch_operands = 0 : i64, tpu.core_type = #tpu.core_type<tc>, window_params = [{pipeline_mode = #tpu.pipeline_mode<synchronous>, transform_indices = @transform_0, window_bounds = array<i64: 26, 13>}, {transform_indices = @transform_1, window_bounds = array<i64: 4, 13, 32>}, {transform_indices = @transform_2, window_bounds = array<i64: 4, 26, 32>}]} {
    %c0 = arith.constant 0 : index
    %c0_0 = arith.constant 0 : index
    %0 = vector.load %arg1[%c0, %c0_0] : memref<26x13xf32, #tpu.memory_space<vmem>>, vector<26x13xf32>
    %c0_1 = arith.constant 0 : index
    %c0_2 = arith.constant 0 : index
    %c0_3 = arith.constant 0 : index
    %1 = vector.load %arg2[%c0_1, %c0_2, %c0_3] : memref<4x13x32xf32, #tpu.memory_space<vmem>>, vector<1x13x32xf32>
    %2 = vector.shape_cast %1 : vector<1x13x32xf32> to vector<13x32xf32>
    %cst = arith.constant dense<0.000000e+00> : vector<26x32xf32>
    %3 = tpu.matmul %0, %2, %cst {dimension_numbers = #tpu.dot_dimension_numbers<[1], [0], [0], [1], [0, 0, 1, 1], [], []>} : vector<26x13xf32>, vector<13x32xf32>, vector<26x32xf32> -> vector<26x32xf32>
    %c0_4 = arith.constant 0 : index
    %c0_5 = arith.constant 0 : index
    %c0_6 = arith.constant 0 : index
    %4 = vector.load %arg3[%c0_4, %c0_5, %c0_6] : memref<4x26x32xf32, #tpu.memory_space<vmem>>, vector<1x26x32xf32>
    %5 = vector.shape_cast %4 : vector<1x26x32xf32> to vector<26x32xf32>
    %6 = vector.shape_cast %3 : vector<26x32xf32> to vector<1x26x32xf32>
    tpu.vector_store %arg3[%c0_4, %c0_5, %c0_6], %6 {strides = array<i32>} : memref<4x26x32xf32, #tpu.memory_space<vmem>>, vector<1x26x32xf32>,
    %c1 = arith.constant 1 : index
    %c0_7 = arith.constant 0 : index
    %c0_8 = arith.constant 0 : index
    %7 = vector.load %arg2[%c1, %c0_7, %c0_8] : memref<4x13x32xf32, #tpu.memory_space<vmem>>, vector<1x13x32xf32>
    %8 = vector.shape_cast %7 : vector<1x13x32xf32> to vector<13x32xf32>
    %cst_9 = arith.constant dense<0.000000e+00> : vector<26x32xf32>
    %9 = tpu.matmul %0, %8, %cst_9 {dimension_numbers = #tpu.dot_dimension_numbers<[1], [0], [0], [1], [0, 0, 1, 1], [], []>} : vector<26x13xf32>, vector<13x32xf32>, vector<26x32xf32> -> vector<26x32xf32>
    %c1_10 = arith.constant 1 : index
    %c0_11 = arith.constant 0 : index
    %c0_12 = arith.constant 0 : index
    %10 = vector.load %arg3[%c1_10, %c0_11, %c0_12] : memref<4x26x32xf32, #tpu.memory_space<vmem>>, vector<1x26x32xf32>
    %11 = vector.shape_cast %10 : vector<1x26x32xf32> to vector<26x32xf32>
    %12 = vector.shape_cast %9 : vector<26x32xf32> to vector<1x26x32xf32>
    tpu.vector_store %arg3[%c1_10, %c0_11, %c0_12], %12 {strides = array<i32>} : memref<4x26x32xf32, #tpu.memory_space<vmem>>, vector<1x26x32xf32>,
    %c2 = arith.constant 2 : index
    %c0_13 = arith.constant 0 : index
    %c0_14 = arith.constant 0 : index
    %13 = vector.load %arg2[%c2, %c0_13, %c0_14] : memref<4x13x32xf32, #tpu.memory_space<vmem>>, vector<1x13x32xf32>
    %14 = vector.shape_cast %13 : vector<1x13x32xf32> to vector<13x32xf32>
    %cst_15 = arith.constant dense<0.000000e+00> : vector<26x32xf32>
    %15 = tpu.matmul %0, %14, %cst_15 {dimension_numbers = #tpu.dot_dimension_numbers<[1], [0], [0], [1], [0, 0, 1, 1], [], []>} : vector<26x13xf32>, vector<13x32xf32>, vector<26x32xf32> -> vector<26x32xf32>
    %c2_16 = arith.constant 2 : index
    %c0_17 = arith.constant 0 : index
    %c0_18 = arith.constant 0 : index
    %16 = vector.load %arg3[%c2_16, %c0_17, %c0_18] : memref<4x26x32xf32, #tpu.memory_space<vmem>>, vector<1x26x32xf32>
    %17 = vector.shape_cast %16 : vector<1x26x32xf32> to vector<26x32xf32>
    %18 = vector.shape_cast %15 : vector<26x32xf32> to vector<1x26x32xf32>
    tpu.vector_store %arg3[%c2_16, %c0_17, %c0_18], %18 {strides = array<i32>} : memref<4x26x32xf32, #tpu.memory_space<vmem>>, vector<1x26x32xf32>,
    %c3 = arith.constant 3 : index
    %c0_19 = arith.constant 0 : index
    %c0_20 = arith.constant 0 : index
    %19 = vector.load %arg2[%c3, %c0_19, %c0_20] : memref<4x13x32xf32, #tpu.memory_space<vmem>>, vector<1x13x32xf32>
    %20 = vector.shape_cast %19 : vector<1x13x32xf32> to vector<13x32xf32>
    %cst_21 = arith.constant dense<0.000000e+00> : vector<26x32xf32>
    %21 = tpu.matmul %0, %20, %cst_21 {dimension_numbers = #tpu.dot_dimension_numbers<[1], [0], [0], [1], [0, 0, 1, 1], [], []>} : vector<26x13xf32>, vector<13x32xf32>, vector<26x32xf32> -> vector<26x32xf32>
    %c3_22 = arith.constant 3 : index
    %c0_23 = arith.constant 0 : index
    %c0_24 = arith.constant 0 : index
    %22 = vector.load %arg3[%c3_22, %c0_23, %c0_24] : memref<4x26x32xf32, #tpu.memory_space<vmem>>, vector<1x26x32xf32>
    %23 = vector.shape_cast %22 : vector<1x26x32xf32> to vector<26x32xf32>
    %24 = vector.shape_cast %21 : vector<26x32xf32> to vector<1x26x32xf32>
    tpu.vector_store %arg3[%c3_22, %c0_23, %c0_24], %24 {strides = array<i32>} : memref<4x26x32xf32, #tpu.memory_space<vmem>>, vector<1x26x32xf32>,
    return
  }
  func.func @transform_0(%arg0: i32) -> (i32, i32) {
    %c0_i32 = arith.constant 0 : i32
    %c0_i32_0 = arith.constant 0 : i32
    %c0_i32_1 = arith.constant 0 : i32
    return %c0_i32, %c0_i32_0 : i32, i32
  }
  func.func @transform_1(%arg0: i32) -> (i32, i32, i32) {
    %c0_i32 = arith.constant 0 : i32
    %c0_i32_0 = arith.constant 0 : i32
    %c0_i32_1 = arith.constant 0 : i32
    return %arg0, %c0_i32, %c0_i32_0 : i32, i32, i32
  }
  func.func @transform_2(%arg0: i32) -> (i32, i32, i32) {
    %c0_i32 = arith.constant 0 : i32
    %c0_i32_0 = arith.constant 0 : i32
    %c0_i32_1 = arith.constant 0 : i32
    return %arg0, %c0_i32, %c0_i32_0 : i32, i32, i32
  }
}

module attributes {stable_mosaic.version = 11 : i64} {
  func.func @_conv3x3_row_kernel(%arg0: i32, %arg1: i32, %arg2: memref<1x784x32xf32, #tpu.memory_space<vmem>>, %arg3: memref<9x32x32xf32, #tpu.memory_space<vmem>>, %arg4: memref<1x32xf32, #tpu.memory_space<vmem>>, %arg5: memref<1x1x26x32xf32, #tpu.memory_space<vmem>>, %arg6: memref<1x2x32xf32, #tpu.memory_space<vmem>>) attributes {dimension_semantics = [#tpu.dimension_semantics<parallel>, #tpu.dimension_semantics<arbitrary>], iteration_bounds = array<i64: 2, 26>, scalar_prefetch = 0 : i64, scratch_operands = 0 : i64, tpu.core_type = #tpu.core_type<tc>, window_params = [{transform_indices = @transform_0, window_bounds = array<i64: 1, 784, 32>}, {pipeline_mode = #tpu.pipeline_mode<synchronous>, transform_indices = @transform_1, window_bounds = array<i64: 9, 32, 32>}, {pipeline_mode = #tpu.pipeline_mode<synchronous>, transform_indices = @transform_2, window_bounds = array<i64: 1, 32>}, {transform_indices = @transform_3, window_bounds = array<i64: 1, 1, 26, 32>}, {transform_indices = @transform_4, window_bounds = array<i64: 1, 2, 32>}]} {
    %c0_i32 = arith.constant 0 : i32
    %0 = arith.cmpi eq, %arg1, %c0_i32 : i32
    %1 = arith.extui %0 : i1 to i32
    %c0_i32_0 = arith.constant 0 : i32
    %2 = arith.cmpi ne, %1, %c0_i32_0 : i32
    scf.if %2 {
      %cst_90 = arith.constant 0.000000e+00 : f32
      %135 = vector.broadcast %cst_90 : f32 to vector<1x2x32xf32>
      %c0_91 = arith.constant 0 : index
      %c0_92 = arith.constant 0 : index
      %c0_93 = arith.constant 0 : index
      %136 = vector.load %arg6[%c0_91, %c0_92, %c0_93] : memref<1x2x32xf32, #tpu.memory_space<vmem>>, vector<1x2x32xf32>
      tpu.vector_store %arg6[%c0_91, %c0_92, %c0_93], %135 {strides = array<i32>} : memref<1x2x32xf32, #tpu.memory_space<vmem>>, vector<1x2x32xf32>,
    } else {
    }
    %cst = arith.constant 0.000000e+00 : f32
    %3 = vector.broadcast %cst : f32 to vector<26x32xf32>
    %c0_i32_1 = arith.constant 0 : i32
    %4 = arith.addi %arg1, %c0_i32_1 : i32
    %c28_i32 = arith.constant 28 : i32
    %5 = arith.muli %4, %c28_i32 : i32
    %c0_i32_2 = arith.constant 0 : i32
    %6 = arith.addi %5, %c0_i32_2 : i32
    %c0 = arith.constant 0 : index
    %7 = arith.index_cast %6 : i32 to index
    %c0_3 = arith.constant 0 : index
    %8 = vector.load %arg2[%c0, %7, %c0_3] : memref<1x784x32xf32, #tpu.memory_space<vmem>>, vector<1x26x32xf32>
    %9 = vector.shape_cast %8 : vector<1x26x32xf32> to vector<26x32xf32>
    %10 = arith.truncf %9 : vector<26x32xf32> to vector<26x32xbf16>
    %c0_4 = arith.constant 0 : index
    %c0_5 = arith.constant 0 : index
    %c0_6 = arith.constant 0 : index
    %11 = vector.load %arg3[%c0_4, %c0_5, %c0_6] : memref<9x32x32xf32, #tpu.memory_space<vmem>>, vector<1x32x32xf32>
    %12 = vector.shape_cast %11 : vector<1x32x32xf32> to vector<32x32xf32>
    %13 = arith.truncf %12 : vector<32x32xf32> to vector<32x32xbf16>
    %cst_7 = arith.constant dense<0.000000e+00> : vector<26x32xf32>
    %14 = tpu.matmul %10, %13, %cst_7 {dimension_numbers = #tpu.dot_dimension_numbers<[1], [0], [0], [1], [0, 0, 1, 1], [], []>} : vector<26x32xbf16>, vector<32x32xbf16>, vector<26x32xf32> -> vector<26x32xf32>
    %15 = arith.addf %3, %14 : vector<26x32xf32>
    %c0_i32_8 = arith.constant 0 : i32
    %16 = arith.addi %arg1, %c0_i32_8 : i32
    %c28_i32_9 = arith.constant 28 : i32
    %17 = arith.muli %16, %c28_i32_9 : i32
    %c1_i32 = arith.constant 1 : i32
    %18 = arith.addi %17, %c1_i32 : i32
    %c0_10 = arith.constant 0 : index
    %19 = arith.index_cast %18 : i32 to index
    %c0_11 = arith.constant 0 : index
    %20 = vector.load %arg2[%c0_10, %19, %c0_11] : memref<1x784x32xf32, #tpu.memory_space<vmem>>, vector<1x26x32xf32>
    %21 = vector.shape_cast %20 : vector<1x26x32xf32> to vector<26x32xf32>
    %22 = arith.truncf %21 : vector<26x32xf32> to vector<26x32xbf16>
    %c1 = arith.constant 1 : index
    %c0_12 = arith.constant 0 : index
    %c0_13 = arith.constant 0 : index
    %23 = vector.load %arg3[%c1, %c0_12, %c0_13] : memref<9x32x32xf32, #tpu.memory_space<vmem>>, vector<1x32x32xf32>
    %24 = vector.shape_cast %23 : vector<1x32x32xf32> to vector<32x32xf32>
    %25 = arith.truncf %24 : vector<32x32xf32> to vector<32x32xbf16>
    %cst_14 = arith.constant dense<0.000000e+00> : vector<26x32xf32>
    %26 = tpu.matmul %22, %25, %cst_14 {dimension_numbers = #tpu.dot_dimension_numbers<[1], [0], [0], [1], [0, 0, 1, 1], [], []>} : vector<26x32xbf16>, vector<32x32xbf16>, vector<26x32xf32> -> vector<26x32xf32>
    %27 = arith.addf %15, %26 : vector<26x32xf32>
    %c0_i32_15 = arith.constant 0 : i32
    %28 = arith.addi %arg1, %c0_i32_15 : i32
    %c28_i32_16 = arith.constant 28 : i32
    %29 = arith.muli %28, %c28_i32_16 : i32
    %c2_i32 = arith.constant 2 : i32
    %30 = arith.addi %29, %c2_i32 : i32
    %c0_17 = arith.constant 0 : index
    %31 = arith.index_cast %30 : i32 to index
    %c0_18 = arith.constant 0 : index
    %32 = vector.load %arg2[%c0_17, %31, %c0_18] : memref<1x784x32xf32, #tpu.memory_space<vmem>>, vector<1x26x32xf32>
    %33 = vector.shape_cast %32 : vector<1x26x32xf32> to vector<26x32xf32>
    %34 = arith.truncf %33 : vector<26x32xf32> to vector<26x32xbf16>
    %c2 = arith.constant 2 : index
    %c0_19 = arith.constant 0 : index
    %c0_20 = arith.constant 0 : index
    %35 = vector.load %arg3[%c2, %c0_19, %c0_20] : memref<9x32x32xf32, #tpu.memory_space<vmem>>, vector<1x32x32xf32>
    %36 = vector.shape_cast %35 : vector<1x32x32xf32> to vector<32x32xf32>
    %37 = arith.truncf %36 : vector<32x32xf32> to vector<32x32xbf16>
    %cst_21 = arith.constant dense<0.000000e+00> : vector<26x32xf32>
    %38 = tpu.matmul %34, %37, %cst_21 {dimension_numbers = #tpu.dot_dimension_numbers<[1], [0], [0], [1], [0, 0, 1, 1], [], []>} : vector<26x32xbf16>, vector<32x32xbf16>, vector<26x32xf32> -> vector<26x32xf32>
    %39 = arith.addf %27, %38 : vector<26x32xf32>
    %c1_i32_22 = arith.constant 1 : i32
    %40 = arith.addi %arg1, %c1_i32_22 : i32
    %c28_i32_23 = arith.constant 28 : i32
    %41 = arith.muli %40, %c28_i32_23 : i32
    %c0_i32_24 = arith.constant 0 : i32
    %42 = arith.addi %41, %c0_i32_24 : i32
    %c0_25 = arith.constant 0 : index
    %43 = arith.index_cast %42 : i32 to index
    %c0_26 = arith.constant 0 : index
    %44 = vector.load %arg2[%c0_25, %43, %c0_26] : memref<1x784x32xf32, #tpu.memory_space<vmem>>, vector<1x26x32xf32>
    %45 = vector.shape_cast %44 : vector<1x26x32xf32> to vector<26x32xf32>
    %46 = arith.truncf %45 : vector<26x32xf32> to vector<26x32xbf16>
    %c3 = arith.constant 3 : index
    %c0_27 = arith.constant 0 : index
    %c0_28 = arith.constant 0 : index
    %47 = vector.load %arg3[%c3, %c0_27, %c0_28] : memref<9x32x32xf32, #tpu.memory_space<vmem>>, vector<1x32x32xf32>
    %48 = vector.shape_cast %47 : vector<1x32x32xf32> to vector<32x32xf32>
    %49 = arith.truncf %48 : vector<32x32xf32> to vector<32x32xbf16>
    %cst_29 = arith.constant dense<0.000000e+00> : vector<26x32xf32>
    %50 = tpu.matmul %46, %49, %cst_29 {dimension_numbers = #tpu.dot_dimension_numbers<[1], [0], [0], [1], [0, 0, 1, 1], [], []>} : vector<26x32xbf16>, vector<32x32xbf16>, vector<26x32xf32> -> vector<26x32xf32>
    %51 = arith.addf %39, %50 : vector<26x32xf32>
    %c1_i32_30 = arith.constant 1 : i32
    %52 = arith.addi %arg1, %c1_i32_30 : i32
    %c28_i32_31 = arith.constant 28 : i32
    %53 = arith.muli %52, %c28_i32_31 : i32
    %c1_i32_32 = arith.constant 1 : i32
    %54 = arith.addi %53, %c1_i32_32 : i32
    %c0_33 = arith.constant 0 : index
    %55 = arith.index_cast %54 : i32 to index
    %c0_34 = arith.constant 0 : index
    %56 = vector.load %arg2[%c0_33, %55, %c0_34] : memref<1x784x32xf32, #tpu.memory_space<vmem>>, vector<1x26x32xf32>
    %57 = vector.shape_cast %56 : vector<1x26x32xf32> to vector<26x32xf32>
    %58 = arith.truncf %57 : vector<26x32xf32> to vector<26x32xbf16>
    %c4 = arith.constant 4 : index
    %c0_35 = arith.constant 0 : index
    %c0_36 = arith.constant 0 : index
    %59 = vector.load %arg3[%c4, %c0_35, %c0_36] : memref<9x32x32xf32, #tpu.memory_space<vmem>>, vector<1x32x32xf32>
    %60 = vector.shape_cast %59 : vector<1x32x32xf32> to vector<32x32xf32>
    %61 = arith.truncf %60 : vector<32x32xf32> to vector<32x32xbf16>
    %cst_37 = arith.constant dense<0.000000e+00> : vector<26x32xf32>
    %62 = tpu.matmul %58, %61, %cst_37 {dimension_numbers = #tpu.dot_dimension_numbers<[1], [0], [0], [1], [0, 0, 1, 1], [], []>} : vector<26x32xbf16>, vector<32x32xbf16>, vector<26x32xf32> -> vector<26x32xf32>
    %63 = arith.addf %51, %62 : vector<26x32xf32>
    %c1_i32_38 = arith.constant 1 : i32
    %64 = arith.addi %arg1, %c1_i32_38 : i32
    %c28_i32_39 = arith.constant 28 : i32
    %65 = arith.muli %64, %c28_i32_39 : i32
    %c2_i32_40 = arith.constant 2 : i32
    %66 = arith.addi %65, %c2_i32_40 : i32
    %c0_41 = arith.constant 0 : index
    %67 = arith.index_cast %66 : i32 to index
    %c0_42 = arith.constant 0 : index
    %68 = vector.load %arg2[%c0_41, %67, %c0_42] : memref<1x784x32xf32, #tpu.memory_space<vmem>>, vector<1x26x32xf32>
    %69 = vector.shape_cast %68 : vector<1x26x32xf32> to vector<26x32xf32>
    %70 = arith.truncf %69 : vector<26x32xf32> to vector<26x32xbf16>
    %c5 = arith.constant 5 : index
    %c0_43 = arith.constant 0 : index
    %c0_44 = arith.constant 0 : index
    %71 = vector.load %arg3[%c5, %c0_43, %c0_44] : memref<9x32x32xf32, #tpu.memory_space<vmem>>, vector<1x32x32xf32>
    %72 = vector.shape_cast %71 : vector<1x32x32xf32> to vector<32x32xf32>
    %73 = arith.truncf %72 : vector<32x32xf32> to vector<32x32xbf16>
    %cst_45 = arith.constant dense<0.000000e+00> : vector<26x32xf32>
    %74 = tpu.matmul %70, %73, %cst_45 {dimension_numbers = #tpu.dot_dimension_numbers<[1], [0], [0], [1], [0, 0, 1, 1], [], []>} : vector<26x32xbf16>, vector<32x32xbf16>, vector<26x32xf32> -> vector<26x32xf32>
    %75 = arith.addf %63, %74 : vector<26x32xf32>
    %c2_i32_46 = arith.constant 2 : i32
    %76 = arith.addi %arg1, %c2_i32_46 : i32
    %c28_i32_47 = arith.constant 28 : i32
    %77 = arith.muli %76, %c28_i32_47 : i32
    %c0_i32_48 = arith.constant 0 : i32
    %78 = arith.addi %77, %c0_i32_48 : i32
    %c0_49 = arith.constant 0 : index
    %79 = arith.index_cast %78 : i32 to index
    %c0_50 = arith.constant 0 : index
    %80 = vector.load %arg2[%c0_49, %79, %c0_50] : memref<1x784x32xf32, #tpu.memory_space<vmem>>, vector<1x26x32xf32>
    %81 = vector.shape_cast %80 : vector<1x26x32xf32> to vector<26x32xf32>
    %82 = arith.truncf %81 : vector<26x32xf32> to vector<26x32xbf16>
    %c6 = arith.constant 6 : index
    %c0_51 = arith.constant 0 : index
    %c0_52 = arith.constant 0 : index
    %83 = vector.load %arg3[%c6, %c0_51, %c0_52] : memref<9x32x32xf32, #tpu.memory_space<vmem>>, vector<1x32x32xf32>
    %84 = vector.shape_cast %83 : vector<1x32x32xf32> to vector<32x32xf32>
    %85 = arith.truncf %84 : vector<32x32xf32> to vector<32x32xbf16>
    %cst_53 = arith.constant dense<0.000000e+00> : vector<26x32xf32>
    %86 = tpu.matmul %82, %85, %cst_53 {dimension_numbers = #tpu.dot_dimension_numbers<[1], [0], [0], [1], [0, 0, 1, 1], [], []>} : vector<26x32xbf16>, vector<32x32xbf16>, vector<26x32xf32> -> vector<26x32xf32>
    %87 = arith.addf %75, %86 : vector<26x32xf32>
    %c2_i32_54 = arith.constant 2 : i32
    %88 = arith.addi %arg1, %c2_i32_54 : i32
    %c28_i32_55 = arith.constant 28 : i32
    %89 = arith.muli %88, %c28_i32_55 : i32
    %c1_i32_56 = arith.constant 1 : i32
    %90 = arith.addi %89, %c1_i32_56 : i32
    %c0_57 = arith.constant 0 : index
    %91 = arith.index_cast %90 : i32 to index
    %c0_58 = arith.constant 0 : index
    %92 = vector.load %arg2[%c0_57, %91, %c0_58] : memref<1x784x32xf32, #tpu.memory_space<vmem>>, vector<1x26x32xf32>
    %93 = vector.shape_cast %92 : vector<1x26x32xf32> to vector<26x32xf32>
    %94 = arith.truncf %93 : vector<26x32xf32> to vector<26x32xbf16>
    %c7 = arith.constant 7 : index
    %c0_59 = arith.constant 0 : index
    %c0_60 = arith.constant 0 : index
    %95 = vector.load %arg3[%c7, %c0_59, %c0_60] : memref<9x32x32xf32, #tpu.memory_space<vmem>>, vector<1x32x32xf32>
    %96 = vector.shape_cast %95 : vector<1x32x32xf32> to vector<32x32xf32>
    %97 = arith.truncf %96 : vector<32x32xf32> to vector<32x32xbf16>
    %cst_61 = arith.constant dense<0.000000e+00> : vector<26x32xf32>
    %98 = tpu.matmul %94, %97, %cst_61 {dimension_numbers = #tpu.dot_dimension_numbers<[1], [0], [0], [1], [0, 0, 1, 1], [], []>} : vector<26x32xbf16>, vector<32x32xbf16>, vector<26x32xf32> -> vector<26x32xf32>
    %99 = arith.addf %87, %98 : vector<26x32xf32>
    %c2_i32_62 = arith.constant 2 : i32
    %100 = arith.addi %arg1, %c2_i32_62 : i32
    %c28_i32_63 = arith.constant 28 : i32
    %101 = arith.muli %100, %c28_i32_63 : i32
    %c2_i32_64 = arith.constant 2 : i32
    %102 = arith.addi %101, %c2_i32_64 : i32
    %c0_65 = arith.constant 0 : index
    %103 = arith.index_cast %102 : i32 to index
    %c0_66 = arith.constant 0 : index
    %104 = vector.load %arg2[%c0_65, %103, %c0_66] : memref<1x784x32xf32, #tpu.memory_space<vmem>>, vector<1x26x32xf32>
    %105 = vector.shape_cast %104 : vector<1x26x32xf32> to vector<26x32xf32>
    %106 = arith.truncf %105 : vector<26x32xf32> to vector<26x32xbf16>
    %c8 = arith.constant 8 : index
    %c0_67 = arith.constant 0 : index
    %c0_68 = arith.constant 0 : index
    %107 = vector.load %arg3[%c8, %c0_67, %c0_68] : memref<9x32x32xf32, #tpu.memory_space<vmem>>, vector<1x32x32xf32>
    %108 = vector.shape_cast %107 : vector<1x32x32xf32> to vector<32x32xf32>
    %109 = arith.truncf %108 : vector<32x32xf32> to vector<32x32xbf16>
    %cst_69 = arith.constant dense<0.000000e+00> : vector<26x32xf32>
    %110 = tpu.matmul %106, %109, %cst_69 {dimension_numbers = #tpu.dot_dimension_numbers<[1], [0], [0], [1], [0, 0, 1, 1], [], []>} : vector<26x32xbf16>, vector<32x32xbf16>, vector<26x32xf32> -> vector<26x32xf32>
    %111 = arith.addf %99, %110 : vector<26x32xf32>
    %c0_70 = arith.constant 0 : index
    %c0_71 = arith.constant 0 : index
    %112 = vector.load %arg4[%c0_70, %c0_71] : memref<1x32xf32, #tpu.memory_space<vmem>>, vector<1x32xf32>
    %113 = vector.broadcast %112 : vector<1x32xf32> to vector<26x32xf32>
    %114 = arith.addf %111, %113 : vector<26x32xf32>
    %c0_72 = arith.constant 0 : index
    %c0_73 = arith.constant 0 : index
    %c0_74 = arith.constant 0 : index
    %c0_75 = arith.constant 0 : index
    %115 = vector.load %arg5[%c0_72, %c0_73, %c0_74, %c0_75] : memref<1x1x26x32xf32, #tpu.memory_space<vmem>>, vector<1x1x26x32xf32>
    %116 = vector.shape_cast %115 : vector<1x1x26x32xf32> to vector<26x32xf32>
    %117 = vector.shape_cast %114 : vector<26x32xf32> to vector<1x1x26x32xf32>
    tpu.vector_store %arg5[%c0_72, %c0_73, %c0_74, %c0_75], %117 {strides = array<i32>} : memref<1x1x26x32xf32, #tpu.memory_space<vmem>>, vector<1x1x26x32xf32>,
    %c0_76 = arith.constant 0 : index
    %c0_77 = arith.constant 0 : index
    %c0_78 = arith.constant 0 : index
    %118 = vector.load %arg6[%c0_76, %c0_77, %c0_78] : memref<1x2x32xf32, #tpu.memory_space<vmem>>, vector<1x1x32xf32>
    %119 = vector.shape_cast %118 : vector<1x1x32xf32> to vector<1x32xf32>
    %cst_79 = arith.constant dense<0.000000e+00> : vector<32xf32>
    %120 = vector.multi_reduction <add>, %114, %cst_79 [0] : vector<26x32xf32> to vector<32xf32>
    %121 = vector.shape_cast %120 : vector<32xf32> to vector<1x32xf32>
    %122 = arith.addf %119, %121 : vector<1x32xf32>
    %c0_80 = arith.constant 0 : index
    %c0_81 = arith.constant 0 : index
    %c0_82 = arith.constant 0 : index
    %123 = vector.load %arg6[%c0_80, %c0_81, %c0_82] : memref<1x2x32xf32, #tpu.memory_space<vmem>>, vector<1x1x32xf32>
    %124 = vector.shape_cast %123 : vector<1x1x32xf32> to vector<1x32xf32>
    %125 = vector.shape_cast %122 : vector<1x32xf32> to vector<1x1x32xf32>
    tpu.vector_store %arg6[%c0_80, %c0_81, %c0_82], %125 {strides = array<i32>} : memref<1x2x32xf32, #tpu.memory_space<vmem>>, vector<1x1x32xf32>,
    %c0_83 = arith.constant 0 : index
    %c1_84 = arith.constant 1 : index
    %c0_85 = arith.constant 0 : index
    %126 = vector.load %arg6[%c0_83, %c1_84, %c0_85] : memref<1x2x32xf32, #tpu.memory_space<vmem>>, vector<1x1x32xf32>
    %127 = vector.shape_cast %126 : vector<1x1x32xf32> to vector<1x32xf32>
    %128 = arith.mulf %114, %114 : vector<26x32xf32>
    %cst_86 = arith.constant dense<0.000000e+00> : vector<32xf32>
    %129 = vector.multi_reduction <add>, %128, %cst_86 [0] : vector<26x32xf32> to vector<32xf32>
    %130 = vector.shape_cast %129 : vector<32xf32> to vector<1x32xf32>
    %131 = arith.addf %127, %130 : vector<1x32xf32>
    %c0_87 = arith.constant 0 : index
    %c1_88 = arith.constant 1 : index
    %c0_89 = arith.constant 0 : index
    %132 = vector.load %arg6[%c0_87, %c1_88, %c0_89] : memref<1x2x32xf32, #tpu.memory_space<vmem>>, vector<1x1x32xf32>
    %133 = vector.shape_cast %132 : vector<1x1x32xf32> to vector<1x32xf32>
    %134 = vector.shape_cast %131 : vector<1x32xf32> to vector<1x1x32xf32>
    tpu.vector_store %arg6[%c0_87, %c1_88, %c0_89], %134 {strides = array<i32>} : memref<1x2x32xf32, #tpu.memory_space<vmem>>, vector<1x1x32xf32>,
    return
  }
  func.func @transform_0(%arg0: i32, %arg1: i32) -> (i32, i32, i32) {
    %c0_i32 = arith.constant 0 : i32
    %c0_i32_0 = arith.constant 0 : i32
    %c0_i32_1 = arith.constant 0 : i32
    return %arg0, %c0_i32, %c0_i32_0 : i32, i32, i32
  }
  func.func @transform_1(%arg0: i32, %arg1: i32) -> (i32, i32, i32) {
    %c0_i32 = arith.constant 0 : i32
    %c0_i32_0 = arith.constant 0 : i32
    %c0_i32_1 = arith.constant 0 : i32
    %c0_i32_2 = arith.constant 0 : i32
    return %c0_i32, %c0_i32_0, %c0_i32_1 : i32, i32, i32
  }
  func.func @transform_2(%arg0: i32, %arg1: i32) -> (i32, i32) {
    %c0_i32 = arith.constant 0 : i32
    %c0_i32_0 = arith.constant 0 : i32
    %c0_i32_1 = arith.constant 0 : i32
    return %c0_i32, %c0_i32_0 : i32, i32
  }
  func.func @transform_3(%arg0: i32, %arg1: i32) -> (i32, i32, i32, i32) {
    %c0_i32 = arith.constant 0 : i32
    %c0_i32_0 = arith.constant 0 : i32
    %c0_i32_1 = arith.constant 0 : i32
    return %arg0, %arg1, %c0_i32, %c0_i32_0 : i32, i32, i32, i32
  }
  func.func @transform_4(%arg0: i32, %arg1: i32) -> (i32, i32, i32) {
    %c0_i32 = arith.constant 0 : i32
    %c0_i32_0 = arith.constant 0 : i32
    %c0_i32_1 = arith.constant 0 : i32
    return %arg0, %c0_i32, %c0_i32_0 : i32, i32, i32
  }
}

module attributes {stable_mosaic.version = 11 : i64} {
  func.func @_affine_silu_kernel(%arg0: i32, %arg1: memref<256x128xf32, #tpu.memory_space<vmem>>, %arg2: memref<1x128xf32, #tpu.memory_space<vmem>>, %arg3: memref<1x128xf32, #tpu.memory_space<vmem>>, %arg4: memref<256x128xf32, #tpu.memory_space<vmem>>) attributes {dimension_semantics = [#tpu.dimension_semantics<parallel>], iteration_bounds = array<i64: 2>, scalar_prefetch = 0 : i64, scratch_operands = 0 : i64, tpu.core_type = #tpu.core_type<tc>, window_params = [{transform_indices = @transform_0, window_bounds = array<i64: 256, 128>}, {pipeline_mode = #tpu.pipeline_mode<synchronous>, transform_indices = @transform_1, window_bounds = array<i64: 1, 128>}, {pipeline_mode = #tpu.pipeline_mode<synchronous>, transform_indices = @transform_2, window_bounds = array<i64: 1, 128>}, {transform_indices = @transform_3, window_bounds = array<i64: 256, 128>}]} {
    %c0 = arith.constant 0 : index
    %c0_0 = arith.constant 0 : index
    %0 = vector.load %arg1[%c0, %c0_0] : memref<256x128xf32, #tpu.memory_space<vmem>>, vector<256x128xf32>
    %c0_1 = arith.constant 0 : index
    %c0_2 = arith.constant 0 : index
    %1 = vector.load %arg2[%c0_1, %c0_2] : memref<1x128xf32, #tpu.memory_space<vmem>>, vector<1x128xf32>
    %2 = vector.broadcast %1 : vector<1x128xf32> to vector<256x128xf32>
    %3 = arith.mulf %0, %2 : vector<256x128xf32>
    %c0_3 = arith.constant 0 : index
    %c0_4 = arith.constant 0 : index
    %4 = vector.load %arg3[%c0_3, %c0_4] : memref<1x128xf32, #tpu.memory_space<vmem>>, vector<1x128xf32>
    %5 = vector.broadcast %4 : vector<1x128xf32> to vector<256x128xf32>
    %6 = arith.addf %3, %5 : vector<256x128xf32>
    %cst = arith.constant 0.000000e+00 : f32
    %7 = vector.broadcast %cst : f32 to vector<256x128xf32>
    %8 = arith.subf %7, %6 : vector<256x128xf32>
    %9 = math.exp %8 : vector<256x128xf32>
    %cst_5 = arith.constant 1.000000e+00 : f32
    %10 = vector.broadcast %cst_5 : f32 to vector<256x128xf32>
    %11 = arith.addf %10, %9 : vector<256x128xf32>
    %12 = tpu.reciprocal %11 {approx = true} : vector<256x128xf32> -> vector<256x128xf32>
    %13 = arith.mulf %6, %12 : vector<256x128xf32>
    %c0_6 = arith.constant 0 : index
    %c0_7 = arith.constant 0 : index
    %14 = vector.load %arg4[%c0_6, %c0_7] : memref<256x128xf32, #tpu.memory_space<vmem>>, vector<256x128xf32>
    tpu.vector_store %arg4[%c0_6, %c0_7], %13 {strides = array<i32>} : memref<256x128xf32, #tpu.memory_space<vmem>>, vector<256x128xf32>,
    return
  }
  func.func @transform_0(%arg0: i32) -> (i32, i32) {
    %c0_i32 = arith.constant 0 : i32
    %c0_i32_0 = arith.constant 0 : i32
    return %arg0, %c0_i32 : i32, i32
  }
  func.func @transform_1(%arg0: i32) -> (i32, i32) {
    %c0_i32 = arith.constant 0 : i32
    %c0_i32_0 = arith.constant 0 : i32
    %c0_i32_1 = arith.constant 0 : i32
    return %c0_i32, %c0_i32_0 : i32, i32
  }
  func.func @transform_2(%arg0: i32) -> (i32, i32) {
    %c0_i32 = arith.constant 0 : i32
    %c0_i32_0 = arith.constant 0 : i32
    %c0_i32_1 = arith.constant 0 : i32
    return %c0_i32, %c0_i32_0 : i32, i32
  }
  func.func @transform_3(%arg0: i32) -> (i32, i32) {
    %c0_i32 = arith.constant 0 : i32
    %c0_i32_0 = arith.constant 0 : i32
    return %arg0, %c0_i32 : i32, i32
  }
}

module attributes {stable_mosaic.version = 11 : i64} {
  func.func @_affine_residual_kernel(%arg0: i32, %arg1: memref<256x128xf32, #tpu.memory_space<vmem>>, %arg2: memref<256x128xf32, #tpu.memory_space<vmem>>, %arg3: memref<1x128xf32, #tpu.memory_space<vmem>>, %arg4: memref<1x128xf32, #tpu.memory_space<vmem>>, %arg5: memref<256x128xf32, #tpu.memory_space<vmem>>) attributes {dimension_semantics = [#tpu.dimension_semantics<parallel>], iteration_bounds = array<i64: 2>, scalar_prefetch = 0 : i64, scratch_operands = 0 : i64, tpu.core_type = #tpu.core_type<tc>, window_params = [{transform_indices = @transform_0, window_bounds = array<i64: 256, 128>}, {transform_indices = @transform_1, window_bounds = array<i64: 256, 128>}, {pipeline_mode = #tpu.pipeline_mode<synchronous>, transform_indices = @transform_2, window_bounds = array<i64: 1, 128>}, {pipeline_mode = #tpu.pipeline_mode<synchronous>, transform_indices = @transform_3, window_bounds = array<i64: 1, 128>}, {transform_indices = @transform_4, window_bounds = array<i64: 256, 128>}]} {
    %c0 = arith.constant 0 : index
    %c0_0 = arith.constant 0 : index
    %0 = vector.load %arg1[%c0, %c0_0] : memref<256x128xf32, #tpu.memory_space<vmem>>, vector<256x128xf32>
    %c0_1 = arith.constant 0 : index
    %c0_2 = arith.constant 0 : index
    %1 = vector.load %arg3[%c0_1, %c0_2] : memref<1x128xf32, #tpu.memory_space<vmem>>, vector<1x128xf32>
    %2 = vector.broadcast %1 : vector<1x128xf32> to vector<256x128xf32>
    %3 = arith.mulf %0, %2 : vector<256x128xf32>
    %c0_3 = arith.constant 0 : index
    %c0_4 = arith.constant 0 : index
    %4 = vector.load %arg4[%c0_3, %c0_4] : memref<1x128xf32, #tpu.memory_space<vmem>>, vector<1x128xf32>
    %5 = vector.broadcast %4 : vector<1x128xf32> to vector<256x128xf32>
    %6 = arith.addf %3, %5 : vector<256x128xf32>
    %c0_5 = arith.constant 0 : index
    %c0_6 = arith.constant 0 : index
    %7 = vector.load %arg2[%c0_5, %c0_6] : memref<256x128xf32, #tpu.memory_space<vmem>>, vector<256x128xf32>
    %8 = arith.addf %6, %7 : vector<256x128xf32>
    %c0_7 = arith.constant 0 : index
    %c0_8 = arith.constant 0 : index
    %9 = vector.load %arg5[%c0_7, %c0_8] : memref<256x128xf32, #tpu.memory_space<vmem>>, vector<256x128xf32>
    tpu.vector_store %arg5[%c0_7, %c0_8], %8 {strides = array<i32>} : memref<256x128xf32, #tpu.memory_space<vmem>>, vector<256x128xf32>,
    return
  }
  func.func @transform_0(%arg0: i32) -> (i32, i32) {
    %c0_i32 = arith.constant 0 : i32
    %c0_i32_0 = arith.constant 0 : i32
    return %arg0, %c0_i32 : i32, i32
  }
  func.func @transform_1(%arg0: i32) -> (i32, i32) {
    %c0_i32 = arith.constant 0 : i32
    %c0_i32_0 = arith.constant 0 : i32
    return %arg0, %c0_i32 : i32, i32
  }
  func.func @transform_2(%arg0: i32) -> (i32, i32) {
    %c0_i32 = arith.constant 0 : i32
    %c0_i32_0 = arith.constant 0 : i32
    %c0_i32_1 = arith.constant 0 : i32
    return %c0_i32, %c0_i32_0 : i32, i32
  }
  func.func @transform_3(%arg0: i32) -> (i32, i32) {
    %c0_i32 = arith.constant 0 : i32
    %c0_i32_0 = arith.constant 0 : i32
    %c0_i32_1 = arith.constant 0 : i32
    return %c0_i32, %c0_i32_0 : i32, i32
  }
  func.func @transform_4(%arg0: i32) -> (i32, i32) {
    %c0_i32 = arith.constant 0 : i32
    %c0_i32_0 = arith.constant 0 : i32
    return %arg0, %c0_i32 : i32, i32
  }
}

module attributes {stable_mosaic.version = 11 : i64} {
  func.func @_conv3x3_row_kernel(%arg0: i32, %arg1: i32, %arg2: memref<1x729x32xf32, #tpu.memory_space<vmem>>, %arg3: memref<9x32x64xf32, #tpu.memory_space<vmem>>, %arg4: memref<1x64xf32, #tpu.memory_space<vmem>>, %arg5: memref<1x1x25x64xf32, #tpu.memory_space<vmem>>, %arg6: memref<1x2x64xf32, #tpu.memory_space<vmem>>) attributes {dimension_semantics = [#tpu.dimension_semantics<parallel>, #tpu.dimension_semantics<arbitrary>], iteration_bounds = array<i64: 2, 25>, scalar_prefetch = 0 : i64, scratch_operands = 0 : i64, tpu.core_type = #tpu.core_type<tc>, window_params = [{transform_indices = @transform_0, window_bounds = array<i64: 1, 729, 32>}, {pipeline_mode = #tpu.pipeline_mode<synchronous>, transform_indices = @transform_1, window_bounds = array<i64: 9, 32, 64>}, {pipeline_mode = #tpu.pipeline_mode<synchronous>, transform_indices = @transform_2, window_bounds = array<i64: 1, 64>}, {transform_indices = @transform_3, window_bounds = array<i64: 1, 1, 25, 64>}, {transform_indices = @transform_4, window_bounds = array<i64: 1, 2, 64>}]} {
    %c0_i32 = arith.constant 0 : i32
    %0 = arith.cmpi eq, %arg1, %c0_i32 : i32
    %1 = arith.extui %0 : i1 to i32
    %c0_i32_0 = arith.constant 0 : i32
    %2 = arith.cmpi ne, %1, %c0_i32_0 : i32
    scf.if %2 {
      %cst_90 = arith.constant 0.000000e+00 : f32
      %135 = vector.broadcast %cst_90 : f32 to vector<1x2x64xf32>
      %c0_91 = arith.constant 0 : index
      %c0_92 = arith.constant 0 : index
      %c0_93 = arith.constant 0 : index
      %136 = vector.load %arg6[%c0_91, %c0_92, %c0_93] : memref<1x2x64xf32, #tpu.memory_space<vmem>>, vector<1x2x64xf32>
      tpu.vector_store %arg6[%c0_91, %c0_92, %c0_93], %135 {strides = array<i32>} : memref<1x2x64xf32, #tpu.memory_space<vmem>>, vector<1x2x64xf32>,
    } else {
    }
    %cst = arith.constant 0.000000e+00 : f32
    %3 = vector.broadcast %cst : f32 to vector<25x64xf32>
    %c0_i32_1 = arith.constant 0 : i32
    %4 = arith.addi %arg1, %c0_i32_1 : i32
    %c27_i32 = arith.constant 27 : i32
    %5 = arith.muli %4, %c27_i32 : i32
    %c0_i32_2 = arith.constant 0 : i32
    %6 = arith.addi %5, %c0_i32_2 : i32
    %c0 = arith.constant 0 : index
    %7 = arith.index_cast %6 : i32 to index
    %c0_3 = arith.constant 0 : index
    %8 = vector.load %arg2[%c0, %7, %c0_3] : memref<1x729x32xf32, #tpu.memory_space<vmem>>, vector<1x25x32xf32>
    %9 = vector.shape_cast %8 : vector<1x25x32xf32> to vector<25x32xf32>
    %10 = arith.truncf %9 : vector<25x32xf32> to vector<25x32xbf16>
    %c0_4 = arith.constant 0 : index
    %c0_5 = arith.constant 0 : index
    %c0_6 = arith.constant 0 : index
    %11 = vector.load %arg3[%c0_4, %c0_5, %c0_6] : memref<9x32x64xf32, #tpu.memory_space<vmem>>, vector<1x32x64xf32>
    %12 = vector.shape_cast %11 : vector<1x32x64xf32> to vector<32x64xf32>
    %13 = arith.truncf %12 : vector<32x64xf32> to vector<32x64xbf16>
    %cst_7 = arith.constant dense<0.000000e+00> : vector<25x64xf32>
    %14 = tpu.matmul %10, %13, %cst_7 {dimension_numbers = #tpu.dot_dimension_numbers<[1], [0], [0], [1], [0, 0, 1, 1], [], []>} : vector<25x32xbf16>, vector<32x64xbf16>, vector<25x64xf32> -> vector<25x64xf32>
    %15 = arith.addf %3, %14 : vector<25x64xf32>
    %c0_i32_8 = arith.constant 0 : i32
    %16 = arith.addi %arg1, %c0_i32_8 : i32
    %c27_i32_9 = arith.constant 27 : i32
    %17 = arith.muli %16, %c27_i32_9 : i32
    %c1_i32 = arith.constant 1 : i32
    %18 = arith.addi %17, %c1_i32 : i32
    %c0_10 = arith.constant 0 : index
    %19 = arith.index_cast %18 : i32 to index
    %c0_11 = arith.constant 0 : index
    %20 = vector.load %arg2[%c0_10, %19, %c0_11] : memref<1x729x32xf32, #tpu.memory_space<vmem>>, vector<1x25x32xf32>
    %21 = vector.shape_cast %20 : vector<1x25x32xf32> to vector<25x32xf32>
    %22 = arith.truncf %21 : vector<25x32xf32> to vector<25x32xbf16>
    %c1 = arith.constant 1 : index
    %c0_12 = arith.constant 0 : index
    %c0_13 = arith.constant 0 : index
    %23 = vector.load %arg3[%c1, %c0_12, %c0_13] : memref<9x32x64xf32, #tpu.memory_space<vmem>>, vector<1x32x64xf32>
    %24 = vector.shape_cast %23 : vector<1x32x64xf32> to vector<32x64xf32>
    %25 = arith.truncf %24 : vector<32x64xf32> to vector<32x64xbf16>
    %cst_14 = arith.constant dense<0.000000e+00> : vector<25x64xf32>
    %26 = tpu.matmul %22, %25, %cst_14 {dimension_numbers = #tpu.dot_dimension_numbers<[1], [0], [0], [1], [0, 0, 1, 1], [], []>} : vector<25x32xbf16>, vector<32x64xbf16>, vector<25x64xf32> -> vector<25x64xf32>
    %27 = arith.addf %15, %26 : vector<25x64xf32>
    %c0_i32_15 = arith.constant 0 : i32
    %28 = arith.addi %arg1, %c0_i32_15 : i32
    %c27_i32_16 = arith.constant 27 : i32
    %29 = arith.muli %28, %c27_i32_16 : i32
    %c2_i32 = arith.constant 2 : i32
    %30 = arith.addi %29, %c2_i32 : i32
    %c0_17 = arith.constant 0 : index
    %31 = arith.index_cast %30 : i32 to index
    %c0_18 = arith.constant 0 : index
    %32 = vector.load %arg2[%c0_17, %31, %c0_18] : memref<1x729x32xf32, #tpu.memory_space<vmem>>, vector<1x25x32xf32>
    %33 = vector.shape_cast %32 : vector<1x25x32xf32> to vector<25x32xf32>
    %34 = arith.truncf %33 : vector<25x32xf32> to vector<25x32xbf16>
    %c2 = arith.constant 2 : index
    %c0_19 = arith.constant 0 : index
    %c0_20 = arith.constant 0 : index
    %35 = vector.load %arg3[%c2, %c0_19, %c0_20] : memref<9x32x64xf32, #tpu.memory_space<vmem>>, vector<1x32x64xf32>
    %36 = vector.shape_cast %35 : vector<1x32x64xf32> to vector<32x64xf32>
    %37 = arith.truncf %36 : vector<32x64xf32> to vector<32x64xbf16>
    %cst_21 = arith.constant dense<0.000000e+00> : vector<25x64xf32>
    %38 = tpu.matmul %34, %37, %cst_21 {dimension_numbers = #tpu.dot_dimension_numbers<[1], [0], [0], [1], [0, 0, 1, 1], [], []>} : vector<25x32xbf16>, vector<32x64xbf16>, vector<25x64xf32> -> vector<25x64xf32>
    %39 = arith.addf %27, %38 : vector<25x64xf32>
    %c1_i32_22 = arith.constant 1 : i32
    %40 = arith.addi %arg1, %c1_i32_22 : i32
    %c27_i32_23 = arith.constant 27 : i32
    %41 = arith.muli %40, %c27_i32_23 : i32
    %c0_i32_24 = arith.constant 0 : i32
    %42 = arith.addi %41, %c0_i32_24 : i32
    %c0_25 = arith.constant 0 : index
    %43 = arith.index_cast %42 : i32 to index
    %c0_26 = arith.constant 0 : index
    %44 = vector.load %arg2[%c0_25, %43, %c0_26] : memref<1x729x32xf32, #tpu.memory_space<vmem>>, vector<1x25x32xf32>
    %45 = vector.shape_cast %44 : vector<1x25x32xf32> to vector<25x32xf32>
    %46 = arith.truncf %45 : vector<25x32xf32> to vector<25x32xbf16>
    %c3 = arith.constant 3 : index
    %c0_27 = arith.constant 0 : index
    %c0_28 = arith.constant 0 : index
    %47 = vector.load %arg3[%c3, %c0_27, %c0_28] : memref<9x32x64xf32, #tpu.memory_space<vmem>>, vector<1x32x64xf32>
    %48 = vector.shape_cast %47 : vector<1x32x64xf32> to vector<32x64xf32>
    %49 = arith.truncf %48 : vector<32x64xf32> to vector<32x64xbf16>
    %cst_29 = arith.constant dense<0.000000e+00> : vector<25x64xf32>
    %50 = tpu.matmul %46, %49, %cst_29 {dimension_numbers = #tpu.dot_dimension_numbers<[1], [0], [0], [1], [0, 0, 1, 1], [], []>} : vector<25x32xbf16>, vector<32x64xbf16>, vector<25x64xf32> -> vector<25x64xf32>
    %51 = arith.addf %39, %50 : vector<25x64xf32>
    %c1_i32_30 = arith.constant 1 : i32
    %52 = arith.addi %arg1, %c1_i32_30 : i32
    %c27_i32_31 = arith.constant 27 : i32
    %53 = arith.muli %52, %c27_i32_31 : i32
    %c1_i32_32 = arith.constant 1 : i32
    %54 = arith.addi %53, %c1_i32_32 : i32
    %c0_33 = arith.constant 0 : index
    %55 = arith.index_cast %54 : i32 to index
    %c0_34 = arith.constant 0 : index
    %56 = vector.load %arg2[%c0_33, %55, %c0_34] : memref<1x729x32xf32, #tpu.memory_space<vmem>>, vector<1x25x32xf32>
    %57 = vector.shape_cast %56 : vector<1x25x32xf32> to vector<25x32xf32>
    %58 = arith.truncf %57 : vector<25x32xf32> to vector<25x32xbf16>
    %c4 = arith.constant 4 : index
    %c0_35 = arith.constant 0 : index
    %c0_36 = arith.constant 0 : index
    %59 = vector.load %arg3[%c4, %c0_35, %c0_36] : memref<9x32x64xf32, #tpu.memory_space<vmem>>, vector<1x32x64xf32>
    %60 = vector.shape_cast %59 : vector<1x32x64xf32> to vector<32x64xf32>
    %61 = arith.truncf %60 : vector<32x64xf32> to vector<32x64xbf16>
    %cst_37 = arith.constant dense<0.000000e+00> : vector<25x64xf32>
    %62 = tpu.matmul %58, %61, %cst_37 {dimension_numbers = #tpu.dot_dimension_numbers<[1], [0], [0], [1], [0, 0, 1, 1], [], []>} : vector<25x32xbf16>, vector<32x64xbf16>, vector<25x64xf32> -> vector<25x64xf32>
    %63 = arith.addf %51, %62 : vector<25x64xf32>
    %c1_i32_38 = arith.constant 1 : i32
    %64 = arith.addi %arg1, %c1_i32_38 : i32
    %c27_i32_39 = arith.constant 27 : i32
    %65 = arith.muli %64, %c27_i32_39 : i32
    %c2_i32_40 = arith.constant 2 : i32
    %66 = arith.addi %65, %c2_i32_40 : i32
    %c0_41 = arith.constant 0 : index
    %67 = arith.index_cast %66 : i32 to index
    %c0_42 = arith.constant 0 : index
    %68 = vector.load %arg2[%c0_41, %67, %c0_42] : memref<1x729x32xf32, #tpu.memory_space<vmem>>, vector<1x25x32xf32>
    %69 = vector.shape_cast %68 : vector<1x25x32xf32> to vector<25x32xf32>
    %70 = arith.truncf %69 : vector<25x32xf32> to vector<25x32xbf16>
    %c5 = arith.constant 5 : index
    %c0_43 = arith.constant 0 : index
    %c0_44 = arith.constant 0 : index
    %71 = vector.load %arg3[%c5, %c0_43, %c0_44] : memref<9x32x64xf32, #tpu.memory_space<vmem>>, vector<1x32x64xf32>
    %72 = vector.shape_cast %71 : vector<1x32x64xf32> to vector<32x64xf32>
    %73 = arith.truncf %72 : vector<32x64xf32> to vector<32x64xbf16>
    %cst_45 = arith.constant dense<0.000000e+00> : vector<25x64xf32>
    %74 = tpu.matmul %70, %73, %cst_45 {dimension_numbers = #tpu.dot_dimension_numbers<[1], [0], [0], [1], [0, 0, 1, 1], [], []>} : vector<25x32xbf16>, vector<32x64xbf16>, vector<25x64xf32> -> vector<25x64xf32>
    %75 = arith.addf %63, %74 : vector<25x64xf32>
    %c2_i32_46 = arith.constant 2 : i32
    %76 = arith.addi %arg1, %c2_i32_46 : i32
    %c27_i32_47 = arith.constant 27 : i32
    %77 = arith.muli %76, %c27_i32_47 : i32
    %c0_i32_48 = arith.constant 0 : i32
    %78 = arith.addi %77, %c0_i32_48 : i32
    %c0_49 = arith.constant 0 : index
    %79 = arith.index_cast %78 : i32 to index
    %c0_50 = arith.constant 0 : index
    %80 = vector.load %arg2[%c0_49, %79, %c0_50] : memref<1x729x32xf32, #tpu.memory_space<vmem>>, vector<1x25x32xf32>
    %81 = vector.shape_cast %80 : vector<1x25x32xf32> to vector<25x32xf32>
    %82 = arith.truncf %81 : vector<25x32xf32> to vector<25x32xbf16>
    %c6 = arith.constant 6 : index
    %c0_51 = arith.constant 0 : index
    %c0_52 = arith.constant 0 : index
    %83 = vector.load %arg3[%c6, %c0_51, %c0_52] : memref<9x32x64xf32, #tpu.memory_space<vmem>>, vector<1x32x64xf32>
    %84 = vector.shape_cast %83 : vector<1x32x64xf32> to vector<32x64xf32>
    %85 = arith.truncf %84 : vector<32x64xf32> to vector<32x64xbf16>
    %cst_53 = arith.constant dense<0.000000e+00> : vector<25x64xf32>
    %86 = tpu.matmul %82, %85, %cst_53 {dimension_numbers = #tpu.dot_dimension_numbers<[1], [0], [0], [1], [0, 0, 1, 1], [], []>} : vector<25x32xbf16>, vector<32x64xbf16>, vector<25x64xf32> -> vector<25x64xf32>
    %87 = arith.addf %75, %86 : vector<25x64xf32>
    %c2_i32_54 = arith.constant 2 : i32
    %88 = arith.addi %arg1, %c2_i32_54 : i32
    %c27_i32_55 = arith.constant 27 : i32
    %89 = arith.muli %88, %c27_i32_55 : i32
    %c1_i32_56 = arith.constant 1 : i32
    %90 = arith.addi %89, %c1_i32_56 : i32
    %c0_57 = arith.constant 0 : index
    %91 = arith.index_cast %90 : i32 to index
    %c0_58 = arith.constant 0 : index
    %92 = vector.load %arg2[%c0_57, %91, %c0_58] : memref<1x729x32xf32, #tpu.memory_space<vmem>>, vector<1x25x32xf32>
    %93 = vector.shape_cast %92 : vector<1x25x32xf32> to vector<25x32xf32>
    %94 = arith.truncf %93 : vector<25x32xf32> to vector<25x32xbf16>
    %c7 = arith.constant 7 : index
    %c0_59 = arith.constant 0 : index
    %c0_60 = arith.constant 0 : index
    %95 = vector.load %arg3[%c7, %c0_59, %c0_60] : memref<9x32x64xf32, #tpu.memory_space<vmem>>, vector<1x32x64xf32>
    %96 = vector.shape_cast %95 : vector<1x32x64xf32> to vector<32x64xf32>
    %97 = arith.truncf %96 : vector<32x64xf32> to vector<32x64xbf16>
    %cst_61 = arith.constant dense<0.000000e+00> : vector<25x64xf32>
    %98 = tpu.matmul %94, %97, %cst_61 {dimension_numbers = #tpu.dot_dimension_numbers<[1], [0], [0], [1], [0, 0, 1, 1], [], []>} : vector<25x32xbf16>, vector<32x64xbf16>, vector<25x64xf32> -> vector<25x64xf32>
    %99 = arith.addf %87, %98 : vector<25x64xf32>
    %c2_i32_62 = arith.constant 2 : i32
    %100 = arith.addi %arg1, %c2_i32_62 : i32
    %c27_i32_63 = arith.constant 27 : i32
    %101 = arith.muli %100, %c27_i32_63 : i32
    %c2_i32_64 = arith.constant 2 : i32
    %102 = arith.addi %101, %c2_i32_64 : i32
    %c0_65 = arith.constant 0 : index
    %103 = arith.index_cast %102 : i32 to index
    %c0_66 = arith.constant 0 : index
    %104 = vector.load %arg2[%c0_65, %103, %c0_66] : memref<1x729x32xf32, #tpu.memory_space<vmem>>, vector<1x25x32xf32>
    %105 = vector.shape_cast %104 : vector<1x25x32xf32> to vector<25x32xf32>
    %106 = arith.truncf %105 : vector<25x32xf32> to vector<25x32xbf16>
    %c8 = arith.constant 8 : index
    %c0_67 = arith.constant 0 : index
    %c0_68 = arith.constant 0 : index
    %107 = vector.load %arg3[%c8, %c0_67, %c0_68] : memref<9x32x64xf32, #tpu.memory_space<vmem>>, vector<1x32x64xf32>
    %108 = vector.shape_cast %107 : vector<1x32x64xf32> to vector<32x64xf32>
    %109 = arith.truncf %108 : vector<32x64xf32> to vector<32x64xbf16>
    %cst_69 = arith.constant dense<0.000000e+00> : vector<25x64xf32>
    %110 = tpu.matmul %106, %109, %cst_69 {dimension_numbers = #tpu.dot_dimension_numbers<[1], [0], [0], [1], [0, 0, 1, 1], [], []>} : vector<25x32xbf16>, vector<32x64xbf16>, vector<25x64xf32> -> vector<25x64xf32>
    %111 = arith.addf %99, %110 : vector<25x64xf32>
    %c0_70 = arith.constant 0 : index
    %c0_71 = arith.constant 0 : index
    %112 = vector.load %arg4[%c0_70, %c0_71] : memref<1x64xf32, #tpu.memory_space<vmem>>, vector<1x64xf32>
    %113 = vector.broadcast %112 : vector<1x64xf32> to vector<25x64xf32>
    %114 = arith.addf %111, %113 : vector<25x64xf32>
    %c0_72 = arith.constant 0 : index
    %c0_73 = arith.constant 0 : index
    %c0_74 = arith.constant 0 : index
    %c0_75 = arith.constant 0 : index
    %115 = vector.load %arg5[%c0_72, %c0_73, %c0_74, %c0_75] : memref<1x1x25x64xf32, #tpu.memory_space<vmem>>, vector<1x1x25x64xf32>
    %116 = vector.shape_cast %115 : vector<1x1x25x64xf32> to vector<25x64xf32>
    %117 = vector.shape_cast %114 : vector<25x64xf32> to vector<1x1x25x64xf32>
    tpu.vector_store %arg5[%c0_72, %c0_73, %c0_74, %c0_75], %117 {strides = array<i32>} : memref<1x1x25x64xf32, #tpu.memory_space<vmem>>, vector<1x1x25x64xf32>,
    %c0_76 = arith.constant 0 : index
    %c0_77 = arith.constant 0 : index
    %c0_78 = arith.constant 0 : index
    %118 = vector.load %arg6[%c0_76, %c0_77, %c0_78] : memref<1x2x64xf32, #tpu.memory_space<vmem>>, vector<1x1x64xf32>
    %119 = vector.shape_cast %118 : vector<1x1x64xf32> to vector<1x64xf32>
    %cst_79 = arith.constant dense<0.000000e+00> : vector<64xf32>
    %120 = vector.multi_reduction <add>, %114, %cst_79 [0] : vector<25x64xf32> to vector<64xf32>
    %121 = vector.shape_cast %120 : vector<64xf32> to vector<1x64xf32>
    %122 = arith.addf %119, %121 : vector<1x64xf32>
    %c0_80 = arith.constant 0 : index
    %c0_81 = arith.constant 0 : index
    %c0_82 = arith.constant 0 : index
    %123 = vector.load %arg6[%c0_80, %c0_81, %c0_82] : memref<1x2x64xf32, #tpu.memory_space<vmem>>, vector<1x1x64xf32>
    %124 = vector.shape_cast %123 : vector<1x1x64xf32> to vector<1x64xf32>
    %125 = vector.shape_cast %122 : vector<1x64xf32> to vector<1x1x64xf32>
    tpu.vector_store %arg6[%c0_80, %c0_81, %c0_82], %125 {strides = array<i32>} : memref<1x2x64xf32, #tpu.memory_space<vmem>>, vector<1x1x64xf32>,
    %c0_83 = arith.constant 0 : index
    %c1_84 = arith.constant 1 : index
    %c0_85 = arith.constant 0 : index
    %126 = vector.load %arg6[%c0_83, %c1_84, %c0_85] : memref<1x2x64xf32, #tpu.memory_space<vmem>>, vector<1x1x64xf32>
    %127 = vector.shape_cast %126 : vector<1x1x64xf32> to vector<1x64xf32>
    %128 = arith.mulf %114, %114 : vector<25x64xf32>
    %cst_86 = arith.constant dense<0.000000e+00> : vector<64xf32>
    %129 = vector.multi_reduction <add>, %128, %cst_86 [0] : vector<25x64xf32> to vector<64xf32>
    %130 = vector.shape_cast %129 : vector<64xf32> to vector<1x64xf32>
    %131 = arith.addf %127, %130 : vector<1x64xf32>
    %c0_87 = arith.constant 0 : index
    %c1_88 = arith.constant 1 : index
    %c0_89 = arith.constant 0 : index
    %132 = vector.load %arg6[%c0_87, %c1_88, %c0_89] : memref<1x2x64xf32, #tpu.memory_space<vmem>>, vector<1x1x64xf32>
    %133 = vector.shape_cast %132 : vector<1x1x64xf32> to vector<1x64xf32>
    %134 = vector.shape_cast %131 : vector<1x64xf32> to vector<1x1x64xf32>
    tpu.vector_store %arg6[%c0_87, %c1_88, %c0_89], %134 {strides = array<i32>} : memref<1x2x64xf32, #tpu.memory_space<vmem>>, vector<1x1x64xf32>,
    return
  }
  func.func @transform_0(%arg0: i32, %arg1: i32) -> (i32, i32, i32) {
    %c0_i32 = arith.constant 0 : i32
    %c0_i32_0 = arith.constant 0 : i32
    %c0_i32_1 = arith.constant 0 : i32
    return %arg0, %c0_i32, %c0_i32_0 : i32, i32, i32
  }
  func.func @transform_1(%arg0: i32, %arg1: i32) -> (i32, i32, i32) {
    %c0_i32 = arith.constant 0 : i32
    %c0_i32_0 = arith.constant 0 : i32
    %c0_i32_1 = arith.constant 0 : i32
    %c0_i32_2 = arith.constant 0 : i32
    return %c0_i32, %c0_i32_0, %c0_i32_1 : i32, i32, i32
  }
  func.func @transform_2(%arg0: i32, %arg1: i32) -> (i32, i32) {
    %c0_i32 = arith.constant 0 : i32
    %c0_i32_0 = arith.constant 0 : i32
    %c0_i32_1 = arith.constant 0 : i32
    return %c0_i32, %c0_i32_0 : i32, i32
  }
  func.func @transform_3(%arg0: i32, %arg1: i32) -> (i32, i32, i32, i32) {
    %c0_i32 = arith.constant 0 : i32
    %c0_i32_0 = arith.constant 0 : i32
    %c0_i32_1 = arith.constant 0 : i32
    return %arg0, %arg1, %c0_i32, %c0_i32_0 : i32, i32, i32, i32
  }
  func.func @transform_4(%arg0: i32, %arg1: i32) -> (i32, i32, i32) {
    %c0_i32 = arith.constant 0 : i32
    %c0_i32_0 = arith.constant 0 : i32
    %c0_i32_1 = arith.constant 0 : i32
    return %arg0, %c0_i32, %c0_i32_0 : i32, i32, i32
  }
}

module attributes {stable_mosaic.version = 11 : i64} {
  func.func @_affine_silu_kernel(%arg0: i32, %arg1: memref<256x128xf32, #tpu.memory_space<vmem>>, %arg2: memref<1x128xf32, #tpu.memory_space<vmem>>, %arg3: memref<1x128xf32, #tpu.memory_space<vmem>>, %arg4: memref<256x128xf32, #tpu.memory_space<vmem>>) attributes {dimension_semantics = [#tpu.dimension_semantics<parallel>], iteration_bounds = array<i64: 3>, scalar_prefetch = 0 : i64, scratch_operands = 0 : i64, tpu.core_type = #tpu.core_type<tc>, window_params = [{transform_indices = @transform_0, window_bounds = array<i64: 256, 128>}, {pipeline_mode = #tpu.pipeline_mode<synchronous>, transform_indices = @transform_1, window_bounds = array<i64: 1, 128>}, {pipeline_mode = #tpu.pipeline_mode<synchronous>, transform_indices = @transform_2, window_bounds = array<i64: 1, 128>}, {transform_indices = @transform_3, window_bounds = array<i64: 256, 128>}]} {
    %c0 = arith.constant 0 : index
    %c0_0 = arith.constant 0 : index
    %0 = vector.load %arg1[%c0, %c0_0] : memref<256x128xf32, #tpu.memory_space<vmem>>, vector<256x128xf32>
    %c0_1 = arith.constant 0 : index
    %c0_2 = arith.constant 0 : index
    %1 = vector.load %arg2[%c0_1, %c0_2] : memref<1x128xf32, #tpu.memory_space<vmem>>, vector<1x128xf32>
    %2 = vector.broadcast %1 : vector<1x128xf32> to vector<256x128xf32>
    %3 = arith.mulf %0, %2 : vector<256x128xf32>
    %c0_3 = arith.constant 0 : index
    %c0_4 = arith.constant 0 : index
    %4 = vector.load %arg3[%c0_3, %c0_4] : memref<1x128xf32, #tpu.memory_space<vmem>>, vector<1x128xf32>
    %5 = vector.broadcast %4 : vector<1x128xf32> to vector<256x128xf32>
    %6 = arith.addf %3, %5 : vector<256x128xf32>
    %cst = arith.constant 0.000000e+00 : f32
    %7 = vector.broadcast %cst : f32 to vector<256x128xf32>
    %8 = arith.subf %7, %6 : vector<256x128xf32>
    %9 = math.exp %8 : vector<256x128xf32>
    %cst_5 = arith.constant 1.000000e+00 : f32
    %10 = vector.broadcast %cst_5 : f32 to vector<256x128xf32>
    %11 = arith.addf %10, %9 : vector<256x128xf32>
    %12 = tpu.reciprocal %11 {approx = true} : vector<256x128xf32> -> vector<256x128xf32>
    %13 = arith.mulf %6, %12 : vector<256x128xf32>
    %c0_6 = arith.constant 0 : index
    %c0_7 = arith.constant 0 : index
    %14 = vector.load %arg4[%c0_6, %c0_7] : memref<256x128xf32, #tpu.memory_space<vmem>>, vector<256x128xf32>
    tpu.vector_store %arg4[%c0_6, %c0_7], %13 {strides = array<i32>} : memref<256x128xf32, #tpu.memory_space<vmem>>, vector<256x128xf32>,
    return
  }
  func.func @transform_0(%arg0: i32) -> (i32, i32) {
    %c0_i32 = arith.constant 0 : i32
    %c0_i32_0 = arith.constant 0 : i32
    return %arg0, %c0_i32 : i32, i32
  }
  func.func @transform_1(%arg0: i32) -> (i32, i32) {
    %c0_i32 = arith.constant 0 : i32
    %c0_i32_0 = arith.constant 0 : i32
    %c0_i32_1 = arith.constant 0 : i32
    return %c0_i32, %c0_i32_0 : i32, i32
  }
  func.func @transform_2(%arg0: i32) -> (i32, i32) {
    %c0_i32 = arith.constant 0 : i32
    %c0_i32_0 = arith.constant 0 : i32
    %c0_i32_1 = arith.constant 0 : i32
    return %c0_i32, %c0_i32_0 : i32, i32
  }
  func.func @transform_3(%arg0: i32) -> (i32, i32) {
    %c0_i32 = arith.constant 0 : i32
    %c0_i32_0 = arith.constant 0 : i32
    return %arg0, %c0_i32 : i32, i32
  }
}

</mosaic_0001>

<bundles_post_ra>
// kernel: decoder2_forward.39
= control target key start
LH: loop header
LB: loop body
LE: loop exit
PB: predicated region body
PF: predicated region fallthrough
CT: control target
= control target key end

     0   :  { %s100_s0 = inlined_call_operand.vmem [shape: f32[16,128], index: 0, kind: input, shape index: {}]   ;;  %s101_s1 = inlined_call_operand.vmem [shape: f32[1,128], index: 1, kind: input, shape index: {}]   ;;  %s102_s2 = inlined_call_operand.vmem [shape: f32[1,128], index: 2, kind: input, shape index: {}]   ;;  %s103_s3 = inlined_call_operand.vmem [shape: f32[16,128], index: 3, kind: output, shape index: {}]  }
   0x1   :  { %v14_v0 = vld [vmem:[%s100_s0] sm:$0xff]  ;;  %v15_v4 = vld [vmem:[%s100_s0 + $0x8] sm:$0xff] }
   0x2   :  { %v52_v1 = vld [vmem:[%s101_s1] ss:$0 sm:$0xff] }
   0x3   :  { %v53_v2 = vld [vmem:[%s102_s2] ss:$0 sm:$0xff]  ;;  %v23_v3 = vmul.f32 %v52_v1, %v14_v0  ;;  %v24_v5 = vmul.f32 %v52_v1, %v15_v4 }
   0x5   :  { %v32_v6 = vadd.f32 %v53_v2, %v23_v3  ;;  %v33_v7 = vadd.f32 %v53_v2, %v24_v5 }
   0x7   :  { %v34_v8 = vsub.f32 0.0, %v32_v6  ;;  %v35_v9 = vsub.f32 0.0, %v33_v7 }
   0x9   :  { %v36_v10 = vmul.f32 1.442695, %v34_v8  ;;  %v38_v11 = vmul.f32 1.442695, %v35_v9 }
   0xb   :  { %54 = vpow2.f32 %v36_v10 }
   0xc   :  { %56 = vpow2.f32 %v38_v11 }
  0x15   :  { %v55_v12 = vpop.eup %54 }
  0x16   :  { %v57_v13 = vpop.eup %56  ;;  %v40_v14 = vadd.f32 1.0, %v55_v12 }
  0x17   :  { %v41_v15 = vadd.f32 1.0, %v57_v13 }
  0x18   :  { %58 = vrcp.f32 %v40_v14 }
  0x19   :  { %60 = vrcp.f32 %v41_v15 }
  0x22   :  { %v59_v16 = vpop.eup %58 }
  0x23   :  { %v61_v17 = vpop.eup %60  ;;  %v44_v18 = vmul.f32 %v59_v16, %v32_v6 }
  0x24   :  { %v45_v19 = vmul.f32 %v61_v17, %v33_v7 }
  0x25   :  { %46 = vst [vmem:[%s103_s3] sm:$0xff] %v44_v18 }
  0x26   :  { %47 = vst [vmem:[%s103_s3 + $0x8] sm:$0xff] %v45_v19 }

// kernel: decoder2_forward.40
= control target key start
LH: loop header
LB: loop body
LE: loop exit
PB: predicated region body
PF: predicated region fallthrough
CT: control target
= control target key end

     0   :  { %s335_s9 = smov 0   ;;  %s355_s0 = inlined_call_operand.vmem [shape: f32[8,4], index: 0, kind: input, shape index: {}]   ;;  %s356_s1 = inlined_call_operand.vmem [shape: f32[2,4,256], index: 1, kind: input, shape index: {}]   ;;  %s357_s2 = inlined_call_operand.vmem [shape: f32[2,8,256], index: 2, kind: output, shape index: {}]  }
   0x1 LB: > { %s285_s10 = sadd.s32 4294967295, %s317_s9   ;;  %p289_p0 = scmp.ge.s32.totalorder %s317_s9, 1  ;;  %s317_s9 = sphi %s335_s9, %s12_s9  }
   0x2   : > { %p112_p1 = scmp.lt.s32.totalorder %s317_s9, 3 }
   0x4   : > { %p113_p2 = pnand %p289_p0, %p112_p1 }
   0x5   : > { %p134_p3 = scmp.lt.s32.totalorder (!%p113_p2), %s285_s10, 1  ;;  %v319_v0 = vmov (!%p113_p2), 0.0   ;;  %vm152_vm0 = vcmask (!%p113_p2), 1043456   ;;  %v144_v3 = vld [vmem:[%s355_s0] sm:$0xff] (!%p113_p2)  ;;  %vm148_vm1 = vcmask (!%p113_p2), 31744  }
   0x6   : > { %116 = sbr.rel (%p113_p2) target bundleno = 235 (0xeb), region = 28  ;;  %221 = vmatprep.mubr.f32.mxu0 (!%p113_p2), %v319_v0 }
   0xd   : > { %s359_s10 = smov (!%p134_p3, %s285_s10), 1 }
   0xe   : > { %s299_s11 = sshll.u32 %s359_s10, 3  ;;  %s300_s17 = sshll.u32 %s359_s10, 4 }
   0xf   : > { %s138_s14 = scalar_lea.vmem %s356_s1, %s299_s11  ;;  %s143_s20 = scalar_lea.vmem %s357_s2, %s300_s17 }
  0x10   : > { %v145_v1 = vld [vmem:[%s138_s14] sm:$0xff] }
  0x11   : > { %v147_v2 = vcombine.high %v145_v1, %v145_v1 }
  0x13   : > { %294 = vmatprep.subr.msk.mxu0 %vm152_vm0, %v147_v2 }
  0x14   : > { %295 = vmatpush1.msk.msra.mxu0 %vm152_vm0, %v145_v1 }
  0x15   : > { %296 = vmatmul.mubr.msk.f32.vlgmr.msra.gmra.mrb[0].mxu0 %vm148_vm1, %v144_v3 }
  0xe8   : > { %v223_v4 = vpop.f32.mrb[0].mxu0 }
  0xe9   : > { %228 = vst [vmem:[%s143_s20] sm:$0xff] %v223_v4  ;;  %v225_v5 = vpop.f32.mrb[1].mxu0 }
  0xea   : > { %229 = vst [vmem:[%s143_s20 + $0x8] sm:$0xff] %v225_v5 }
  0xeb PF: > { %s12_s9 = sadd.s32 1, %s317_s9  }
  0xec   : > { %p9_p4 = scmp.ge.s32.totalorder %s12_s9, 4  }
  0xee   :  { %11 = sbr.rel (!%p9_p4) target bundleno = 1 (0x1), region = 58 }

// kernel: decoder2_forward.38
= control target key start
LH: loop header
LB: loop body
LE: loop exit
PB: predicated region body
PF: predicated region fallthrough
CT: control target
= control target key end

     0   :  { %s1103_s15 = smov 0   ;;  %s1105_s16 = smov 0   ;;  %s1277_s0 = inlined_call_operand.vmem [shape: f32[2,36,16], index: 0, kind: input, shape index: {}]   ;;  %s1278_s1 = inlined_call_operand.vmem [shape: f32[9,16,64], index: 1, kind: input, shape index: {}]   ;;  %s1279_s2 = inlined_call_operand.vmem [shape: f32[1,64], index: 2, kind: input, shape index: {}]   ;;  %s1280_s3 = inlined_call_operand.vmem [shape: f32[2,4,4,64], index: 3, kind: output, shape index: {0}]   ;;  %s1281_s4 = inlined_call_operand.vmem [shape: f32[2,2,64], index: 4, kind: output, shape index: {1}]  }
   0x1   :  { %s1107_s17 = smov 0   ;;  %s1109_s18 = smov 0  }
   0x2   :  { %s1111_s19 = smov 0  }
   0x3 LB: > { %s24_s20 = sadd.s32 1, %s1065_s17  ;;  %s27_s21 = sadd.s32 1, %s1069_s18  ;;  %s1073_s19 = sphi %s1111_s19, %s15_s19   ;;  %s1069_s18 = sphi %s1109_s18, %s1285_s18   ;;  %s1065_s17 = sphi %s1107_s17, %s1284_s17   ;;  %s1061_s16 = sphi %s1105_s16, %s1283_s16   ;;  %s1057_s15 = sphi %s1103_s15, %s1282_s15  }
   0x4   : > { %p25_p0 = scmp.ge.s32.totalorder %s24_s20, 4  ;;  %p877_p1 = scmp.ge.s32.totalorder %s1073_s19, 1 }
   0x5   : > { %p179_p2 = scmp.lt.s32.totalorder %s1073_s19, 9 }
   0x6   : > { %s1287_s20 = smov (%p25_p0, %s24_s20), 0  ;;  %s1289_s21 = smov (!%p25_p0, %s27_s21), %s1069_s18 }
   0x7   : > { %p180_p3 = pnand %p877_p1, %p179_p2  ;;  %p29_p4 = scmp.ge.s32.totalorder %s1289_s21, 2 }
   0x8   : > { %p212_p5 = scmp.lt.s32.totalorder (!%p180_p3), %s1061_s16, 1  ;;  %p219_p6 = scmp.lt.s32.totalorder (!%p180_p3), %s1057_s15, 3 }
   0x9   : > { %s1291_s21 = smov (%p29_p4, %s1289_s21), 0  ;;  %183 = sbr.rel (%p180_p3) target bundleno = 295 (0x127), region = 32 }
   0xa   : > { %p882_p7 = scmp.ne.s32.totalorder (!%p180_p3), %s1057_s15, 0 }
  0x10   : > { %s1293_s16 = smov (!%p212_p5, %s1061_s16), 1  ;;  %233 = sbr.rel (%p882_p7) target bundleno = 23 (0x17), region = 36 }
  0x11   : > { %s220_s22 = scalar_select %p219_p6, %s1057_s15, 3 }
  0x12   : > { %s991_s23 = smul.u32 40, %s1293_s16  ;;  %s879_s24 = sshll.u32 %s1293_s16, 2  ;;  %vm234_vm0 = vcmask (!%p882_p7), 517120   ;;  %v1075_v0 = vmov (!%p882_p7), 0.0  }
  0x13   : > { %s222_s25 = sadd.s32 %s879_s24, %s220_s22  ;;  %s881_s26 = sshll.u32 %s1293_s16, 1 }
  0x14   : > { %s216_s29 = scalar_lea.vmem %s1277_s0, %s991_s23  ;;  %s880_s30 = sshll.u32 %s222_s25, 2 }
  0x15   : > { %s1143_s7 = scalar_lea.vmem %s1280_s3, %s880_s30  ;;  %s1148_s10 = scalar_lea.vmem %s1281_s4, %s881_s26 }
  0x16   : > { %235 = vst.msk [vmem:[%s1148_s10] sm:$0x3] (!%p882_p7), %vm234_vm0, %v1075_v0 }
  0x17 PF: > { %v884_v1 = vld [vmem:[%s1278_s1 + $0x10] sm:$0xff]  ;;  %v885_v2 = vld [vmem:[%s1278_s1 + $0x18] sm:$0xff]  ;;  %v240_v3 = vld [vmem:[%s1278_s1] sm:$0xff]  ;;  %s236_s23 = smul.u32 6, %s1057_s15  ;;  %v1076_v4 = vmov 0.0   ;;  %vm1077_vm1 = vmmov 0  }
  0x18   : > { %937 = vmatprep.subr.bf16.mxu0 %v1076_v4  ;;  %v250_v5 = vpack.c.bf16 %v885_v2, %v884_v1  ;;  %943 = vmatprep.subr.bf16.mxu1 %v1076_v4  ;;  %v241_v6 = vld [vmem:[%s1278_s1 + $0x8] sm:$0xff]  ;;  %v889_v7 = vld [vmem:[%s1278_s1 + $0x20] sm:$0xff]  ;;  %v893_v10 = vld [vmem:[%s1278_s1 + $0x30] sm:$0xff]  ;;  %vm251_vm2 = vcmask 130048   ;;  %vm712_vm3 = vcmask 519168   ;;  %vm723_vm4 = vcmask 516096  }
  0x19   : > { %v890_v8 = vld [vmem:[%s1278_s1 + $0x28] sm:$0xff]  ;;  %v242_v9 = vpack.c.bf16 %v241_v6, %v240_v3  ;;  %939 = vmatprep.mubr.msk.bf16.mxu0 %vm1077_vm1, %v1076_v4  ;;  %s1175_s15 = scalar_lea.vmem %s216_s29, %s236_s23  ;;  %945 = vmatprep.mubr.msk.bf16.mxu1 %vm1077_vm1, %v1076_v4  ;;  %v894_v11 = vld [vmem:[%s1278_s1 + $0x38] sm:$0xff]  ;;  %v897_v19 = vld [vmem:[%s1278_s1 + $0x40] sm:$0xff] }
  0x1a   : > { %938 = vmatpush3.bf16.msra.mxu0 %v250_v5  ;;  %v883_v12 = vld [vmem:[%s1175_s15 + $0x1] sm:$0xf]  ;;  %v345_v14 = vpack.c.bf16 %v890_v8, %v889_v7  ;;  %v398_v17 = vpack.c.bf16 %v894_v11, %v893_v10  ;;  %v898_v20 = vld [vmem:[%s1278_s1 + $0x48] sm:$0xff]  ;;  %v901_v22 = vld [vmem:[%s1278_s1 + $0x50] sm:$0xff] }
  0x1b   : > { %v238_v13 = vld [vmem:[%s1175_s15] sm:$0xf]  ;;  %944 = vmatpush3.bf16.msra.mxu1 %v242_v9  ;;  %v246_v15 = vpack.c.bf16 %v883_v12, %v883_v12  ;;  %949 = vmatprep.subr.bf16.mxu0 %v1076_v4  ;;  %v892_v21 = vld [vmem:[%s1175_s15 + $0x6] sm:$0xf]  ;;  %v902_v23 = vld [vmem:[%s1278_s1 + $0x58] sm:$0xff]  ;;  %v450_v25 = vpack.c.bf16 %v898_v20, %v897_v19 }
  0x1c   : > { %v239_v16 = vpack.c.bf16 %v238_v13, %v238_v13  ;;  %955 = vmatprep.subr.bf16.mxu1 %v1076_v4  ;;  %v888_v18 = vld [vmem:[%s1175_s15 + $0x2] sm:$0xf]  ;;  %v394_v26 = vpack.c.bf16 %v892_v21, %v892_v21  ;;  %v502_v27 = vpack.c.bf16 %v902_v23, %v901_v22  ;;  %v896_v28 = vld [vmem:[%s1175_s15 + $0x7] sm:$0xf]  ;;  %v909_v32 = vld [vmem:[%s1278_s1 + $0x70] sm:$0xff] }
  0x1d   : > { %940 = vmatmul.mubr.msk.bf16.vlgmr.msra.gmra.mrb[0].mxu0 %vm251_vm2, %v246_v15  ;;  %v341_v24 = vpack.c.bf16 %v888_v18, %v888_v18  ;;  %v905_v29 = vld [vmem:[%s1278_s1 + $0x60] sm:$0xff]  ;;  %v906_v30 = vld [vmem:[%s1278_s1 + $0x68] sm:$0xff]  ;;  %v910_v33 = vld [vmem:[%s1278_s1 + $0x78] sm:$0xff]  ;;  %v446_v34 = vpack.c.bf16 %v896_v28, %v896_v28 }
  0x1e   : > { %946 = vmatmul.mubr.msk.bf16.vlgmr.msra.gmra.mrb[0].mxu1 %vm251_vm2, %v239_v16  ;;  %950 = vmatpush3.bf16.msra.mxu0 %v345_v14  ;;  %v900_v31 = vld [vmem:[%s1175_s15 + $0x8] sm:$0xf]  ;;  %v555_v35 = vpack.c.bf16 %v906_v30, %v905_v29  ;;  %v607_v37 = vpack.c.bf16 %v910_v33, %v909_v32  ;;  %v904_v38 = vld [vmem:[%s1175_s15 + $0xc] sm:$0xf]  ;;  %v913_v39 = vld [vmem:[%s1278_s1 + $0x80] sm:$0xff] }
  0x1f   : > { %951 = vmatprep.mubr.msk.bf16.mxu0 %vm1077_vm1, %v1076_v4  ;;  %956 = vmatpush3.bf16.msra.mxu1 %v398_v17  ;;  %v498_v36 = vpack.c.bf16 %v900_v31, %v900_v31  ;;  %v914_v40 = vld [vmem:[%s1278_s1 + $0x88] sm:$0xff]  ;;  %v551_v42 = vpack.c.bf16 %v904_v38, %v904_v38  ;;  %v916_v23 = vld [vmem:[%s1279_s2] ss:$0 sm:$0xff] }
  0x20   : > { %961 = vmatprep.subr.bf16.mxu0 %v1076_v4  ;;  %957 = vmatprep.mubr.msk.bf16.mxu1 %vm1077_vm1, %v1076_v4  ;;  %v908_v41 = vld [vmem:[%s1175_s15 + $0xd] sm:$0xf]  ;;  %v659_v43 = vpack.c.bf16 %v914_v40, %v913_v39 }
  0x21   : > { %967 = vmatprep.subr.bf16.mxu1 %v1076_v4  ;;  %v603_v44 = vpack.c.bf16 %v908_v41, %v908_v41  ;;  %v912_v45 = vld [vmem:[%s1175_s15 + $0xe] sm:$0xf]  ;;  %v714_v41 = vld [vmem:[%s1148_s10] sm:$0x1] }
  0x22   : > { %v655_v46 = vpack.c.bf16 %v912_v45, %v912_v45 }
  0x25   : > { %952 = vmatmul.mubr.msk.bf16.vlgmr.msra.gmra.mrb[4].mxu0 %vm251_vm2, %v341_v24 }
  0x26   : > { %962 = vmatpush3.bf16.msra.mxu0 %v450_v25  ;;  %958 = vmatmul.mubr.msk.bf16.vlgmr.msra.gmra.mrb[4].mxu1 %vm251_vm2, %v394_v26 }
  0x27   : > { %963 = vmatprep.mubr.msk.bf16.mxu0 %vm1077_vm1, %v1076_v4  ;;  %968 = vmatpush3.bf16.msra.mxu1 %v502_v27 }
  0x28   : > { %973 = vmatprep.subr.bf16.mxu0 %v1076_v4  ;;  %969 = vmatprep.mubr.msk.bf16.mxu1 %vm1077_vm1, %v1076_v4 }
  0x29   : > { %979 = vmatprep.subr.bf16.mxu1 %v1076_v4 }
  0x2d   : > { %964 = vmatmul.mubr.msk.bf16.vlgmr.msra.gmra.mrb[8].mxu0 %vm251_vm2, %v446_v34 }
  0x2e   : > { %974 = vmatpush3.bf16.msra.mxu0 %v555_v35  ;;  %970 = vmatmul.mubr.msk.bf16.vlgmr.msra.gmra.mrb[8].mxu1 %vm251_vm2, %v498_v36 }
  0x2f   : > { %975 = vmatprep.mubr.msk.bf16.mxu0 %vm1077_vm1, %v1076_v4  ;;  %980 = vmatpush3.bf16.msra.mxu1 %v607_v37 }
  0x30   : > { %985 = vmatprep.subr.bf16.mxu0 %v1076_v4  ;;  %981 = vmatprep.mubr.msk.bf16.mxu1 %vm1077_vm1, %v1076_v4 }
  0x35   : > { %976 = vmatmul.mubr.msk.bf16.vlgmr.msra.gmra.mrb[12].mxu0 %vm251_vm2, %v551_v42 }
  0x36   : > { %986 = vmatpush3.bf16.msra.mxu0 %v659_v43  ;;  %982 = vmatmul.mubr.msk.bf16.vlgmr.msra.gmra.mrb[12].mxu1 %vm251_vm2, %v603_v44  ;;  %v725_v44 = vld [vmem:[%s1148_s10 + $0x1] sm:$0x1] }
  0x37   : > { %987 = vmatprep.mubr.msk.bf16.mxu0 %vm1077_vm1, %v1076_v4 }
  0x3d   : > { %988 = vmatmul.mubr.msk.bf16.vlgmr.msra.gmra.mrb[16].mxu0 %vm251_vm2, %v655_v46 }
  0xf0   : > { %v289_v47 = vpop.f32.mrb[0].mxu0 }
  0xf1   : > { %v941_v48 = vpop.f32.mrb[1].mxu0  ;;  %v332_v49 = vpop.f32.mrb[0].mxu1 }
  0xf2   : > { %v333_v50 = vadd.f32 %v332_v49, %v289_v47  ;;  %v292_v51 = vpop.f32.mrb[2].mxu0  ;;  %v947_v52 = vpop.f32.mrb[1].mxu1 }
  0xf3   : > { %v942_v53 = vpop.f32.mrb[3].mxu0  ;;  %v335_v54 = vpop.f32.mrb[2].mxu1 }
  0xf4   : > { %v948_v55 = vpop.f32.mrb[3].mxu1 }
  0xf8   : > { %v383_v56 = vpop.f32.mrb[4].mxu0 }
  0xf9   : > { %v389_v57 = vadd.f32 %v383_v56, %v333_v50  ;;  %v953_v58 = vpop.f32.mrb[5].mxu0  ;;  %v436_v59 = vpop.f32.mrb[4].mxu1 }
  0xfa   : > { %v386_v60 = vpop.f32.mrb[6].mxu0  ;;  %v959_v61 = vpop.f32.mrb[5].mxu1 }
  0xfb   : > { %v442_v62 = vadd.f32 %v436_v59, %v389_v57  ;;  %v954_v63 = vpop.f32.mrb[7].mxu0  ;;  %v439_v0 = vpop.f32.mrb[6].mxu1 }
  0xfc   : > { %v960_v1 = vpop.f32.mrb[7].mxu1 }
 0x100   : > { %v488_v2 = vpop.f32.mrb[8].mxu0 }
 0x101   : > { %v494_v3 = vadd.f32 %v488_v2, %v442_v62  ;;  %v965_v4 = vpop.f32.mrb[9].mxu0  ;;  %v540_v5 = vpop.f32.mrb[8].mxu1 }
 0x102   : > { %v491_v6 = vpop.f32.mrb[10].mxu0  ;;  %v971_v7 = vpop.f32.mrb[9].mxu1 }
 0x103   : > { %v546_v8 = vadd.f32 %v540_v5, %v494_v3  ;;  %v966_v9 = vpop.f32.mrb[11].mxu0  ;;  %v543_v10 = vpop.f32.mrb[10].mxu1 }
 0x104   : > { %v972_v11 = vpop.f32.mrb[11].mxu1 }
 0x108   : > { %v593_v12 = vpop.f32.mrb[12].mxu0 }
 0x109   : > { %v599_v13 = vadd.f32 %v593_v12, %v546_v8  ;;  %v977_v14 = vpop.f32.mrb[13].mxu0  ;;  %v645_v15 = vpop.f32.mrb[12].mxu1 }
 0x10a   : > { %v596_v16 = vpop.f32.mrb[14].mxu0  ;;  %v983_v17 = vpop.f32.mrb[13].mxu1 }
 0x10b   : > { %v651_v18 = vadd.f32 %v645_v15, %v599_v13  ;;  %v978_v19 = vpop.f32.mrb[15].mxu0  ;;  %v648_v20 = vpop.f32.mrb[14].mxu1 }
 0x10c   : > { %v984_v21 = vpop.f32.mrb[15].mxu1 }
 0x110   : > { %v697_v22 = vpop.f32.mrb[16].mxu0 }
 0x111   : > { %v703_v24 = vadd.f32 %v697_v22, %v651_v18  ;;  %v989_v25 = vpop.f32.mrb[17].mxu0 }
 0x112   : > { %v700_v26 = vpop.f32.mrb[18].mxu0 }
 0x113   : > { %v711_v27 = vadd.f32 %v916_v23, %v703_v24  ;;  %v990_v28 = vpop.f32.mrb[19].mxu0 }
 0x115   : > { %713 = vst.msk [vmem:[%s1143_s7] sm:$0xf] %vm712_vm3, %v711_v27  ;;  %v715_v29 = vsel %vm712_vm3, %v711_v27, 0.0  ;;  %v726_v30 = vmul.f32 %v711_v27, %v711_v27 }
 0x116   : > { %v716_v31 = vrot.slane %v715_v29, 4 }
 0x117   : > { %v727_v32 = vsel %vm712_vm3, %v726_v30, 0.0 }
 0x118   : > { %v717_v33 = vadd.f32 %v716_v31, %v715_v29  ;;  %v728_v34 = vrot.slane %v727_v32, 4 }
 0x11a   : > { %v718_v35 = vrot.slane %v717_v33, 2  ;;  %v729_v36 = vadd.f32 %v728_v34, %v727_v32 }
 0x11c   : > { %v719_v37 = vadd.f32 %v718_v35, %v717_v33  ;;  %v730_v38 = vrot.slane %v729_v36, 2 }
 0x11e   : > { %v720_v39 = vrot.slane %v719_v37, 1  ;;  %v731_v40 = vadd.f32 %v730_v38, %v729_v36 }
 0x120   : > { %v721_v42 = vadd.f32 %v720_v39, %v719_v37  ;;  %v732_v43 = vrot.slane %v731_v40, 1 }
 0x122   : > { %v722_v45 = vadd.f32 %v721_v42, %v714_v41  ;;  %v733_v46 = vadd.f32 %v732_v43, %v731_v40 }
 0x124   : > { %724 = vst.msk [vmem:[%s1148_s10] sm:$0x1] %vm723_vm4, %v722_v45  ;;  %v734_v47 = vadd.f32 %v733_v46, %v725_v44 }
 0x126   : > { %735 = vst.msk [vmem:[%s1148_s10 + $0x1] sm:$0x1] %vm723_vm4, %v734_v47 }
 0x127 PF: > { %s15_s19 = sadd.s32 1, %s1073_s19   ;;  %s1282_s15 = smov %s1065_s17 }
 0x128   : > { %p12_p8 = scmp.ge.s32.totalorder %s15_s19, 10   ;;  %s1283_s16 = smov %s1069_s18 }
 0x129   : > { %s1284_s17 = smov %s1287_s20  ;;  %s1285_s18 = smov %s1291_s21 }
 0x12a   :  { %14 = sbr.rel (!%p12_p8) target bundleno = 3 (0x3), region = 95 }

// kernel: decoder2_forward.41
= control target key start
LH: loop header
LB: loop body
LE: loop exit
PB: predicated region body
PF: predicated region fallthrough
CT: control target
= control target key end

     0   :  { %s604_s9 = smov 0   ;;  %s632_s0 = inlined_call_operand.vmem [shape: f32[8,4], index: 0, kind: input, shape index: {}]   ;;  %s633_s1 = inlined_call_operand.vmem [shape: f32[16,4,64], index: 1, kind: input, shape index: {}]   ;;  %s634_s2 = inlined_call_operand.vmem [shape: f32[16,8,64], index: 2, kind: output, shape index: {}]  }
   0x1 LB: > { %s516_s10 = sadd.s32 4294967295, %s585_s9   ;;  %p520_p0 = scmp.ge.s32.totalorder %s585_s9, 1  ;;  %s585_s9 = sphi %s604_s9, %s12_s9  }
   0x2   : > { %p113_p1 = scmp.lt.s32.totalorder %s585_s9, 5 }
   0x4   : > { %p114_p2 = pnand %p520_p0, %p113_p1 }
   0x5   : > { %s521_s11 = sshll.u32 (!%p114_p2), %s516_s10, 2  ;;  %v587_v0 = vmov (!%p114_p2), 0.0   ;;  %vm588_vm0 = vmmov (!%p114_p2), 0   ;;  %vm153_vm1 = vcmask (!%p114_p2), 1043456   ;;  %v147_v1 = vld [vmem:[%s632_s0] sm:$0xff] (!%p114_p2)  ;;  %vm149_vm2 = vcmask (!%p114_p2), 31744  }
   0x6   : > { %117 = sbr.rel (%p114_p2) target bundleno = 235 (0xeb), region = 28  ;;  %549 = vmatprep.subr.mxu0 (!%p114_p2), %v587_v0  ;;  %554 = vmatprep.subr.mxu1 (!%p114_p2), %v587_v0  ;;  %p136_p3 = scmp.lt.s32.totalorder (!%p114_p2), %s521_s11, 15  ;;  %vm227_vm3 = vcmask (!%p114_p2), 523264  }
   0x7   : > { %551 = vmatprep.mubr.msk.f32.mxu0 (!%p114_p2), %vm588_vm0, %v587_v0  ;;  %556 = vmatprep.mubr.msk.f32.mxu1 (!%p114_p2), %vm588_vm0, %v587_v0 }
   0xd   : > { %s636_s11 = smov (!%p136_p3, %s521_s11), 15 }
   0xe   : > { %s522_s12 = sshll.u32 %s636_s11, 2  ;;  %s524_s18 = sshll.u32 %s636_s11, 3 }
   0xf   : > { %s139_s15 = scalar_lea.vmem %s633_s1, %s522_s12  ;;  %s145_s21 = scalar_lea.vmem %s634_s2, %s524_s18 }
  0x10   : > { %v148_v2 = vld [vmem:[%s139_s15] sm:$0xf]  ;;  %v527_v3 = vld [vmem:[%s139_s15 + $0x4] sm:$0xf]  ;;  %v531_v4 = vld [vmem:[%s139_s15 + $0x8] sm:$0xf] }
  0x11   : > { %550 = vmatpush3.msk.msra.mxu0 %vm153_vm1, %v148_v2  ;;  %555 = vmatpush3.msk.msra.mxu1 %vm153_vm1, %v527_v3  ;;  %v535_v5 = vld [vmem:[%s139_s15 + $0xc] sm:$0xf] }
  0x12   : > { %552 = vmatmul.mubr.msk.f32.vlgmr.msra.gmra.mrb[0].mxu0 %vm149_vm2, %v147_v1  ;;  %557 = vmatmul.mubr.msk.f32.vlgmr.msra.gmra.mrb[0].mxu1 %vm149_vm2, %v147_v1 }
  0x13   : > { %559 = vmatprep.subr.mxu0 %v587_v0  ;;  %564 = vmatprep.subr.mxu1 %v587_v0 }
  0x14   : > { %560 = vmatpush3.msk.msra.mxu0 %vm153_vm1, %v531_v4  ;;  %565 = vmatpush3.msk.msra.mxu1 %vm153_vm1, %v535_v5 }
  0x15   : > { %561 = vmatprep.mubr.msk.f32.mxu0 %vm588_vm0, %v587_v0  ;;  %566 = vmatprep.mubr.msk.f32.mxu1 %vm588_vm0, %v587_v0 }
  0x16   : > { %562 = vmatmul.mubr.msk.f32.vlgmr.msra.gmra.mrb[2].mxu0 %vm149_vm2, %v147_v1  ;;  %567 = vmatmul.mubr.msk.f32.vlgmr.msra.gmra.mrb[2].mxu1 %vm149_vm2, %v147_v1 }
  0xe5   : > { %v223_v6 = vpop.f32.mrb[0].mxu0  ;;  %v300_v7 = vpop.f32.mrb[0].mxu1 }
  0xe6   : > { %228 = vst.msk [vmem:[%s145_s21] sm:$0xff] %vm227_vm3, %v223_v6  ;;  %530 = vst.msk [vmem:[%s145_s21 + $0x8] sm:$0xff] %vm227_vm3, %v300_v7  ;;  %v553_v8 = vpop.f32.mrb[1].mxu0  ;;  %v558_v9 = vpop.f32.mrb[1].mxu1 }
  0xe9   : > { %v377_v10 = vpop.f32.mrb[2].mxu0  ;;  %v454_v11 = vpop.f32.mrb[2].mxu1 }
  0xea   : > { %534 = vst.msk [vmem:[%s145_s21 + $0x10] sm:$0xff] %vm227_vm3, %v377_v10  ;;  %538 = vst.msk [vmem:[%s145_s21 + $0x18] sm:$0xff] %vm227_vm3, %v454_v11  ;;  %v563_v12 = vpop.f32.mrb[3].mxu0  ;;  %v568_v13 = vpop.f32.mrb[3].mxu1 }
  0xeb PF: > { %s12_s9 = sadd.s32 1, %s585_s9  }
  0xec   : > { %p9_p4 = scmp.ge.s32.totalorder %s12_s9, 6  }
  0xee   :  { %11 = sbr.rel (!%p9_p4) target bundleno = 1 (0x1), region = 64 }

// kernel: decoder2_forward.43
= control target key start
LH: loop header
LB: loop body
LE: loop exit
PB: predicated region body
PF: predicated region fallthrough
CT: control target
= control target key end

     0   :  { %s248_s0 = inlined_call_operand.vmem [shape: f32[64,128], index: 0, kind: input, shape index: {}]   ;;  %s249_s1 = inlined_call_operand.vmem [shape: f32[1,128], index: 1, kind: input, shape index: {}]   ;;  %s250_s2 = inlined_call_operand.vmem [shape: f32[1,128], index: 2, kind: input, shape index: {}]   ;;  %s251_s3 = inlined_call_operand.vmem [shape: f32[64,128], index: 3, kind: output, shape index: {}]  }
   0x1   :  { %v14_v0 = vld [vmem:[%s248_s0] sm:$0xff]  ;;  %v15_v4 = vld [vmem:[%s248_s0 + $0x8] sm:$0xff]  ;;  %v16_v5 = vld [vmem:[%s248_s0 + $0x10] sm:$0xff] }
   0x2   :  { %v112_v1 = vld [vmem:[%s249_s1] ss:$0 sm:$0xff]  ;;  %v17_v6 = vld [vmem:[%s248_s0 + $0x18] sm:$0xff]  ;;  %v19_v11 = vld [vmem:[%s248_s0 + $0x28] sm:$0xff] }
   0x3   :  { %v113_v2 = vld [vmem:[%s250_s2] ss:$0 sm:$0xff]  ;;  %v29_v3 = vmul.f32 %v112_v1, %v14_v0  ;;  %v30_v7 = vmul.f32 %v112_v1, %v15_v4  ;;  %v31_v8 = vmul.f32 %v112_v1, %v16_v5  ;;  %v32_v9 = vmul.f32 %v112_v1, %v17_v6  ;;  %v20_v12 = vld [vmem:[%s248_s0 + $0x30] sm:$0xff]  ;;  %v21_v17 = vld [vmem:[%s248_s0 + $0x38] sm:$0xff] }
   0x4   :  { %v18_v10 = vld [vmem:[%s248_s0 + $0x20] sm:$0xff]  ;;  %v34_v15 = vmul.f32 %v112_v1, %v19_v11  ;;  %v35_v16 = vmul.f32 %v112_v1, %v20_v12  ;;  %v36_v21 = vmul.f32 %v112_v1, %v21_v17 }
   0x5   :  { %v193_v13 = vadd.f32 %v113_v2, %v29_v3  ;;  %v33_v14 = vmul.f32 %v112_v1, %v18_v10  ;;  %v45_v18 = vadd.f32 %v113_v2, %v30_v7  ;;  %v198_v19 = vadd.f32 %v113_v2, %v31_v8 }
   0x6   :  { %v200_v20 = vadd.f32 %v113_v2, %v32_v9  ;;  %v205_v24 = vadd.f32 %v113_v2, %v34_v15  ;;  %v207_v25 = vadd.f32 %v113_v2, %v35_v16  ;;  %v211_v29 = vadd.f32 %v113_v2, %v36_v21 }
   0x7   :  { %v52_v22 = vsub.f32 0.0, %v193_v13  ;;  %v203_v23 = vadd.f32 %v113_v2, %v33_v14  ;;  %v53_v26 = vsub.f32 0.0, %v45_v18  ;;  %v54_v27 = vsub.f32 0.0, %v198_v19 }
   0x8   :  { %v55_v28 = vsub.f32 0.0, %v200_v20  ;;  %v57_v32 = vsub.f32 0.0, %v205_v24  ;;  %v58_v33 = vsub.f32 0.0, %v207_v25  ;;  %v59_v39 = vsub.f32 0.0, %v211_v29 }
   0x9   :  { %v60_v30 = vmul.f32 1.442695, %v52_v22  ;;  %v56_v31 = vsub.f32 0.0, %v203_v23  ;;  %v62_v34 = vmul.f32 1.442695, %v53_v26 }
   0xa   :  { %v64_v35 = vmul.f32 1.442695, %v54_v27  ;;  %v66_v36 = vmul.f32 1.442695, %v55_v28  ;;  %v70_v38 = vmul.f32 1.442695, %v57_v32 }
   0xb   :  { %114 = vpow2.f32 %v60_v30  ;;  %v68_v37 = vmul.f32 1.442695, %v56_v31  ;;  %v72_v40 = vmul.f32 1.442695, %v58_v33  ;;  %v74_v41 = vmul.f32 1.442695, %v59_v39 }
   0xc   :  { %116 = vpow2.f32 %v62_v34 }
   0xd   :  { %118 = vpow2.f32 %v64_v35 }
   0xe   :  { %120 = vpow2.f32 %v66_v36 }
   0xf   :  { %122 = vpow2.f32 %v68_v37 }
  0x10   :  { %124 = vpow2.f32 %v70_v38 }
  0x11   :  { %126 = vpow2.f32 %v72_v40 }
  0x12   :  { %128 = vpow2.f32 %v74_v41 }
  0x15   :  { %v115_v42 = vpop.eup %114 }
  0x16   :  { %v117_v43 = vpop.eup %116  ;;  %v76_v44 = vadd.f32 1.0, %v115_v42 }
  0x17   :  { %v119_v45 = vpop.eup %118  ;;  %v77_v46 = vadd.f32 1.0, %v117_v43 }
  0x18   :  { %v121_v47 = vpop.eup %120  ;;  %130 = vrcp.f32 %v76_v44  ;;  %v78_v48 = vadd.f32 1.0, %v119_v45 }
  0x19   :  { %v123_v49 = vpop.eup %122  ;;  %132 = vrcp.f32 %v77_v46  ;;  %v79_v50 = vadd.f32 1.0, %v121_v47 }
  0x1a   :  { %v125_v51 = vpop.eup %124  ;;  %134 = vrcp.f32 %v78_v48  ;;  %v80_v52 = vadd.f32 1.0, %v123_v49 }
  0x1b   :  { %v127_v53 = vpop.eup %126  ;;  %136 = vrcp.f32 %v79_v50  ;;  %v81_v54 = vadd.f32 1.0, %v125_v51 }
  0x1c   :  { %v129_v55 = vpop.eup %128  ;;  %138 = vrcp.f32 %v80_v52  ;;  %v82_v56 = vadd.f32 1.0, %v127_v53 }
  0x1d   :  { %140 = vrcp.f32 %v81_v54  ;;  %v83_v57 = vadd.f32 1.0, %v129_v55 }
  0x1e   :  { %142 = vrcp.f32 %v82_v56 }
  0x1f   :  { %144 = vrcp.f32 %v83_v57 }
  0x22   :  { %v131_v58 = vpop.eup %130 }
  0x23   :  { %v133_v59 = vpop.eup %132  ;;  %v92_v60 = vmul.f32 %v131_v58, %v193_v13 }
  0x24   :  { %v135_v61 = vpop.eup %134  ;;  %v93_v62 = vmul.f32 %v133_v59, %v45_v18 }
  0x25   :  { %v137_v63 = vpop.eup %136  ;;  %100 = vst [vmem:[%s251_s3] sm:$0xff] %v92_v60  ;;  %v94_v0 = vmul.f32 %v135_v61, %v198_v19 }
  0x26   :  { %v139_v1 = vpop.eup %138  ;;  %101 = vst [vmem:[%s251_s3 + $0x8] sm:$0xff] %v93_v62  ;;  %v95_v2 = vmul.f32 %v137_v63, %v200_v20 }
  0x27   :  { %v141_v3 = vpop.eup %140  ;;  %102 = vst [vmem:[%s251_s3 + $0x10] sm:$0xff] %v94_v0  ;;  %v96_v4 = vmul.f32 %v139_v1, %v203_v23 }
  0x28   :  { %v143_v5 = vpop.eup %142  ;;  %103 = vst [vmem:[%s251_s3 + $0x18] sm:$0xff] %v95_v2  ;;  %v97_v6 = vmul.f32 %v141_v3, %v205_v24 }
  0x29   :  { %v145_v7 = vpop.eup %144  ;;  %104 = vst [vmem:[%s251_s3 + $0x20] sm:$0xff] %v96_v4  ;;  %v98_v8 = vmul.f32 %v143_v5, %v207_v25 }
  0x2a   :  { %105 = vst [vmem:[%s251_s3 + $0x28] sm:$0xff] %v97_v6  ;;  %v99_v9 = vmul.f32 %v145_v7, %v211_v29 }
  0x2b   :  { %106 = vst [vmem:[%s251_s3 + $0x30] sm:$0xff] %v98_v8 }
  0x2c   :  { %107 = vst [vmem:[%s251_s3 + $0x38] sm:$0xff] %v99_v9 }

// kernel: decoder2_forward.45
= control target key start
LH: loop header
LB: loop body
LE: loop exit
PB: predicated region body
PF: predicated region fallthrough
CT: control target
= control target key end

     0   :  { %s188_s0 = inlined_call_operand.vmem [shape: f32[64,128], index: 0, kind: input, shape index: {}]   ;;  %s189_s1 = inlined_call_operand.vmem [shape: f32[64,128], index: 1, kind: input, shape index: {}]   ;;  %s190_s2 = inlined_call_operand.vmem [shape: f32[1,128], index: 2, kind: input, shape index: {}]   ;;  %s191_s3 = inlined_call_operand.vmem [shape: f32[1,128], index: 3, kind: input, shape index: {}]   ;;  %s192_s4 = inlined_call_operand.vmem [shape: f32[64,128], index: 4, kind: output, shape index: {}]  }
   0x1   :  { %v17_v0 = vld [vmem:[%s188_s0] sm:$0xff]  ;;  %v18_v4 = vld [vmem:[%s188_s0 + $0x8] sm:$0xff]  ;;  %v19_v7 = vld [vmem:[%s188_s0 + $0x10] sm:$0xff] }
   0x2   :  { %v83_v1 = vld [vmem:[%s190_s2] ss:$0 sm:$0xff]  ;;  %v20_v8 = vld [vmem:[%s188_s0 + $0x18] sm:$0xff]  ;;  %v56_v10 = vld [vmem:[%s189_s1 + $0x8] sm:$0xff] }
   0x3   :  { %v84_v2 = vld [vmem:[%s191_s3] ss:$0 sm:$0xff]  ;;  %v32_v3 = vmul.f32 %v83_v1, %v17_v0  ;;  %v33_v6 = vmul.f32 %v83_v1, %v18_v4  ;;  %v34_v11 = vmul.f32 %v83_v1, %v19_v7  ;;  %v57_v12 = vld [vmem:[%s189_s1 + $0x10] sm:$0xff]  ;;  %v35_v13 = vmul.f32 %v83_v1, %v20_v8  ;;  %v58_v16 = vld [vmem:[%s189_s1 + $0x18] sm:$0xff] }
   0x4   :  { %v55_v5 = vld [vmem:[%s189_s1] sm:$0xff]  ;;  %v22_v18 = vld [vmem:[%s188_s0 + $0x28] sm:$0xff]  ;;  %v23_v19 = vld [vmem:[%s188_s0 + $0x30] sm:$0xff] }
   0x5   :  { %v47_v9 = vadd.f32 %v84_v2, %v32_v3  ;;  %v21_v14 = vld [vmem:[%s188_s0 + $0x20] sm:$0xff]  ;;  %v48_v15 = vadd.f32 %v84_v2, %v33_v6  ;;  %v49_v21 = vadd.f32 %v84_v2, %v34_v11  ;;  %v50_v22 = vadd.f32 %v84_v2, %v35_v13  ;;  %v24_v25 = vld [vmem:[%s188_s0 + $0x38] sm:$0xff]  ;;  %v60_v28 = vld [vmem:[%s189_s1 + $0x28] sm:$0xff] }
   0x6   :  { %v36_v17 = vmul.f32 %v83_v1, %v21_v14  ;;  %v59_v23 = vld [vmem:[%s189_s1 + $0x20] sm:$0xff]  ;;  %v37_v24 = vmul.f32 %v83_v1, %v22_v18  ;;  %v38_v29 = vmul.f32 %v83_v1, %v23_v19  ;;  %v39_v30 = vmul.f32 %v83_v1, %v24_v25  ;;  %v61_v34 = vld [vmem:[%s189_s1 + $0x30] sm:$0xff]  ;;  %v62_v35 = vld [vmem:[%s189_s1 + $0x38] sm:$0xff] }
   0x7   :  { %v63_v20 = vadd.f32 %v55_v5, %v47_v9  ;;  %v64_v26 = vadd.f32 %v56_v10, %v48_v15  ;;  %v65_v31 = vadd.f32 %v57_v12, %v49_v21  ;;  %v66_v32 = vadd.f32 %v58_v16, %v50_v22 }
   0x8   :  { %v51_v27 = vadd.f32 %v84_v2, %v36_v17  ;;  %v52_v33 = vadd.f32 %v84_v2, %v37_v24  ;;  %v53_v37 = vadd.f32 %v84_v2, %v38_v29  ;;  %v54_v38 = vadd.f32 %v84_v2, %v39_v30 }
   0x9   :  { %71 = vst [vmem:[%s192_s4] sm:$0xff] %v63_v20  ;;  %72 = vst [vmem:[%s192_s4 + $0x8] sm:$0xff] %v64_v26 }
   0xa   :  { %v67_v36 = vadd.f32 %v59_v23, %v51_v27  ;;  %73 = vst [vmem:[%s192_s4 + $0x10] sm:$0xff] %v65_v31  ;;  %74 = vst [vmem:[%s192_s4 + $0x18] sm:$0xff] %v66_v32  ;;  %v68_v39 = vadd.f32 %v60_v28, %v52_v33  ;;  %v69_v40 = vadd.f32 %v61_v34, %v53_v37 }
   0xb   :  { %v70_v41 = vadd.f32 %v62_v35, %v54_v38 }
   0xc   :  { %75 = vst [vmem:[%s192_s4 + $0x20] sm:$0xff] %v67_v36  ;;  %76 = vst [vmem:[%s192_s4 + $0x28] sm:$0xff] %v68_v39 }
   0xd   :  { %77 = vst [vmem:[%s192_s4 + $0x30] sm:$0xff] %v69_v40  ;;  %78 = vst [vmem:[%s192_s4 + $0x38] sm:$0xff] %v70_v41 }

// kernel: decoder2_forward.42
= control target key start
LH: loop header
LB: loop body
LE: loop exit
PB: predicated region body
PF: predicated region fallthrough
CT: control target
= control target key end

     0   :  { %s1312_s15 = smov 0   ;;  %s1314_s16 = smov 0   ;;  %s1681_s0 = inlined_call_operand.vmem [shape: f32[2,100,64], index: 0, kind: input, shape index: {}]   ;;  %s1682_s1 = inlined_call_operand.vmem [shape: f32[9,64,64], index: 1, kind: input, shape index: {}]   ;;  %s1683_s2 = inlined_call_operand.vmem [shape: f32[1,64], index: 2, kind: input, shape index: {}]   ;;  %s1684_s3 = inlined_call_operand.vmem [shape: f32[2,8,8,64], index: 3, kind: output, shape index: {0}]   ;;  %s1685_s4 = inlined_call_operand.vmem [shape: f32[2,2,64], index: 4, kind: output, shape index: {1}]  }
   0x1   :  { %s1316_s17 = smov 0   ;;  %s1318_s18 = smov 0  }
   0x2   :  { %s1320_s19 = smov 0  }
   0x3 LB: > { %s24_s20 = sadd.s32 1, %s1274_s17  ;;  %s27_s21 = sadd.s32 1, %s1278_s18  ;;  %s1282_s19 = sphi %s1320_s19, %s15_s19   ;;  %s1278_s18 = sphi %s1318_s18, %s1689_s18   ;;  %s1274_s17 = sphi %s1316_s17, %s1688_s17   ;;  %s1270_s16 = sphi %s1314_s16, %s1687_s16   ;;  %s1266_s15 = sphi %s1312_s15, %s1686_s15  }
   0x4   : > { %p25_p0 = scmp.ge.s32.totalorder %s24_s20, 8  ;;  %p957_p1 = scmp.ge.s32.totalorder %s1282_s19, 1 }
   0x5   : > { %p179_p2 = scmp.lt.s32.totalorder %s1282_s19, 17 }
   0x6   : > { %s1691_s20 = smov (%p25_p0, %s24_s20), 0  ;;  %s1693_s21 = smov (!%p25_p0, %s27_s21), %s1278_s18 }
   0x7   : > { %p180_p3 = pnand %p957_p1, %p179_p2  ;;  %p29_p4 = scmp.ge.s32.totalorder %s1693_s21, 2 }
   0x8   : > { %p212_p5 = scmp.lt.s32.totalorder (!%p180_p3), %s1270_s16, 1  ;;  %p219_p6 = scmp.lt.s32.totalorder (!%p180_p3), %s1266_s15, 7 }
   0x9   : > { %s1695_s21 = smov (%p29_p4, %s1693_s21), 0  ;;  %183 = sbr.rel (%p180_p3) target bundleno = 339 (0x153), region = 32 }
   0xa   : > { %p962_p7 = scmp.ne.s32.totalorder (!%p180_p3), %s1266_s15, 0 }
  0x10   : > { %s1697_s16 = smov (!%p212_p5, %s1270_s16), 1  ;;  %233 = sbr.rel (%p962_p7) target bundleno = 23 (0x17), region = 36 }
  0x11   : > { %s220_s22 = scalar_select %p219_p6, %s1266_s15, 7 }
  0x12   : > { %s1200_s23 = smul.u32 104, %s1697_s16  ;;  %s959_s24 = sshll.u32 %s1697_s16, 3  ;;  %vm234_vm0 = vcmask (!%p962_p7), 517120   ;;  %v1284_v0 = vmov (!%p962_p7), 0.0  }
  0x13   : > { %s222_s25 = sadd.s32 %s959_s24, %s220_s22  ;;  %s961_s26 = sshll.u32 %s1697_s16, 1 }
  0x14   : > { %s1349_s29 = scalar_lea.vmem %s1681_s0, %s1200_s23  ;;  %s960_s30 = sshll.u32 %s222_s25, 3 }
  0x15   : > { %s1354_s7 = scalar_lea.vmem %s1684_s3, %s960_s30  ;;  %s1359_s10 = scalar_lea.vmem %s1685_s4, %s961_s26 }
  0x16   : > { %235 = vst.msk [vmem:[%s1359_s10] sm:$0x3] (!%p962_p7), %vm234_vm0, %v1284_v0 }
  0x17 PF: > { %v964_v1 = vld [vmem:[%s1682_s1 + $0x40] sm:$0xff]  ;;  %v965_v2 = vld [vmem:[%s1682_s1 + $0x48] sm:$0xff]  ;;  %v1285_v4 = vmov 0.0   ;;  %v966_v7 = vld [vmem:[%s1682_s1 + $0x50] sm:$0xff]  ;;  %vm1286_vm1 = vmmov 0   ;;  %s236_s14 = smul.u32 10, %s1266_s15 }
  0x18   : > { %v240_v3 = vld [vmem:[%s1682_s1] sm:$0xff]  ;;  %1092 = vmatprep.subr.bf16.mxu0 %v1285_v4  ;;  %v265_v5 = vpack.c.bf16 %v965_v2, %v964_v1  ;;  %1104 = vmatprep.subr.bf16.mxu1 %v1285_v4  ;;  %v241_v6 = vld [vmem:[%s1682_s1 + $0x8] sm:$0xff]  ;;  %v967_v8 = vld [vmem:[%s1682_s1 + $0x58] sm:$0xff]  ;;  %vm269_vm2 = vcmask 523264   ;;  %vm803_vm3 = vcmask 516096  }
  0x19   : > { %v248_v9 = vpack.c.bf16 %v241_v6, %v240_v3  ;;  %v242_v10 = vld [vmem:[%s1682_s1 + $0x10] sm:$0xff]  ;;  %v243_v11 = vld [vmem:[%s1682_s1 + $0x18] sm:$0xff]  ;;  %1100 = vmatprep.mubr.msk.bf16.mxu0 %vm1286_vm1, %v1285_v4  ;;  %1112 = vmatprep.mubr.msk.bf16.mxu1 %vm1286_vm1, %v1285_v4  ;;  %v266_v12 = vpack.c.bf16 %v967_v8, %v966_v7  ;;  %v968_v14 = vld [vmem:[%s1682_s1 + $0x60] sm:$0xff]  ;;  %s1416_s28 = scalar_lea.vmem %s1349_s29, %s236_s14 }
  0x1a   : > { %1093 = vmatpush3.bf16.msra.mxu0 %v265_v5  ;;  %v249_v13 = vpack.c.bf16 %v243_v11, %v242_v10  ;;  %v969_v15 = vld [vmem:[%s1682_s1 + $0x68] sm:$0xff]  ;;  %v244_v16 = vld [vmem:[%s1682_s1 + $0x20] sm:$0xff]  ;;  %v970_v20 = vld [vmem:[%s1682_s1 + $0x70] sm:$0xff] }
  0x1b   : > { %1105 = vmatpush3.bf16.msra.mxu1 %v248_v9  ;;  %1094 = vmatprep.subr.bf16.mxu0 %v1285_v4  ;;  %v245_v17 = vld [vmem:[%s1682_s1 + $0x28] sm:$0xff]  ;;  %v267_v18 = vpack.c.bf16 %v969_v15, %v968_v14  ;;  %v971_v21 = vld [vmem:[%s1682_s1 + $0x78] sm:$0xff]  ;;  %v246_v22 = vld [vmem:[%s1682_s1 + $0x30] sm:$0xff] }
  0x1c   : > { %1106 = vmatprep.subr.bf16.mxu1 %v1285_v4  ;;  %v250_v19 = vpack.c.bf16 %v245_v17, %v244_v16  ;;  %v247_v23 = vld [vmem:[%s1682_s1 + $0x38] sm:$0xff]  ;;  %v268_v24 = vpack.c.bf16 %v971_v21, %v970_v20  ;;  %v963_v25 = vld [vmem:[%s1416_s28 + $0x1] sm:$0xff]  ;;  %v977_v36 = vld [vmem:[%s1682_s1 + $0x90] sm:$0xff] }
  0x1d   : > { %v251_v26 = vpack.c.bf16 %v247_v23, %v246_v22  ;;  %v238_v27 = vld [vmem:[%s1416_s28] sm:$0xff]  ;;  %v976_v29 = vld [vmem:[%s1682_s1 + $0x88] sm:$0xff]  ;;  %v255_v32 = vpack.c.bf16 %v963_v25, %v963_v25  ;;  %v978_v37 = vld [vmem:[%s1682_s1 + $0x98] sm:$0xff] }
  0x1e   : > { %1095 = vmatpush3.bf16.msra.mxu0 %v266_v12  ;;  %v975_v28 = vld [vmem:[%s1682_s1 + $0x80] sm:$0xff]  ;;  %v986_v31 = vld [vmem:[%s1682_s1 + $0xc8] sm:$0xff]  ;;  %v239_v33 = vpack.c.bf16 %v238_v27, %v238_v27  ;;  %v987_v38 = vld [vmem:[%s1682_s1 + $0xd0] sm:$0xff]  ;;  %v370_v40 = vpack.c.bf16 %v978_v37, %v977_v36 }
  0x1f   : > { %1107 = vmatpush3.bf16.msra.mxu1 %v249_v13  ;;  %1096 = vmatprep.subr.bf16.mxu0 %v1285_v4  ;;  %v985_v30 = vld [vmem:[%s1682_s1 + $0xc0] sm:$0xff]  ;;  %v369_v34 = vpack.c.bf16 %v976_v29, %v975_v28  ;;  %v988_v39 = vld [vmem:[%s1682_s1 + $0xd8] sm:$0xff]  ;;  %v980_v43 = vld [vmem:[%s1682_s1 + $0xa8] sm:$0xff] }
  0x20   : > { %1108 = vmatprep.subr.bf16.mxu1 %v1285_v4  ;;  %v431_v35 = vpack.c.bf16 %v986_v31, %v985_v30  ;;  %v432_v41 = vpack.c.bf16 %v988_v39, %v987_v38  ;;  %v979_v42 = vld [vmem:[%s1682_s1 + $0xa0] sm:$0xff]  ;;  %v990_v45 = vld [vmem:[%s1682_s1 + $0xe8] sm:$0xff]  ;;  %v981_v48 = vld [vmem:[%s1682_s1 + $0xb0] sm:$0xff] }
  0x21   : > { %v989_v44 = vld [vmem:[%s1682_s1 + $0xe0] sm:$0xff]  ;;  %v371_v46 = vpack.c.bf16 %v980_v43, %v979_v42  ;;  %v982_v49 = vld [vmem:[%s1682_s1 + $0xb8] sm:$0xff]  ;;  %v991_v50 = vld [vmem:[%s1682_s1 + $0xf0] sm:$0xff] }
  0x22   : > { %1097 = vmatpush3.bf16.msra.mxu0 %v267_v18  ;;  %v433_v47 = vpack.c.bf16 %v990_v45, %v989_v44  ;;  %v992_v51 = vld [vmem:[%s1682_s1 + $0xf8] sm:$0xff]  ;;  %v372_v52 = vpack.c.bf16 %v982_v49, %v981_v48  ;;  %v974_v53 = vld [vmem:[%s1416_s28 + $0x2] sm:$0xff]  ;;  %v984_v57 = vld [vmem:[%s1416_s28 + $0xa] sm:$0xff] }
  0x23   : > { %1109 = vmatpush3.bf16.msra.mxu1 %v250_v19  ;;  %1098 = vmatprep.subr.bf16.mxu0 %v1285_v4  ;;  %v434_v54 = vpack.c.bf16 %v992_v51, %v991_v50  ;;  %v995_v55 = vld [vmem:[%s1682_s1 + $0x100] sm:$0xff]  ;;  %v996_v56 = vld [vmem:[%s1682_s1 + $0x108] sm:$0xff]  ;;  %v359_v60 = vpack.c.bf16 %v974_v53, %v974_v53  ;;  %v421_v62 = vpack.c.bf16 %v984_v57, %v984_v57  ;;  %v997_v0 = vld [vmem:[%s1682_s1 + $0x110] sm:$0xff] }
  0x24   : > { %1110 = vmatprep.subr.bf16.mxu1 %v1285_v4  ;;  %v1005_v58 = vld [vmem:[%s1682_s1 + $0x140] sm:$0xff]  ;;  %v1006_v59 = vld [vmem:[%s1682_s1 + $0x148] sm:$0xff]  ;;  %v492_v61 = vpack.c.bf16 %v996_v56, %v995_v55  ;;  %v998_v1 = vld [vmem:[%s1682_s1 + $0x118] sm:$0xff] }
  0x25   : > { %v553_v63 = vpack.c.bf16 %v1006_v59, %v1005_v58  ;;  %v1007_v2 = vld [vmem:[%s1682_s1 + $0x150] sm:$0xff]  ;;  %v1008_v3 = vld [vmem:[%s1682_s1 + $0x158] sm:$0xff]  ;;  %v493_v5 = vpack.c.bf16 %v998_v1, %v997_v0  ;;  %v999_v7 = vld [vmem:[%s1682_s1 + $0x120] sm:$0xff] }
  0x26   : > { %1099 = vmatpush3.bf16.msra.mxu0 %v268_v24  ;;  %v554_v6 = vpack.c.bf16 %v1008_v3, %v1007_v2  ;;  %v1000_v8 = vld [vmem:[%s1682_s1 + $0x128] sm:$0xff]  ;;  %v1009_v9 = vld [vmem:[%s1682_s1 + $0x160] sm:$0xff]  ;;  %v1001_v13 = vld [vmem:[%s1682_s1 + $0x130] sm:$0xff] }
  0x27   : > { %1111 = vmatpush3.bf16.msra.mxu1 %v251_v26  ;;  %1116 = vmatprep.subr.bf16.mxu0 %v1285_v4  ;;  %v1010_v10 = vld [vmem:[%s1682_s1 + $0x168] sm:$0xff]  ;;  %v494_v11 = vpack.c.bf16 %v1000_v8, %v999_v7  ;;  %v1002_v14 = vld [vmem:[%s1682_s1 + $0x138] sm:$0xff]  ;;  %v1011_v15 = vld [vmem:[%s1682_s1 + $0x170] sm:$0xff] }
  0x28   : > { %1128 = vmatprep.subr.bf16.mxu1 %v1285_v4  ;;  %v555_v12 = vpack.c.bf16 %v1010_v10, %v1009_v9  ;;  %v1012_v16 = vld [vmem:[%s1682_s1 + $0x178] sm:$0xff]  ;;  %v495_v17 = vpack.c.bf16 %v1002_v14, %v1001_v13  ;;  %v994_v18 = vld [vmem:[%s1416_s28 + $0xb] sm:$0xff]  ;;  %v1015_v20 = vld [vmem:[%s1682_s1 + $0x180] sm:$0xff] }
  0x29   : > { %1101 = vmatmul.mubr.msk.bf16.vlgmr.msra.gmra.mrb[0].mxu0 %vm269_vm2, %v255_v32  ;;  %v556_v19 = vpack.c.bf16 %v1012_v16, %v1011_v15  ;;  %v1016_v21 = vld [vmem:[%s1682_s1 + $0x188] sm:$0xff]  ;;  %v1025_v23 = vld [vmem:[%s1682_s1 + $0x1c0] sm:$0xff]  ;;  %v482_v25 = vpack.c.bf16 %v994_v18, %v994_v18  ;;  %v1017_v29 = vld [vmem:[%s1682_s1 + $0x190] sm:$0xff] }
  0x2a   : > { %1113 = vmatmul.mubr.msk.bf16.vlgmr.msra.gmra.mrb[0].mxu1 %vm269_vm2, %v239_v33  ;;  %1117 = vmatpush3.bf16.msra.mxu0 %v369_v34  ;;  %v1004_v22 = vld [vmem:[%s1416_s28 + $0xc] sm:$0xff]  ;;  %v615_v26 = vpack.c.bf16 %v1016_v21, %v1015_v20  ;;  %v1018_v30 = vld [vmem:[%s1682_s1 + $0x198] sm:$0xff]  ;;  %v1029_v37 = vld [vmem:[%s1682_s1 + $0x1e0] sm:$0xff] }
  0x2b   : > { %1129 = vmatpush3.bf16.msra.mxu1 %v431_v35  ;;  %1118 = vmatprep.subr.bf16.mxu0 %v1285_v4  ;;  %v1026_v24 = vld [vmem:[%s1682_s1 + $0x1c8] sm:$0xff]  ;;  %v543_v27 = vpack.c.bf16 %v1004_v22, %v1004_v22  ;;  %v1027_v31 = vld [vmem:[%s1682_s1 + $0x1d0] sm:$0xff]  ;;  %v1028_v32 = vld [vmem:[%s1682_s1 + $0x1d8] sm:$0xff]  ;;  %v616_v33 = vpack.c.bf16 %v1018_v30, %v1017_v29 }
  0x2c   : > { %1130 = vmatprep.subr.bf16.mxu1 %v1285_v4  ;;  %1124 = vmatprep.mubr.msk.bf16.mxu0 %vm1286_vm1, %v1285_v4  ;;  %v676_v28 = vpack.c.bf16 %v1026_v24, %v1025_v23  ;;  %v677_v34 = vpack.c.bf16 %v1028_v32, %v1027_v31  ;;  %v1019_v35 = vld [vmem:[%s1682_s1 + $0x1a0] sm:$0xff]  ;;  %v1020_v36 = vld [vmem:[%s1682_s1 + $0x1a8] sm:$0xff]  ;;  %v1022_v42 = vld [vmem:[%s1682_s1 + $0x1b8] sm:$0xff] }
  0x2d   : > { %1136 = vmatprep.mubr.msk.bf16.mxu1 %vm1286_vm1, %v1285_v4  ;;  %v1030_v38 = vld [vmem:[%s1682_s1 + $0x1e8] sm:$0xff]  ;;  %v617_v39 = vpack.c.bf16 %v1020_v36, %v1019_v35  ;;  %v1031_v43 = vld [vmem:[%s1682_s1 + $0x1f0] sm:$0xff]  ;;  %v1032_v44 = vld [vmem:[%s1682_s1 + $0x1f8] sm:$0xff] }
  0x2e   : > { %1119 = vmatpush3.bf16.msra.mxu0 %v370_v40  ;;  %v678_v40 = vpack.c.bf16 %v1030_v38, %v1029_v37  ;;  %v1035_v48 = vld [vmem:[%s1682_s1 + $0x200] sm:$0xff]  ;;  %v1036_v49 = vld [vmem:[%s1682_s1 + $0x208] sm:$0xff]  ;;  %v1024_v50 = vld [vmem:[%s1416_s28 + $0x15] sm:$0xff] }
  0x2f   : > { %1131 = vmatpush3.bf16.msra.mxu1 %v432_v41  ;;  %1120 = vmatprep.subr.bf16.mxu0 %v1285_v4  ;;  %v1021_v41 = vld [vmem:[%s1682_s1 + $0x1b0] sm:$0xff]  ;;  %v666_v53 = vpack.c.bf16 %v1024_v50, %v1024_v50  ;;  %v1038_v55 = vld [vmem:[%s1682_s1 + $0x218] sm:$0xff]  ;;  %v1039_v57 = vld [vmem:[%s1682_s1 + $0x220] sm:$0xff] }
  0x30   : > { %1132 = vmatprep.subr.bf16.mxu1 %v1285_v4  ;;  %v618_v45 = vpack.c.bf16 %v1022_v42, %v1021_v41  ;;  %v1040_v58 = vld [vmem:[%s1682_s1 + $0x228] sm:$0xff]  ;;  %v1044_v41 = vld [vmem:[%s1683_s2] ss:$0 sm:$0xff] }
  0x31   : > { %v739_v59 = vpack.c.bf16 %v1040_v58, %v1039_v57 }
  0x32   : > { %1121 = vmatpush3.bf16.msra.mxu0 %v371_v46  ;;  %v1014_v46 = vld [vmem:[%s1416_s28 + $0x14] sm:$0xff] }
  0x33   : > { %1133 = vmatpush3.bf16.msra.mxu1 %v433_v47  ;;  %1122 = vmatprep.subr.bf16.mxu0 %v1285_v4  ;;  %v679_v47 = vpack.c.bf16 %v1032_v44, %v1031_v43  ;;  %v605_v51 = vpack.c.bf16 %v1014_v46, %v1014_v46 }
  0x34   : > { %1134 = vmatprep.subr.bf16.mxu1 %v1285_v4 }
  0x36   : > { %1123 = vmatpush3.bf16.msra.mxu0 %v372_v52  ;;  %v737_v52 = vpack.c.bf16 %v1036_v49, %v1035_v48 }
  0x37   : > { %1135 = vmatpush3.bf16.msra.mxu1 %v434_v54  ;;  %1140 = vmatprep.subr.bf16.mxu0 %v1285_v4  ;;  %v1037_v54 = vld [vmem:[%s1682_s1 + $0x210] sm:$0xff] }
  0x38   : > { %1152 = vmatprep.subr.bf16.mxu1 %v1285_v4  ;;  %v738_v56 = vpack.c.bf16 %v1038_v55, %v1037_v54 }
  0x39   : > { %1125 = vmatmul.mubr.msk.bf16.vlgmr.msra.gmra.mrb[4].mxu0 %vm269_vm2, %v359_v60  ;;  %v1041_v60 = vld [vmem:[%s1682_s1 + $0x230] sm:$0xff] }
  0x3a   : > { %1141 = vmatpush3.bf16.msra.mxu0 %v492_v61  ;;  %1137 = vmatmul.mubr.msk.bf16.vlgmr.msra.gmra.mrb[4].mxu1 %vm269_vm2, %v421_v62  ;;  %v1042_v61 = vld [vmem:[%s1682_s1 + $0x238] sm:$0xff] }
  0x3b   : > { %1153 = vmatpush3.bf16.msra.mxu1 %v553_v63  ;;  %1142 = vmatprep.subr.bf16.mxu0 %v1285_v4  ;;  %v740_v62 = vpack.c.bf16 %v1042_v61, %v1041_v60  ;;  %v1034_v63 = vld [vmem:[%s1416_s28 + $0x16] sm:$0xff] }
  0x3c   : > { %1154 = vmatprep.subr.bf16.mxu1 %v1285_v4  ;;  %1148 = vmatprep.mubr.msk.bf16.mxu0 %vm1286_vm1, %v1285_v4  ;;  %v727_v0 = vpack.c.bf16 %v1034_v63, %v1034_v63 }
  0x3d   : > { %1160 = vmatprep.mubr.msk.bf16.mxu1 %vm1286_vm1, %v1285_v4 }
  0x3e   : > { %1143 = vmatpush3.bf16.msra.mxu0 %v493_v5 }
  0x3f   : > { %1155 = vmatpush3.bf16.msra.mxu1 %v554_v6  ;;  %1144 = vmatprep.subr.bf16.mxu0 %v1285_v4 }
  0x40   : > { %1156 = vmatprep.subr.bf16.mxu1 %v1285_v4 }
  0x42   : > { %1145 = vmatpush3.bf16.msra.mxu0 %v494_v11 }
  0x43   : > { %1157 = vmatpush3.bf16.msra.mxu1 %v555_v12  ;;  %1146 = vmatprep.subr.bf16.mxu0 %v1285_v4 }
  0x44   : > { %1158 = vmatprep.subr.bf16.mxu1 %v1285_v4 }
  0x46   : > { %1147 = vmatpush3.bf16.msra.mxu0 %v495_v17 }
  0x47   : > { %1159 = vmatpush3.bf16.msra.mxu1 %v556_v19  ;;  %1164 = vmatprep.subr.bf16.mxu0 %v1285_v4 }
  0x48   : > { %1176 = vmatprep.subr.bf16.mxu1 %v1285_v4 }
  0x49   : > { %1149 = vmatmul.mubr.msk.bf16.vlgmr.msra.gmra.mrb[8].mxu0 %vm269_vm2, %v482_v25 }
  0x4a   : > { %1165 = vmatpush3.bf16.msra.mxu0 %v615_v26  ;;  %1161 = vmatmul.mubr.msk.bf16.vlgmr.msra.gmra.mrb[8].mxu1 %vm269_vm2, %v543_v27 }
  0x4b   : > { %1177 = vmatpush3.bf16.msra.mxu1 %v676_v28  ;;  %1166 = vmatprep.subr.bf16.mxu0 %v1285_v4 }
  0x4c   : > { %1178 = vmatprep.subr.bf16.mxu1 %v1285_v4  ;;  %1172 = vmatprep.mubr.msk.bf16.mxu0 %vm1286_vm1, %v1285_v4 }
  0x4d   : > { %1184 = vmatprep.mubr.msk.bf16.mxu1 %vm1286_vm1, %v1285_v4 }
  0x4e   : > { %1167 = vmatpush3.bf16.msra.mxu0 %v616_v33 }
  0x4f   : > { %1179 = vmatpush3.bf16.msra.mxu1 %v677_v34  ;;  %1168 = vmatprep.subr.bf16.mxu0 %v1285_v4 }
  0x50   : > { %1180 = vmatprep.subr.bf16.mxu1 %v1285_v4 }
  0x52   : > { %1169 = vmatpush3.bf16.msra.mxu0 %v617_v39 }
  0x53   : > { %1181 = vmatpush3.bf16.msra.mxu1 %v678_v40  ;;  %1170 = vmatprep.subr.bf16.mxu0 %v1285_v4 }
  0x54   : > { %1182 = vmatprep.subr.bf16.mxu1 %v1285_v4 }
  0x56   : > { %1171 = vmatpush3.bf16.msra.mxu0 %v618_v45 }
  0x57   : > { %1183 = vmatpush3.bf16.msra.mxu1 %v679_v47  ;;  %1188 = vmatprep.subr.bf16.mxu0 %v1285_v4 }
  0x59   : > { %1173 = vmatmul.mubr.msk.bf16.vlgmr.msra.gmra.mrb[12].mxu0 %vm269_vm2, %v605_v51 }
  0x5a   : > { %1189 = vmatpush3.bf16.msra.mxu0 %v737_v52  ;;  %1185 = vmatmul.mubr.msk.bf16.vlgmr.msra.gmra.mrb[12].mxu1 %vm269_vm2, %v666_v53 }
  0x5b   : > { %1190 = vmatprep.subr.bf16.mxu0 %v1285_v4  ;;  %1196 = vmatprep.mubr.msk.bf16.mxu0 %vm1286_vm1, %v1285_v4 }
  0x5e   : > { %1191 = vmatpush3.bf16.msra.mxu0 %v738_v56 }
  0x5f   : > { %1192 = vmatprep.subr.bf16.mxu0 %v1285_v4 }
  0x62   : > { %1193 = vmatpush3.bf16.msra.mxu0 %v739_v59  ;;  %v794_v59 = vld [vmem:[%s1359_s10] sm:$0x1] }
  0x63   : > { %1194 = vmatprep.subr.bf16.mxu0 %v1285_v4 }
  0x66   : > { %1195 = vmatpush3.bf16.msra.mxu0 %v740_v62  ;;  %v805_v62 = vld [vmem:[%s1359_s10 + $0x1] sm:$0x1] }
  0x69   : > { %1197 = vmatmul.mubr.msk.bf16.vlgmr.msra.gmra.mrb[16].mxu0 %vm269_vm2, %v727_v0 }
  0xfc   : > { %v307_v1 = vpop.f32.mrb[0].mxu0 }
  0xfd   : > { %v1102_v2 = vpop.f32.mrb[1].mxu0  ;;  %v350_v3 = vpop.f32.mrb[0].mxu1 }
  0xfe   : > { %v351_v5 = vadd.f32 %v350_v3, %v307_v1  ;;  %v310_v6 = vpop.f32.mrb[2].mxu0  ;;  %v1114_v7 = vpop.f32.mrb[1].mxu1 }
  0xff   : > { %v1103_v8 = vpop.f32.mrb[3].mxu0  ;;  %v353_v9 = vpop.f32.mrb[2].mxu1 }
 0x100   : > { %v1115_v10 = vpop.f32.mrb[3].mxu1 }
 0x10c   : > { %v410_v11 = vpop.f32.mrb[4].mxu0 }
 0x10d   : > { %v416_v12 = vadd.f32 %v410_v11, %v351_v5  ;;  %v1126_v13 = vpop.f32.mrb[5].mxu0  ;;  %v472_v14 = vpop.f32.mrb[4].mxu1 }
 0x10e   : > { %v413_v15 = vpop.f32.mrb[6].mxu0  ;;  %v1138_v16 = vpop.f32.mrb[5].mxu1 }
 0x10f   : > { %v478_v4 = vadd.f32 %v472_v14, %v416_v12  ;;  %v1127_v17 = vpop.f32.mrb[7].mxu0  ;;  %v475_v18 = vpop.f32.mrb[6].mxu1 }
 0x110   : > { %v1139_v19 = vpop.f32.mrb[7].mxu1 }
 0x11c   : > { %v533_v20 = vpop.f32.mrb[8].mxu0 }
 0x11d   : > { %v539_v21 = vadd.f32 %v533_v20, %v478_v4  ;;  %v1150_v22 = vpop.f32.mrb[9].mxu0  ;;  %v594_v23 = vpop.f32.mrb[8].mxu1 }
 0x11e   : > { %v536_v24 = vpop.f32.mrb[10].mxu0  ;;  %v1162_v25 = vpop.f32.mrb[9].mxu1 }
 0x11f   : > { %v600_v26 = vadd.f32 %v594_v23, %v539_v21  ;;  %v1151_v27 = vpop.f32.mrb[11].mxu0  ;;  %v597_v28 = vpop.f32.mrb[10].mxu1 }
 0x120   : > { %v1163_v29 = vpop.f32.mrb[11].mxu1 }
 0x12c   : > { %v656_v30 = vpop.f32.mrb[12].mxu0 }
 0x12d   : > { %v662_v31 = vadd.f32 %v656_v30, %v600_v26  ;;  %v1174_v32 = vpop.f32.mrb[13].mxu0  ;;  %v717_v33 = vpop.f32.mrb[12].mxu1 }
 0x12e   : > { %v659_v34 = vpop.f32.mrb[14].mxu0  ;;  %v1186_v35 = vpop.f32.mrb[13].mxu1 }
 0x12f   : > { %v723_v36 = vadd.f32 %v717_v33, %v662_v31  ;;  %v1175_v37 = vpop.f32.mrb[15].mxu0  ;;  %v720_v38 = vpop.f32.mrb[14].mxu1 }
 0x130   : > { %v1187_v39 = vpop.f32.mrb[15].mxu1 }
 0x13c   : > { %v778_v40 = vpop.f32.mrb[16].mxu0 }
 0x13d   : > { %v784_v42 = vadd.f32 %v778_v40, %v723_v36  ;;  %v1198_v43 = vpop.f32.mrb[17].mxu0 }
 0x13e   : > { %v781_v44 = vpop.f32.mrb[18].mxu0 }
 0x13f   : > { %v792_v45 = vadd.f32 %v1044_v41, %v784_v42  ;;  %v1199_v46 = vpop.f32.mrb[19].mxu0 }
 0x141   : > { %793 = vst.msk [vmem:[%s1354_s7] sm:$0xff] %vm269_vm2, %v792_v45  ;;  %v795_v47 = vsel %vm269_vm2, %v792_v45, 0.0  ;;  %v806_v48 = vmul.f32 %v792_v45, %v792_v45 }
 0x142   : > { %v796_v49 = vrot.slane %v795_v47, 4 }
 0x143   : > { %v807_v50 = vsel %vm269_vm2, %v806_v48, 0.0 }
 0x144   : > { %v797_v51 = vadd.f32 %v796_v49, %v795_v47  ;;  %v808_v52 = vrot.slane %v807_v50, 4 }
 0x146   : > { %v798_v53 = vrot.slane %v797_v51, 2  ;;  %v809_v54 = vadd.f32 %v808_v52, %v807_v50 }
 0x148   : > { %v799_v55 = vadd.f32 %v798_v53, %v797_v51  ;;  %v810_v56 = vrot.slane %v809_v54, 2 }
 0x14a   : > { %v800_v57 = vrot.slane %v799_v55, 1  ;;  %v811_v58 = vadd.f32 %v810_v56, %v809_v54 }
 0x14c   : > { %v801_v60 = vadd.f32 %v800_v57, %v799_v55  ;;  %v812_v61 = vrot.slane %v811_v58, 1 }
 0x14e   : > { %v802_v63 = vadd.f32 %v801_v60, %v794_v59  ;;  %v813_v0 = vadd.f32 %v812_v61, %v811_v58 }
 0x150   : > { %804 = vst.msk [vmem:[%s1359_s10] sm:$0x1] %vm803_vm3, %v802_v63  ;;  %v814_v1 = vadd.f32 %v813_v0, %v805_v62 }
 0x152   : > { %815 = vst.msk [vmem:[%s1359_s10 + $0x1] sm:$0x1] %vm803_vm3, %v814_v1 }
 0x153 PF: > { %s15_s19 = sadd.s32 1, %s1282_s19   ;;  %s1686_s15 = smov %s1274_s17 }
 0x154   : > { %p12_p8 = scmp.ge.s32.totalorder %s15_s19, 18   ;;  %s1687_s16 = smov %s1278_s18 }
 0x155   : > { %s1688_s17 = smov %s1691_s20  ;;  %s1689_s18 = smov %s1695_s21 }
 0x156   :  { %14 = sbr.rel (!%p12_p8) target bundleno = 3 (0x3), region = 95 }

// kernel: decoder2_forward.50
= control target key start
LH: loop header
LB: loop body
LE: loop exit
PB: predicated region body
PF: predicated region fallthrough
CT: control target
= control target key end

     0   :  { %s1313_s15 = smov 0   ;;  %s1315_s16 = smov 0   ;;  %s1679_s0 = inlined_call_operand.vmem [shape: f32[2,81,64], index: 0, kind: input, shape index: {}]   ;;  %s1680_s1 = inlined_call_operand.vmem [shape: f32[9,64,32], index: 1, kind: input, shape index: {}]   ;;  %s1681_s2 = inlined_call_operand.vmem [shape: f32[1,32], index: 2, kind: input, shape index: {}]   ;;  %s1682_s3 = inlined_call_operand.vmem [shape: f32[2,7,7,32], index: 3, kind: output, shape index: {0}]   ;;  %s1683_s4 = inlined_call_operand.vmem [shape: f32[2,2,32], index: 4, kind: output, shape index: {1}]  }
   0x1   :  { %s1317_s17 = smov 0   ;;  %s1319_s18 = smov 0  }
   0x2   :  { %s1321_s19 = smov 0  }
   0x3 LB: > { %s24_s20 = sadd.s32 1, %s1275_s17  ;;  %s27_s21 = sadd.s32 1, %s1279_s18  ;;  %s1283_s19 = sphi %s1321_s19, %s15_s19   ;;  %s1279_s18 = sphi %s1319_s18, %s1687_s18   ;;  %s1275_s17 = sphi %s1317_s17, %s1686_s17   ;;  %s1271_s16 = sphi %s1315_s16, %s1685_s16   ;;  %s1267_s15 = sphi %s1313_s15, %s1684_s15  }
   0x4   : > { %p25_p0 = scmp.ge.s32.totalorder %s24_s20, 7  ;;  %p958_p1 = scmp.ge.s32.totalorder %s1283_s19, 1 }
   0x5   : > { %p179_p2 = scmp.lt.s32.totalorder %s1283_s19, 15 }
   0x6   : > { %s1689_s20 = smov (%p25_p0, %s24_s20), 0  ;;  %s1691_s21 = smov (!%p25_p0, %s27_s21), %s1279_s18 }
   0x7   : > { %p180_p3 = pnand %p958_p1, %p179_p2  ;;  %p29_p4 = scmp.ge.s32.totalorder %s1691_s21, 2 }
   0x8   : > { %p212_p5 = scmp.lt.s32.totalorder (!%p180_p3), %s1271_s16, 1  ;;  %p219_p6 = scmp.lt.s32.totalorder (!%p180_p3), %s1267_s15, 6 }
   0x9   : > { %s1693_s21 = smov (%p29_p4, %s1691_s21), 0  ;;  %183 = sbr.rel (%p180_p3) target bundleno = 343 (0x157), region = 32 }
   0xa   : > { %p962_p7 = scmp.ne.s32.totalorder (!%p180_p3), %s1267_s15, 0 }
  0x10   : > { %s1695_s16 = smov (!%p212_p5, %s1271_s16), 1  ;;  %vm234_vm0 = vcmask (!%p962_p7), 254976   ;;  %v1285_v0 = vmov (!%p962_p7), 0.0  }
  0x11   : > { %s220_s22 = scalar_select %p219_p6, %s1267_s15, 6 }
  0x12   : > { %s1200_s23 = smul.u32 88, %s1695_s16  ;;  %s961_s24 = sshll.u32 %s1695_s16, 1 }
  0x13   : > { %s1201_s25 = smul.u32 7, %s1695_s16  ;;  %s1350_s28 = scalar_lea.vmem %s1683_s4, %s961_s24 }
  0x14   : > { %s1355_s5 = scalar_lea.vmem %s1679_s0, %s1200_s23  ;;  %233 = sbr.rel (%p962_p7) target bundleno = 27 (0x1b), region = 36  ;;  %235 = vst.msk [vmem:[%s1350_s28] sm:$0x3] (!%p962_p7), %vm234_vm0, %v1285_v0 }
  0x15   : > { %s222_s6 = sadd.s32 %s1201_s25, %s220_s22 }
  0x16   : > { %s960_s7 = sshll.u32 %s222_s6, 3 }
  0x17   : > { %s1360_s10 = scalar_lea.vmem %s1682_s3, %s960_s7 }
  0x1b PF: > { %v964_v1 = vld [vmem:[%s1680_s1 + $0x40] sm:$0xff]  ;;  %v965_v2 = vld [vmem:[%s1680_s1 + $0x48] sm:$0xff]  ;;  %v1286_v4 = vmov 0.0   ;;  %v966_v7 = vld [vmem:[%s1680_s1 + $0x50] sm:$0xff]  ;;  %vm1287_vm1 = vmmov 0   ;;  %s236_s14 = smul.u32 9, %s1267_s15 }
  0x1c   : > { %v240_v3 = vld [vmem:[%s1680_s1] sm:$0xff]  ;;  %1092 = vmatprep.subr.bf16.mxu0 %v1286_v4  ;;  %v265_v5 = vpack.c.bf16 %v965_v2, %v964_v1  ;;  %1104 = vmatprep.subr.bf16.mxu1 %v1286_v4  ;;  %v241_v6 = vld [vmem:[%s1680_s1 + $0x8] sm:$0xff]  ;;  %v967_v8 = vld [vmem:[%s1680_s1 + $0x58] sm:$0xff]  ;;  %vm269_vm2 = vcmask 523264   ;;  %vm793_vm3 = vcmask 260096   ;;  %vm804_vm4 = vcmask 253952  }
  0x1d   : > { %v248_v9 = vpack.c.bf16 %v241_v6, %v240_v3  ;;  %v242_v10 = vld [vmem:[%s1680_s1 + $0x10] sm:$0xff]  ;;  %v243_v11 = vld [vmem:[%s1680_s1 + $0x18] sm:$0xff]  ;;  %1100 = vmatprep.mubr.msk.bf16.mxu0 %vm1287_vm1, %v1286_v4  ;;  %1112 = vmatprep.mubr.msk.bf16.mxu1 %vm1287_vm1, %v1286_v4  ;;  %v266_v12 = vpack.c.bf16 %v967_v8, %v966_v7  ;;  %v968_v14 = vld [vmem:[%s1680_s1 + $0x60] sm:$0xff]  ;;  %s1417_s29 = scalar_lea.vmem %s1355_s5, %s236_s14 }
  0x1e   : > { %1093 = vmatpush3.bf16.msra.mxu0 %v265_v5  ;;  %v249_v13 = vpack.c.bf16 %v243_v11, %v242_v10  ;;  %v969_v15 = vld [vmem:[%s1680_s1 + $0x68] sm:$0xff]  ;;  %v244_v16 = vld [vmem:[%s1680_s1 + $0x20] sm:$0xff]  ;;  %v970_v20 = vld [vmem:[%s1680_s1 + $0x70] sm:$0xff] }
  0x1f   : > { %1105 = vmatpush3.bf16.msra.mxu1 %v248_v9  ;;  %1094 = vmatprep.subr.bf16.mxu0 %v1286_v4  ;;  %v245_v17 = vld [vmem:[%s1680_s1 + $0x28] sm:$0xff]  ;;  %v267_v18 = vpack.c.bf16 %v969_v15, %v968_v14  ;;  %v971_v21 = vld [vmem:[%s1680_s1 + $0x78] sm:$0xff]  ;;  %v246_v22 = vld [vmem:[%s1680_s1 + $0x30] sm:$0xff] }
  0x20   : > { %1106 = vmatprep.subr.bf16.mxu1 %v1286_v4  ;;  %v250_v19 = vpack.c.bf16 %v245_v17, %v244_v16  ;;  %v247_v23 = vld [vmem:[%s1680_s1 + $0x38] sm:$0xff]  ;;  %v268_v24 = vpack.c.bf16 %v971_v21, %v970_v20  ;;  %v963_v25 = vld [vmem:[%s1417_s29 + $0x1] sm:$0x7f]  ;;  %v976_v29 = vld [vmem:[%s1680_s1 + $0x88] sm:$0xff] }
  0x21   : > { %v251_v26 = vpack.c.bf16 %v247_v23, %v246_v22  ;;  %v238_v27 = vld [vmem:[%s1417_s29] sm:$0x7f]  ;;  %v986_v31 = vld [vmem:[%s1680_s1 + $0xc8] sm:$0xff]  ;;  %v255_v32 = vpack.c.bf16 %v963_v25, %v963_v25  ;;  %v977_v36 = vld [vmem:[%s1680_s1 + $0x90] sm:$0xff] }
  0x22   : > { %1095 = vmatpush3.bf16.msra.mxu0 %v266_v12  ;;  %v975_v28 = vld [vmem:[%s1680_s1 + $0x80] sm:$0xff]  ;;  %v239_v33 = vpack.c.bf16 %v238_v27, %v238_v27  ;;  %v978_v37 = vld [vmem:[%s1680_s1 + $0x98] sm:$0xff]  ;;  %v987_v38 = vld [vmem:[%s1680_s1 + $0xd0] sm:$0xff] }
  0x23   : > { %1107 = vmatpush3.bf16.msra.mxu1 %v249_v13  ;;  %1096 = vmatprep.subr.bf16.mxu0 %v1286_v4  ;;  %v985_v30 = vld [vmem:[%s1680_s1 + $0xc0] sm:$0xff]  ;;  %v369_v34 = vpack.c.bf16 %v976_v29, %v975_v28  ;;  %v988_v39 = vld [vmem:[%s1680_s1 + $0xd8] sm:$0xff]  ;;  %v370_v40 = vpack.c.bf16 %v978_v37, %v977_v36  ;;  %v980_v43 = vld [vmem:[%s1680_s1 + $0xa8] sm:$0xff] }
  0x24   : > { %1108 = vmatprep.subr.bf16.mxu1 %v1286_v4  ;;  %v431_v35 = vpack.c.bf16 %v986_v31, %v985_v30  ;;  %v432_v41 = vpack.c.bf16 %v988_v39, %v987_v38  ;;  %v979_v42 = vld [vmem:[%s1680_s1 + $0xa0] sm:$0xff]  ;;  %v990_v45 = vld [vmem:[%s1680_s1 + $0xe8] sm:$0xff]  ;;  %v981_v48 = vld [vmem:[%s1680_s1 + $0xb0] sm:$0xff] }
  0x25   : > { %v989_v44 = vld [vmem:[%s1680_s1 + $0xe0] sm:$0xff]  ;;  %v371_v46 = vpack.c.bf16 %v980_v43, %v979_v42  ;;  %v982_v49 = vld [vmem:[%s1680_s1 + $0xb8] sm:$0xff]  ;;  %v991_v50 = vld [vmem:[%s1680_s1 + $0xf0] sm:$0xff] }
  0x26   : > { %1097 = vmatpush3.bf16.msra.mxu0 %v267_v18  ;;  %v433_v47 = vpack.c.bf16 %v990_v45, %v989_v44  ;;  %v992_v51 = vld [vmem:[%s1680_s1 + $0xf8] sm:$0xff]  ;;  %v372_v52 = vpack.c.bf16 %v982_v49, %v981_v48  ;;  %v974_v53 = vld [vmem:[%s1417_s29 + $0x2] sm:$0x7f]  ;;  %v984_v57 = vld [vmem:[%s1417_s29 + $0x9] sm:$0x7f] }
  0x27   : > { %1109 = vmatpush3.bf16.msra.mxu1 %v250_v19  ;;  %1098 = vmatprep.subr.bf16.mxu0 %v1286_v4  ;;  %v434_v54 = vpack.c.bf16 %v992_v51, %v991_v50  ;;  %v995_v55 = vld [vmem:[%s1680_s1 + $0x100] sm:$0xff]  ;;  %v996_v56 = vld [vmem:[%s1680_s1 + $0x108] sm:$0xff]  ;;  %v359_v60 = vpack.c.bf16 %v974_v53, %v974_v53  ;;  %v421_v62 = vpack.c.bf16 %v984_v57, %v984_v57  ;;  %v997_v0 = vld [vmem:[%s1680_s1 + $0x110] sm:$0xff] }
  0x28   : > { %1110 = vmatprep.subr.bf16.mxu1 %v1286_v4  ;;  %v1005_v58 = vld [vmem:[%s1680_s1 + $0x140] sm:$0xff]  ;;  %v1006_v59 = vld [vmem:[%s1680_s1 + $0x148] sm:$0xff]  ;;  %v492_v61 = vpack.c.bf16 %v996_v56, %v995_v55  ;;  %v998_v1 = vld [vmem:[%s1680_s1 + $0x118] sm:$0xff] }
  0x29   : > { %v553_v63 = vpack.c.bf16 %v1006_v59, %v1005_v58  ;;  %v1007_v2 = vld [vmem:[%s1680_s1 + $0x150] sm:$0xff]  ;;  %v1008_v3 = vld [vmem:[%s1680_s1 + $0x158] sm:$0xff]  ;;  %v493_v5 = vpack.c.bf16 %v998_v1, %v997_v0  ;;  %v999_v7 = vld [vmem:[%s1680_s1 + $0x120] sm:$0xff] }
  0x2a   : > { %1099 = vmatpush3.bf16.msra.mxu0 %v268_v24  ;;  %v554_v6 = vpack.c.bf16 %v1008_v3, %v1007_v2  ;;  %v1000_v8 = vld [vmem:[%s1680_s1 + $0x128] sm:$0xff]  ;;  %v1009_v9 = vld [vmem:[%s1680_s1 + $0x160] sm:$0xff]  ;;  %v1001_v13 = vld [vmem:[%s1680_s1 + $0x130] sm:$0xff] }
  0x2b   : > { %1111 = vmatpush3.bf16.msra.mxu1 %v251_v26  ;;  %1116 = vmatprep.subr.bf16.mxu0 %v1286_v4  ;;  %v1010_v10 = vld [vmem:[%s1680_s1 + $0x168] sm:$0xff]  ;;  %v494_v11 = vpack.c.bf16 %v1000_v8, %v999_v7  ;;  %v1002_v14 = vld [vmem:[%s1680_s1 + $0x138] sm:$0xff]  ;;  %v1011_v15 = vld [vmem:[%s1680_s1 + $0x170] sm:$0xff] }
  0x2c   : > { %1128 = vmatprep.subr.bf16.mxu1 %v1286_v4  ;;  %v555_v12 = vpack.c.bf16 %v1010_v10, %v1009_v9  ;;  %v1012_v16 = vld [vmem:[%s1680_s1 + $0x178] sm:$0xff]  ;;  %v495_v17 = vpack.c.bf16 %v1002_v14, %v1001_v13  ;;  %v994_v18 = vld [vmem:[%s1417_s29 + $0xa] sm:$0x7f]  ;;  %v1015_v20 = vld [vmem:[%s1680_s1 + $0x180] sm:$0xff] }
  0x2d   : > { %1101 = vmatmul.mubr.msk.bf16.vlgmr.msra.gmra.mrb[0].mxu0 %vm269_vm2, %v255_v32  ;;  %v556_v19 = vpack.c.bf16 %v1012_v16, %v1011_v15  ;;  %v1016_v21 = vld [vmem:[%s1680_s1 + $0x188] sm:$0xff]  ;;  %v1025_v23 = vld [vmem:[%s1680_s1 + $0x1c0] sm:$0xff]  ;;  %v482_v25 = vpack.c.bf16 %v994_v18, %v994_v18  ;;  %v1017_v29 = vld [vmem:[%s1680_s1 + $0x190] sm:$0xff] }
  0x2e   : > { %1113 = vmatmul.mubr.msk.bf16.vlgmr.msra.gmra.mrb[0].mxu1 %vm269_vm2, %v239_v33  ;;  %1117 = vmatpush3.bf16.msra.mxu0 %v369_v34  ;;  %v1004_v22 = vld [vmem:[%s1417_s29 + $0xb] sm:$0x7f]  ;;  %v615_v26 = vpack.c.bf16 %v1016_v21, %v1015_v20  ;;  %v1018_v30 = vld [vmem:[%s1680_s1 + $0x198] sm:$0xff]  ;;  %v1029_v37 = vld [vmem:[%s1680_s1 + $0x1e0] sm:$0xff] }
  0x2f   : > { %1129 = vmatpush3.bf16.msra.mxu1 %v431_v35  ;;  %1118 = vmatprep.subr.bf16.mxu0 %v1286_v4  ;;  %v1026_v24 = vld [vmem:[%s1680_s1 + $0x1c8] sm:$0xff]  ;;  %v543_v27 = vpack.c.bf16 %v1004_v22, %v1004_v22  ;;  %v1027_v31 = vld [vmem:[%s1680_s1 + $0x1d0] sm:$0xff]  ;;  %v1028_v32 = vld [vmem:[%s1680_s1 + $0x1d8] sm:$0xff]  ;;  %v616_v33 = vpack.c.bf16 %v1018_v30, %v1017_v29 }
  0x30   : > { %1130 = vmatprep.subr.bf16.mxu1 %v1286_v4  ;;  %1124 = vmatprep.mubr.msk.bf16.mxu0 %vm1287_vm1, %v1286_v4  ;;  %v676_v28 = vpack.c.bf16 %v1026_v24, %v1025_v23  ;;  %v677_v34 = vpack.c.bf16 %v1028_v32, %v1027_v31  ;;  %v1019_v35 = vld [vmem:[%s1680_s1 + $0x1a0] sm:$0xff]  ;;  %v1020_v36 = vld [vmem:[%s1680_s1 + $0x1a8] sm:$0xff]  ;;  %v1022_v42 = vld [vmem:[%s1680_s1 + $0x1b8] sm:$0xff] }
  0x31   : > { %1136 = vmatprep.mubr.msk.bf16.mxu1 %vm1287_vm1, %v1286_v4  ;;  %v1030_v38 = vld [vmem:[%s1680_s1 + $0x1e8] sm:$0xff]  ;;  %v617_v39 = vpack.c.bf16 %v1020_v36, %v1019_v35  ;;  %v1031_v43 = vld [vmem:[%s1680_s1 + $0x1f0] sm:$0xff]  ;;  %v1032_v44 = vld [vmem:[%s1680_s1 + $0x1f8] sm:$0xff] }
  0x32   : > { %1119 = vmatpush3.bf16.msra.mxu0 %v370_v40  ;;  %v678_v40 = vpack.c.bf16 %v1030_v38, %v1029_v37  ;;  %v1035_v48 = vld [vmem:[%s1680_s1 + $0x200] sm:$0xff]  ;;  %v1036_v49 = vld [vmem:[%s1680_s1 + $0x208] sm:$0xff]  ;;  %v1024_v50 = vld [vmem:[%s1417_s29 + $0x13] sm:$0x7f] }
  0x33   : > { %1131 = vmatpush3.bf16.msra.mxu1 %v432_v41  ;;  %1120 = vmatprep.subr.bf16.mxu0 %v1286_v4  ;;  %v1021_v41 = vld [vmem:[%s1680_s1 + $0x1b0] sm:$0xff]  ;;  %v666_v53 = vpack.c.bf16 %v1024_v50, %v1024_v50  ;;  %v1038_v55 = vld [vmem:[%s1680_s1 + $0x218] sm:$0xff]  ;;  %v1039_v57 = vld [vmem:[%s1680_s1 + $0x220] sm:$0xff] }
  0x34   : > { %1132 = vmatprep.subr.bf16.mxu1 %v1286_v4  ;;  %v618_v45 = vpack.c.bf16 %v1022_v42, %v1021_v41  ;;  %v1040_v58 = vld [vmem:[%s1680_s1 + $0x228] sm:$0xff]  ;;  %v1044_v41 = vld [vmem:[%s1681_s2] ss:$0 sm:$0xff] }
  0x35   : > { %v739_v59 = vpack.c.bf16 %v1040_v58, %v1039_v57 }
  0x36   : > { %1121 = vmatpush3.bf16.msra.mxu0 %v371_v46  ;;  %v1014_v46 = vld [vmem:[%s1417_s29 + $0x12] sm:$0x7f] }
  0x37   : > { %1133 = vmatpush3.bf16.msra.mxu1 %v433_v47  ;;  %1122 = vmatprep.subr.bf16.mxu0 %v1286_v4  ;;  %v679_v47 = vpack.c.bf16 %v1032_v44, %v1031_v43  ;;  %v605_v51 = vpack.c.bf16 %v1014_v46, %v1014_v46 }
  0x38   : > { %1134 = vmatprep.subr.bf16.mxu1 %v1286_v4 }
  0x3a   : > { %1123 = vmatpush3.bf16.msra.mxu0 %v372_v52  ;;  %v737_v52 = vpack.c.bf16 %v1036_v49, %v1035_v48 }
  0x3b   : > { %1135 = vmatpush3.bf16.msra.mxu1 %v434_v54  ;;  %1140 = vmatprep.subr.bf16.mxu0 %v1286_v4  ;;  %v1037_v54 = vld [vmem:[%s1680_s1 + $0x210] sm:$0xff] }
  0x3c   : > { %1152 = vmatprep.subr.bf16.mxu1 %v1286_v4  ;;  %v738_v56 = vpack.c.bf16 %v1038_v55, %v1037_v54 }
  0x3d   : > { %1125 = vmatmul.mubr.msk.bf16.vlgmr.msra.gmra.mrb[4].mxu0 %vm269_vm2, %v359_v60  ;;  %v1041_v60 = vld [vmem:[%s1680_s1 + $0x230] sm:$0xff] }
  0x3e   : > { %1141 = vmatpush3.bf16.msra.mxu0 %v492_v61  ;;  %1137 = vmatmul.mubr.msk.bf16.vlgmr.msra.gmra.mrb[4].mxu1 %vm269_vm2, %v421_v62  ;;  %v1042_v61 = vld [vmem:[%s1680_s1 + $0x238] sm:$0xff] }
  0x3f   : > { %1153 = vmatpush3.bf16.msra.mxu1 %v553_v63  ;;  %1142 = vmatprep.subr.bf16.mxu0 %v1286_v4  ;;  %v740_v62 = vpack.c.bf16 %v1042_v61, %v1041_v60  ;;  %v1034_v63 = vld [vmem:[%s1417_s29 + $0x14] sm:$0x7f] }
  0x40   : > { %1154 = vmatprep.subr.bf16.mxu1 %v1286_v4  ;;  %1148 = vmatprep.mubr.msk.bf16.mxu0 %vm1287_vm1, %v1286_v4  ;;  %v727_v0 = vpack.c.bf16 %v1034_v63, %v1034_v63 }
  0x41   : > { %1160 = vmatprep.mubr.msk.bf16.mxu1 %vm1287_vm1, %v1286_v4 }
  0x42   : > { %1143 = vmatpush3.bf16.msra.mxu0 %v493_v5 }
  0x43   : > { %1155 = vmatpush3.bf16.msra.mxu1 %v554_v6  ;;  %1144 = vmatprep.subr.bf16.mxu0 %v1286_v4 }
  0x44   : > { %1156 = vmatprep.subr.bf16.mxu1 %v1286_v4 }
  0x46   : > { %1145 = vmatpush3.bf16.msra.mxu0 %v494_v11 }
  0x47   : > { %1157 = vmatpush3.bf16.msra.mxu1 %v555_v12  ;;  %1146 = vmatprep.subr.bf16.mxu0 %v1286_v4 }
  0x48   : > { %1158 = vmatprep.subr.bf16.mxu1 %v1286_v4 }
  0x4a   : > { %1147 = vmatpush3.bf16.msra.mxu0 %v495_v17 }
  0x4b   : > { %1159 = vmatpush3.bf16.msra.mxu1 %v556_v19  ;;  %1164 = vmatprep.subr.bf16.mxu0 %v1286_v4 }
  0x4c   : > { %1176 = vmatprep.subr.bf16.mxu1 %v1286_v4 }
  0x4d   : > { %1149 = vmatmul.mubr.msk.bf16.vlgmr.msra.gmra.mrb[8].mxu0 %vm269_vm2, %v482_v25 }
  0x4e   : > { %1165 = vmatpush3.bf16.msra.mxu0 %v615_v26  ;;  %1161 = vmatmul.mubr.msk.bf16.vlgmr.msra.gmra.mrb[8].mxu1 %vm269_vm2, %v543_v27 }
  0x4f   : > { %1177 = vmatpush3.bf16.msra.mxu1 %v676_v28  ;;  %1166 = vmatprep.subr.bf16.mxu0 %v1286_v4 }
  0x50   : > { %1178 = vmatprep.subr.bf16.mxu1 %v1286_v4  ;;  %1172 = vmatprep.mubr.msk.bf16.mxu0 %vm1287_vm1, %v1286_v4 }
  0x51   : > { %1184 = vmatprep.mubr.msk.bf16.mxu1 %vm1287_vm1, %v1286_v4 }
  0x52   : > { %1167 = vmatpush3.bf16.msra.mxu0 %v616_v33 }
  0x53   : > { %1179 = vmatpush3.bf16.msra.mxu1 %v677_v34  ;;  %1168 = vmatprep.subr.bf16.mxu0 %v1286_v4 }
  0x54   : > { %1180 = vmatprep.subr.bf16.mxu1 %v1286_v4 }
  0x56   : > { %1169 = vmatpush3.bf16.msra.mxu0 %v617_v39 }
  0x57   : > { %1181 = vmatpush3.bf16.msra.mxu1 %v678_v40  ;;  %1170 = vmatprep.subr.bf16.mxu0 %v1286_v4 }
  0x58   : > { %1182 = vmatprep.subr.bf16.mxu1 %v1286_v4 }
  0x5a   : > { %1171 = vmatpush3.bf16.msra.mxu0 %v618_v45 }
  0x5b   : > { %1183 = vmatpush3.bf16.msra.mxu1 %v679_v47  ;;  %1188 = vmatprep.subr.bf16.mxu0 %v1286_v4 }
  0x5d   : > { %1173 = vmatmul.mubr.msk.bf16.vlgmr.msra.gmra.mrb[12].mxu0 %vm269_vm2, %v605_v51 }
  0x5e   : > { %1189 = vmatpush3.bf16.msra.mxu0 %v737_v52  ;;  %1185 = vmatmul.mubr.msk.bf16.vlgmr.msra.gmra.mrb[12].mxu1 %vm269_vm2, %v666_v53 }
  0x5f   : > { %1190 = vmatprep.subr.bf16.mxu0 %v1286_v4  ;;  %1196 = vmatprep.mubr.msk.bf16.mxu0 %vm1287_vm1, %v1286_v4 }
  0x62   : > { %1191 = vmatpush3.bf16.msra.mxu0 %v738_v56 }
  0x63   : > { %1192 = vmatprep.subr.bf16.mxu0 %v1286_v4 }
  0x66   : > { %1193 = vmatpush3.bf16.msra.mxu0 %v739_v59  ;;  %v795_v59 = vld [vmem:[%s1350_s28] sm:$0x1] }
  0x67   : > { %1194 = vmatprep.subr.bf16.mxu0 %v1286_v4 }
  0x6a   : > { %1195 = vmatpush3.bf16.msra.mxu0 %v740_v62  ;;  %v806_v62 = vld [vmem:[%s1350_s28 + $0x1] sm:$0x1] }
  0x6d   : > { %1197 = vmatmul.mubr.msk.bf16.vlgmr.msra.gmra.mrb[16].mxu0 %vm269_vm2, %v727_v0 }
 0x100   : > { %v307_v1 = vpop.f32.mrb[0].mxu0 }
 0x101   : > { %v1102_v2 = vpop.f32.mrb[1].mxu0  ;;  %v350_v3 = vpop.f32.mrb[0].mxu1 }
 0x102   : > { %v351_v5 = vadd.f32 %v350_v3, %v307_v1  ;;  %v310_v6 = vpop.f32.mrb[2].mxu0  ;;  %v1114_v7 = vpop.f32.mrb[1].mxu1 }
 0x103   : > { %v1103_v8 = vpop.f32.mrb[3].mxu0  ;;  %v353_v9 = vpop.f32.mrb[2].mxu1 }
 0x104   : > { %v1115_v10 = vpop.f32.mrb[3].mxu1 }
 0x110   : > { %v410_v11 = vpop.f32.mrb[4].mxu0 }
 0x111   : > { %v416_v12 = vadd.f32 %v410_v11, %v351_v5  ;;  %v1126_v13 = vpop.f32.mrb[5].mxu0  ;;  %v472_v14 = vpop.f32.mrb[4].mxu1 }
 0x112   : > { %v413_v15 = vpop.f32.mrb[6].mxu0  ;;  %v1138_v16 = vpop.f32.mrb[5].mxu1 }
 0x113   : > { %v478_v4 = vadd.f32 %v472_v14, %v416_v12  ;;  %v1127_v17 = vpop.f32.mrb[7].mxu0  ;;  %v475_v18 = vpop.f32.mrb[6].mxu1 }
 0x114   : > { %v1139_v19 = vpop.f32.mrb[7].mxu1 }
 0x120   : > { %v533_v20 = vpop.f32.mrb[8].mxu0 }
 0x121   : > { %v539_v21 = vadd.f32 %v533_v20, %v478_v4  ;;  %v1150_v22 = vpop.f32.mrb[9].mxu0  ;;  %v594_v23 = vpop.f32.mrb[8].mxu1 }
 0x122   : > { %v536_v24 = vpop.f32.mrb[10].mxu0  ;;  %v1162_v25 = vpop.f32.mrb[9].mxu1 }
 0x123   : > { %v600_v26 = vadd.f32 %v594_v23, %v539_v21  ;;  %v1151_v27 = vpop.f32.mrb[11].mxu0  ;;  %v597_v28 = vpop.f32.mrb[10].mxu1 }
 0x124   : > { %v1163_v29 = vpop.f32.mrb[11].mxu1 }
 0x130   : > { %v656_v30 = vpop.f32.mrb[12].mxu0 }
 0x131   : > { %v662_v31 = vadd.f32 %v656_v30, %v600_v26  ;;  %v1174_v32 = vpop.f32.mrb[13].mxu0  ;;  %v717_v33 = vpop.f32.mrb[12].mxu1 }
 0x132   : > { %v659_v34 = vpop.f32.mrb[14].mxu0  ;;  %v1186_v35 = vpop.f32.mrb[13].mxu1 }
 0x133   : > { %v723_v36 = vadd.f32 %v717_v33, %v662_v31  ;;  %v1175_v37 = vpop.f32.mrb[15].mxu0  ;;  %v720_v38 = vpop.f32.mrb[14].mxu1 }
 0x134   : > { %v1187_v39 = vpop.f32.mrb[15].mxu1 }
 0x140   : > { %v778_v40 = vpop.f32.mrb[16].mxu0 }
 0x141   : > { %v784_v42 = vadd.f32 %v778_v40, %v723_v36  ;;  %v1198_v43 = vpop.f32.mrb[17].mxu0 }
 0x142   : > { %v781_v44 = vpop.f32.mrb[18].mxu0 }
 0x143   : > { %v792_v45 = vadd.f32 %v1044_v41, %v784_v42  ;;  %v1199_v46 = vpop.f32.mrb[19].mxu0 }
 0x145   : > { %794 = vst.msk [vmem:[%s1360_s10] sm:$0x7f] %vm793_vm3, %v792_v45  ;;  %v796_v47 = vsel %vm793_vm3, %v792_v45, 0.0  ;;  %v807_v48 = vmul.f32 %v792_v45, %v792_v45 }
 0x146   : > { %v797_v49 = vrot.slane %v796_v47, 4 }
 0x147   : > { %v808_v50 = vsel %vm793_vm3, %v807_v48, 0.0 }
 0x148   : > { %v798_v51 = vadd.f32 %v797_v49, %v796_v47  ;;  %v809_v52 = vrot.slane %v808_v50, 4 }
 0x14a   : > { %v799_v53 = vrot.slane %v798_v51, 2  ;;  %v810_v54 = vadd.f32 %v809_v52, %v808_v50 }
 0x14c   : > { %v800_v55 = vadd.f32 %v799_v53, %v798_v51  ;;  %v811_v56 = vrot.slane %v810_v54, 2 }
 0x14e   : > { %v801_v57 = vrot.slane %v800_v55, 1  ;;  %v812_v58 = vadd.f32 %v811_v56, %v810_v54 }
 0x150   : > { %v802_v60 = vadd.f32 %v801_v57, %v800_v55  ;;  %v813_v61 = vrot.slane %v812_v58, 1 }
 0x152   : > { %v803_v63 = vadd.f32 %v802_v60, %v795_v59  ;;  %v814_v0 = vadd.f32 %v813_v61, %v812_v58 }
 0x154   : > { %805 = vst.msk [vmem:[%s1350_s28] sm:$0x1] %vm804_vm4, %v803_v63  ;;  %v815_v1 = vadd.f32 %v814_v0, %v806_v62 }
 0x156   : > { %816 = vst.msk [vmem:[%s1350_s28 + $0x1] sm:$0x1] %vm804_vm4, %v815_v1 }
 0x157 PF: > { %s15_s19 = sadd.s32 1, %s1283_s19   ;;  %s1684_s15 = smov %s1275_s17 }
 0x158   : > { %p12_p8 = scmp.ge.s32.totalorder %s15_s19, 16   ;;  %s1685_s16 = smov %s1279_s18 }
 0x159   : > { %s1686_s17 = smov %s1689_s20  ;;  %s1687_s18 = smov %s1693_s21 }
 0x15a   :  { %14 = sbr.rel (!%p12_p8) target bundleno = 3 (0x3), region = 95 }

// kernel: decoder2_forward.52
= control target key start
LH: loop header
LB: loop body
LE: loop exit
PB: predicated region body
PF: predicated region fallthrough
CT: control target
= control target key end

     0   :  { %s352_s9 = smov 0   ;;  %s375_s0 = inlined_call_operand.vmem [shape: f32[14,7], index: 0, kind: input, shape index: {}]   ;;  %s376_s1 = inlined_call_operand.vmem [shape: f32[2,7,224], index: 1, kind: input, shape index: {}]   ;;  %s377_s2 = inlined_call_operand.vmem [shape: f32[2,14,224], index: 2, kind: output, shape index: {}]  }
   0x1 LB: > { %s300_s10 = sadd.s32 4294967295, %s334_s9   ;;  %p304_p0 = scmp.ge.s32.totalorder %s334_s9, 1  ;;  %s334_s9 = sphi %s352_s9, %s12_s9  }
   0x2   : > { %p112_p1 = scmp.lt.s32.totalorder %s334_s9, 3 }
   0x4   : > { %p113_p2 = pnand %p304_p0, %p112_p1 }
   0x5   : > { %p134_p3 = scmp.lt.s32.totalorder (!%p113_p2), %s300_s10, 1  ;;  %v336_v0 = vmov (!%p113_p2), 0.0   ;;  %vm155_vm0 = vcmask (!%p113_p2), 1046528   ;;  %v144_v1 = vld [vmem:[%s375_s0] sm:$0xff] (!%p113_p2)  ;;  %vm148_vm1 = vcmask (!%p113_p2), 56320   ;;  %vm240_vm2 = vcmask (!%p113_p2), 785408  }
   0x6   : > { %116 = sbr.rel (%p113_p2) target bundleno = 234 (0xea), region = 28  ;;  %226 = vmatprep.mubr.f32.mxu0 (!%p113_p2), %v336_v0  ;;  %232 = vmatprep.mubr.f32.mxu1 (!%p113_p2), %v336_v0  ;;  %v145_v4 = vld [vmem:[%s375_s0 + $0x8] sm:$0x3f] (!%p113_p2)  ;;  %vm243_vm3 = vcmask (!%p113_p2), 783360  }
   0xd   : > { %s379_s10 = smov (!%p134_p3, %s300_s10), 1 }
   0xe   : > { %s315_s11 = sshll.u32 %s379_s10, 4  ;;  %s316_s19 = sshll.u32 %s379_s10, 5 }
   0xf   : > { %s138_s14 = scalar_lea.vmem %s376_s1, %s315_s11  ;;  %s143_s22 = scalar_lea.vmem %s377_s2, %s316_s19 }
  0x10   : > { %v147_v2 = vld [vmem:[%s138_s14 + $0x8] sm:$0x7f]  ;;  %v146_v3 = vld [vmem:[%s138_s14] sm:$0x7f] }
  0x11   : > { %309 = vmatprep.subr.msk.mxu0 %vm155_vm0, %v147_v2  ;;  %317 = vmatprep.subr.msk.mxu1 %vm155_vm0, %v147_v2 }
  0x12   : > { %310 = vmatpush1.msk.msra.mxu0 %vm155_vm0, %v146_v3  ;;  %318 = vmatpush1.msk.msra.mxu1 %vm155_vm0, %v146_v3 }
  0x13   : > { %311 = vmatmul.mubr.msk.f32.vlgmr.msra.gmra.mrb[0].mxu0 %vm148_vm1, %v144_v1  ;;  %312 = vmatmul.mubr.msk.f32.vlgmr.msra.gmra.mrb[0].mxu1 %vm148_vm1, %v145_v4 }
  0xe6   : > { %v228_v5 = vpop.f32.mrb[0].mxu0  ;;  %v234_v6 = vpop.f32.mrb[0].mxu1 }
  0xe7   : > { %239 = vst [vmem:[%s143_s22] sm:$0xff] %v228_v5  ;;  %242 = vst [vmem:[%s143_s22 + $0x10] sm:$0x3f] %v234_v6  ;;  %v230_v7 = vpop.f32.mrb[1].mxu0  ;;  %v236_v8 = vpop.f32.mrb[1].mxu1 }
  0xe8   : > { %241 = vst.msk [vmem:[%s143_s22 + $0x8] sm:$0xff] %vm240_vm2, %v230_v7 }
  0xe9   : > { %244 = vst.msk [vmem:[%s143_s22 + $0x18] sm:$0x3f] %vm243_vm3, %v236_v8 }
  0xea PF: > { %s12_s9 = sadd.s32 1, %s334_s9  }
  0xeb   : > { %p9_p4 = scmp.ge.s32.totalorder %s12_s9, 4  }
  0xed   :  { %11 = sbr.rel (!%p9_p4) target bundleno = 1 (0x1), region = 58 }

// kernel: decoder2_forward.51
= control target key start
LH: loop header
LB: loop body
LE: loop exit
PB: predicated region body
PF: predicated region fallthrough
CT: control target
= control target key end

     0   :  { %s140_s0 = inlined_call_operand.vmem [shape: f32[32,128], index: 0, kind: input, shape index: {}]   ;;  %s141_s1 = inlined_call_operand.vmem [shape: f32[1,128], index: 1, kind: input, shape index: {}]   ;;  %s142_s2 = inlined_call_operand.vmem [shape: f32[1,128], index: 2, kind: input, shape index: {}]   ;;  %s143_s3 = inlined_call_operand.vmem [shape: f32[32,128], index: 3, kind: output, shape index: {}]  }
   0x1   :  { %v14_v0 = vld [vmem:[%s140_s0] sm:$0xff]  ;;  %v15_v4 = vld [vmem:[%s140_s0 + $0x8] sm:$0xff]  ;;  %v16_v5 = vld [vmem:[%s140_s0 + $0x10] sm:$0xff] }
   0x2   :  { %v72_v1 = vld [vmem:[%s141_s1] ss:$0 sm:$0xff]  ;;  %v17_v6 = vld [vmem:[%s140_s0 + $0x18] sm:$0xff] }
   0x3   :  { %v73_v2 = vld [vmem:[%s142_s2] ss:$0 sm:$0xff]  ;;  %v25_v3 = vmul.f32 %v72_v1, %v14_v0  ;;  %v26_v7 = vmul.f32 %v72_v1, %v15_v4  ;;  %v27_v8 = vmul.f32 %v72_v1, %v16_v5  ;;  %v28_v9 = vmul.f32 %v72_v1, %v17_v6 }
   0x5   :  { %v36_v10 = vadd.f32 %v73_v2, %v25_v3  ;;  %v37_v11 = vadd.f32 %v73_v2, %v26_v7  ;;  %v38_v12 = vadd.f32 %v73_v2, %v27_v8  ;;  %v39_v13 = vadd.f32 %v73_v2, %v28_v9 }
   0x7   :  { %v40_v14 = vsub.f32 0.0, %v36_v10  ;;  %v41_v15 = vsub.f32 0.0, %v37_v11  ;;  %v42_v16 = vsub.f32 0.0, %v38_v12  ;;  %v43_v17 = vsub.f32 0.0, %v39_v13 }
   0x9   :  { %v44_v18 = vmul.f32 1.442695, %v40_v14  ;;  %v46_v19 = vmul.f32 1.442695, %v41_v15  ;;  %v48_v20 = vmul.f32 1.442695, %v42_v16 }
   0xa   :  { %v50_v21 = vmul.f32 1.442695, %v43_v17 }
   0xb   :  { %74 = vpow2.f32 %v44_v18 }
   0xc   :  { %76 = vpow2.f32 %v46_v19 }
   0xd   :  { %78 = vpow2.f32 %v48_v20 }
   0xe   :  { %80 = vpow2.f32 %v50_v21 }
  0x15   :  { %v75_v22 = vpop.eup %74 }
  0x16   :  { %v77_v23 = vpop.eup %76  ;;  %v52_v24 = vadd.f32 1.0, %v75_v22 }
  0x17   :  { %v79_v25 = vpop.eup %78  ;;  %v53_v26 = vadd.f32 1.0, %v77_v23 }
  0x18   :  { %v81_v27 = vpop.eup %80  ;;  %82 = vrcp.f32 %v52_v24  ;;  %v54_v28 = vadd.f32 1.0, %v79_v25 }
  0x19   :  { %84 = vrcp.f32 %v53_v26  ;;  %v55_v29 = vadd.f32 1.0, %v81_v27 }
  0x1a   :  { %86 = vrcp.f32 %v54_v28 }
  0x1b   :  { %88 = vrcp.f32 %v55_v29 }
  0x22   :  { %v83_v30 = vpop.eup %82 }
  0x23   :  { %v85_v31 = vpop.eup %84  ;;  %v60_v32 = vmul.f32 %v83_v30, %v36_v10 }
  0x24   :  { %v87_v33 = vpop.eup %86  ;;  %v61_v34 = vmul.f32 %v85_v31, %v37_v11 }
  0x25   :  { %v89_v35 = vpop.eup %88  ;;  %64 = vst [vmem:[%s143_s3] sm:$0xff] %v60_v32  ;;  %v62_v36 = vmul.f32 %v87_v33, %v38_v12 }
  0x26   :  { %65 = vst [vmem:[%s143_s3 + $0x8] sm:$0xff] %v61_v34  ;;  %v63_v37 = vmul.f32 %v89_v35, %v39_v13 }
  0x27   :  { %66 = vst [vmem:[%s143_s3 + $0x10] sm:$0xff] %v62_v36 }
  0x28   :  { %67 = vst [vmem:[%s143_s3 + $0x18] sm:$0xff] %v63_v37 }

// kernel: decoder2_forward.53
= control target key start
LH: loop header
LB: loop body
LE: loop exit
PB: predicated region body
PF: predicated region fallthrough
CT: control target
= control target key end

     0   :  { %s646_s9 = smov 0   ;;  %s689_s0 = inlined_call_operand.vmem [shape: f32[14,7], index: 0, kind: input, shape index: {}]   ;;  %s690_s1 = inlined_call_operand.vmem [shape: f32[28,7,32], index: 1, kind: input, shape index: {}]   ;;  %s691_s2 = inlined_call_operand.vmem [shape: f32[28,14,32], index: 2, kind: output, shape index: {}]  }
   0x1 LB: > { %s549_s10 = sadd.s32 4294967295, %s629_s9   ;;  %p553_p0 = scmp.ge.s32.totalorder %s629_s9, 1  ;;  %s629_s9 = sphi %s646_s9, %s12_s9  }
   0x2   : > { %p113_p1 = scmp.lt.s32.totalorder %s629_s9, 8 }
   0x4   : > { %p114_p2 = pnand %p553_p0, %p113_p1 }
   0x5   : > { %s554_s11 = sshll.u32 (!%p114_p2), %s549_s10, 2  ;;  %v149_v0 = vld [vmem:[%s689_s0] sm:$0xff] (!%p114_p2)  ;;  %vm152_vm0 = vcmask (!%p114_p2), 56320   ;;  %vm159_vm1 = vcmask (!%p114_p2), 1046528   ;;  %v150_v3 = vld [vmem:[%s689_s0 + $0x8] sm:$0x3f] (!%p114_p2) }
   0x6   : > { %117 = sbr.rel (%p114_p2) target bundleno = 237 (0xed), region = 28  ;;  %p137_p3 = scmp.lt.s32.totalorder (!%p114_p2), %s554_s11, 27  ;;  %597 = vmatprep.mubr.msk.f32.mxu0 (!%p114_p2), %vm152_vm0, %v149_v0  ;;  %602 = vmatprep.mubr.msk.f32.mxu1 (!%p114_p2), %vm152_vm0, %v149_v0  ;;  %vm240_vm2 = vcmask (!%p114_p2), 259072   ;;  %vm238_vm3 = vcmask (!%p114_p2), 261120  }
   0xd   : > { %s693_s11 = smov (!%p137_p3, %s554_s11), 27 }
   0xe   : > { %s555_s14 = sshll.u32 %s693_s11, 3  ;;  %s582_s20 = sshll.u32 %s693_s11, 4 }
   0xf   : > { %s140_s17 = scalar_lea.vmem %s690_s1, %s555_s14  ;;  %s147_s23 = scalar_lea.vmem %s691_s2, %s582_s20 }
  0x10   : > { %v151_v1 = vld [vmem:[%s140_s17] sm:$0x7f]  ;;  %v562_v2 = vld [vmem:[%s140_s17 + $0x8] sm:$0x7f]  ;;  %v568_v4 = vld [vmem:[%s140_s17 + $0x10] sm:$0x7f] }
  0x11   : > { %595 = vmatprep.subr.msk.mxu0 %vm159_vm1, %v151_v1  ;;  %600 = vmatprep.subr.msk.mxu1 %vm159_vm1, %v562_v2  ;;  %v574_v5 = vld [vmem:[%s140_s17 + $0x18] sm:$0x7f] }
  0x12   : > { %596 = vmatpush3.msk.msra.mxu0 %vm159_vm1, %v151_v1  ;;  %601 = vmatpush3.msk.msra.mxu1 %vm159_vm1, %v562_v2 }
  0x13   : > { %598 = vmatmul.mubr.msk.f32.vlgmr.msra.gmra.mrb[0].mxu0 %vm152_vm0, %v150_v3  ;;  %603 = vmatmul.mubr.msk.f32.vlgmr.msra.gmra.mrb[0].mxu1 %vm152_vm0, %v150_v3 }
  0x14   : > { %605 = vmatprep.subr.msk.mxu0 %vm159_vm1, %v568_v4  ;;  %610 = vmatprep.subr.msk.mxu1 %vm159_vm1, %v574_v5 }
  0x15   : > { %606 = vmatpush3.msk.msra.mxu0 %vm159_vm1, %v568_v4  ;;  %611 = vmatpush3.msk.msra.mxu1 %vm159_vm1, %v574_v5 }
  0x16   : > { %607 = vmatprep.mubr.msk.f32.mxu0 %vm152_vm0, %v149_v0  ;;  %612 = vmatprep.mubr.msk.f32.mxu1 %vm152_vm0, %v149_v0 }
  0x17   : > { %608 = vmatmul.mubr.msk.f32.vlgmr.msra.gmra.mrb[2].mxu0 %vm152_vm0, %v150_v3  ;;  %613 = vmatmul.mubr.msk.f32.vlgmr.msra.gmra.mrb[2].mxu1 %vm152_vm0, %v150_v3 }
  0xe6   : > { %v599_v6 = vpop.f32.mrb[0].mxu0  ;;  %v604_v7 = vpop.f32.mrb[0].mxu1 }
  0xe7   : > { %241 = vst.msk [vmem:[%s147_s23 + $0x8] sm:$0x3f] %vm240_vm2, %v599_v6  ;;  %567 = vst.msk [vmem:[%s147_s23 + $0x18] sm:$0x3f] %vm240_vm2, %v604_v7  ;;  %v229_v8 = vpop.f32.mrb[1].mxu0  ;;  %v313_v9 = vpop.f32.mrb[1].mxu1 }
  0xe8   : > { %239 = vst.msk [vmem:[%s147_s23] sm:$0xff] %vm238_vm3, %v229_v8  ;;  %566 = vst.msk [vmem:[%s147_s23 + $0x10] sm:$0xff] %vm238_vm3, %v313_v9 }
  0xea   : > { %v609_v10 = vpop.f32.mrb[2].mxu0  ;;  %v614_v11 = vpop.f32.mrb[2].mxu1 }
  0xeb   : > { %573 = vst.msk [vmem:[%s147_s23 + $0x28] sm:$0x3f] %vm240_vm2, %v609_v10  ;;  %579 = vst.msk [vmem:[%s147_s23 + $0x38] sm:$0x3f] %vm240_vm2, %v614_v11  ;;  %v396_v12 = vpop.f32.mrb[3].mxu0  ;;  %v479_v13 = vpop.f32.mrb[3].mxu1 }
  0xec   : > { %572 = vst.msk [vmem:[%s147_s23 + $0x20] sm:$0xff] %vm238_vm3, %v396_v12  ;;  %578 = vst.msk [vmem:[%s147_s23 + $0x30] sm:$0xff] %vm238_vm3, %v479_v13 }
  0xed PF: > { %s12_s9 = sadd.s32 1, %s629_s9  }
  0xee   : > { %p9_p4 = scmp.ge.s32.totalorder %s12_s9, 9  }
  0xf0   :  { %11 = sbr.rel (!%p9_p4) target bundleno = 1 (0x1), region = 64 }

// kernel: decoder2_forward.55
= control target key start
LH: loop header
LB: loop body
LE: loop exit
PB: predicated region body
PF: predicated region fallthrough
CT: control target
= control target key end

     0   :  { %s372_s0 = inlined_call_operand.vmem [shape: f32[104,128], index: 0, kind: input, shape index: {}]   ;;  %s373_s1 = inlined_call_operand.vmem [shape: f32[1,128], index: 1, kind: input, shape index: {}]   ;;  %s374_s2 = inlined_call_operand.vmem [shape: f32[1,128], index: 2, kind: input, shape index: {}]   ;;  %s375_s3 = inlined_call_operand.vmem [shape: f32[104,128], index: 3, kind: output, shape index: {}]  }
   0x1   :  { %v14_v0 = vld [vmem:[%s372_s0] sm:$0xff]  ;;  %v15_v4 = vld [vmem:[%s372_s0 + $0x8] sm:$0xff]  ;;  %v16_v5 = vld [vmem:[%s372_s0 + $0x10] sm:$0xff] }
   0x2   :  { %v162_v1 = vld [vmem:[%s373_s1] ss:$0 sm:$0xff]  ;;  %v17_v6 = vld [vmem:[%s372_s0 + $0x18] sm:$0xff]  ;;  %v19_v11 = vld [vmem:[%s372_s0 + $0x28] sm:$0xff] }
   0x3   :  { %v163_v2 = vld [vmem:[%s374_s2] ss:$0 sm:$0xff]  ;;  %v34_v3 = vmul.f32 %v162_v1, %v14_v0  ;;  %v35_v7 = vmul.f32 %v162_v1, %v15_v4  ;;  %v36_v8 = vmul.f32 %v162_v1, %v16_v5  ;;  %v37_v9 = vmul.f32 %v162_v1, %v17_v6  ;;  %v20_v12 = vld [vmem:[%s372_s0 + $0x30] sm:$0xff]  ;;  %v21_v17 = vld [vmem:[%s372_s0 + $0x38] sm:$0xff] }
   0x4   :  { %v18_v10 = vld [vmem:[%s372_s0 + $0x20] sm:$0xff]  ;;  %v39_v15 = vmul.f32 %v162_v1, %v19_v11  ;;  %v40_v16 = vmul.f32 %v162_v1, %v20_v12  ;;  %v41_v21 = vmul.f32 %v162_v1, %v21_v17  ;;  %v23_v31 = vld [vmem:[%s372_s0 + $0x48] sm:$0xff]  ;;  %v24_v32 = vld [vmem:[%s372_s0 + $0x50] sm:$0xff] }
   0x5   :  { %v263_v13 = vadd.f32 %v163_v2, %v34_v3  ;;  %v38_v14 = vmul.f32 %v162_v1, %v18_v10  ;;  %v268_v18 = vadd.f32 %v163_v2, %v35_v7  ;;  %v270_v19 = vadd.f32 %v163_v2, %v36_v8  ;;  %v22_v26 = vld [vmem:[%s372_s0 + $0x40] sm:$0xff]  ;;  %v25_v33 = vld [vmem:[%s372_s0 + $0x58] sm:$0xff] }
   0x6   :  { %v272_v20 = vadd.f32 %v163_v2, %v37_v9  ;;  %v277_v24 = vadd.f32 %v163_v2, %v39_v15  ;;  %v279_v25 = vadd.f32 %v163_v2, %v40_v16  ;;  %v287_v30 = vadd.f32 %v163_v2, %v41_v21  ;;  %v26_v38 = vld [vmem:[%s372_s0 + $0x60] sm:$0xff] }
   0x7   :  { %v67_v22 = vsub.f32 0.0, %v263_v13  ;;  %v275_v23 = vadd.f32 %v163_v2, %v38_v14  ;;  %v68_v27 = vsub.f32 0.0, %v268_v18  ;;  %v69_v28 = vsub.f32 0.0, %v270_v19 }
   0x8   :  { %v70_v29 = vsub.f32 0.0, %v272_v20  ;;  %v72_v36 = vsub.f32 0.0, %v277_v24  ;;  %v73_v37 = vsub.f32 0.0, %v279_v25  ;;  %v42_v42 = vmul.f32 %v162_v1, %v22_v26 }
   0x9   :  { %v80_v34 = vmul.f32 1.442695, %v67_v22  ;;  %v71_v35 = vsub.f32 0.0, %v275_v23  ;;  %v82_v39 = vmul.f32 1.442695, %v68_v27  ;;  %v74_v46 = vsub.f32 0.0, %v287_v30 }
   0xa   :  { %v84_v40 = vmul.f32 1.442695, %v69_v28  ;;  %v86_v41 = vmul.f32 1.442695, %v70_v29  ;;  %v90_v44 = vmul.f32 1.442695, %v72_v36  ;;  %v305_v47 = vadd.f32 %v163_v2, %v42_v42 }
   0xb   :  { %164 = vpow2.f32 %v80_v34  ;;  %v88_v43 = vmul.f32 1.442695, %v71_v35  ;;  %v92_v45 = vmul.f32 1.442695, %v73_v37  ;;  %v43_v48 = vmul.f32 %v162_v1, %v23_v31 }
   0xc   :  { %166 = vpow2.f32 %v82_v39  ;;  %v44_v49 = vmul.f32 %v162_v1, %v24_v32  ;;  %v45_v50 = vmul.f32 %v162_v1, %v25_v33  ;;  %v46_v51 = vmul.f32 %v162_v1, %v26_v38 }
   0xd   :  { %168 = vpow2.f32 %v84_v40  ;;  %v94_v52 = vmul.f32 1.442695, %v74_v46  ;;  %v75_v53 = vsub.f32 0.0, %v305_v47  ;;  %v308_v54 = vadd.f32 %v163_v2, %v43_v48 }
   0xe   :  { %170 = vpow2.f32 %v86_v41  ;;  %v310_v55 = vadd.f32 %v163_v2, %v44_v49  ;;  %v312_v56 = vadd.f32 %v163_v2, %v45_v50  ;;  %v314_v57 = vadd.f32 %v163_v2, %v46_v51 }
   0xf   :  { %172 = vpow2.f32 %v88_v43  ;;  %v96_v58 = vmul.f32 1.442695, %v75_v53  ;;  %v76_v59 = vsub.f32 0.0, %v308_v54 }
  0x10   :  { %174 = vpow2.f32 %v90_v44  ;;  %v77_v60 = vsub.f32 0.0, %v310_v55  ;;  %v78_v61 = vsub.f32 0.0, %v312_v56  ;;  %v79_v62 = vsub.f32 0.0, %v314_v57 }
  0x11   :  { %176 = vpow2.f32 %v92_v45  ;;  %v98_v63 = vmul.f32 1.442695, %v76_v59 }
  0x12   :  { %178 = vpow2.f32 %v94_v52  ;;  %v100_v0 = vmul.f32 1.442695, %v77_v60  ;;  %v102_v1 = vmul.f32 1.442695, %v78_v61  ;;  %v104_v3 = vmul.f32 1.442695, %v79_v62 }
  0x13   :  { %180 = vpow2.f32 %v96_v58 }
  0x14   :  { %182 = vpow2.f32 %v98_v63 }
  0x15   :  { %v165_v2 = vpop.eup %164  ;;  %184 = vpow2.f32 %v100_v0 }
  0x16   :  { %v167_v4 = vpop.eup %166  ;;  %v106_v5 = vadd.f32 1.0, %v165_v2  ;;  %186 = vpow2.f32 %v102_v1 }
  0x17   :  { %v169_v6 = vpop.eup %168  ;;  %v107_v7 = vadd.f32 1.0, %v167_v4  ;;  %188 = vpow2.f32 %v104_v3 }
  0x18   :  { %v171_v8 = vpop.eup %170  ;;  %190 = vrcp.f32 %v106_v5  ;;  %v108_v9 = vadd.f32 1.0, %v169_v6 }
  0x19   :  { %v173_v10 = vpop.eup %172  ;;  %192 = vrcp.f32 %v107_v7  ;;  %v109_v11 = vadd.f32 1.0, %v171_v8 }
  0x1a   :  { %v175_v12 = vpop.eup %174  ;;  %194 = vrcp.f32 %v108_v9  ;;  %v110_v14 = vadd.f32 1.0, %v173_v10 }
  0x1b   :  { %v177_v15 = vpop.eup %176  ;;  %196 = vrcp.f32 %v109_v11  ;;  %v111_v16 = vadd.f32 1.0, %v175_v12 }
  0x1c   :  { %v179_v17 = vpop.eup %178  ;;  %198 = vrcp.f32 %v110_v14  ;;  %v112_v21 = vadd.f32 1.0, %v177_v15 }
  0x1d   :  { %v181_v22 = vpop.eup %180  ;;  %200 = vrcp.f32 %v111_v16  ;;  %v113_v26 = vadd.f32 1.0, %v179_v17 }
  0x1e   :  { %v183_v27 = vpop.eup %182  ;;  %202 = vrcp.f32 %v112_v21  ;;  %v114_v28 = vadd.f32 1.0, %v181_v22 }
  0x1f   :  { %v185_v29 = vpop.eup %184  ;;  %204 = vrcp.f32 %v113_v26  ;;  %v115_v31 = vadd.f32 1.0, %v183_v27 }
  0x20   :  { %v187_v32 = vpop.eup %186  ;;  %206 = vrcp.f32 %v114_v28  ;;  %v116_v33 = vadd.f32 1.0, %v185_v29 }
  0x21   :  { %v189_v34 = vpop.eup %188  ;;  %208 = vrcp.f32 %v115_v31  ;;  %v117_v35 = vadd.f32 1.0, %v187_v32 }
  0x22   :  { %v191_v36 = vpop.eup %190  ;;  %210 = vrcp.f32 %v116_v33  ;;  %v118_v37 = vadd.f32 1.0, %v189_v34 }
  0x23   :  { %v193_v38 = vpop.eup %192  ;;  %v132_v39 = vmul.f32 %v191_v36, %v263_v13  ;;  %212 = vrcp.f32 %v117_v35 }
  0x24   :  { %v195_v40 = vpop.eup %194  ;;  %v133_v41 = vmul.f32 %v193_v38, %v268_v18  ;;  %214 = vrcp.f32 %v118_v37 }
  0x25   :  { %v197_v42 = vpop.eup %196  ;;  %145 = vst [vmem:[%s375_s3] sm:$0xff] %v132_v39  ;;  %v134_v43 = vmul.f32 %v195_v40, %v270_v19 }
  0x26   :  { %v199_v44 = vpop.eup %198  ;;  %146 = vst [vmem:[%s375_s3 + $0x8] sm:$0xff] %v133_v41  ;;  %v135_v45 = vmul.f32 %v197_v42, %v272_v20 }
  0x27   :  { %v201_v13 = vpop.eup %200  ;;  %147 = vst [vmem:[%s375_s3 + $0x10] sm:$0xff] %v134_v43  ;;  %v136_v18 = vmul.f32 %v199_v44, %v275_v23 }
  0x28   :  { %v203_v46 = vpop.eup %202  ;;  %148 = vst [vmem:[%s375_s3 + $0x18] sm:$0xff] %v135_v45  ;;  %v137_v19 = vmul.f32 %v201_v13, %v277_v24 }
  0x29   :  { %v205_v48 = vpop.eup %204  ;;  %149 = vst [vmem:[%s375_s3 + $0x20] sm:$0xff] %v136_v18  ;;  %v138_v20 = vmul.f32 %v203_v46, %v279_v25 }
  0x2a   :  { %v207_v49 = vpop.eup %206  ;;  %150 = vst [vmem:[%s375_s3 + $0x28] sm:$0xff] %v137_v19  ;;  %v139_v23 = vmul.f32 %v205_v48, %v287_v30 }
  0x2b   :  { %v209_v50 = vpop.eup %208  ;;  %151 = vst [vmem:[%s375_s3 + $0x30] sm:$0xff] %v138_v20  ;;  %v140_v24 = vmul.f32 %v207_v49, %v305_v47 }
  0x2c   :  { %v211_v51 = vpop.eup %210  ;;  %152 = vst [vmem:[%s375_s3 + $0x38] sm:$0xff] %v139_v23  ;;  %v141_v25 = vmul.f32 %v209_v50, %v308_v54 }
  0x2d   :  { %v213_v52 = vpop.eup %212  ;;  %153 = vst [vmem:[%s375_s3 + $0x40] sm:$0xff] %v140_v24  ;;  %v142_v30 = vmul.f32 %v211_v51, %v310_v55 }
  0x2e   :  { %v215_v53 = vpop.eup %214  ;;  %154 = vst [vmem:[%s375_s3 + $0x48] sm:$0xff] %v141_v25  ;;  %v143_v47 = vmul.f32 %v213_v52, %v312_v56 }
  0x2f   :  { %155 = vst [vmem:[%s375_s3 + $0x50] sm:$0xff] %v142_v30  ;;  %v144_v54 = vmul.f32 %v215_v53, %v314_v57 }
  0x30   :  { %156 = vst [vmem:[%s375_s3 + $0x58] sm:$0xff] %v143_v47 }
  0x31   :  { %157 = vst [vmem:[%s375_s3 + $0x60] sm:$0xff] %v144_v54 }

// kernel: decoder2_forward.54
= control target key start
LH: loop header
LB: loop body
LE: loop exit
PB: predicated region body
PF: predicated region fallthrough
CT: control target
= control target key end

     0   :  { %s1232_s15 = smov 0   ;;  %s1234_s16 = smov 0   ;;  %s1482_s0 = inlined_call_operand.vmem [shape: f32[2,256,32], index: 0, kind: input, shape index: {}]   ;;  %s1483_s1 = inlined_call_operand.vmem [shape: f32[9,32,32], index: 1, kind: input, shape index: {}]   ;;  %s1484_s2 = inlined_call_operand.vmem [shape: f32[1,32], index: 2, kind: input, shape index: {}]   ;;  %s1485_s3 = inlined_call_operand.vmem [shape: f32[2,14,14,32], index: 3, kind: output, shape index: {0}]   ;;  %s1486_s4 = inlined_call_operand.vmem [shape: f32[2,2,32], index: 4, kind: output, shape index: {1}]  }
   0x1   :  { %s1236_s17 = smov 0   ;;  %s1238_s18 = smov 0  }
   0x2   :  { %s1240_s19 = smov 0  }
   0x3 LB: > { %s24_s20 = sadd.s32 1, %s1194_s17  ;;  %s27_s21 = sadd.s32 1, %s1198_s18  ;;  %s1202_s19 = sphi %s1240_s19, %s15_s19   ;;  %s1198_s18 = sphi %s1238_s18, %s1490_s18   ;;  %s1194_s17 = sphi %s1236_s17, %s1489_s17   ;;  %s1190_s16 = sphi %s1234_s16, %s1488_s16   ;;  %s1186_s15 = sphi %s1232_s15, %s1487_s15  }
   0x4   : > { %p25_p0 = scmp.ge.s32.totalorder %s24_s20, 14  ;;  %p944_p1 = scmp.ge.s32.totalorder %s1202_s19, 1 }
   0x5   : > { %p179_p2 = scmp.lt.s32.totalorder %s1202_s19, 29 }
   0x6   : > { %s1492_s20 = smov (%p25_p0, %s24_s20), 0  ;;  %s1494_s21 = smov (!%p25_p0, %s27_s21), %s1198_s18 }
   0x7   : > { %p180_p3 = pnand %p944_p1, %p179_p2  ;;  %p29_p4 = scmp.ge.s32.totalorder %s1494_s21, 2 }
   0x8   : > { %p213_p5 = scmp.lt.s32.totalorder (!%p180_p3), %s1190_s16, 1  ;;  %p220_p6 = scmp.lt.s32.totalorder (!%p180_p3), %s1186_s15, 13 }
   0x9   : > { %s1496_s21 = smov (%p29_p4, %s1494_s21), 0  ;;  %183 = sbr.rel (%p180_p3) target bundleno = 303 (0x12f), region = 32 }
   0xa   : > { %p950_p7 = scmp.ne.s32.totalorder (!%p180_p3), %s1186_s15, 0 }
  0x10   : > { %s1498_s16 = smov (!%p213_p5, %s1190_s16), 1  ;;  %235 = sbr.rel (%p950_p7) target bundleno = 23 (0x17), region = 36 }
  0x11   : > { %s221_s22 = scalar_select %p220_p6, %s1186_s15, 13 }
  0x12   : > { %s1020_s23 = sshll.u32 %s1498_s16, 8  ;;  %s1120_s24 = smul.u32 28, %s1498_s16  ;;  %vm236_vm0 = vcmask (!%p950_p7), 254976   ;;  %v1204_v0 = vmov (!%p950_p7), 0.0  }
  0x13   : > { %s217_s27 = scalar_lea.vmem %s1482_s0, %s1020_s23  ;;  %s947_s28 = sshll.u32 %s221_s22, 1 }
  0x14   : > { %s224_s29 = sadd.s32 %s1120_s24, %s947_s28  ;;  %s949_s30 = sshll.u32 %s1498_s16, 1 }
  0x15   : > { %s948_s5 = sshll.u32 %s224_s29, 3  ;;  %s1272_s8 = scalar_lea.vmem %s1486_s4, %s949_s30 }
  0x16   : > { %s1277_s11 = scalar_lea.vmem %s1485_s3, %s948_s5  ;;  %237 = vst.msk [vmem:[%s1272_s8] sm:$0x3] (!%p950_p7), %vm236_vm0, %v1204_v0 }
  0x17 PF: > { %v955_v1 = vld [vmem:[%s1483_s1 + $0x20] sm:$0xff]  ;;  %v956_v2 = vld [vmem:[%s1483_s1 + $0x28] sm:$0xff]  ;;  %s951_s24 = sshll.u32 %s1186_s15, 4  ;;  %v1205_v4 = vmov 0.0   ;;  %v957_v7 = vld [vmem:[%s1483_s1 + $0x30] sm:$0xff]  ;;  %vm1206_vm1 = vmmov 0  }
  0x18   : > { %v243_v3 = vld [vmem:[%s1483_s1] sm:$0xff]  ;;  %1048 = vmatprep.subr.bf16.mxu0 %v1205_v4  ;;  %1056 = vmatprep.subr.bf16.mxu1 %v1205_v4  ;;  %v259_v5 = vpack.c.bf16 %v956_v2, %v955_v1  ;;  %v244_v6 = vld [vmem:[%s1483_s1 + $0x8] sm:$0xff]  ;;  %v958_v8 = vld [vmem:[%s1483_s1 + $0x38] sm:$0xff]  ;;  %s1302_s6 = scalar_lea.vmem %s217_s27, %s951_s24  ;;  %vm261_vm2 = vcmask 261120   ;;  %vm768_vm3 = vcmask 259072   ;;  %vm781_vm4 = vcmask 253952  }
  0x19   : > { %v247_v9 = vpack.c.bf16 %v244_v6, %v243_v3  ;;  %v245_v10 = vld [vmem:[%s1483_s1 + $0x10] sm:$0xff]  ;;  %v246_v11 = vld [vmem:[%s1483_s1 + $0x18] sm:$0xff]  ;;  %1052 = vmatprep.mubr.msk.bf16.mxu0 %vm1206_vm1, %v1205_v4  ;;  %1060 = vmatprep.mubr.msk.bf16.mxu1 %vm1206_vm1, %v1205_v4  ;;  %v260_v12 = vpack.c.bf16 %v958_v8, %v957_v7  ;;  %v953_v13 = vld [vmem:[%s1302_s6 + $0x1] sm:$0xff] }
  0x1a   : > { %1049 = vmatpush3.bf16.msra.mxu0 %v259_v5  ;;  %v954_v14 = vld [vmem:[%s1302_s6 + $0x9] sm:$0x3f]  ;;  %v240_v15 = vld [vmem:[%s1302_s6] sm:$0xff]  ;;  %v248_v16 = vpack.c.bf16 %v246_v11, %v245_v10  ;;  %v966_v26 = vld [vmem:[%s1483_s1 + $0x50] sm:$0xff] }
  0x1b   : > { %1057 = vmatpush3.bf16.msra.mxu1 %v247_v9  ;;  %1050 = vmatprep.subr.bf16.mxu0 %v1205_v4  ;;  %v241_v17 = vld [vmem:[%s1302_s6 + $0x8] sm:$0x3f]  ;;  %v964_v18 = vld [vmem:[%s1483_s1 + $0x40] sm:$0xff]  ;;  %v253_v22 = vpack.c.bf16 %v954_v14, %v953_v13  ;;  %v967_v27 = vld [vmem:[%s1483_s1 + $0x58] sm:$0xff] }
  0x1c   : > { %v965_v19 = vld [vmem:[%s1483_s1 + $0x48] sm:$0xff]  ;;  %1058 = vmatprep.subr.bf16.mxu1 %v1205_v4  ;;  %v972_v20 = vld [vmem:[%s1483_s1 + $0x60] sm:$0xff]  ;;  %v242_v23 = vpack.c.bf16 %v241_v17, %v240_v15  ;;  %v974_v28 = vld [vmem:[%s1483_s1 + $0x70] sm:$0xff]  ;;  %v361_v30 = vpack.c.bf16 %v967_v27, %v966_v26 }
  0x1d   : > { %v973_v21 = vld [vmem:[%s1483_s1 + $0x68] sm:$0xff]  ;;  %v360_v24 = vpack.c.bf16 %v965_v19, %v964_v18  ;;  %v975_v29 = vld [vmem:[%s1483_s1 + $0x78] sm:$0xff]  ;;  %v980_v33 = vld [vmem:[%s1483_s1 + $0x80] sm:$0xff] }
  0x1e   : > { %1051 = vmatpush3.bf16.msra.mxu0 %v260_v12  ;;  %v419_v25 = vpack.c.bf16 %v973_v21, %v972_v20  ;;  %v962_v31 = vld [vmem:[%s1302_s6 + $0x2] sm:$0xff]  ;;  %v963_v32 = vld [vmem:[%s1302_s6 + $0xa] sm:$0x3f]  ;;  %v420_v34 = vpack.c.bf16 %v975_v29, %v974_v28  ;;  %v970_v36 = vld [vmem:[%s1302_s6 + $0x10] sm:$0xff] }
  0x1f   : > { %1059 = vmatpush3.bf16.msra.mxu1 %v248_v16  ;;  %1064 = vmatprep.subr.bf16.mxu0 %v1205_v4  ;;  %v981_v35 = vld [vmem:[%s1483_s1 + $0x88] sm:$0xff]  ;;  %v971_v37 = vld [vmem:[%s1302_s6 + $0x18] sm:$0x3f]  ;;  %v988_v38 = vld [vmem:[%s1483_s1 + $0xa0] sm:$0xff]  ;;  %v354_v40 = vpack.c.bf16 %v963_v32, %v962_v31 }
  0x20   : > { %1072 = vmatprep.subr.bf16.mxu1 %v1205_v4  ;;  %v989_v39 = vld [vmem:[%s1483_s1 + $0xa8] sm:$0xff]  ;;  %v477_v41 = vpack.c.bf16 %v981_v35, %v980_v33  ;;  %v413_v42 = vpack.c.bf16 %v971_v37, %v970_v36  ;;  %v982_v44 = vld [vmem:[%s1483_s1 + $0x90] sm:$0xff]  ;;  %v983_v45 = vld [vmem:[%s1483_s1 + $0x98] sm:$0xff] }
  0x21   : > { %1053 = vmatmul.mubr.msk.bf16.vlgmr.msra.gmra.mrb[0].mxu0 %vm261_vm2, %v253_v22  ;;  %v535_v43 = vpack.c.bf16 %v989_v39, %v988_v38  ;;  %v990_v46 = vld [vmem:[%s1483_s1 + $0xb0] sm:$0xff]  ;;  %v991_v47 = vld [vmem:[%s1483_s1 + $0xb8] sm:$0xff]  ;;  %v478_v48 = vpack.c.bf16 %v983_v45, %v982_v44  ;;  %v996_v51 = vld [vmem:[%s1483_s1 + $0xc0] sm:$0xff] }
  0x22   : > { %1061 = vmatmul.mubr.msk.bf16.vlgmr.msra.gmra.mrb[0].mxu1 %vm261_vm2, %v242_v23  ;;  %1065 = vmatpush3.bf16.msra.mxu0 %v360_v24  ;;  %v978_v49 = vld [vmem:[%s1302_s6 + $0x11] sm:$0xff]  ;;  %v979_v50 = vld [vmem:[%s1302_s6 + $0x19] sm:$0x3f]  ;;  %v536_v52 = vpack.c.bf16 %v991_v47, %v990_v46  ;;  %v997_v53 = vld [vmem:[%s1483_s1 + $0xc8] sm:$0xff] }
  0x23   : > { %1073 = vmatpush3.bf16.msra.mxu1 %v419_v25  ;;  %1066 = vmatprep.subr.bf16.mxu0 %v1205_v4  ;;  %v986_v54 = vld [vmem:[%s1302_s6 + $0x12] sm:$0xff]  ;;  %v987_v55 = vld [vmem:[%s1302_s6 + $0x1a] sm:$0x3f]  ;;  %v1004_v56 = vld [vmem:[%s1483_s1 + $0xe0] sm:$0xff]  ;;  %v471_v58 = vpack.c.bf16 %v979_v50, %v978_v49  ;;  %v594_v59 = vpack.c.bf16 %v997_v53, %v996_v51 }
  0x24   : > { %1074 = vmatprep.subr.bf16.mxu1 %v1205_v4  ;;  %1068 = vmatprep.mubr.msk.bf16.mxu0 %vm1206_vm1, %v1205_v4  ;;  %v1005_v57 = vld [vmem:[%s1483_s1 + $0xe8] sm:$0xff]  ;;  %v529_v60 = vpack.c.bf16 %v987_v55, %v986_v54  ;;  %v998_v62 = vld [vmem:[%s1483_s1 + $0xd0] sm:$0xff]  ;;  %v999_v63 = vld [vmem:[%s1483_s1 + $0xd8] sm:$0xff] }
  0x25   : > { %1076 = vmatprep.mubr.msk.bf16.mxu1 %vm1206_vm1, %v1205_v4  ;;  %v652_v61 = vpack.c.bf16 %v1005_v57, %v1004_v56  ;;  %v1006_v0 = vld [vmem:[%s1483_s1 + $0xf0] sm:$0xff]  ;;  %v1007_v1 = vld [vmem:[%s1483_s1 + $0xf8] sm:$0xff]  ;;  %v595_v2 = vpack.c.bf16 %v999_v63, %v998_v62  ;;  %v994_v3 = vld [vmem:[%s1302_s6 + $0x20] sm:$0xff] }
  0x26   : > { %1067 = vmatpush3.bf16.msra.mxu0 %v361_v30  ;;  %v995_v5 = vld [vmem:[%s1302_s6 + $0x28] sm:$0x3f]  ;;  %v1012_v6 = vld [vmem:[%s1483_s1 + $0x100] sm:$0xff]  ;;  %v653_v7 = vpack.c.bf16 %v1007_v1, %v1006_v0  ;;  %v1014_v14 = vld [vmem:[%s1483_s1 + $0x110] sm:$0xff] }
  0x27   : > { %1075 = vmatpush3.bf16.msra.mxu1 %v420_v34  ;;  %1080 = vmatprep.subr.bf16.mxu0 %v1205_v4  ;;  %v1013_v8 = vld [vmem:[%s1483_s1 + $0x108] sm:$0xff]  ;;  %v588_v11 = vpack.c.bf16 %v995_v5, %v994_v3  ;;  %v1015_v15 = vld [vmem:[%s1483_s1 + $0x118] sm:$0xff] }
  0x28   : > { %1088 = vmatprep.subr.bf16.mxu1 %v1205_v4  ;;  %v1002_v9 = vld [vmem:[%s1302_s6 + $0x21] sm:$0xff]  ;;  %v1003_v10 = vld [vmem:[%s1302_s6 + $0x29] sm:$0x3f]  ;;  %v710_v12 = vpack.c.bf16 %v1013_v8, %v1012_v6  ;;  %v711_v16 = vpack.c.bf16 %v1015_v15, %v1014_v14 }
  0x29   : > { %1069 = vmatmul.mubr.msk.bf16.vlgmr.msra.gmra.mrb[4].mxu0 %vm261_vm2, %v354_v40  ;;  %v646_v13 = vpack.c.bf16 %v1003_v10, %v1002_v9  ;;  %v1010_v17 = vld [vmem:[%s1302_s6 + $0x22] sm:$0xff]  ;;  %v1011_v18 = vld [vmem:[%s1302_s6 + $0x2a] sm:$0x3f] }
  0x2a   : > { %1081 = vmatpush3.bf16.msra.mxu0 %v477_v41  ;;  %1077 = vmatmul.mubr.msk.bf16.vlgmr.msra.gmra.mrb[4].mxu1 %vm261_vm2, %v413_v42  ;;  %v704_v19 = vpack.c.bf16 %v1011_v18, %v1010_v17 }
  0x2b   : > { %1089 = vmatpush3.bf16.msra.mxu1 %v535_v43  ;;  %1082 = vmatprep.subr.bf16.mxu0 %v1205_v4 }
  0x2c   : > { %1090 = vmatprep.subr.bf16.mxu1 %v1205_v4  ;;  %1084 = vmatprep.mubr.msk.bf16.mxu0 %vm1206_vm1, %v1205_v4 }
  0x2d   : > { %1092 = vmatprep.mubr.msk.bf16.mxu1 %vm1206_vm1, %v1205_v4 }
  0x2e   : > { %1083 = vmatpush3.bf16.msra.mxu0 %v478_v48 }
  0x2f   : > { %1091 = vmatpush3.bf16.msra.mxu1 %v536_v52  ;;  %1096 = vmatprep.subr.bf16.mxu0 %v1205_v4 }
  0x30   : > { %1104 = vmatprep.subr.bf16.mxu1 %v1205_v4 }
  0x31   : > { %1085 = vmatmul.mubr.msk.bf16.vlgmr.msra.gmra.mrb[8].mxu0 %vm261_vm2, %v471_v58 }
  0x32   : > { %1097 = vmatpush3.bf16.msra.mxu0 %v594_v59  ;;  %1093 = vmatmul.mubr.msk.bf16.vlgmr.msra.gmra.mrb[8].mxu1 %vm261_vm2, %v529_v60 }
  0x33   : > { %1105 = vmatpush3.bf16.msra.mxu1 %v652_v61  ;;  %1098 = vmatprep.subr.bf16.mxu0 %v1205_v4 }
  0x34   : > { %1106 = vmatprep.subr.bf16.mxu1 %v1205_v4  ;;  %1100 = vmatprep.mubr.msk.bf16.mxu0 %vm1206_vm1, %v1205_v4 }
  0x35   : > { %1108 = vmatprep.mubr.msk.bf16.mxu1 %vm1206_vm1, %v1205_v4 }
  0x36   : > { %1099 = vmatpush3.bf16.msra.mxu0 %v595_v2  ;;  %v1017_v2 = vld [vmem:[%s1484_s2] ss:$0 sm:$0xff] }
  0x37   : > { %1107 = vmatpush3.bf16.msra.mxu1 %v653_v7  ;;  %1112 = vmatprep.subr.bf16.mxu0 %v1205_v4 }
  0x39   : > { %1101 = vmatmul.mubr.msk.bf16.vlgmr.msra.gmra.mrb[12].mxu0 %vm261_vm2, %v588_v11 }
  0x3a   : > { %1113 = vmatpush3.bf16.msra.mxu0 %v710_v12  ;;  %1109 = vmatmul.mubr.msk.bf16.vlgmr.msra.gmra.mrb[12].mxu1 %vm261_vm2, %v646_v13 }
  0x3b   : > { %1114 = vmatprep.subr.bf16.mxu0 %v1205_v4  ;;  %1116 = vmatprep.mubr.msk.bf16.mxu0 %vm1206_vm1, %v1205_v4 }
  0x3e   : > { %1115 = vmatpush3.bf16.msra.mxu0 %v711_v16 }
  0x41   : > { %1117 = vmatmul.mubr.msk.bf16.vlgmr.msra.gmra.mrb[16].mxu0 %vm261_vm2, %v704_v19 }
  0xf4   : > { %v299_v20 = vpop.f32.mrb[0].mxu0 }
  0xf5   : > { %v343_v21 = vpop.f32.mrb[0].mxu1  ;;  %v1054_v22 = vpop.f32.mrb[1].mxu0 }
  0xf6   : > { %v344_v23 = vadd.f32 %v343_v21, %v299_v20  ;;  %v1062_v24 = vpop.f32.mrb[1].mxu1  ;;  %v302_v25 = vpop.f32.mrb[2].mxu0 }
  0xf7   : > { %v346_v26 = vpop.f32.mrb[2].mxu1  ;;  %v1055_v27 = vpop.f32.mrb[3].mxu0 }
  0xf8   : > { %v347_v28 = vadd.f32 %v346_v26, %v302_v25  ;;  %v1063_v29 = vpop.f32.mrb[3].mxu1 }
  0xfc   : > { %v399_v30 = vpop.f32.mrb[4].mxu0 }
  0xfd   : > { %v406_v31 = vadd.f32 %v399_v30, %v344_v23  ;;  %v1070_v32 = vpop.f32.mrb[5].mxu0  ;;  %v458_v33 = vpop.f32.mrb[4].mxu1 }
  0xfe   : > { %v402_v34 = vpop.f32.mrb[6].mxu0  ;;  %v1078_v4 = vpop.f32.mrb[5].mxu1 }
  0xff   : > { %v407_v35 = vadd.f32 %v402_v34, %v347_v28  ;;  %v465_v36 = vadd.f32 %v458_v33, %v406_v31  ;;  %v1071_v37 = vpop.f32.mrb[7].mxu0  ;;  %v461_v38 = vpop.f32.mrb[6].mxu1  ;;  %v770_v28 = vld [vmem:[%s1272_s8] sm:$0x1]  ;;  %v783_v31 = vld [vmem:[%s1272_s8 + $0x1] sm:$0x1] }
 0x100   : > { %v1079_v39 = vpop.f32.mrb[7].mxu1 }
 0x101   : > { %v466_v40 = vadd.f32 %v461_v38, %v407_v35 }
 0x104   : > { %v516_v41 = vpop.f32.mrb[8].mxu0 }
 0x105   : > { %v523_v42 = vadd.f32 %v516_v41, %v465_v36  ;;  %v1086_v43 = vpop.f32.mrb[9].mxu0  ;;  %v574_v44 = vpop.f32.mrb[8].mxu1 }
 0x106   : > { %v519_v45 = vpop.f32.mrb[10].mxu0  ;;  %v1094_v46 = vpop.f32.mrb[9].mxu1 }
 0x107   : > { %v524_v47 = vadd.f32 %v519_v45, %v466_v40  ;;  %v581_v48 = vadd.f32 %v574_v44, %v523_v42  ;;  %v1087_v49 = vpop.f32.mrb[11].mxu0  ;;  %v577_v50 = vpop.f32.mrb[10].mxu1 }
 0x108   : > { %v1095_v51 = vpop.f32.mrb[11].mxu1 }
 0x109   : > { %v582_v52 = vadd.f32 %v577_v50, %v524_v47 }
 0x10c   : > { %v633_v53 = vpop.f32.mrb[12].mxu0 }
 0x10d   : > { %v640_v54 = vadd.f32 %v633_v53, %v581_v48  ;;  %v1102_v55 = vpop.f32.mrb[13].mxu0  ;;  %v691_v56 = vpop.f32.mrb[12].mxu1 }
 0x10e   : > { %v636_v57 = vpop.f32.mrb[14].mxu0  ;;  %v1110_v58 = vpop.f32.mrb[13].mxu1 }
 0x10f   : > { %v641_v59 = vadd.f32 %v636_v57, %v582_v52  ;;  %v698_v60 = vadd.f32 %v691_v56, %v640_v54  ;;  %v1103_v61 = vpop.f32.mrb[15].mxu0  ;;  %v694_v62 = vpop.f32.mrb[14].mxu1 }
 0x110   : > { %v1111_v63 = vpop.f32.mrb[15].mxu1 }
 0x111   : > { %v699_v0 = vadd.f32 %v694_v62, %v641_v59 }
 0x114   : > { %v749_v1 = vpop.f32.mrb[16].mxu0 }
 0x115   : > { %v756_v3 = vadd.f32 %v749_v1, %v698_v60  ;;  %v1118_v5 = vpop.f32.mrb[17].mxu0 }
 0x116   : > { %v752_v6 = vpop.f32.mrb[18].mxu0 }
 0x117   : > { %v765_v7 = vadd.f32 %v1017_v2, %v756_v3  ;;  %v757_v8 = vadd.f32 %v752_v6, %v699_v0  ;;  %v1119_v9 = vpop.f32.mrb[19].mxu0 }
 0x119   : > { %767 = vst.msk [vmem:[%s1277_s11] sm:$0xff] %vm261_vm2, %v765_v7  ;;  %v784_v10 = vmul.f32 %v765_v7, %v765_v7  ;;  %v766_v11 = vadd.f32 %v1017_v2, %v757_v8  ;;  %v771_v12 = vsel %vm261_vm2, %v765_v7, 0.0 }
 0x11b   : > { %769 = vst.msk [vmem:[%s1277_s11 + $0x8] sm:$0x3f] %vm768_vm3, %v766_v11  ;;  %v772_v13 = vsel %vm768_vm3, %v766_v11, 0.0  ;;  %v785_v14 = vmul.f32 %v766_v11, %v766_v11  ;;  %v786_v16 = vsel %vm261_vm2, %v784_v10, 0.0 }
 0x11c   : > { %v773_v15 = vadd.f32 %v772_v13, %v771_v12 }
 0x11d   : > { %v787_v17 = vsel %vm768_vm3, %v785_v14, 0.0 }
 0x11e   : > { %v774_v18 = vrot.slane %v773_v15, 4  ;;  %v788_v19 = vadd.f32 %v787_v17, %v786_v16 }
 0x120   : > { %v775_v20 = vadd.f32 %v774_v18, %v773_v15  ;;  %v789_v21 = vrot.slane %v788_v19, 4 }
 0x122   : > { %v776_v22 = vrot.slane %v775_v20, 2  ;;  %v790_v23 = vadd.f32 %v789_v21, %v788_v19 }
 0x124   : > { %v777_v24 = vadd.f32 %v776_v22, %v775_v20  ;;  %v791_v25 = vrot.slane %v790_v23, 2 }
 0x126   : > { %v778_v26 = vrot.slane %v777_v24, 1  ;;  %v792_v27 = vadd.f32 %v791_v25, %v790_v23 }
 0x128   : > { %v779_v29 = vadd.f32 %v778_v26, %v777_v24  ;;  %v793_v30 = vrot.slane %v792_v27, 1 }
 0x12a   : > { %v780_v32 = vadd.f32 %v779_v29, %v770_v28  ;;  %v794_v33 = vadd.f32 %v793_v30, %v792_v27 }
 0x12c   : > { %782 = vst.msk [vmem:[%s1272_s8] sm:$0x1] %vm781_vm4, %v780_v32  ;;  %v795_v34 = vadd.f32 %v794_v33, %v783_v31 }
 0x12e   : > { %796 = vst.msk [vmem:[%s1272_s8 + $0x1] sm:$0x1] %vm781_vm4, %v795_v34 }
 0x12f PF: > { %s15_s19 = sadd.s32 1, %s1202_s19   ;;  %s1487_s15 = smov %s1194_s17 }
 0x130   : > { %p12_p8 = scmp.ge.s32.totalorder %s15_s19, 30   ;;  %s1488_s16 = smov %s1198_s18 }
 0x131   : > { %s1489_s17 = smov %s1492_s20  ;;  %s1490_s18 = smov %s1496_s21 }
 0x132   :  { %14 = sbr.rel (!%p12_p8) target bundleno = 3 (0x3), region = 95 }

// kernel: decoder2_forward.57
= control target key start
LH: loop header
LB: loop body
LE: loop exit
PB: predicated region body
PF: predicated region fallthrough
CT: control target
= control target key end

     0   :  { %s278_s0 = inlined_call_operand.vmem [shape: f32[104,128], index: 0, kind: input, shape index: {}]   ;;  %s279_s1 = inlined_call_operand.vmem [shape: f32[104,128], index: 1, kind: input, shape index: {}]   ;;  %s280_s2 = inlined_call_operand.vmem [shape: f32[1,128], index: 2, kind: input, shape index: {}]   ;;  %s281_s3 = inlined_call_operand.vmem [shape: f32[1,128], index: 3, kind: input, shape index: {}]   ;;  %s282_s4 = inlined_call_operand.vmem [shape: f32[104,128], index: 4, kind: output, shape index: {}]  }
   0x1   :  { %v17_v0 = vld [vmem:[%s278_s0] sm:$0xff]  ;;  %v18_v4 = vld [vmem:[%s278_s0 + $0x8] sm:$0xff]  ;;  %v19_v7 = vld [vmem:[%s278_s0 + $0x10] sm:$0xff] }
   0x2   :  { %v113_v1 = vld [vmem:[%s280_s2] ss:$0 sm:$0xff]  ;;  %v20_v8 = vld [vmem:[%s278_s0 + $0x18] sm:$0xff]  ;;  %v71_v10 = vld [vmem:[%s279_s1 + $0x8] sm:$0xff] }
   0x3   :  { %v149_v2 = vld [vmem:[%s281_s3] ss:$0 sm:$0xff]  ;;  %v37_v3 = vmul.f32 %v113_v1, %v17_v0  ;;  %v38_v6 = vmul.f32 %v113_v1, %v18_v4  ;;  %v39_v11 = vmul.f32 %v113_v1, %v19_v7  ;;  %v72_v12 = vld [vmem:[%s279_s1 + $0x10] sm:$0xff]  ;;  %v40_v13 = vmul.f32 %v113_v1, %v20_v8  ;;  %v73_v16 = vld [vmem:[%s279_s1 + $0x18] sm:$0xff] }
   0x4   :  { %v70_v5 = vld [vmem:[%s279_s1] sm:$0xff]  ;;  %v22_v18 = vld [vmem:[%s278_s0 + $0x28] sm:$0xff]  ;;  %v23_v19 = vld [vmem:[%s278_s0 + $0x30] sm:$0xff] }
   0x5   :  { %v57_v9 = vadd.f32 %v149_v2, %v37_v3  ;;  %v21_v14 = vld [vmem:[%s278_s0 + $0x20] sm:$0xff]  ;;  %v58_v15 = vadd.f32 %v149_v2, %v38_v6  ;;  %v59_v21 = vadd.f32 %v149_v2, %v39_v11  ;;  %v60_v22 = vadd.f32 %v149_v2, %v40_v13  ;;  %v24_v25 = vld [vmem:[%s278_s0 + $0x38] sm:$0xff]  ;;  %v75_v28 = vld [vmem:[%s279_s1 + $0x28] sm:$0xff] }
   0x6   :  { %v41_v17 = vmul.f32 %v113_v1, %v21_v14  ;;  %v74_v23 = vld [vmem:[%s279_s1 + $0x20] sm:$0xff]  ;;  %v42_v24 = vmul.f32 %v113_v1, %v22_v18  ;;  %v43_v29 = vmul.f32 %v113_v1, %v23_v19  ;;  %v44_v30 = vmul.f32 %v113_v1, %v24_v25  ;;  %v26_v32 = vld [vmem:[%s278_s0 + $0x48] sm:$0xff]  ;;  %v76_v36 = vld [vmem:[%s279_s1 + $0x30] sm:$0xff] }
   0x7   :  { %v83_v20 = vadd.f32 %v70_v5, %v57_v9  ;;  %v84_v26 = vadd.f32 %v71_v10, %v58_v15  ;;  %v25_v31 = vld [vmem:[%s278_s0 + $0x40] sm:$0xff]  ;;  %v85_v33 = vadd.f32 %v72_v12, %v59_v21  ;;  %v86_v34 = vadd.f32 %v73_v16, %v60_v22  ;;  %v77_v37 = vld [vmem:[%s279_s1 + $0x38] sm:$0xff]  ;;  %v27_v39 = vld [vmem:[%s278_s0 + $0x50] sm:$0xff] }
   0x8   :  { %v61_v27 = vadd.f32 %v149_v2, %v41_v17  ;;  %v62_v35 = vadd.f32 %v149_v2, %v42_v24  ;;  %v45_v38 = vmul.f32 %v113_v1, %v25_v31  ;;  %v63_v41 = vadd.f32 %v149_v2, %v43_v29  ;;  %v78_v43 = vld [vmem:[%s279_s1 + $0x40] sm:$0xff]  ;;  %v28_v45 = vld [vmem:[%s278_s0 + $0x58] sm:$0xff]  ;;  %v79_v49 = vld [vmem:[%s279_s1 + $0x48] sm:$0xff] }
   0x9   :  { %96 = vst [vmem:[%s282_s4] sm:$0xff] %v83_v20  ;;  %97 = vst [vmem:[%s282_s4 + $0x8] sm:$0xff] %v84_v26  ;;  %v64_v42 = vadd.f32 %v149_v2, %v44_v30  ;;  %v46_v44 = vmul.f32 %v113_v1, %v26_v32  ;;  %v29_v46 = vld [vmem:[%s278_s0 + $0x60] sm:$0xff]  ;;  %v47_v50 = vmul.f32 %v113_v1, %v27_v39  ;;  %v80_v55 = vld [vmem:[%s279_s1 + $0x50] sm:$0xff] }
   0xa   :  { %v87_v40 = vadd.f32 %v74_v23, %v61_v27  ;;  %98 = vst [vmem:[%s282_s4 + $0x10] sm:$0xff] %v85_v33  ;;  %99 = vst [vmem:[%s282_s4 + $0x18] sm:$0xff] %v86_v34  ;;  %v88_v47 = vadd.f32 %v75_v28, %v62_v35  ;;  %v65_v48 = vadd.f32 %v149_v2, %v45_v38  ;;  %v81_v56 = vld [vmem:[%s279_s1 + $0x58] sm:$0xff]  ;;  %v82_v61 = vld [vmem:[%s279_s1 + $0x60] sm:$0xff] }
   0xb   :  { %v48_v51 = vmul.f32 %v113_v1, %v28_v45  ;;  %v89_v52 = vadd.f32 %v76_v36, %v63_v41  ;;  %v90_v53 = vadd.f32 %v77_v37, %v64_v42  ;;  %v66_v54 = vadd.f32 %v149_v2, %v46_v44 }
   0xc   :  { %100 = vst [vmem:[%s282_s4 + $0x20] sm:$0xff] %v87_v40  ;;  %v49_v57 = vmul.f32 %v113_v1, %v29_v46  ;;  %101 = vst [vmem:[%s282_s4 + $0x28] sm:$0xff] %v88_v47  ;;  %v91_v58 = vadd.f32 %v78_v43, %v65_v48  ;;  %v67_v59 = vadd.f32 %v149_v2, %v47_v50 }
   0xd   :  { %v68_v60 = vadd.f32 %v149_v2, %v48_v51  ;;  %102 = vst [vmem:[%s282_s4 + $0x30] sm:$0xff] %v89_v52  ;;  %103 = vst [vmem:[%s282_s4 + $0x38] sm:$0xff] %v90_v53  ;;  %v92_v62 = vadd.f32 %v79_v49, %v66_v54 }
   0xe   :  { %v69_v63 = vadd.f32 %v149_v2, %v49_v57  ;;  %104 = vst [vmem:[%s282_s4 + $0x40] sm:$0xff] %v91_v58  ;;  %v93_v0 = vadd.f32 %v80_v55, %v67_v59 }
   0xf   :  { %v94_v1 = vadd.f32 %v81_v56, %v68_v60  ;;  %105 = vst [vmem:[%s282_s4 + $0x48] sm:$0xff] %v92_v62 }
  0x10   :  { %v95_v3 = vadd.f32 %v82_v61, %v69_v63  ;;  %106 = vst [vmem:[%s282_s4 + $0x50] sm:$0xff] %v93_v0 }
  0x11   :  { %107 = vst [vmem:[%s282_s4 + $0x58] sm:$0xff] %v94_v1 }
  0x12   :  { %108 = vst [vmem:[%s282_s4 + $0x60] sm:$0xff] %v95_v3 }

// kernel: decoder2_forward.63
= control target key start
LH: loop header
LB: loop body
LE: loop exit
PB: predicated region body
PF: predicated region fallthrough
CT: control target
= control target key end

     0   :  { %s324_s0 = inlined_call_operand.vmem [shape: f32[88,128], index: 0, kind: input, shape index: {}]   ;;  %s325_s1 = inlined_call_operand.vmem [shape: f32[1,128], index: 1, kind: input, shape index: {}]   ;;  %s326_s2 = inlined_call_operand.vmem [shape: f32[1,128], index: 2, kind: input, shape index: {}]   ;;  %s327_s3 = inlined_call_operand.vmem [shape: f32[88,128], index: 3, kind: output, shape index: {}]  }
   0x1   :  { %v14_v0 = vld [vmem:[%s324_s0] sm:$0xff]  ;;  %v15_v4 = vld [vmem:[%s324_s0 + $0x8] sm:$0xff]  ;;  %v16_v5 = vld [vmem:[%s324_s0 + $0x10] sm:$0xff] }
   0x2   :  { %v142_v1 = vld [vmem:[%s325_s1] ss:$0 sm:$0xff]  ;;  %v17_v6 = vld [vmem:[%s324_s0 + $0x18] sm:$0xff]  ;;  %v19_v11 = vld [vmem:[%s324_s0 + $0x28] sm:$0xff] }
   0x3   :  { %v143_v2 = vld [vmem:[%s326_s2] ss:$0 sm:$0xff]  ;;  %v32_v3 = vmul.f32 %v142_v1, %v14_v0  ;;  %v33_v7 = vmul.f32 %v142_v1, %v15_v4  ;;  %v34_v8 = vmul.f32 %v142_v1, %v16_v5  ;;  %v35_v9 = vmul.f32 %v142_v1, %v17_v6  ;;  %v20_v12 = vld [vmem:[%s324_s0 + $0x30] sm:$0xff]  ;;  %v21_v17 = vld [vmem:[%s324_s0 + $0x38] sm:$0xff] }
   0x4   :  { %v18_v10 = vld [vmem:[%s324_s0 + $0x20] sm:$0xff]  ;;  %v37_v15 = vmul.f32 %v142_v1, %v19_v11  ;;  %v38_v16 = vmul.f32 %v142_v1, %v20_v12  ;;  %v39_v21 = vmul.f32 %v142_v1, %v21_v17  ;;  %v23_v31 = vld [vmem:[%s324_s0 + $0x48] sm:$0xff]  ;;  %v24_v36 = vld [vmem:[%s324_s0 + $0x50] sm:$0xff] }
   0x5   :  { %v235_v13 = vadd.f32 %v143_v2, %v32_v3  ;;  %v36_v14 = vmul.f32 %v142_v1, %v18_v10  ;;  %v240_v18 = vadd.f32 %v143_v2, %v33_v7  ;;  %v242_v19 = vadd.f32 %v143_v2, %v34_v8  ;;  %v22_v26 = vld [vmem:[%s324_s0 + $0x40] sm:$0xff] }
   0x6   :  { %v244_v20 = vadd.f32 %v143_v2, %v35_v9  ;;  %v249_v24 = vadd.f32 %v143_v2, %v37_v15  ;;  %v251_v25 = vadd.f32 %v143_v2, %v38_v16  ;;  %v259_v30 = vadd.f32 %v143_v2, %v39_v21 }
   0x7   :  { %v61_v22 = vsub.f32 0.0, %v235_v13  ;;  %v247_v23 = vadd.f32 %v143_v2, %v36_v14  ;;  %v62_v27 = vsub.f32 0.0, %v240_v18  ;;  %v63_v28 = vsub.f32 0.0, %v242_v19 }
   0x8   :  { %v64_v29 = vsub.f32 0.0, %v244_v20  ;;  %v66_v34 = vsub.f32 0.0, %v249_v24  ;;  %v67_v35 = vsub.f32 0.0, %v251_v25  ;;  %v40_v40 = vmul.f32 %v142_v1, %v22_v26 }
   0x9   :  { %v72_v32 = vmul.f32 1.442695, %v61_v22  ;;  %v65_v33 = vsub.f32 0.0, %v247_v23  ;;  %v74_v37 = vmul.f32 1.442695, %v62_v27  ;;  %v68_v43 = vsub.f32 0.0, %v259_v30 }
   0xa   :  { %v76_v38 = vmul.f32 1.442695, %v63_v28  ;;  %v78_v39 = vmul.f32 1.442695, %v64_v29  ;;  %v82_v42 = vmul.f32 1.442695, %v66_v34  ;;  %v271_v44 = vadd.f32 %v143_v2, %v40_v40 }
   0xb   :  { %144 = vpow2.f32 %v72_v32  ;;  %v80_v41 = vmul.f32 1.442695, %v65_v33  ;;  %v41_v45 = vmul.f32 %v142_v1, %v23_v31  ;;  %v84_v46 = vmul.f32 1.442695, %v67_v35 }
   0xc   :  { %146 = vpow2.f32 %v74_v37  ;;  %v42_v47 = vmul.f32 %v142_v1, %v24_v36  ;;  %v86_v48 = vmul.f32 1.442695, %v68_v43  ;;  %v69_v49 = vsub.f32 0.0, %v271_v44 }
   0xd   :  { %148 = vpow2.f32 %v76_v38  ;;  %v274_v50 = vadd.f32 %v143_v2, %v41_v45 }
   0xe   :  { %150 = vpow2.f32 %v78_v39  ;;  %v276_v51 = vadd.f32 %v143_v2, %v42_v47  ;;  %v88_v52 = vmul.f32 1.442695, %v69_v49 }
   0xf   :  { %152 = vpow2.f32 %v80_v41  ;;  %v70_v53 = vsub.f32 0.0, %v274_v50 }
  0x10   :  { %154 = vpow2.f32 %v82_v42  ;;  %v71_v54 = vsub.f32 0.0, %v276_v51 }
  0x11   :  { %156 = vpow2.f32 %v84_v46  ;;  %v90_v55 = vmul.f32 1.442695, %v70_v53 }
  0x12   :  { %158 = vpow2.f32 %v86_v48  ;;  %v92_v56 = vmul.f32 1.442695, %v71_v54 }
  0x13   :  { %160 = vpow2.f32 %v88_v52 }
  0x14   :  { %162 = vpow2.f32 %v90_v55 }
  0x15   :  { %v145_v57 = vpop.eup %144  ;;  %164 = vpow2.f32 %v92_v56 }
  0x16   :  { %v147_v58 = vpop.eup %146  ;;  %v94_v59 = vadd.f32 1.0, %v145_v57 }
  0x17   :  { %v149_v60 = vpop.eup %148  ;;  %v95_v61 = vadd.f32 1.0, %v147_v58 }
  0x18   :  { %v151_v62 = vpop.eup %150  ;;  %166 = vrcp.f32 %v94_v59  ;;  %v96_v63 = vadd.f32 1.0, %v149_v60 }
  0x19   :  { %v153_v0 = vpop.eup %152  ;;  %168 = vrcp.f32 %v95_v61  ;;  %v97_v1 = vadd.f32 1.0, %v151_v62 }
  0x1a   :  { %v155_v2 = vpop.eup %154  ;;  %170 = vrcp.f32 %v96_v63  ;;  %v98_v3 = vadd.f32 1.0, %v153_v0 }
  0x1b   :  { %v157_v4 = vpop.eup %156  ;;  %172 = vrcp.f32 %v97_v1  ;;  %v99_v5 = vadd.f32 1.0, %v155_v2 }
  0x1c   :  { %v159_v6 = vpop.eup %158  ;;  %174 = vrcp.f32 %v98_v3  ;;  %v100_v7 = vadd.f32 1.0, %v157_v4 }
  0x1d   :  { %v161_v8 = vpop.eup %160  ;;  %176 = vrcp.f32 %v99_v5  ;;  %v101_v9 = vadd.f32 1.0, %v159_v6 }
  0x1e   :  { %v163_v10 = vpop.eup %162  ;;  %178 = vrcp.f32 %v100_v7  ;;  %v102_v11 = vadd.f32 1.0, %v161_v8 }
  0x1f   :  { %v165_v12 = vpop.eup %164  ;;  %180 = vrcp.f32 %v101_v9  ;;  %v103_v14 = vadd.f32 1.0, %v163_v10 }
  0x20   :  { %182 = vrcp.f32 %v102_v11  ;;  %v104_v15 = vadd.f32 1.0, %v165_v12 }
  0x21   :  { %184 = vrcp.f32 %v103_v14 }
  0x22   :  { %v167_v16 = vpop.eup %166  ;;  %186 = vrcp.f32 %v104_v15 }
  0x23   :  { %v169_v17 = vpop.eup %168  ;;  %v116_v21 = vmul.f32 %v167_v16, %v235_v13 }
  0x24   :  { %v171_v22 = vpop.eup %170  ;;  %v117_v26 = vmul.f32 %v169_v17, %v240_v18 }
  0x25   :  { %v173_v27 = vpop.eup %172  ;;  %127 = vst [vmem:[%s327_s3] sm:$0xff] %v116_v21  ;;  %v118_v28 = vmul.f32 %v171_v22, %v242_v19 }
  0x26   :  { %v175_v29 = vpop.eup %174  ;;  %128 = vst [vmem:[%s327_s3 + $0x8] sm:$0xff] %v117_v26  ;;  %v119_v31 = vmul.f32 %v173_v27, %v244_v20 }
  0x27   :  { %v177_v32 = vpop.eup %176  ;;  %129 = vst [vmem:[%s327_s3 + $0x10] sm:$0xff] %v118_v28  ;;  %v120_v13 = vmul.f32 %v175_v29, %v247_v23 }
  0x28   :  { %v179_v18 = vpop.eup %178  ;;  %130 = vst [vmem:[%s327_s3 + $0x18] sm:$0xff] %v119_v31  ;;  %v121_v19 = vmul.f32 %v177_v32, %v249_v24 }
  0x29   :  { %v181_v33 = vpop.eup %180  ;;  %131 = vst [vmem:[%s327_s3 + $0x20] sm:$0xff] %v120_v13  ;;  %v122_v20 = vmul.f32 %v179_v18, %v251_v25 }
  0x2a   :  { %v183_v34 = vpop.eup %182  ;;  %132 = vst [vmem:[%s327_s3 + $0x28] sm:$0xff] %v121_v19  ;;  %v123_v23 = vmul.f32 %v181_v33, %v259_v30 }
  0x2b   :  { %v185_v35 = vpop.eup %184  ;;  %133 = vst [vmem:[%s327_s3 + $0x30] sm:$0xff] %v122_v20  ;;  %v124_v24 = vmul.f32 %v183_v34, %v271_v44 }
  0x2c   :  { %v187_v36 = vpop.eup %186  ;;  %134 = vst [vmem:[%s327_s3 + $0x38] sm:$0xff] %v123_v23  ;;  %v125_v25 = vmul.f32 %v185_v35, %v274_v50 }
  0x2d   :  { %135 = vst [vmem:[%s327_s3 + $0x40] sm:$0xff] %v124_v24  ;;  %v126_v30 = vmul.f32 %v187_v36, %v276_v51 }
  0x2e   :  { %136 = vst [vmem:[%s327_s3 + $0x48] sm:$0xff] %v125_v25 }
  0x2f   :  { %137 = vst [vmem:[%s327_s3 + $0x50] sm:$0xff] %v126_v30 }

// kernel: decoder2_forward.62
= control target key start
LH: loop header
LB: loop body
LE: loop exit
PB: predicated region body
PF: predicated region fallthrough
CT: control target
= control target key end

     0   :  { %s1222_s15 = smov 0   ;;  %s1224_s16 = smov 0   ;;  %s1472_s0 = inlined_call_operand.vmem [shape: f32[2,225,32], index: 0, kind: input, shape index: {}]   ;;  %s1473_s1 = inlined_call_operand.vmem [shape: f32[9,32,32], index: 1, kind: input, shape index: {}]   ;;  %s1474_s2 = inlined_call_operand.vmem [shape: f32[1,32], index: 2, kind: input, shape index: {}]   ;;  %s1475_s3 = inlined_call_operand.vmem [shape: f32[2,13,13,32], index: 3, kind: output, shape index: {0}]   ;;  %s1476_s4 = inlined_call_operand.vmem [shape: f32[2,2,32], index: 4, kind: output, shape index: {1}]  }
   0x1   :  { %s1226_s17 = smov 0   ;;  %s1228_s18 = smov 0  }
   0x2   :  { %s1230_s19 = smov 0  }
   0x3 LB: > { %s24_s20 = sadd.s32 1, %s1184_s17  ;;  %s27_s21 = sadd.s32 1, %s1188_s18  ;;  %s1192_s19 = sphi %s1230_s19, %s15_s19   ;;  %s1188_s18 = sphi %s1228_s18, %s1480_s18   ;;  %s1184_s17 = sphi %s1226_s17, %s1479_s17   ;;  %s1180_s16 = sphi %s1224_s16, %s1478_s16   ;;  %s1176_s15 = sphi %s1222_s15, %s1477_s15  }
   0x4   : > { %p25_p0 = scmp.ge.s32.totalorder %s24_s20, 13  ;;  %p944_p1 = scmp.ge.s32.totalorder %s1192_s19, 1 }
   0x5   : > { %p179_p2 = scmp.lt.s32.totalorder %s1192_s19, 27 }
   0x6   : > { %s1482_s20 = smov (%p25_p0, %s24_s20), 0  ;;  %s1484_s21 = smov (!%p25_p0, %s27_s21), %s1188_s18 }
   0x7   : > { %p180_p3 = pnand %p944_p1, %p179_p2  ;;  %p29_p4 = scmp.ge.s32.totalorder %s1484_s21, 2 }
   0x8   : > { %p213_p5 = scmp.lt.s32.totalorder (!%p180_p3), %s1180_s16, 1  ;;  %p220_p6 = scmp.lt.s32.totalorder (!%p180_p3), %s1176_s15, 12 }
   0x9   : > { %s1486_s21 = smov (%p29_p4, %s1484_s21), 0  ;;  %183 = sbr.rel (%p180_p3) target bundleno = 308 (0x134), region = 32 }
   0xa   : > { %p949_p7 = scmp.ne.s32.totalorder (!%p180_p3), %s1176_s15, 0 }
  0x10   : > { %s1488_s16 = smov (!%p213_p5, %s1180_s16), 1  ;;  %vm236_vm0 = vcmask (!%p949_p7), 254976   ;;  %v1194_v0 = vmov (!%p949_p7), 0.0  }
  0x11   : > { %s221_s22 = scalar_select %p220_p6, %s1176_s15, 12 }
  0x12   : > { %s1109_s23 = smul.u32 232, %s1488_s16  ;;  %s948_s24 = sshll.u32 %s1488_s16, 1 }
  0x13   : > { %s946_s25 = sshll.u32 %s221_s22, 1  ;;  %s1110_s26 = smul.u32 26, %s1488_s16 }
  0x14   : > { %s217_s29 = scalar_lea.vmem %s1472_s0, %s1109_s23  ;;  %s1262_s6 = scalar_lea.vmem %s1476_s4, %s948_s24 }
  0x15   : > { %s224_s7 = sadd.s32 %s1110_s26, %s946_s25  ;;  %235 = sbr.rel (%p949_p7) target bundleno = 28 (0x1c), region = 36  ;;  %237 = vst.msk [vmem:[%s1262_s6] sm:$0x3] (!%p949_p7), %vm236_vm0, %v1194_v0 }
  0x16   : > { %s947_s8 = sshll.u32 %s224_s7, 3 }
  0x17   : > { %s1267_s11 = scalar_lea.vmem %s1475_s3, %s947_s8 }
  0x1c PF: > { %v952_v1 = vld [vmem:[%s1473_s1 + $0x20] sm:$0xff]  ;;  %v953_v2 = vld [vmem:[%s1473_s1 + $0x28] sm:$0xff]  ;;  %s238_s24 = smul.u32 15, %s1176_s15  ;;  %v1195_v4 = vmov 0.0   ;;  %v954_v7 = vld [vmem:[%s1473_s1 + $0x30] sm:$0xff]  ;;  %vm1196_vm1 = vmmov 0  }
  0x1d   : > { %v243_v3 = vld [vmem:[%s1473_s1] sm:$0xff]  ;;  %1037 = vmatprep.subr.bf16.mxu0 %v1195_v4  ;;  %1045 = vmatprep.subr.bf16.mxu1 %v1195_v4  ;;  %v259_v5 = vpack.c.bf16 %v953_v2, %v952_v1  ;;  %v244_v6 = vld [vmem:[%s1473_s1 + $0x8] sm:$0xff]  ;;  %v955_v8 = vld [vmem:[%s1473_s1 + $0x38] sm:$0xff]  ;;  %vm261_vm2 = vcmask 261120   ;;  %vm768_vm3 = vcmask 258048   ;;  %vm781_vm4 = vcmask 253952  }
  0x1e   : > { %v247_v9 = vpack.c.bf16 %v244_v6, %v243_v3  ;;  %v245_v10 = vld [vmem:[%s1473_s1 + $0x10] sm:$0xff]  ;;  %v246_v11 = vld [vmem:[%s1473_s1 + $0x18] sm:$0xff]  ;;  %1041 = vmatprep.mubr.msk.bf16.mxu0 %vm1196_vm1, %v1195_v4  ;;  %1049 = vmatprep.mubr.msk.bf16.mxu1 %vm1196_vm1, %v1195_v4  ;;  %s1302_s10 = scalar_lea.vmem %s217_s29, %s238_s24  ;;  %v260_v12 = vpack.c.bf16 %v955_v8, %v954_v7  ;;  %v960_v15 = vld [vmem:[%s1473_s1 + $0x40] sm:$0xff] }
  0x1f   : > { %1038 = vmatpush3.bf16.msra.mxu0 %v259_v5  ;;  %v950_v13 = vld [vmem:[%s1302_s10 + $0x1] sm:$0xff]  ;;  %v951_v14 = vld [vmem:[%s1302_s10 + $0x9] sm:$0x1f]  ;;  %v248_v16 = vpack.c.bf16 %v246_v11, %v245_v10  ;;  %v962_v26 = vld [vmem:[%s1473_s1 + $0x50] sm:$0xff] }
  0x20   : > { %1046 = vmatpush3.bf16.msra.mxu1 %v247_v9  ;;  %1039 = vmatprep.subr.bf16.mxu0 %v1195_v4  ;;  %v240_v17 = vld [vmem:[%s1302_s10] sm:$0xff]  ;;  %v241_v18 = vld [vmem:[%s1302_s10 + $0x8] sm:$0x1f]  ;;  %v253_v22 = vpack.c.bf16 %v951_v14, %v950_v13  ;;  %v963_v27 = vld [vmem:[%s1473_s1 + $0x58] sm:$0xff] }
  0x21   : > { %v961_v19 = vld [vmem:[%s1473_s1 + $0x48] sm:$0xff]  ;;  %1047 = vmatprep.subr.bf16.mxu1 %v1195_v4  ;;  %v967_v20 = vld [vmem:[%s1473_s1 + $0x60] sm:$0xff]  ;;  %v242_v23 = vpack.c.bf16 %v241_v18, %v240_v17  ;;  %v969_v28 = vld [vmem:[%s1473_s1 + $0x70] sm:$0xff]  ;;  %v361_v30 = vpack.c.bf16 %v963_v27, %v962_v26 }
  0x22   : > { %v968_v21 = vld [vmem:[%s1473_s1 + $0x68] sm:$0xff]  ;;  %v360_v24 = vpack.c.bf16 %v961_v19, %v960_v15  ;;  %v970_v29 = vld [vmem:[%s1473_s1 + $0x78] sm:$0xff]  ;;  %v974_v33 = vld [vmem:[%s1473_s1 + $0x80] sm:$0xff] }
  0x23   : > { %1040 = vmatpush3.bf16.msra.mxu0 %v260_v12  ;;  %v419_v25 = vpack.c.bf16 %v968_v21, %v967_v20  ;;  %v958_v31 = vld [vmem:[%s1302_s10 + $0x2] sm:$0xff]  ;;  %v959_v32 = vld [vmem:[%s1302_s10 + $0xa] sm:$0x1f]  ;;  %v420_v34 = vpack.c.bf16 %v970_v29, %v969_v28  ;;  %v965_v36 = vld [vmem:[%s1302_s10 + $0xf] sm:$0xff] }
  0x24   : > { %1048 = vmatpush3.bf16.msra.mxu1 %v248_v16  ;;  %1053 = vmatprep.subr.bf16.mxu0 %v1195_v4  ;;  %v975_v35 = vld [vmem:[%s1473_s1 + $0x88] sm:$0xff]  ;;  %v966_v37 = vld [vmem:[%s1302_s10 + $0x17] sm:$0x1f]  ;;  %v981_v38 = vld [vmem:[%s1473_s1 + $0xa0] sm:$0xff]  ;;  %v354_v40 = vpack.c.bf16 %v959_v32, %v958_v31 }
  0x25   : > { %1061 = vmatprep.subr.bf16.mxu1 %v1195_v4  ;;  %v982_v39 = vld [vmem:[%s1473_s1 + $0xa8] sm:$0xff]  ;;  %v477_v41 = vpack.c.bf16 %v975_v35, %v974_v33  ;;  %v413_v42 = vpack.c.bf16 %v966_v37, %v965_v36  ;;  %v976_v44 = vld [vmem:[%s1473_s1 + $0x90] sm:$0xff]  ;;  %v977_v45 = vld [vmem:[%s1473_s1 + $0x98] sm:$0xff] }
  0x26   : > { %1042 = vmatmul.mubr.msk.bf16.vlgmr.msra.gmra.mrb[0].mxu0 %vm261_vm2, %v253_v22  ;;  %v535_v43 = vpack.c.bf16 %v982_v39, %v981_v38  ;;  %v983_v46 = vld [vmem:[%s1473_s1 + $0xb0] sm:$0xff]  ;;  %v984_v47 = vld [vmem:[%s1473_s1 + $0xb8] sm:$0xff]  ;;  %v478_v48 = vpack.c.bf16 %v977_v45, %v976_v44  ;;  %v988_v51 = vld [vmem:[%s1473_s1 + $0xc0] sm:$0xff] }
  0x27   : > { %1050 = vmatmul.mubr.msk.bf16.vlgmr.msra.gmra.mrb[0].mxu1 %vm261_vm2, %v242_v23  ;;  %1054 = vmatpush3.bf16.msra.mxu0 %v360_v24  ;;  %v972_v49 = vld [vmem:[%s1302_s10 + $0x10] sm:$0xff]  ;;  %v973_v50 = vld [vmem:[%s1302_s10 + $0x18] sm:$0x1f]  ;;  %v536_v52 = vpack.c.bf16 %v984_v47, %v983_v46  ;;  %v989_v53 = vld [vmem:[%s1473_s1 + $0xc8] sm:$0xff] }
  0x28   : > { %1062 = vmatpush3.bf16.msra.mxu1 %v419_v25  ;;  %1055 = vmatprep.subr.bf16.mxu0 %v1195_v4  ;;  %v979_v54 = vld [vmem:[%s1302_s10 + $0x11] sm:$0xff]  ;;  %v980_v55 = vld [vmem:[%s1302_s10 + $0x19] sm:$0x1f]  ;;  %v995_v56 = vld [vmem:[%s1473_s1 + $0xe0] sm:$0xff]  ;;  %v471_v58 = vpack.c.bf16 %v973_v50, %v972_v49  ;;  %v594_v59 = vpack.c.bf16 %v989_v53, %v988_v51 }
  0x29   : > { %1063 = vmatprep.subr.bf16.mxu1 %v1195_v4  ;;  %1057 = vmatprep.mubr.msk.bf16.mxu0 %vm1196_vm1, %v1195_v4  ;;  %v996_v57 = vld [vmem:[%s1473_s1 + $0xe8] sm:$0xff]  ;;  %v529_v60 = vpack.c.bf16 %v980_v55, %v979_v54  ;;  %v990_v62 = vld [vmem:[%s1473_s1 + $0xd0] sm:$0xff]  ;;  %v991_v63 = vld [vmem:[%s1473_s1 + $0xd8] sm:$0xff] }
  0x2a   : > { %1065 = vmatprep.mubr.msk.bf16.mxu1 %vm1196_vm1, %v1195_v4  ;;  %v652_v61 = vpack.c.bf16 %v996_v57, %v995_v56  ;;  %v997_v0 = vld [vmem:[%s1473_s1 + $0xf0] sm:$0xff]  ;;  %v998_v1 = vld [vmem:[%s1473_s1 + $0xf8] sm:$0xff]  ;;  %v595_v2 = vpack.c.bf16 %v991_v63, %v990_v62  ;;  %v987_v5 = vld [vmem:[%s1302_s10 + $0x26] sm:$0x1f] }
  0x2b   : > { %1056 = vmatpush3.bf16.msra.mxu0 %v361_v30  ;;  %v986_v3 = vld [vmem:[%s1302_s10 + $0x1e] sm:$0xff]  ;;  %v653_v7 = vpack.c.bf16 %v998_v1, %v997_v0  ;;  %v1003_v8 = vld [vmem:[%s1473_s1 + $0x108] sm:$0xff]  ;;  %v1004_v14 = vld [vmem:[%s1473_s1 + $0x110] sm:$0xff] }
  0x2c   : > { %1064 = vmatpush3.bf16.msra.mxu1 %v420_v34  ;;  %1069 = vmatprep.subr.bf16.mxu0 %v1195_v4  ;;  %v1002_v6 = vld [vmem:[%s1473_s1 + $0x100] sm:$0xff]  ;;  %v588_v11 = vpack.c.bf16 %v987_v5, %v986_v3  ;;  %v1005_v15 = vld [vmem:[%s1473_s1 + $0x118] sm:$0xff]  ;;  %v1001_v18 = vld [vmem:[%s1302_s10 + $0x28] sm:$0x1f] }
  0x2d   : > { %1077 = vmatprep.subr.bf16.mxu1 %v1195_v4  ;;  %v993_v9 = vld [vmem:[%s1302_s10 + $0x1f] sm:$0xff]  ;;  %v994_v10 = vld [vmem:[%s1302_s10 + $0x27] sm:$0x1f]  ;;  %v710_v12 = vpack.c.bf16 %v1003_v8, %v1002_v6  ;;  %v711_v16 = vpack.c.bf16 %v1005_v15, %v1004_v14 }
  0x2e   : > { %1058 = vmatmul.mubr.msk.bf16.vlgmr.msra.gmra.mrb[4].mxu0 %vm261_vm2, %v354_v40  ;;  %v646_v13 = vpack.c.bf16 %v994_v10, %v993_v9  ;;  %v1000_v17 = vld [vmem:[%s1302_s10 + $0x20] sm:$0xff] }
  0x2f   : > { %1070 = vmatpush3.bf16.msra.mxu0 %v477_v41  ;;  %1066 = vmatmul.mubr.msk.bf16.vlgmr.msra.gmra.mrb[4].mxu1 %vm261_vm2, %v413_v42  ;;  %v704_v19 = vpack.c.bf16 %v1001_v18, %v1000_v17 }
  0x30   : > { %1078 = vmatpush3.bf16.msra.mxu1 %v535_v43  ;;  %1071 = vmatprep.subr.bf16.mxu0 %v1195_v4 }
  0x31   : > { %1079 = vmatprep.subr.bf16.mxu1 %v1195_v4  ;;  %1073 = vmatprep.mubr.msk.bf16.mxu0 %vm1196_vm1, %v1195_v4 }
  0x32   : > { %1081 = vmatprep.mubr.msk.bf16.mxu1 %vm1196_vm1, %v1195_v4 }
  0x33   : > { %1072 = vmatpush3.bf16.msra.mxu0 %v478_v48 }
  0x34   : > { %1080 = vmatpush3.bf16.msra.mxu1 %v536_v52  ;;  %1085 = vmatprep.subr.bf16.mxu0 %v1195_v4 }
  0x35   : > { %1093 = vmatprep.subr.bf16.mxu1 %v1195_v4 }
  0x36   : > { %1074 = vmatmul.mubr.msk.bf16.vlgmr.msra.gmra.mrb[8].mxu0 %vm261_vm2, %v471_v58 }
  0x37   : > { %1086 = vmatpush3.bf16.msra.mxu0 %v594_v59  ;;  %1082 = vmatmul.mubr.msk.bf16.vlgmr.msra.gmra.mrb[8].mxu1 %vm261_vm2, %v529_v60 }
  0x38   : > { %1094 = vmatpush3.bf16.msra.mxu1 %v652_v61  ;;  %1087 = vmatprep.subr.bf16.mxu0 %v1195_v4 }
  0x39   : > { %1095 = vmatprep.subr.bf16.mxu1 %v1195_v4  ;;  %1089 = vmatprep.mubr.msk.bf16.mxu0 %vm1196_vm1, %v1195_v4 }
  0x3a   : > { %1097 = vmatprep.mubr.msk.bf16.mxu1 %vm1196_vm1, %v1195_v4 }
  0x3b   : > { %1088 = vmatpush3.bf16.msra.mxu0 %v595_v2  ;;  %v1007_v2 = vld [vmem:[%s1474_s2] ss:$0 sm:$0xff] }
  0x3c   : > { %1096 = vmatpush3.bf16.msra.mxu1 %v653_v7  ;;  %1101 = vmatprep.subr.bf16.mxu0 %v1195_v4 }
  0x3e   : > { %1090 = vmatmul.mubr.msk.bf16.vlgmr.msra.gmra.mrb[12].mxu0 %vm261_vm2, %v588_v11 }
  0x3f   : > { %1102 = vmatpush3.bf16.msra.mxu0 %v710_v12  ;;  %1098 = vmatmul.mubr.msk.bf16.vlgmr.msra.gmra.mrb[12].mxu1 %vm261_vm2, %v646_v13 }
  0x40   : > { %1103 = vmatprep.subr.bf16.mxu0 %v1195_v4  ;;  %1105 = vmatprep.mubr.msk.bf16.mxu0 %vm1196_vm1, %v1195_v4 }
  0x43   : > { %1104 = vmatpush3.bf16.msra.mxu0 %v711_v16 }
  0x46   : > { %1106 = vmatmul.mubr.msk.bf16.vlgmr.msra.gmra.mrb[16].mxu0 %vm261_vm2, %v704_v19 }
  0xf9   : > { %v299_v20 = vpop.f32.mrb[0].mxu0 }
  0xfa   : > { %v343_v21 = vpop.f32.mrb[0].mxu1  ;;  %v1043_v22 = vpop.f32.mrb[1].mxu0 }
  0xfb   : > { %v344_v23 = vadd.f32 %v343_v21, %v299_v20  ;;  %v1051_v24 = vpop.f32.mrb[1].mxu1  ;;  %v302_v25 = vpop.f32.mrb[2].mxu0 }
  0xfc   : > { %v346_v26 = vpop.f32.mrb[2].mxu1  ;;  %v1044_v27 = vpop.f32.mrb[3].mxu0 }
  0xfd   : > { %v347_v28 = vadd.f32 %v346_v26, %v302_v25  ;;  %v1052_v29 = vpop.f32.mrb[3].mxu1 }
 0x101   : > { %v399_v30 = vpop.f32.mrb[4].mxu0 }
 0x102   : > { %v406_v31 = vadd.f32 %v399_v30, %v344_v23  ;;  %v1059_v32 = vpop.f32.mrb[5].mxu0  ;;  %v458_v33 = vpop.f32.mrb[4].mxu1 }
 0x103   : > { %v402_v34 = vpop.f32.mrb[6].mxu0  ;;  %v1067_v4 = vpop.f32.mrb[5].mxu1 }
 0x104   : > { %v407_v35 = vadd.f32 %v402_v34, %v347_v28  ;;  %v465_v36 = vadd.f32 %v458_v33, %v406_v31  ;;  %v1060_v37 = vpop.f32.mrb[7].mxu0  ;;  %v461_v38 = vpop.f32.mrb[6].mxu1  ;;  %v770_v28 = vld [vmem:[%s1262_s6] sm:$0x1]  ;;  %v783_v31 = vld [vmem:[%s1262_s6 + $0x1] sm:$0x1] }
 0x105   : > { %v1068_v39 = vpop.f32.mrb[7].mxu1 }
 0x106   : > { %v466_v40 = vadd.f32 %v461_v38, %v407_v35 }
 0x109   : > { %v516_v41 = vpop.f32.mrb[8].mxu0 }
 0x10a   : > { %v523_v42 = vadd.f32 %v516_v41, %v465_v36  ;;  %v1075_v43 = vpop.f32.mrb[9].mxu0  ;;  %v574_v44 = vpop.f32.mrb[8].mxu1 }
 0x10b   : > { %v519_v45 = vpop.f32.mrb[10].mxu0  ;;  %v1083_v46 = vpop.f32.mrb[9].mxu1 }
 0x10c   : > { %v524_v47 = vadd.f32 %v519_v45, %v466_v40  ;;  %v581_v48 = vadd.f32 %v574_v44, %v523_v42  ;;  %v1076_v49 = vpop.f32.mrb[11].mxu0  ;;  %v577_v50 = vpop.f32.mrb[10].mxu1 }
 0x10d   : > { %v1084_v51 = vpop.f32.mrb[11].mxu1 }
 0x10e   : > { %v582_v52 = vadd.f32 %v577_v50, %v524_v47 }
 0x111   : > { %v633_v53 = vpop.f32.mrb[12].mxu0 }
 0x112   : > { %v640_v54 = vadd.f32 %v633_v53, %v581_v48  ;;  %v1091_v55 = vpop.f32.mrb[13].mxu0  ;;  %v691_v56 = vpop.f32.mrb[12].mxu1 }
 0x113   : > { %v636_v57 = vpop.f32.mrb[14].mxu0  ;;  %v1099_v58 = vpop.f32.mrb[13].mxu1 }
 0x114   : > { %v641_v59 = vadd.f32 %v636_v57, %v582_v52  ;;  %v698_v60 = vadd.f32 %v691_v56, %v640_v54  ;;  %v1092_v61 = vpop.f32.mrb[15].mxu0  ;;  %v694_v62 = vpop.f32.mrb[14].mxu1 }
 0x115   : > { %v1100_v63 = vpop.f32.mrb[15].mxu1 }
 0x116   : > { %v699_v0 = vadd.f32 %v694_v62, %v641_v59 }
 0x119   : > { %v749_v1 = vpop.f32.mrb[16].mxu0 }
 0x11a   : > { %v756_v3 = vadd.f32 %v749_v1, %v698_v60  ;;  %v1107_v5 = vpop.f32.mrb[17].mxu0 }
 0x11b   : > { %v752_v6 = vpop.f32.mrb[18].mxu0 }
 0x11c   : > { %v765_v7 = vadd.f32 %v1007_v2, %v756_v3  ;;  %v757_v8 = vadd.f32 %v752_v6, %v699_v0  ;;  %v1108_v9 = vpop.f32.mrb[19].mxu0 }
 0x11e   : > { %767 = vst.msk [vmem:[%s1267_s11] sm:$0xff] %vm261_vm2, %v765_v7  ;;  %v784_v10 = vmul.f32 %v765_v7, %v765_v7  ;;  %v766_v11 = vadd.f32 %v1007_v2, %v757_v8  ;;  %v771_v12 = vsel %vm261_vm2, %v765_v7, 0.0 }
 0x120   : > { %769 = vst.msk [vmem:[%s1267_s11 + $0x8] sm:$0x1f] %vm768_vm3, %v766_v11  ;;  %v772_v13 = vsel %vm768_vm3, %v766_v11, 0.0  ;;  %v785_v14 = vmul.f32 %v766_v11, %v766_v11  ;;  %v786_v16 = vsel %vm261_vm2, %v784_v10, 0.0 }
 0x121   : > { %v773_v15 = vadd.f32 %v772_v13, %v771_v12 }
 0x122   : > { %v787_v17 = vsel %vm768_vm3, %v785_v14, 0.0 }
 0x123   : > { %v774_v18 = vrot.slane %v773_v15, 4  ;;  %v788_v19 = vadd.f32 %v787_v17, %v786_v16 }
 0x125   : > { %v775_v20 = vadd.f32 %v774_v18, %v773_v15  ;;  %v789_v21 = vrot.slane %v788_v19, 4 }
 0x127   : > { %v776_v22 = vrot.slane %v775_v20, 2  ;;  %v790_v23 = vadd.f32 %v789_v21, %v788_v19 }
 0x129   : > { %v777_v24 = vadd.f32 %v776_v22, %v775_v20  ;;  %v791_v25 = vrot.slane %v790_v23, 2 }
 0x12b   : > { %v778_v26 = vrot.slane %v777_v24, 1  ;;  %v792_v27 = vadd.f32 %v791_v25, %v790_v23 }
 0x12d   : > { %v779_v29 = vadd.f32 %v778_v26, %v777_v24  ;;  %v793_v30 = vrot.slane %v792_v27, 1 }
 0x12f   : > { %v780_v32 = vadd.f32 %v779_v29, %v770_v28  ;;  %v794_v33 = vadd.f32 %v793_v30, %v792_v27 }
 0x131   : > { %782 = vst.msk [vmem:[%s1262_s6] sm:$0x1] %vm781_vm4, %v780_v32  ;;  %v795_v34 = vadd.f32 %v794_v33, %v783_v31 }
 0x133   : > { %796 = vst.msk [vmem:[%s1262_s6 + $0x1] sm:$0x1] %vm781_vm4, %v795_v34 }
 0x134 PF: > { %s15_s19 = sadd.s32 1, %s1192_s19   ;;  %s1477_s15 = smov %s1184_s17 }
 0x135   : > { %p12_p8 = scmp.ge.s32.totalorder %s15_s19, 28   ;;  %s1478_s16 = smov %s1188_s18 }
 0x136   : > { %s1479_s17 = smov %s1482_s20  ;;  %s1480_s18 = smov %s1486_s21 }
 0x137   :  { %14 = sbr.rel (!%p12_p8) target bundleno = 3 (0x3), region = 95 }

// kernel: decoder2_forward.64
= control target key start
LH: loop header
LB: loop body
LE: loop exit
PB: predicated region body
PF: predicated region fallthrough
CT: control target
= control target key end

     0   :  { %s505_s9 = smov 0   ;;  %s579_s0 = inlined_call_operand.vmem [shape: f32[26,13], index: 0, kind: input, shape index: {}]   ;;  %s580_s1 = inlined_call_operand.vmem [shape: f32[2,13,416], index: 1, kind: input, shape index: {}]   ;;  %s581_s2 = inlined_call_operand.vmem [shape: f32[2,26,416], index: 2, kind: output, shape index: {}]  }
   0x1 LB: > { %s433_s10 = sadd.s32 4294967295, %s486_s9   ;;  %p437_p0 = scmp.ge.s32.totalorder %s486_s9, 1  ;;  %s486_s9 = sphi %s505_s9, %s12_s9  }
   0x2   : > { %p112_p1 = scmp.lt.s32.totalorder %s486_s9, 3 }
   0x4   : > { %p113_p2 = pnand %p437_p0, %p112_p1 }
   0x5   : > { %p134_p3 = scmp.lt.s32.totalorder (!%p113_p2), %s433_s10, 1  ;;  %v488_v0 = vmov (!%p113_p2), 0.0   ;;  %vm169_vm0 = vcmask (!%p113_p2), 1044480   ;;  %vm489_vm1 = vmmov (!%p113_p2), 1   ;;  %v144_v14 = vld [vmem:[%s579_s0] sm:$0xff] (!%p113_p2)  ;;  %vm156_vm3 = vcmask (!%p113_p2), 105472  }
   0x6   : > { %116 = sbr.rel (%p113_p2) target bundleno = 251 (0xfb), region = 28  ;;  %246 = vmatprep.mubr.f32.mxu0 (!%p113_p2), %v488_v0  ;;  %335 = vmatprep.mubr.f32.mxu1 (!%p113_p2), %v488_v0  ;;  %vm519_vm2 = vmpackc.low (!%p113_p2), %vm169_vm0, %vm489_vm1  ;;  %v145_v15 = vld [vmem:[%s579_s0 + $0x8] sm:$0xff] (!%p113_p2)  ;;  %v146_v16 = vld [vmem:[%s579_s0 + $0x10] sm:$0xff] (!%p113_p2)  ;;  %vm363_vm4 = vcmask (!%p113_p2), 261120   ;;  %vm376_vm5 = vcmask (!%p113_p2), 254976  }
   0x7   : > { %v147_v17 = vld [vmem:[%s579_s0 + $0x18] sm:$0x3] (!%p113_p2) }
   0xd   : > { %s585_s10 = smov (!%p134_p3, %s433_s10), 1 }
   0xe   : > { %s456_s11 = sshll.u32 %s585_s10, 6  ;;  %s457_s23 = sshll.u32 %s585_s10, 7 }
   0xf   : > { %s138_s14 = scalar_lea.vmem %s580_s1, %s456_s11  ;;  %s555_s26 = scalar_lea.vmem %s581_s2, %s457_s23 }
  0x10   : > { %v149_v2 = vld [vmem:[%s138_s14 + $0x8] sm:$0xff]  ;;  %v151_v4 = vld [vmem:[%s138_s14 + $0x18] sm:$0xff]  ;;  %v148_v7 = vld [vmem:[%s138_s14] sm:$0xff] }
  0x11   : > { %v153_v3 = vld [vmem:[%s138_s14 + $0x28] sm:$0x1f]  ;;  %v155_v6 = vld [vmem:[%s138_s14 + $0x38] sm:$0x1f]  ;;  %v152_v8 = vld [vmem:[%s138_s14 + $0x20] sm:$0x1f] }
  0x12   : > { %v458_v5 = vpack.c.bf16 %v153_v3, %v149_v2  ;;  %v464_v9 = vpack.c.bf16 %v155_v6, %v151_v4  ;;  %v461_v10 = vpack.c.bf16 %v152_v8, %v148_v7  ;;  %v150_v11 = vld [vmem:[%s138_s14 + $0x10] sm:$0xff] }
  0x13   : > { %v154_v12 = vld [vmem:[%s138_s14 + $0x30] sm:$0x1f] }
  0x14   : > { %460 = vmatprep.subr.msk.bf16.mxu0 %vm519_vm2, %v458_v5  ;;  %v467_v13 = vpack.c.bf16 %v154_v12, %v150_v11  ;;  %466 = vmatprep.subr.msk.bf16.mxu1 %vm519_vm2, %v464_v9 }
  0x15   : > { %463 = vmatpush1.bf16.msk.msra.mxu0 %vm519_vm2, %v461_v10 }
  0x16   : > { %469 = vmatpush1.bf16.msk.msra.mxu1 %vm519_vm2, %v467_v13 }
  0x18   : > { %444 = vmatmul.mubr.msk.f32.vlgmr.msra.gmra.mrb[0].mxu0 %vm156_vm3, %v144_v14 }
  0x19   : > { %450 = vmatmul.mubr.msk.f32.vlgmr.msra.gmra.mrb[0].mxu1 %vm156_vm3, %v144_v14  ;;  %252 = vmatprep.mubr.f32.mxu0 %v488_v0 }
  0x1a   : > { %341 = vmatprep.mubr.f32.mxu1 %v488_v0 }
  0x1c   : > { %445 = vmatmul.mubr.msk.f32.gmra.mrb[2].mxu0 %vm156_vm3, %v145_v15 }
  0x1d   : > { %451 = vmatmul.mubr.msk.f32.gmra.mrb[2].mxu1 %vm156_vm3, %v145_v15  ;;  %258 = vmatprep.mubr.f32.mxu0 %v488_v0 }
  0x1e   : > { %347 = vmatprep.mubr.f32.mxu1 %v488_v0 }
  0x20   : > { %446 = vmatmul.mubr.msk.f32.gmra.mrb[4].mxu0 %vm156_vm3, %v146_v16 }
  0x21   : > { %452 = vmatmul.mubr.msk.f32.gmra.mrb[4].mxu1 %vm156_vm3, %v146_v16  ;;  %264 = vmatprep.mubr.f32.mxu0 %v488_v0 }
  0x22   : > { %353 = vmatprep.mubr.f32.mxu1 %v488_v0 }
  0x24   : > { %447 = vmatmul.mubr.msk.f32.gmra.mrb[6].mxu0 %vm156_vm3, %v147_v17 }
  0x25   : > { %453 = vmatmul.mubr.msk.f32.gmra.mrb[6].mxu1 %vm156_vm3, %v147_v17 }
  0xeb   : > { %v248_v18 = vpop.f32.mrb[0].mxu0 }
  0xec   : > { %360 = vst [vmem:[%s555_s26] sm:$0xff] %v248_v18  ;;  %v337_v19 = vpop.f32.mrb[0].mxu1  ;;  %v250_v20 = vpop.f32.mrb[1].mxu0 }
  0xed   : > { %362 = vst [vmem:[%s555_s26 + $0x10] sm:$0xff] %v337_v19  ;;  %361 = vst [vmem:[%s555_s26 + $0x8] sm:$0xff] %v250_v20  ;;  %v339_v21 = vpop.f32.mrb[1].mxu1 }
  0xee   : > { %364 = vst.msk [vmem:[%s555_s26 + $0x18] sm:$0xff] %vm363_vm4, %v339_v21 }
  0xef   : > { %v254_v22 = vpop.f32.mrb[2].mxu0 }
  0xf0   : > { %365 = vst [vmem:[%s555_s26 + $0x20] sm:$0xff] %v254_v22  ;;  %v343_v23 = vpop.f32.mrb[2].mxu1  ;;  %v256_v24 = vpop.f32.mrb[3].mxu0 }
  0xf1   : > { %367 = vst [vmem:[%s555_s26 + $0x30] sm:$0xff] %v343_v23  ;;  %366 = vst [vmem:[%s555_s26 + $0x28] sm:$0xff] %v256_v24  ;;  %v345_v25 = vpop.f32.mrb[3].mxu1 }
  0xf2   : > { %368 = vst.msk [vmem:[%s555_s26 + $0x38] sm:$0xff] %vm363_vm4, %v345_v25 }
  0xf3   : > { %v260_v26 = vpop.f32.mrb[4].mxu0 }
  0xf4   : > { %369 = vst [vmem:[%s555_s26 + $0x40] sm:$0xff] %v260_v26  ;;  %v349_v27 = vpop.f32.mrb[4].mxu1  ;;  %v262_v28 = vpop.f32.mrb[5].mxu0 }
  0xf5   : > { %371 = vst [vmem:[%s555_s26 + $0x50] sm:$0xff] %v349_v27  ;;  %370 = vst [vmem:[%s555_s26 + $0x48] sm:$0xff] %v262_v28  ;;  %v351_v29 = vpop.f32.mrb[5].mxu1 }
  0xf6   : > { %372 = vst.msk [vmem:[%s555_s26 + $0x58] sm:$0xff] %vm363_vm4, %v351_v29 }
  0xf7   : > { %v266_v30 = vpop.f32.mrb[6].mxu0 }
  0xf8   : > { %373 = vst [vmem:[%s555_s26 + $0x60] sm:$0x3] %v266_v30  ;;  %v355_v31 = vpop.f32.mrb[6].mxu1  ;;  %v268_v32 = vpop.f32.mrb[7].mxu0 }
  0xf9   : > { %375 = vst [vmem:[%s555_s26 + $0x70] sm:$0x3] %v355_v31  ;;  %374 = vst [vmem:[%s555_s26 + $0x68] sm:$0x3] %v268_v32  ;;  %v357_v33 = vpop.f32.mrb[7].mxu1 }
  0xfa   : > { %377 = vst.msk [vmem:[%s555_s26 + $0x78] sm:$0x3] %vm376_vm5, %v357_v33 }
  0xfb PF: > { %s12_s9 = sadd.s32 1, %s486_s9  }
  0xfc   : > { %p9_p4 = scmp.ge.s32.totalorder %s12_s9, 4  }
  0xfe   :  { %11 = sbr.rel (!%p9_p4) target bundleno = 1 (0x1), region = 58 }

// kernel: decoder2_forward.65
= control target key start
LH: loop header
LB: loop body
LE: loop exit
PB: predicated region body
PF: predicated region fallthrough
CT: control target
= control target key end

     0   :  { %s786_s9 = smov 0   ;;  %s889_s0 = inlined_call_operand.vmem [shape: f32[26,13], index: 0, kind: input, shape index: {}]   ;;  %s890_s1 = inlined_call_operand.vmem [shape: f32[52,13,32], index: 1, kind: input, shape index: {}]   ;;  %s891_s2 = inlined_call_operand.vmem [shape: f32[52,26,32], index: 2, kind: output, shape index: {}]  }
   0x1 LB: > { %s612_s10 = sadd.s32 4294967295, %s768_s9   ;;  %p616_p0 = scmp.ge.s32.totalorder %s768_s9, 1  ;;  %s768_s9 = sphi %s786_s9, %s12_s9  }
   0x2   : > { %p114_p1 = scmp.lt.s32.totalorder %s768_s9, 14 }
   0x4   : > { %p115_p2 = pnand %p616_p0, %p114_p1 }
   0x5   : > { %s617_s11 = sshll.u32 (!%p115_p2), %s612_s10, 2  ;;  %v152_v0 = vld [vmem:[%s889_s0] sm:$0xff] (!%p115_p2)  ;;  %vm158_vm0 = vcmask (!%p115_p2), 105472   ;;  %vm171_vm1 = vcmask (!%p115_p2), 1044480   ;;  %vm770_vm2 = vmmov (!%p115_p2), 1   ;;  %v153_v14 = vld [vmem:[%s889_s0 + $0x8] sm:$0xff] (!%p115_p2) }
   0x6   : > { %118 = sbr.rel (%p115_p2) target bundleno = 250 (0xfa), region = 28  ;;  %p139_p3 = scmp.lt.s32.totalorder (!%p115_p2), %s617_s11, 51  ;;  %693 = vmatprep.mubr.msk.f32.mxu0 (!%p115_p2), %vm158_vm0, %v152_v0  ;;  %703 = vmatprep.mubr.msk.f32.mxu1 (!%p115_p2), %vm158_vm0, %v152_v0  ;;  %vm805_vm3 = vmpackc.low (!%p115_p2), %vm171_vm1, %vm770_vm2  ;;  %v154_v15 = vld [vmem:[%s889_s0 + $0x10] sm:$0xff] (!%p115_p2)  ;;  %v155_v16 = vld [vmem:[%s889_s0 + $0x18] sm:$0x3] (!%p115_p2)  ;;  %vm260_vm4 = vcmask (!%p115_p2), 261120  }
   0x7   : > { %vm264_vm5 = vcmask (!%p115_p2), 254976  }
   0xd   : > { %s895_s11 = smov (!%p139_p3, %s617_s11), 51 }
   0xe   : > { %s663_s14 = sshll.u32 %s895_s11, 4  ;;  %s664_s24 = sshll.u32 %s895_s11, 5 }
   0xf   : > { %s143_s17 = scalar_lea.vmem %s890_s1, %s663_s14  ;;  %s852_s27 = scalar_lea.vmem %s891_s2, %s664_s24 }
  0x10   : > { %v156_v2 = vld [vmem:[%s143_s17] sm:$0xff]  ;;  %v157_v3 = vld [vmem:[%s143_s17 + $0x8] sm:$0x1f]  ;;  %v628_v4 = vld [vmem:[%s143_s17 + $0x10] sm:$0xff] }
  0x11   : > { %v729_v5 = vpack.c.bf16 %v157_v3, %v156_v2  ;;  %v629_v6 = vld [vmem:[%s143_s17 + $0x18] sm:$0x1f]  ;;  %v639_v7 = vld [vmem:[%s143_s17 + $0x20] sm:$0xff]  ;;  %v640_v8 = vld [vmem:[%s143_s17 + $0x28] sm:$0x1f] }
  0x12   : > { %v735_v9 = vpack.c.bf16 %v629_v6, %v628_v4  ;;  %v741_v10 = vpack.c.bf16 %v640_v8, %v639_v7  ;;  %v650_v11 = vld [vmem:[%s143_s17 + $0x30] sm:$0xff]  ;;  %v651_v12 = vld [vmem:[%s143_s17 + $0x38] sm:$0x1f] }
  0x13   : > { %731 = vmatprep.subr.msk.bf16.mxu0 %vm805_vm3, %v729_v5  ;;  %v747_v13 = vpack.c.bf16 %v651_v12, %v650_v11 }
  0x14   : > { %737 = vmatprep.subr.msk.bf16.mxu1 %vm805_vm3, %v735_v9  ;;  %734 = vmatpush3.bf16.msk.msra.mxu0 %vm805_vm3, %v729_v5 }
  0x15   : > { %740 = vmatpush3.bf16.msk.msra.mxu1 %vm805_vm3, %v735_v9  ;;  %743 = vmatprep.subr.msk.bf16.mxu0 %vm805_vm3, %v741_v10 }
  0x16   : > { %749 = vmatprep.subr.msk.bf16.mxu1 %vm805_vm3, %v747_v13 }
  0x17   : > { %694 = vmatmul.mubr.msk.f32.vlgmr.msra.gmra.mrb[0].mxu0 %vm158_vm0, %v153_v14 }
  0x18   : > { %704 = vmatmul.mubr.msk.f32.vlgmr.msra.gmra.mrb[0].mxu1 %vm158_vm0, %v153_v14  ;;  %746 = vmatpush3.bf16.msk.msra.mxu0 %vm805_vm3, %v741_v10 }
  0x19   : > { %752 = vmatpush3.bf16.msk.msra.mxu1 %vm805_vm3, %v747_v13  ;;  %696 = vmatprep.mubr.msk.f32.mxu0 %vm158_vm0, %v154_v15 }
  0x1a   : > { %706 = vmatprep.mubr.msk.f32.mxu1 %vm158_vm0, %v154_v15 }
  0x1b   : > { %697 = vmatmul.mubr.msk.f32.gmra.mrb[2].mxu0 %vm158_vm0, %v155_v16 }
  0x1c   : > { %707 = vmatmul.mubr.msk.f32.gmra.mrb[2].mxu1 %vm158_vm0, %v155_v16  ;;  %713 = vmatprep.mubr.msk.f32.mxu0 %vm158_vm0, %v152_v0 }
  0x1d   : > { %723 = vmatprep.mubr.msk.f32.mxu1 %vm158_vm0, %v152_v0 }
  0x1f   : > { %714 = vmatmul.mubr.msk.f32.vlgmr.msra.gmra.mrb[4].mxu0 %vm158_vm0, %v153_v14 }
  0x20   : > { %724 = vmatmul.mubr.msk.f32.vlgmr.msra.gmra.mrb[4].mxu1 %vm158_vm0, %v153_v14  ;;  %716 = vmatprep.mubr.msk.f32.mxu0 %vm158_vm0, %v154_v15 }
  0x21   : > { %726 = vmatprep.mubr.msk.f32.mxu1 %vm158_vm0, %v154_v15 }
  0x23   : > { %717 = vmatmul.mubr.msk.f32.gmra.mrb[6].mxu0 %vm158_vm0, %v155_v16 }
  0x24   : > { %727 = vmatmul.mubr.msk.f32.gmra.mrb[6].mxu1 %vm158_vm0, %v155_v16 }
  0xea   : > { %v695_v17 = vpop.f32.mrb[0].mxu0 }
  0xeb   : > { %262 = vst.msk [vmem:[%s852_s27 + $0x8] sm:$0xff] %vm260_vm4, %v695_v17  ;;  %v705_v18 = vpop.f32.mrb[0].mxu1  ;;  %v241_v19 = vpop.f32.mrb[1].mxu0 }
  0xec   : > { %636 = vst.msk [vmem:[%s852_s27 + $0x28] sm:$0xff] %vm260_vm4, %v705_v18  ;;  %261 = vst.msk [vmem:[%s852_s27] sm:$0xff] %vm260_vm4, %v241_v19  ;;  %v338_v20 = vpop.f32.mrb[1].mxu1 }
  0xed   : > { %635 = vst.msk [vmem:[%s852_s27 + $0x20] sm:$0xff] %vm260_vm4, %v338_v20 }
  0xee   : > { %v698_v21 = vpop.f32.mrb[2].mxu0 }
  0xef   : > { %265 = vst.msk [vmem:[%s852_s27 + $0x18] sm:$0x3] %vm264_vm5, %v698_v21  ;;  %v708_v22 = vpop.f32.mrb[2].mxu1  ;;  %v251_v23 = vpop.f32.mrb[3].mxu0 }
  0xf0   : > { %638 = vst.msk [vmem:[%s852_s27 + $0x38] sm:$0x3] %vm264_vm5, %v708_v22  ;;  %v348_v24 = vpop.f32.mrb[3].mxu1 }
  0xf1   : > { %263 = vst.msk [vmem:[%s852_s27 + $0x10] sm:$0xff] %vm260_vm4, %v251_v23  ;;  %637 = vst.msk [vmem:[%s852_s27 + $0x30] sm:$0xff] %vm260_vm4, %v348_v24 }
  0xf2   : > { %v715_v25 = vpop.f32.mrb[4].mxu0 }
  0xf3   : > { %647 = vst.msk [vmem:[%s852_s27 + $0x48] sm:$0xff] %vm260_vm4, %v715_v25  ;;  %v725_v26 = vpop.f32.mrb[4].mxu1  ;;  %v434_v27 = vpop.f32.mrb[5].mxu0 }
  0xf4   : > { %658 = vst.msk [vmem:[%s852_s27 + $0x68] sm:$0xff] %vm260_vm4, %v725_v26  ;;  %646 = vst.msk [vmem:[%s852_s27 + $0x40] sm:$0xff] %vm260_vm4, %v434_v27  ;;  %v530_v28 = vpop.f32.mrb[5].mxu1 }
  0xf5   : > { %657 = vst.msk [vmem:[%s852_s27 + $0x60] sm:$0xff] %vm260_vm4, %v530_v28 }
  0xf6   : > { %v718_v29 = vpop.f32.mrb[6].mxu0 }
  0xf7   : > { %649 = vst.msk [vmem:[%s852_s27 + $0x58] sm:$0x3] %vm264_vm5, %v718_v29  ;;  %v728_v30 = vpop.f32.mrb[6].mxu1  ;;  %v444_v31 = vpop.f32.mrb[7].mxu0 }
  0xf8   : > { %660 = vst.msk [vmem:[%s852_s27 + $0x78] sm:$0x3] %vm264_vm5, %v728_v30  ;;  %v540_v32 = vpop.f32.mrb[7].mxu1 }
  0xf9   : > { %648 = vst.msk [vmem:[%s852_s27 + $0x50] sm:$0xff] %vm260_vm4, %v444_v31  ;;  %659 = vst.msk [vmem:[%s852_s27 + $0x70] sm:$0xff] %vm260_vm4, %v540_v32 }
  0xfa PF: > { %s12_s9 = sadd.s32 1, %s768_s9  }
  0xfb   : > { %p9_p4 = scmp.ge.s32.totalorder %s12_s9, 15  }
  0xfd   :  { %11 = sbr.rel (!%p9_p4) target bundleno = 1 (0x1), region = 64 }

// kernel: decoder2_forward.66
= control target key start
LH: loop header
LB: loop body
LE: loop exit
PB: predicated region body
PF: predicated region fallthrough
CT: control target
= control target key end

     0   :  { %s1438_s15 = smov 0   ;;  %s1440_s16 = smov 0   ;;  %s1690_s0 = inlined_call_operand.vmem [shape: f32[2,784,32], index: 0, kind: input, shape index: {}]   ;;  %s1691_s1 = inlined_call_operand.vmem [shape: f32[9,32,32], index: 1, kind: input, shape index: {}]   ;;  %s1692_s2 = inlined_call_operand.vmem [shape: f32[1,32], index: 2, kind: input, shape index: {}]   ;;  %s1693_s3 = inlined_call_operand.vmem [shape: f32[2,26,26,32], index: 3, kind: output, shape index: {0}]   ;;  %s1694_s4 = inlined_call_operand.vmem [shape: f32[2,2,32], index: 4, kind: output, shape index: {1}]  }
   0x1   :  { %s1442_s17 = smov 0   ;;  %s1444_s18 = smov 0  }
   0x2   :  { %s1446_s19 = smov 0  }
   0x3 LB: > { %s24_s20 = sadd.s32 1, %s1402_s17  ;;  %s27_s21 = sadd.s32 1, %s1406_s18  ;;  %s1410_s19 = sphi %s1446_s19, %s15_s19   ;;  %s1406_s18 = sphi %s1444_s18, %s1698_s18   ;;  %s1402_s17 = sphi %s1442_s17, %s1697_s17   ;;  %s1398_s16 = sphi %s1440_s16, %s1696_s16   ;;  %s1394_s15 = sphi %s1438_s15, %s1695_s15  }
   0x4   : > { %p25_p0 = scmp.ge.s32.totalorder %s24_s20, 26  ;;  %p1098_p1 = scmp.ge.s32.totalorder %s1410_s19, 1 }
   0x5   : > { %p179_p2 = scmp.lt.s32.totalorder %s1410_s19, 53 }
   0x6   : > { %s1700_s20 = smov (%p25_p0, %s24_s20), 0  ;;  %s1702_s21 = smov (!%p25_p0, %s27_s21), %s1406_s18 }
   0x7   : > { %p180_p3 = pnand %p1098_p1, %p179_p2  ;;  %p29_p4 = scmp.ge.s32.totalorder %s1702_s21, 2 }
   0x8   : > { %p213_p5 = scmp.lt.s32.totalorder (!%p180_p3), %s1398_s16, 1  ;;  %p220_p6 = scmp.lt.s32.totalorder (!%p180_p3), %s1394_s15, 25 }
   0x9   : > { %s1704_s21 = smov (%p29_p4, %s1702_s21), 0  ;;  %183 = sbr.rel (%p180_p3) target bundleno = 331 (0x14b), region = 32 }
   0xa   : > { %p1103_p7 = scmp.ne.s32.totalorder (!%p180_p3), %s1394_s15, 0 }
  0x10   : > { %s1706_s16 = smov (!%p213_p5, %s1398_s16), 1  ;;  %vm236_vm0 = vcmask (!%p1103_p7), 254976   ;;  %v1412_v0 = vmov (!%p1103_p7), 0.0  }
  0x11   : > { %s221_s22 = scalar_select %p220_p6, %s1394_s15, 25 }
  0x12   : > { %s1329_s23 = smul.u32 784, %s1706_s16  ;;  %s1102_s24 = sshll.u32 %s1706_s16, 1 }
  0x13   : > { %s1100_s25 = sshll.u32 %s221_s22, 2  ;;  %s1330_s26 = smul.u32 104, %s1706_s16 }
  0x14   : > { %s217_s29 = scalar_lea.vmem %s1690_s0, %s1329_s23  ;;  %s1478_s6 = scalar_lea.vmem %s1694_s4, %s1102_s24 }
  0x15   : > { %s224_s7 = sadd.s32 %s1330_s26, %s1100_s25  ;;  %235 = sbr.rel (%p1103_p7) target bundleno = 28 (0x1c), region = 36  ;;  %237 = vst.msk [vmem:[%s1478_s6] sm:$0x3] (!%p1103_p7), %vm236_vm0, %v1412_v0 }
  0x16   : > { %s1101_s8 = sshll.u32 %s224_s7, 3 }
  0x17   : > { %s1483_s11 = scalar_lea.vmem %s1693_s3, %s1101_s8 }
  0x1c PF: > { %v1108_v1 = vld [vmem:[%s1691_s1 + $0x20] sm:$0xff]  ;;  %v1109_v2 = vld [vmem:[%s1691_s1 + $0x28] sm:$0xff]  ;;  %s238_s24 = smul.u32 28, %s1394_s15  ;;  %v1110_v6 = vld [vmem:[%s1691_s1 + $0x30] sm:$0xff]  ;;  %vm267_vm1 = vcmask 261120   ;;  %vm912_vm2 = vcmask 254976  }
  0x1d   : > { %v1140_v3 = vld [vmem:[%s1691_s1 + $0x80] sm:$0xff]  ;;  %v265_v4 = vpack.c.bf16 %v1109_v2, %v1108_v1  ;;  %v1141_v5 = vld [vmem:[%s1691_s1 + $0x88] sm:$0xff]  ;;  %v1111_v7 = vld [vmem:[%s1691_s1 + $0x38] sm:$0xff]  ;;  %vm929_vm3 = vcmask 253952  }
  0x1e   : > { %v540_v8 = vpack.c.bf16 %v1141_v5, %v1140_v3  ;;  %v266_v9 = vpack.c.bf16 %v1111_v7, %v1110_v6  ;;  %v1142_v10 = vld [vmem:[%s1691_s1 + $0x90] sm:$0xff]  ;;  %v1143_v11 = vld [vmem:[%s1691_s1 + $0x98] sm:$0xff]  ;;  %s1512_s10 = scalar_lea.vmem %s217_s29, %s238_s24  ;;  %v1150_v12 = vld [vmem:[%s1691_s1 + $0xa0] sm:$0xff] }
  0x1f   : > { %1225 = vmatprep.subr.bf16.mxu1 %v265_v4  ;;  %v541_v13 = vpack.c.bf16 %v1143_v11, %v1142_v10  ;;  %v1104_v14 = vld [vmem:[%s1512_s10 + $0x1] sm:$0xff]  ;;  %v1105_v15 = vld [vmem:[%s1512_s10 + $0x9] sm:$0xff]  ;;  %v1106_v19 = vld [vmem:[%s1512_s10 + $0x11] sm:$0xff] }
  0x20   : > { %v1136_v16 = vld [vmem:[%s1512_s10 + $0x1d] sm:$0xff]  ;;  %1257 = vmatprep.subr.bf16.mxu0 %v540_v8  ;;  %1226 = vmatpush3.bf16.msra.mxu1 %v265_v4  ;;  %v258_v17 = vpack.c.bf16 %v1105_v15, %v1104_v14  ;;  %v1137_v18 = vld [vmem:[%s1512_s10 + $0x25] sm:$0xff]  ;;  %v1107_v20 = vld [vmem:[%s1512_s10 + $0x19] sm:$0x3] }
  0x21   : > { %1258 = vmatpush3.bf16.msra.mxu0 %v540_v8  ;;  %1227 = vmatprep.subr.bf16.mxu1 %v266_v9  ;;  %v533_v21 = vpack.c.bf16 %v1137_v18, %v1136_v16  ;;  %v1138_v22 = vld [vmem:[%s1512_s10 + $0x2d] sm:$0xff]  ;;  %v1139_v23 = vld [vmem:[%s1512_s10 + $0x35] sm:$0x3]  ;;  %v246_v26 = vld [vmem:[%s1691_s1] sm:$0xff]  ;;  %v259_v29 = vpack.c.bf16 %v1107_v20, %v1106_v19 }
  0x22   : > { %v1151_v24 = vld [vmem:[%s1691_s1 + $0xa8] sm:$0xff]  ;;  %1259 = vmatprep.subr.bf16.mxu0 %v541_v13  ;;  %1229 = vmatprep.mubr.msk.bf16.mxu1 %vm267_vm1, %v258_v17  ;;  %v1152_v28 = vld [vmem:[%s1691_s1 + $0xb0] sm:$0xff]  ;;  %v1153_v31 = vld [vmem:[%s1691_s1 + $0xb8] sm:$0xff]  ;;  %v534_v34 = vpack.c.bf16 %v1139_v23, %v1138_v22 }
  0x23   : > { %v614_v25 = vpack.c.bf16 %v1151_v24, %v1150_v12  ;;  %v247_v27 = vld [vmem:[%s1691_s1 + $0x8] sm:$0xff]  ;;  %1261 = vmatprep.mubr.msk.bf16.mxu0 %vm267_vm1, %v533_v21  ;;  %v248_v32 = vld [vmem:[%s1691_s1 + $0x10] sm:$0xff]  ;;  %v249_v33 = vld [vmem:[%s1691_s1 + $0x18] sm:$0xff]  ;;  %v615_v40 = vpack.c.bf16 %v1153_v31, %v1152_v28 }
  0x24   : > { %v250_v30 = vpack.c.bf16 %v247_v27, %v246_v26  ;;  %1228 = vmatpush3.bf16.msra.mxu1 %v266_v9  ;;  %v240_v35 = vld [vmem:[%s1512_s10] sm:$0xff]  ;;  %v241_v36 = vld [vmem:[%s1512_s10 + $0x8] sm:$0xff]  ;;  %v251_v38 = vpack.c.bf16 %v249_v33, %v248_v32  ;;  %v242_v49 = vld [vmem:[%s1512_s10 + $0x10] sm:$0xff] }
  0x25   : > { %v1146_v37 = vld [vmem:[%s1512_s10 + $0x1e] sm:$0xff]  ;;  %1260 = vmatpush3.bf16.msra.mxu0 %v541_v13  ;;  %v1147_v39 = vld [vmem:[%s1512_s10 + $0x26] sm:$0xff]  ;;  %v244_v41 = vpack.c.bf16 %v241_v36, %v240_v35  ;;  %v243_v50 = vld [vmem:[%s1512_s10 + $0x18] sm:$0x3] }
  0x26   : > { %1233 = vmatprep.subr.bf16.mxu1 %v250_v30  ;;  %1265 = vmatprep.subr.bf16.mxu0 %v614_v25  ;;  %v1160_v42 = vld [vmem:[%s1691_s1 + $0xc0] sm:$0xff]  ;;  %v607_v43 = vpack.c.bf16 %v1147_v39, %v1146_v37  ;;  %v1161_v44 = vld [vmem:[%s1691_s1 + $0xc8] sm:$0xff]  ;;  %v1149_v52 = vld [vmem:[%s1512_s10 + $0x36] sm:$0x3]  ;;  %v245_v56 = vpack.c.bf16 %v243_v50, %v242_v49 }
  0x27   : > { %1230 = vmatmul.mubr.msk.bf16.vlgmr.msra.gmra.mrb[0].mxu1 %vm267_vm1, %v259_v29  ;;  %v1120_v45 = vld [vmem:[%s1691_s1 + $0x40] sm:$0xff]  ;;  %v1121_v46 = vld [vmem:[%s1691_s1 + $0x48] sm:$0xff]  ;;  %v689_v48 = vpack.c.bf16 %v1161_v44, %v1160_v42  ;;  %v1162_v53 = vld [vmem:[%s1691_s1 + $0xd0] sm:$0xff] }
  0x28   : > { %1262 = vmatmul.mubr.msk.bf16.vlgmr.msra.gmra.mrb[0].mxu0 %vm267_vm1, %v534_v34  ;;  %1234 = vmatpush3.bf16.msra.mxu1 %v250_v30  ;;  %v391_v47 = vpack.c.bf16 %v1121_v46, %v1120_v45  ;;  %v1148_v51 = vld [vmem:[%s1512_s10 + $0x2e] sm:$0xff]  ;;  %v1123_v55 = vld [vmem:[%s1691_s1 + $0x58] sm:$0xff]  ;;  %v1116_v58 = vld [vmem:[%s1512_s10 + $0x2] sm:$0xff] }
  0x29   : > { %1266 = vmatpush3.bf16.msra.mxu0 %v614_v25  ;;  %1235 = vmatprep.subr.bf16.mxu1 %v251_v38  ;;  %v1122_v54 = vld [vmem:[%s1691_s1 + $0x50] sm:$0xff]  ;;  %v1163_v57 = vld [vmem:[%s1691_s1 + $0xd8] sm:$0xff]  ;;  %v608_v60 = vpack.c.bf16 %v1149_v52, %v1148_v51  ;;  %v1157_v62 = vld [vmem:[%s1512_s10 + $0x40] sm:$0xff] }
  0x2a   : > { %1267 = vmatprep.subr.bf16.mxu0 %v615_v40  ;;  %1237 = vmatprep.mubr.msk.bf16.mxu1 %vm267_vm1, %v244_v41  ;;  %v1117_v59 = vld [vmem:[%s1512_s10 + $0xa] sm:$0xff]  ;;  %v1156_v61 = vld [vmem:[%s1512_s10 + $0x38] sm:$0xff]  ;;  %v392_v63 = vpack.c.bf16 %v1123_v55, %v1122_v54  ;;  %v690_v0 = vpack.c.bf16 %v1163_v57, %v1162_v53  ;;  %v1130_v2 = vld [vmem:[%s1691_s1 + $0x60] sm:$0xff] }
  0x2b   : > { %1269 = vmatprep.mubr.msk.bf16.mxu0 %vm267_vm1, %v607_v43  ;;  %v384_v1 = vpack.c.bf16 %v1117_v59, %v1116_v58  ;;  %v1131_v3 = vld [vmem:[%s1691_s1 + $0x68] sm:$0xff]  ;;  %v682_v4 = vpack.c.bf16 %v1157_v62, %v1156_v61  ;;  %v1170_v5 = vld [vmem:[%s1691_s1 + $0xe0] sm:$0xff]  ;;  %v1118_v9 = vld [vmem:[%s1512_s10 + $0x12] sm:$0xff] }
  0x2c   : > { %1236 = vmatpush3.bf16.msra.mxu1 %v251_v38  ;;  %v1171_v6 = vld [vmem:[%s1691_s1 + $0xe8] sm:$0xff]  ;;  %v466_v7 = vpack.c.bf16 %v1131_v3, %v1130_v2  ;;  %v1119_v10 = vld [vmem:[%s1512_s10 + $0x1a] sm:$0x3]  ;;  %v1159_v12 = vld [vmem:[%s1512_s10 + $0x50] sm:$0x3] }
  0x2d   : > { %1268 = vmatpush3.bf16.msra.mxu0 %v615_v40  ;;  %1241 = vmatprep.subr.bf16.mxu1 %v391_v47  ;;  %v763_v8 = vpack.c.bf16 %v1171_v6, %v1170_v5  ;;  %v1158_v11 = vld [vmem:[%s1512_s10 + $0x48] sm:$0xff]  ;;  %v1172_v13 = vld [vmem:[%s1691_s1 + $0xf0] sm:$0xff]  ;;  %v1133_v15 = vld [vmem:[%s1691_s1 + $0x78] sm:$0xff]  ;;  %v385_v16 = vpack.c.bf16 %v1119_v10, %v1118_v9 }
  0x2e   : > { %1273 = vmatprep.subr.bf16.mxu0 %v689_v48  ;;  %v1132_v14 = vld [vmem:[%s1691_s1 + $0x70] sm:$0xff]  ;;  %v1173_v17 = vld [vmem:[%s1691_s1 + $0xf8] sm:$0xff]  ;;  %v1127_v19 = vld [vmem:[%s1512_s10 + $0x24] sm:$0xff]  ;;  %v683_v20 = vpack.c.bf16 %v1159_v12, %v1158_v11 }
  0x2f   : > { %v1126_v18 = vld [vmem:[%s1512_s10 + $0x1c] sm:$0xff]  ;;  %v467_v23 = vpack.c.bf16 %v1133_v15, %v1132_v14  ;;  %v764_v24 = vpack.c.bf16 %v1173_v17, %v1172_v13  ;;  %v1181_v28 = vld [vmem:[%s1691_s1 + $0x108] sm:$0xff]  ;;  %v1129_v31 = vld [vmem:[%s1512_s10 + $0x34] sm:$0x3] }
  0x30   : > { %v1166_v21 = vld [vmem:[%s1512_s10 + $0x39] sm:$0xff]  ;;  %v1167_v22 = vld [vmem:[%s1512_s10 + $0x41] sm:$0xff]  ;;  %v459_v25 = vpack.c.bf16 %v1127_v19, %v1126_v18  ;;  %v1128_v30 = vld [vmem:[%s1512_s10 + $0x2c] sm:$0xff] }
  0x31   : > { %v756_v26 = vpack.c.bf16 %v1167_v22, %v1166_v21  ;;  %v1180_v27 = vld [vmem:[%s1691_s1 + $0x100] sm:$0xff]  ;;  %v1168_v32 = vld [vmem:[%s1512_s10 + $0x49] sm:$0xff]  ;;  %v1169_v33 = vld [vmem:[%s1512_s10 + $0x51] sm:$0x3]  ;;  %v460_v36 = vpack.c.bf16 %v1129_v31, %v1128_v30 }
  0x32   : > { %v837_v29 = vpack.c.bf16 %v1181_v28, %v1180_v27  ;;  %v1176_v34 = vld [vmem:[%s1512_s10 + $0x3a] sm:$0xff]  ;;  %v1177_v35 = vld [vmem:[%s1512_s10 + $0x42] sm:$0xff]  ;;  %v1182_v37 = vld [vmem:[%s1691_s1 + $0x110] sm:$0xff]  ;;  %v757_v39 = vpack.c.bf16 %v1169_v33, %v1168_v32 }
  0x33   : > { %1238 = vmatmul.mubr.msk.bf16.vlgmr.msra.gmra.mrb[0].mxu1 %vm267_vm1, %v245_v56  ;;  %v1183_v38 = vld [vmem:[%s1691_s1 + $0x118] sm:$0xff]  ;;  %v830_v40 = vpack.c.bf16 %v1177_v35, %v1176_v34  ;;  %v1178_v42 = vld [vmem:[%s1512_s10 + $0x4a] sm:$0xff]  ;;  %v1179_v43 = vld [vmem:[%s1512_s10 + $0x52] sm:$0x3] }
  0x34   : > { %1270 = vmatmul.mubr.msk.bf16.vlgmr.msra.gmra.mrb[0].mxu0 %vm267_vm1, %v608_v60  ;;  %1242 = vmatpush3.bf16.msra.mxu1 %v391_v47  ;;  %v838_v41 = vpack.c.bf16 %v1183_v38, %v1182_v37  ;;  %v831_v44 = vpack.c.bf16 %v1179_v43, %v1178_v42  ;;  %v1186_v50 = vld [vmem:[%s1692_s2] ss:$0 sm:$0xff]  ;;  %v931_v28 = vld [vmem:[%s1478_s6 + $0x1] sm:$0x1] }
  0x35   : > { %1274 = vmatpush3.bf16.msra.mxu0 %v689_v48  ;;  %1243 = vmatprep.subr.bf16.mxu1 %v392_v63 }
  0x36   : > { %1275 = vmatprep.subr.bf16.mxu0 %v690_v0  ;;  %1245 = vmatprep.mubr.msk.bf16.mxu1 %vm267_vm1, %v384_v1 }
  0x37   : > { %1277 = vmatprep.mubr.msk.bf16.mxu0 %vm267_vm1, %v682_v4 }
  0x38   : > { %1244 = vmatpush3.bf16.msra.mxu1 %v392_v63 }
  0x39   : > { %1276 = vmatpush3.bf16.msra.mxu0 %v690_v0  ;;  %1249 = vmatprep.subr.bf16.mxu1 %v466_v7 }
  0x3a   : > { %1281 = vmatprep.subr.bf16.mxu0 %v763_v8 }
  0x3f   : > { %1246 = vmatmul.mubr.msk.bf16.vlgmr.msra.gmra.mrb[0].mxu1 %vm267_vm1, %v385_v16 }
  0x40   : > { %1278 = vmatmul.mubr.msk.bf16.vlgmr.msra.gmra.mrb[0].mxu0 %vm267_vm1, %v683_v20  ;;  %1250 = vmatpush3.bf16.msra.mxu1 %v466_v7 }
  0x41   : > { %1282 = vmatpush3.bf16.msra.mxu0 %v763_v8  ;;  %1251 = vmatprep.subr.bf16.mxu1 %v467_v23 }
  0x42   : > { %1283 = vmatprep.subr.bf16.mxu0 %v764_v24  ;;  %1253 = vmatprep.mubr.msk.bf16.mxu1 %vm267_vm1, %v459_v25  ;;  %v914_v25 = vld [vmem:[%s1478_s6] sm:$0x1] }
  0x43   : > { %1285 = vmatprep.mubr.msk.bf16.mxu0 %vm267_vm1, %v756_v26 }
  0x44   : > { %1252 = vmatpush3.bf16.msra.mxu1 %v467_v23 }
  0x45   : > { %1284 = vmatpush3.bf16.msra.mxu0 %v764_v24 }
  0x46   : > { %1289 = vmatprep.subr.bf16.mxu0 %v837_v29 }
  0x4b   : > { %1254 = vmatmul.mubr.msk.bf16.vlgmr.msra.gmra.mrb[0].mxu1 %vm267_vm1, %v460_v36 }
  0x4c   : > { %1286 = vmatmul.mubr.msk.bf16.vlgmr.msra.gmra.mrb[0].mxu0 %vm267_vm1, %v757_v39 }
  0x4d   : > { %1290 = vmatpush3.bf16.msra.mxu0 %v837_v29  ;;  %1293 = vmatprep.mubr.msk.bf16.mxu0 %vm267_vm1, %v830_v40 }
  0x4e   : > { %1291 = vmatprep.subr.bf16.mxu0 %v838_v41 }
  0x51   : > { %1292 = vmatpush3.bf16.msra.mxu0 %v838_v41 }
  0x58   : > { %1294 = vmatmul.mubr.msk.bf16.vlgmr.msra.gmra.mrb[0].mxu0 %vm267_vm1, %v831_v44 }
 0x11e   : > { %v1255_v45 = vpop.f32.mrb[0].mxu1 }
 0x11f   : > { %v508_v46 = vpop.f32.mrb[1].mxu1 }
 0x120   : > { %v1256_v47 = vpop.f32.mrb[2].mxu1 }
 0x121   : > { %v511_v48 = vpop.f32.mrb[3].mxu1 }
 0x12b   : > { %v1295_v49 = vpop.f32.mrb[0].mxu0 }
 0x12c   : > { %v1297_v51 = vadd.f32 %v1295_v49, %v1255_v45  ;;  %v879_v52 = vpop.f32.mrb[1].mxu0 }
 0x12d   : > { %v1298_v53 = vadd.f32 %v879_v52, %v508_v46  ;;  %v1296_v54 = vpop.f32.mrb[2].mxu0 }
 0x12e   : > { %v907_v55 = vadd.f32 %v1297_v51, %v1186_v50  ;;  %v1299_v56 = vadd.f32 %v1296_v54, %v1256_v47  ;;  %v882_v57 = vpop.f32.mrb[3].mxu0 }
 0x12f   : > { %v905_v58 = vadd.f32 %v1298_v53, %v1186_v50  ;;  %v1300_v59 = vadd.f32 %v882_v57, %v511_v48 }
 0x130   : > { %911 = vst.msk [vmem:[%s1483_s11 + $0x10] sm:$0xff] %vm267_vm1, %v907_v55  ;;  %v908_v60 = vadd.f32 %v1299_v56, %v1186_v50  ;;  %v934_v63 = vmul.f32 %v907_v55, %v907_v55  ;;  %v918_v4 = vsel %vm267_vm1, %v907_v55, 0.0 }
 0x131   : > { %909 = vst.msk [vmem:[%s1483_s11] sm:$0xff] %vm267_vm1, %v905_v58  ;;  %v932_v61 = vmul.f32 %v905_v58, %v905_v58  ;;  %v906_v62 = vadd.f32 %v1300_v59, %v1186_v50  ;;  %v915_v0 = vsel %vm267_vm1, %v905_v58, 0.0 }
 0x132   : > { %913 = vst.msk [vmem:[%s1483_s11 + $0x18] sm:$0x3] %vm912_vm2, %v908_v60  ;;  %v935_v6 = vmul.f32 %v908_v60, %v908_v60  ;;  %v939_v10 = vsel %vm267_vm1, %v934_v63, 0.0  ;;  %v920_v11 = vsel %vm912_vm2, %v908_v60, 0.0 }
 0x133   : > { %910 = vst.msk [vmem:[%s1483_s11 + $0x8] sm:$0xff] %vm267_vm1, %v906_v62  ;;  %v916_v1 = vsel %vm267_vm1, %v906_v62, 0.0  ;;  %v933_v2 = vmul.f32 %v906_v62, %v906_v62  ;;  %v936_v5 = vsel %vm267_vm1, %v932_v61, 0.0 }
 0x134   : > { %v917_v3 = vadd.f32 %v916_v1, %v915_v0  ;;  %v941_v14 = vsel %vm912_vm2, %v935_v6, 0.0 }
 0x135   : > { %v937_v7 = vsel %vm267_vm1, %v933_v2, 0.0 }
 0x136   : > { %v919_v8 = vadd.f32 %v918_v4, %v917_v3  ;;  %v938_v9 = vadd.f32 %v937_v7, %v936_v5 }
 0x138   : > { %v921_v12 = vadd.f32 %v920_v11, %v919_v8  ;;  %v940_v13 = vadd.f32 %v939_v10, %v938_v9 }
 0x13a   : > { %v922_v15 = vrot.slane %v921_v12, 4  ;;  %v942_v16 = vadd.f32 %v941_v14, %v940_v13 }
 0x13c   : > { %v923_v17 = vadd.f32 %v922_v15, %v921_v12  ;;  %v943_v18 = vrot.slane %v942_v16, 4 }
 0x13e   : > { %v924_v19 = vrot.slane %v923_v17, 2  ;;  %v944_v20 = vadd.f32 %v943_v18, %v942_v16 }
 0x140   : > { %v925_v21 = vadd.f32 %v924_v19, %v923_v17  ;;  %v945_v22 = vrot.slane %v944_v20, 2 }
 0x142   : > { %v926_v23 = vrot.slane %v925_v21, 1  ;;  %v946_v24 = vadd.f32 %v945_v22, %v944_v20 }
 0x144   : > { %v927_v26 = vadd.f32 %v926_v23, %v925_v21  ;;  %v947_v27 = vrot.slane %v946_v24, 1 }
 0x146   : > { %v928_v29 = vadd.f32 %v927_v26, %v914_v25  ;;  %v948_v30 = vadd.f32 %v947_v27, %v946_v24 }
 0x148   : > { %930 = vst.msk [vmem:[%s1478_s6] sm:$0x1] %vm929_vm3, %v928_v29  ;;  %v949_v31 = vadd.f32 %v948_v30, %v931_v28 }
 0x14a   : > { %950 = vst.msk [vmem:[%s1478_s6 + $0x1] sm:$0x1] %vm929_vm3, %v949_v31 }
 0x14b PF: > { %s15_s19 = sadd.s32 1, %s1410_s19   ;;  %s1695_s15 = smov %s1402_s17 }
 0x14c   : > { %p12_p8 = scmp.ge.s32.totalorder %s15_s19, 54   ;;  %s1696_s16 = smov %s1406_s18 }
 0x14d   : > { %s1697_s17 = smov %s1700_s20  ;;  %s1698_s18 = smov %s1704_s21 }
 0x14e   :  { %14 = sbr.rel (!%p12_p8) target bundleno = 3 (0x3), region = 95 }

// kernel: decoder2_forward.67
= control target key start
LH: loop header
LB: loop body
LE: loop exit
PB: predicated region body
PF: predicated region fallthrough
CT: control target
= control target key end

     0   :  { %s741_s12 = smov 0   ;;  %s1041_s0 = inlined_call_operand.vmem [shape: f32[512,128], index: 0, kind: input, shape index: {}]   ;;  %s1042_s1 = inlined_call_operand.vmem [shape: f32[1,128], index: 1, kind: input, shape index: {}]   ;;  %s1043_s2 = inlined_call_operand.vmem [shape: f32[1,128], index: 2, kind: input, shape index: {}]   ;;  %s1044_s3 = inlined_call_operand.vmem [shape: f32[512,128], index: 3, kind: output, shape index: {}]  }
   0x1 LB: > { %s564_s13 = sadd.s32 4294967295, %s719_s12   ;;  %p568_p0 = scmp.ge.s32.totalorder %s719_s12, 1  ;;  %s719_s12 = sphi %s741_s12, %s13_s12  }
   0x2   : > { %p138_p1 = scmp.lt.s32.totalorder %s719_s12, 3 }
   0x4   : > { %p139_p2 = pnand %p568_p0, %p138_p1 }
   0x5   : > { %s569_s14 = sshll.u32 (!%p139_p2), %s564_s13, 5  ;;  %v755_v0 = vld [vmem:[%s1042_s1] ss:$0 sm:$0xff] (!%p139_p2) }
   0x6   : > { %142 = sbr.rel (%p139_p2) target bundleno = 109 (0x6d), region = 32  ;;  %p163_p3 = scmp.lt.s32.totalorder (!%p139_p2), %s569_s14, 63  ;;  %v767_v1 = vld [vmem:[%s1043_s2] ss:$0 sm:$0xff] (!%p139_p2) }
   0xd   : > { %s1046_s14 = smov (!%p163_p3, %s569_s14), 63 }
   0xe   : > { %s570_s15 = sshll.u32 %s1046_s14, 3 }
   0xf   : > { %s762_s20 = scalar_lea.vmem %s1041_s0, %s570_s15  ;;  %s912_s25 = scalar_lea.vmem %s1044_s3, %s570_s15 }
  0x10   : > { %v174_v2 = vld [vmem:[%s762_s20] sm:$0xff]  ;;  %v175_v3 = vld [vmem:[%s762_s20 + $0x8] sm:$0xff]  ;;  %v176_v4 = vld [vmem:[%s762_s20 + $0x10] sm:$0xff] }
  0x11   : > { %v213_v5 = vmul.f32 %v755_v0, %v174_v2  ;;  %v214_v6 = vmul.f32 %v755_v0, %v175_v3  ;;  %v215_v7 = vmul.f32 %v755_v0, %v176_v4  ;;  %v177_v8 = vld [vmem:[%s762_s20 + $0x18] sm:$0xff]  ;;  %v178_v9 = vld [vmem:[%s762_s20 + $0x20] sm:$0xff]  ;;  %v179_v10 = vld [vmem:[%s762_s20 + $0x28] sm:$0xff] }
  0x12   : > { %v216_v11 = vmul.f32 %v755_v0, %v177_v8  ;;  %v217_v12 = vmul.f32 %v755_v0, %v178_v9  ;;  %v218_v13 = vmul.f32 %v755_v0, %v179_v10  ;;  %v180_v14 = vld [vmem:[%s762_s20 + $0x30] sm:$0xff]  ;;  %v181_v15 = vld [vmem:[%s762_s20 + $0x38] sm:$0xff]  ;;  %v182_v24 = vld [vmem:[%s762_s20 + $0x40] sm:$0xff] }
  0x13   : > { %v784_v16 = vadd.f32 %v767_v1, %v213_v5  ;;  %v787_v17 = vadd.f32 %v767_v1, %v214_v6  ;;  %v790_v18 = vadd.f32 %v767_v1, %v215_v7  ;;  %v219_v19 = vmul.f32 %v755_v0, %v180_v14  ;;  %v183_v29 = vld [vmem:[%s762_s20 + $0x48] sm:$0xff]  ;;  %v184_v34 = vld [vmem:[%s762_s20 + $0x50] sm:$0xff]  ;;  %v185_v35 = vld [vmem:[%s762_s20 + $0x58] sm:$0xff] }
  0x14   : > { %v794_v20 = vadd.f32 %v767_v1, %v216_v11  ;;  %v797_v21 = vadd.f32 %v767_v1, %v217_v12  ;;  %v800_v22 = vadd.f32 %v767_v1, %v218_v13  ;;  %v220_v23 = vmul.f32 %v755_v0, %v181_v15  ;;  %v186_v50 = vld [vmem:[%s762_s20 + $0x60] sm:$0xff]  ;;  %v187_v51 = vld [vmem:[%s762_s20 + $0x68] sm:$0xff]  ;;  %v188_v58 = vld [vmem:[%s762_s20 + $0x70] sm:$0xff] }
  0x15   : > { %v284_v25 = vsub.f32 0.0, %v784_v16  ;;  %v285_v26 = vsub.f32 0.0, %v787_v17  ;;  %v286_v27 = vsub.f32 0.0, %v790_v18  ;;  %v808_v28 = vadd.f32 %v767_v1, %v219_v19  ;;  %v189_v62 = vld [vmem:[%s762_s20 + $0x78] sm:$0xff]  ;;  %v190_v7 = vld [vmem:[%s762_s20 + $0x80] sm:$0xff]  ;;  %v191_v8 = vld [vmem:[%s762_s20 + $0x88] sm:$0xff] }
  0x16   : > { %v287_v30 = vsub.f32 0.0, %v794_v20  ;;  %v288_v31 = vsub.f32 0.0, %v797_v21  ;;  %v289_v32 = vsub.f32 0.0, %v800_v22  ;;  %v815_v33 = vadd.f32 %v767_v1, %v220_v23 }
  0x17   : > { %v316_v36 = vmul.f32 1.442695, %v284_v25  ;;  %v318_v37 = vmul.f32 1.442695, %v285_v26  ;;  %v320_v38 = vmul.f32 1.442695, %v286_v27  ;;  %v221_v39 = vmul.f32 %v755_v0, %v182_v24 }
  0x18   : > { %v322_v40 = vmul.f32 1.442695, %v287_v30  ;;  %v324_v41 = vmul.f32 1.442695, %v288_v31  ;;  %v326_v42 = vmul.f32 1.442695, %v289_v32  ;;  %v222_v43 = vmul.f32 %v755_v0, %v183_v29 }
  0x19   : > { %585 = vpow2.f32 %v316_v36  ;;  %v290_v44 = vsub.f32 0.0, %v808_v28  ;;  %v291_v45 = vsub.f32 0.0, %v815_v33  ;;  %v824_v46 = vadd.f32 %v767_v1, %v221_v39  ;;  %v192_v31 = vld [vmem:[%s762_s20 + $0x90] sm:$0xff]  ;;  %v193_v36 = vld [vmem:[%s762_s20 + $0x98] sm:$0xff] }
  0x1a   : > { %587 = vpow2.f32 %v318_v37  ;;  %v827_v47 = vadd.f32 %v767_v1, %v222_v43  ;;  %v223_v48 = vmul.f32 %v755_v0, %v184_v34  ;;  %v224_v49 = vmul.f32 %v755_v0, %v185_v35 }
  0x1b   : > { %589 = vpow2.f32 %v320_v38  ;;  %v328_v52 = vmul.f32 1.442695, %v290_v44  ;;  %v330_v53 = vmul.f32 1.442695, %v291_v45  ;;  %v292_v54 = vsub.f32 0.0, %v824_v46  ;;  %v194_v45 = vld [vmem:[%s762_s20 + $0xa0] sm:$0xff] }
  0x1c   : > { %591 = vpow2.f32 %v322_v40  ;;  %v293_v55 = vsub.f32 0.0, %v827_v47  ;;  %v836_v56 = vadd.f32 %v767_v1, %v223_v48  ;;  %v839_v57 = vadd.f32 %v767_v1, %v224_v49 }
  0x1d   : > { %593 = vpow2.f32 %v324_v41  ;;  %v332_v59 = vmul.f32 1.442695, %v292_v54  ;;  %v225_v60 = vmul.f32 %v755_v0, %v186_v50  ;;  %v226_v61 = vmul.f32 %v755_v0, %v187_v51 }
  0x1e   : > { %595 = vpow2.f32 %v326_v42  ;;  %v334_v63 = vmul.f32 1.442695, %v293_v55  ;;  %v294_v2 = vsub.f32 0.0, %v836_v56  ;;  %v295_v3 = vsub.f32 0.0, %v839_v57 }
  0x1f   : > { %597 = vpow2.f32 %v328_v52  ;;  %v848_v4 = vadd.f32 %v767_v1, %v225_v60  ;;  %v851_v5 = vadd.f32 %v767_v1, %v226_v61  ;;  %v227_v6 = vmul.f32 %v755_v0, %v188_v58  ;;  %v195_v52 = vld [vmem:[%s762_s20 + $0xa8] sm:$0xff] }
  0x20   : > { %599 = vpow2.f32 %v330_v53  ;;  %v336_v9 = vmul.f32 1.442695, %v294_v2  ;;  %v338_v10 = vmul.f32 1.442695, %v295_v3  ;;  %v228_v11 = vmul.f32 %v755_v0, %v189_v62 }
  0x21   : > { %601 = vpow2.f32 %v332_v59  ;;  %v296_v12 = vsub.f32 0.0, %v848_v4  ;;  %v297_v13 = vsub.f32 0.0, %v851_v5  ;;  %v860_v14 = vadd.f32 %v767_v1, %v227_v6 }
  0x22   : > { %603 = vpow2.f32 %v334_v63  ;;  %v863_v15 = vadd.f32 %v767_v1, %v228_v11  ;;  %v229_v19 = vmul.f32 %v755_v0, %v190_v7  ;;  %v230_v23 = vmul.f32 %v755_v0, %v191_v8  ;;  %v196_v11 = vld [vmem:[%s762_s20 + $0xb0] sm:$0xff] }
  0x23   : > { %v586_v24 = vpop.eup %585  ;;  %605 = vpow2.f32 %v336_v9  ;;  %v340_v25 = vmul.f32 1.442695, %v296_v12  ;;  %v298_v26 = vsub.f32 0.0, %v860_v14  ;;  %v876_v39 = vmul.f32 1.442695, %v297_v13 }
  0x24   : > { %v588_v27 = vpop.eup %587  ;;  %v380_v29 = vadd.f32 1.0, %v586_v24  ;;  %607 = vpow2.f32 %v338_v10  ;;  %v869_v30 = vadd.f32 %v767_v1, %v229_v19  ;;  %v873_v35 = vadd.f32 %v767_v1, %v230_v23  ;;  %v197_v24 = vld [vmem:[%s762_s20 + $0xb8] sm:$0xff] }
  0x25   : > { %v590_v32 = vpop.eup %589  ;;  %v381_v34 = vadd.f32 1.0, %v588_v27  ;;  %609 = vpow2.f32 %v340_v25  ;;  %v299_v40 = vsub.f32 0.0, %v863_v15  ;;  %v879_v43 = vmul.f32 1.442695, %v298_v26 }
  0x26   : > { %v592_v37 = vpop.eup %591  ;;  %611 = vrcp.f32 %v380_v29  ;;  %v382_v38 = vadd.f32 1.0, %v590_v32  ;;  %v231_v44 = vmul.f32 %v755_v0, %v192_v31  ;;  %v300_v50 = vsub.f32 0.0, %v869_v30 }
  0x27   : > { %v594_v41 = vpop.eup %593  ;;  %613 = vrcp.f32 %v381_v34  ;;  %v383_v42 = vadd.f32 1.0, %v592_v37  ;;  %v232_v51 = vmul.f32 %v755_v0, %v193_v36  ;;  %v301_v55 = vsub.f32 0.0, %v873_v35  ;;  %v198_v37 = vld [vmem:[%s762_s20 + $0xc0] sm:$0xff] }
  0x28   : > { %v596_v48 = vpop.eup %595  ;;  %615 = vrcp.f32 %v382_v38  ;;  %v384_v49 = vadd.f32 1.0, %v594_v41  ;;  %v888_v58 = vadd.f32 %v767_v1, %v231_v44  ;;  %v233_v62 = vmul.f32 %v755_v0, %v194_v45  ;;  %v199_v44 = vld [vmem:[%s762_s20 + $0xc8] sm:$0xff] }
  0x29   : > { %v598_v53 = vpop.eup %597  ;;  %617 = vrcp.f32 %v383_v42  ;;  %v385_v54 = vadd.f32 1.0, %v596_v48  ;;  %v891_v61 = vadd.f32 %v767_v1, %v232_v51  ;;  %v234_v6 = vmul.f32 %v755_v0, %v195_v52 }
  0x2a   : > { %v600_v59 = vpop.eup %599  ;;  %619 = vrcp.f32 %v384_v49  ;;  %v386_v60 = vadd.f32 1.0, %v598_v53  ;;  %v302_v3 = vsub.f32 0.0, %v888_v58  ;;  %v346_v9 = vmul.f32 1.442695, %v299_v40 }
  0x2b   : > { %v602_v63 = vpop.eup %601  ;;  %621 = vrcp.f32 %v385_v54  ;;  %v387_v2 = vadd.f32 1.0, %v600_v59  ;;  %v303_v10 = vsub.f32 0.0, %v891_v61  ;;  %v348_v19 = vmul.f32 1.442695, %v300_v50 }
  0x2c   : > { %v604_v7 = vpop.eup %603  ;;  %623 = vrcp.f32 %v386_v60  ;;  %v388_v8 = vadd.f32 1.0, %v602_v63  ;;  %v899_v23 = vadd.f32 %v767_v1, %v233_v62  ;;  %v350_v27 = vmul.f32 1.442695, %v301_v55 }
  0x2d   : > { %v606_v12 = vpop.eup %605  ;;  %625 = vrcp.f32 %v387_v2  ;;  %v389_v13 = vadd.f32 1.0, %v604_v7  ;;  %v352_v29 = vmul.f32 1.442695, %v302_v3  ;;  %v903_v34 = vadd.f32 %v767_v1, %v234_v6 }
  0x2e   : > { %v608_v25 = vpop.eup %607  ;;  %627 = vrcp.f32 %v388_v8  ;;  %v390_v26 = vadd.f32 1.0, %v606_v12  ;;  %v235_v36 = vmul.f32 %v755_v0, %v196_v11  ;;  %v354_v41 = vmul.f32 1.442695, %v303_v10 }
  0x2f   : > { %v610_v31 = vpop.eup %609  ;;  %629 = vrcp.f32 %v389_v13  ;;  %v391_v32 = vadd.f32 1.0, %v608_v25  ;;  %v236_v42 = vmul.f32 %v755_v0, %v197_v24  ;;  %v304_v49 = vsub.f32 0.0, %v899_v23 }
  0x30   : > { %v612_v38 = vpop.eup %611  ;;  %631 = vrcp.f32 %v390_v26  ;;  %v392_v40 = vadd.f32 1.0, %v610_v31  ;;  %v919_v50 = vadd.f32 %v767_v1, %v235_v36  ;;  %v237_v54 = vmul.f32 %v755_v0, %v198_v37  ;;  %v200_v31 = vld [vmem:[%s762_s20 + $0xd0] sm:$0xff] }
  0x31   : > { %v614_v45 = vpop.eup %613  ;;  %v444_v48 = vmul.f32 %v612_v38, %v784_v16  ;;  %633 = vrcp.f32 %v391_v32  ;;  %v923_v53 = vadd.f32 %v767_v1, %v236_v42  ;;  %v305_v59 = vsub.f32 0.0, %v903_v34  ;;  %v201_v32 = vld [vmem:[%s762_s20 + $0xd8] sm:$0xff] }
  0x32   : > { %v616_v51 = vpop.eup %615  ;;  %v445_v52 = vmul.f32 %v614_v45, %v787_v17  ;;  %635 = vrcp.f32 %v392_v40  ;;  %v238_v60 = vmul.f32 %v755_v0, %v199_v44  ;;  %v306_v63 = vsub.f32 0.0, %v919_v50 }
  0x33   : > { %v618_v55 = vpop.eup %617  ;;  %476 = vst [vmem:[%s912_s25] sm:$0xff] %v444_v48  ;;  %v446_v16 = vmul.f32 %v616_v51, %v790_v18  ;;  %637 = vpow2.f32 %v876_v39  ;;  %v936_v2 = vadd.f32 %v767_v1, %v237_v54  ;;  %v307_v3 = vsub.f32 0.0, %v923_v53  ;;  %v204_v48 = vld [vmem:[%s762_s20 + $0xf0] sm:$0xff] }
  0x34   : > { %v620_v62 = vpop.eup %619  ;;  %477 = vst [vmem:[%s912_s25 + $0x8] sm:$0xff] %v445_v52  ;;  %v447_v17 = vmul.f32 %v618_v55, %v794_v20  ;;  %639 = vpow2.f32 %v879_v43  ;;  %v942_v6 = vadd.f32 %v767_v1, %v238_v60  ;;  %v356_v7 = vmul.f32 1.442695, %v304_v49  ;;  %v205_v52 = vld [vmem:[%s762_s20 + $0xf8] sm:$0xff] }
  0x35   : > { %v622_v18 = vpop.eup %621  ;;  %478 = vst [vmem:[%s912_s25 + $0x10] sm:$0xff] %v446_v16  ;;  %v448_v39 = vmul.f32 %v620_v62, %v797_v21  ;;  %641 = vpow2.f32 %v346_v9  ;;  %v308_v8 = vsub.f32 0.0, %v936_v2  ;;  %v358_v9 = vmul.f32 1.442695, %v305_v59 }
  0x36   : > { %v624_v20 = vpop.eup %623  ;;  %479 = vst [vmem:[%s912_s25 + $0x18] sm:$0xff] %v447_v17  ;;  %v449_v43 = vmul.f32 %v622_v18, %v800_v22  ;;  %643 = vpow2.f32 %v348_v19  ;;  %v309_v11 = vsub.f32 0.0, %v942_v6  ;;  %v360_v13 = vmul.f32 1.442695, %v306_v63 }
  0x37   : > { %v626_v10 = vpop.eup %625  ;;  %480 = vst [vmem:[%s912_s25 + $0x20] sm:$0xff] %v448_v39  ;;  %v450_v21 = vmul.f32 %v624_v20, %v808_v28  ;;  %645 = vpow2.f32 %v350_v27  ;;  %v362_v28 = vmul.f32 1.442695, %v307_v3  ;;  %v364_v27 = vmul.f32 1.442695, %v308_v8 }
  0x38   : > { %v628_v12 = vpop.eup %627  ;;  %481 = vst [vmem:[%s912_s25 + $0x28] sm:$0xff] %v449_v43  ;;  %v451_v22 = vmul.f32 %v626_v10, %v815_v33  ;;  %647 = vpow2.f32 %v352_v29  ;;  %v240_v45 = vmul.f32 %v755_v0, %v201_v32  ;;  %v243_v62 = vmul.f32 %v755_v0, %v204_v48 }
  0x39   : > { %v630_v19 = vpop.eup %629  ;;  %482 = vst [vmem:[%s912_s25 + $0x30] sm:$0xff] %v450_v21  ;;  %v452_v24 = vmul.f32 %v628_v12, %v824_v46  ;;  %649 = vpow2.f32 %v354_v41  ;;  %v366_v46 = vmul.f32 1.442695, %v309_v11  ;;  %v203_v41 = vld [vmem:[%s762_s20 + $0xe8] sm:$0xff]  ;;  %v244_v39 = vmul.f32 %v755_v0, %v205_v52 }
  0x3a   : > { %v632_v25 = vpop.eup %631  ;;  %483 = vst [vmem:[%s912_s25 + $0x38] sm:$0xff] %v451_v22  ;;  %v453_v26 = vmul.f32 %v630_v19, %v827_v47  ;;  %651 = vpow2.f32 %v356_v7  ;;  %v202_v47 = vld [vmem:[%s762_s20 + $0xe0] sm:$0xff]  ;;  %v242_v55 = vmul.f32 %v755_v0, %v203_v41  ;;  %v979_v18 = vadd.f32 %v767_v1, %v240_v45 }
  0x3b   : > { %v634_v33 = vpop.eup %633  ;;  %484 = vst [vmem:[%s912_s25 + $0x40] sm:$0xff] %v452_v24  ;;  %v454_v29 = vmul.f32 %v632_v25, %v836_v56  ;;  %653 = vpow2.f32 %v358_v9  ;;  %v239_v56 = vmul.f32 %v755_v0, %v200_v31  ;;  %v241_v51 = vmul.f32 %v755_v0, %v202_v47 }
  0x3c   : > { %v636_v36 = vpop.eup %635  ;;  %485 = vst [vmem:[%s912_s25 + $0x48] sm:$0xff] %v453_v26  ;;  %v455_v37 = vmul.f32 %v634_v33, %v839_v57  ;;  %655 = vpow2.f32 %v360_v13  ;;  %v986_v10 = vadd.f32 %v767_v1, %v242_v55  ;;  %v990_v12 = vadd.f32 %v767_v1, %v243_v62 }
  0x3d   : > { %v638_v38 = vpop.eup %637  ;;  %486 = vst [vmem:[%s912_s25 + $0x50] sm:$0xff] %v454_v29  ;;  %v456_v40 = vmul.f32 %v636_v36, %v848_v4  ;;  %657 = vpow2.f32 %v362_v28  ;;  %v975_v60 = vadd.f32 %v767_v1, %v239_v56  ;;  %v983_v43 = vadd.f32 %v767_v1, %v241_v51 }
  0x3e   : > { %v640_v42 = vpop.eup %639  ;;  %487 = vst [vmem:[%s912_s25 + $0x58] sm:$0xff] %v455_v37  ;;  %v393_v44 = vadd.f32 1.0, %v638_v38  ;;  %659 = vpow2.f32 %v364_v27  ;;  %v311_v13 = vsub.f32 0.0, %v979_v18  ;;  %v994_v19 = vadd.f32 %v767_v1, %v244_v39 }
  0x3f   : > { %v642_v57 = vpop.eup %641  ;;  %488 = vst [vmem:[%s912_s25 + $0x60] sm:$0xff] %v456_v40  ;;  %v394_v49 = vadd.f32 1.0, %v640_v42  ;;  %661 = vpow2.f32 %v366_v46  ;;  %v310_v11 = vsub.f32 0.0, %v975_v60  ;;  %v312_v25 = vsub.f32 0.0, %v983_v43 }
  0x40   : > { %v644_v54 = vpop.eup %643  ;;  %663 = vrcp.f32 %v393_v44  ;;  %v395_v4 = vadd.f32 1.0, %v642_v57  ;;  %v313_v31 = vsub.f32 0.0, %v986_v10  ;;  %v314_v32 = vsub.f32 0.0, %v990_v12 }
  0x41   : > { %v646_v16 = vpop.eup %645  ;;  %665 = vrcp.f32 %v394_v49  ;;  %v396_v59 = vadd.f32 1.0, %v644_v54  ;;  %v368_v46 = vmul.f32 1.442695, %v310_v11  ;;  %v370_v37 = vmul.f32 1.442695, %v311_v13 }
  0x42   : > { %v648_v17 = vpop.eup %647  ;;  %667 = vrcp.f32 %v395_v4  ;;  %v397_v63 = vadd.f32 1.0, %v646_v16  ;;  %v315_v47 = vsub.f32 0.0, %v994_v19  ;;  %v372_v56 = vmul.f32 1.442695, %v312_v25 }
  0x43   : > { %v650_v3 = vpop.eup %649  ;;  %669 = vrcp.f32 %v396_v59  ;;  %v398_v20 = vadd.f32 1.0, %v648_v17  ;;  %v374_v44 = vmul.f32 1.442695, %v313_v31  ;;  %v376_v57 = vmul.f32 1.442695, %v314_v32 }
  0x44   : > { %v652_v7 = vpop.eup %651  ;;  %671 = vrcp.f32 %v397_v63  ;;  %v399_v8 = vadd.f32 1.0, %v650_v3  ;;  %v378_v51 = vmul.f32 1.442695, %v315_v47 }
  0x45   : > { %v654_v21 = vpop.eup %653  ;;  %673 = vrcp.f32 %v398_v20  ;;  %v400_v9 = vadd.f32 1.0, %v652_v7 }
  0x46   : > { %v656_v0 = vpop.eup %655  ;;  %675 = vrcp.f32 %v399_v8  ;;  %v401_v22 = vadd.f32 1.0, %v654_v21 }
  0x47   : > { %v658_v24 = vpop.eup %657  ;;  %677 = vrcp.f32 %v400_v9  ;;  %v402_v28 = vadd.f32 1.0, %v656_v0 }
  0x48   : > { %v660_v26 = vpop.eup %659  ;;  %679 = vrcp.f32 %v401_v22  ;;  %v403_v27 = vadd.f32 1.0, %v658_v24 }
  0x49   : > { %v662_v33 = vpop.eup %661  ;;  %681 = vrcp.f32 %v402_v28  ;;  %v404_v29 = vadd.f32 1.0, %v660_v26 }
  0x4a   : > { %v664_v36 = vpop.eup %663  ;;  %683 = vrcp.f32 %v403_v27  ;;  %v405_v1 = vadd.f32 1.0, %v662_v33 }
  0x4b   : > { %v666_v38 = vpop.eup %665  ;;  %v457_v40 = vmul.f32 %v664_v36, %v851_v5  ;;  %685 = vrcp.f32 %v404_v29 }
  0x4c   : > { %v668_v41 = vpop.eup %667  ;;  %v458_v42 = vmul.f32 %v666_v38, %v860_v14  ;;  %687 = vrcp.f32 %v405_v1 }
  0x4d   : > { %v670_v45 = vpop.eup %669  ;;  %489 = vst [vmem:[%s912_s25 + $0x68] sm:$0xff] %v457_v40  ;;  %v459_v48 = vmul.f32 %v668_v41, %v863_v15  ;;  %689 = vpow2.f32 %v368_v46 }
  0x4e   : > { %v672_v49 = vpop.eup %671  ;;  %490 = vst [vmem:[%s912_s25 + $0x70] sm:$0xff] %v458_v42  ;;  %v460_v5 = vmul.f32 %v670_v45, %v869_v30  ;;  %691 = vpow2.f32 %v370_v37 }
  0x4f   : > { %v674_v52 = vpop.eup %673  ;;  %491 = vst [vmem:[%s912_s25 + $0x78] sm:$0xff] %v459_v48  ;;  %v461_v14 = vmul.f32 %v672_v49, %v873_v35  ;;  %693 = vpow2.f32 %v372_v56 }
  0x50   : > { %v676_v54 = vpop.eup %675  ;;  %492 = vst [vmem:[%s912_s25 + $0x80] sm:$0xff] %v460_v5  ;;  %v462_v15 = vmul.f32 %v674_v52, %v888_v58  ;;  %695 = vpow2.f32 %v374_v44 }
  0x51   : > { %v678_v4 = vpop.eup %677  ;;  %493 = vst [vmem:[%s912_s25 + $0x88] sm:$0xff] %v461_v14  ;;  %v463_v30 = vmul.f32 %v676_v54, %v891_v61  ;;  %697 = vpow2.f32 %v376_v57 }
  0x52   : > { %v680_v55 = vpop.eup %679  ;;  %494 = vst [vmem:[%s912_s25 + $0x90] sm:$0xff] %v462_v15  ;;  %v464_v16 = vmul.f32 %v678_v4, %v899_v23  ;;  %699 = vpow2.f32 %v378_v51 }
  0x53   : > { %v682_v35 = vpop.eup %681  ;;  %495 = vst [vmem:[%s912_s25 + $0x98] sm:$0xff] %v463_v30  ;;  %v465_v59 = vmul.f32 %v680_v55, %v903_v34 }
  0x54   : > { %v684_v58 = vpop.eup %683  ;;  %496 = vst [vmem:[%s912_s25 + $0xa0] sm:$0xff] %v464_v16  ;;  %v466_v62 = vmul.f32 %v682_v35, %v919_v50 }
  0x55   : > { %v686_v17 = vpop.eup %685  ;;  %497 = vst [vmem:[%s912_s25 + $0xa8] sm:$0xff] %v465_v59  ;;  %v467_v61 = vmul.f32 %v684_v58, %v923_v53 }
  0x56   : > { %v688_v63 = vpop.eup %687  ;;  %498 = vst [vmem:[%s912_s25 + $0xb0] sm:$0xff] %v466_v62  ;;  %v468_v39 = vmul.f32 %v686_v17, %v936_v2 }
  0x57   : > { %v690_v23 = vpop.eup %689  ;;  %499 = vst [vmem:[%s912_s25 + $0xb8] sm:$0xff] %v467_v61  ;;  %v469_v3 = vmul.f32 %v688_v63, %v942_v6 }
  0x58   : > { %v692_v20 = vpop.eup %691  ;;  %500 = vst [vmem:[%s912_s25 + $0xc0] sm:$0xff] %v468_v39  ;;  %v406_v34 = vadd.f32 1.0, %v690_v23 }
  0x59   : > { %v694_v7 = vpop.eup %693  ;;  %501 = vst [vmem:[%s912_s25 + $0xc8] sm:$0xff] %v469_v3  ;;  %v407_v8 = vadd.f32 1.0, %v692_v20 }
  0x5a   : > { %v696_v21 = vpop.eup %695  ;;  %701 = vrcp.f32 %v406_v34  ;;  %v408_v50 = vadd.f32 1.0, %v694_v7 }
  0x5b   : > { %v698_v9 = vpop.eup %697  ;;  %703 = vrcp.f32 %v407_v8  ;;  %v409_v53 = vadd.f32 1.0, %v696_v21 }
  0x5c   : > { %v700_v11 = vpop.eup %699  ;;  %705 = vrcp.f32 %v408_v50  ;;  %v410_v2 = vadd.f32 1.0, %v698_v9 }
  0x5d   : > { %707 = vrcp.f32 %v409_v53  ;;  %v411_v6 = vadd.f32 1.0, %v700_v11 }
  0x5e   : > { %709 = vrcp.f32 %v410_v2 }
  0x5f   : > { %711 = vrcp.f32 %v411_v6 }
  0x64   : > { %v702_v0 = vpop.eup %701 }
  0x65   : > { %v704_v22 = vpop.eup %703  ;;  %v470_v13 = vmul.f32 %v702_v0, %v975_v60 }
  0x66   : > { %v706_v24 = vpop.eup %705  ;;  %v471_v28 = vmul.f32 %v704_v22, %v979_v18 }
  0x67   : > { %v708_v25 = vpop.eup %707  ;;  %502 = vst [vmem:[%s912_s25 + $0xd0] sm:$0xff] %v470_v13  ;;  %v472_v26 = vmul.f32 %v706_v24, %v983_v43 }
  0x68   : > { %v710_v27 = vpop.eup %709  ;;  %503 = vst [vmem:[%s912_s25 + $0xd8] sm:$0xff] %v471_v28  ;;  %v473_v31 = vmul.f32 %v708_v25, %v986_v10 }
  0x69   : > { %v712_v33 = vpop.eup %711  ;;  %504 = vst [vmem:[%s912_s25 + $0xe0] sm:$0xff] %v472_v26  ;;  %v474_v29 = vmul.f32 %v710_v27, %v990_v12 }
  0x6a   : > { %505 = vst [vmem:[%s912_s25 + $0xe8] sm:$0xff] %v473_v31  ;;  %v475_v46 = vmul.f32 %v712_v33, %v994_v19 }
  0x6b   : > { %506 = vst [vmem:[%s912_s25 + $0xf0] sm:$0xff] %v474_v29 }
  0x6c   : > { %507 = vst [vmem:[%s912_s25 + $0xf8] sm:$0xff] %v475_v46 }
  0x6d PF: > { %s13_s12 = sadd.s32 1, %s719_s12  }
  0x6e   : > { %p10_p4 = scmp.ge.s32.totalorder %s13_s12, 4  }
  0x70   :  { %12 = sbr.rel (!%p10_p4) target bundleno = 1 (0x1), region = 62 }

// kernel: decoder2_forward.69
= control target key start
LH: loop header
LB: loop body
LE: loop exit
PB: predicated region body
PF: predicated region fallthrough
CT: control target
= control target key end

     0   :  { %s553_s15 = smov 0   ;;  %s749_s0 = inlined_call_operand.vmem [shape: f32[512,128], index: 0, kind: input, shape index: {}]   ;;  %s750_s1 = inlined_call_operand.vmem [shape: f32[512,128], index: 1, kind: input, shape index: {}]   ;;  %s751_s2 = inlined_call_operand.vmem [shape: f32[1,128], index: 2, kind: input, shape index: {}]   ;;  %s752_s3 = inlined_call_operand.vmem [shape: f32[1,128], index: 3, kind: input, shape index: {}]   ;;  %s753_s4 = inlined_call_operand.vmem [shape: f32[512,128], index: 4, kind: output, shape index: {}]  }
   0x1 LB: > { %s497_s16 = sadd.s32 4294967295, %s526_s15   ;;  %p501_p0 = scmp.ge.s32.totalorder %s526_s15, 1  ;;  %s526_s15 = sphi %s553_s15, %s14_s15  }
   0x2   : > { %p174_p1 = scmp.lt.s32.totalorder %s526_s15, 3 }
   0x4   : > { %p175_p2 = pnand %p501_p0, %p174_p1 }
   0x5   : > { %s502_s17 = sshll.u32 (!%p175_p2), %s497_s16, 5  ;;  %v564_v0 = vld [vmem:[%s751_s2] ss:$0 sm:$0xff] (!%p175_p2) }
   0x6   : > { %178 = sbr.rel (%p175_p2) target bundleno = 49 (0x31), region = 36  ;;  %p206_p3 = scmp.lt.s32.totalorder (!%p175_p2), %s502_s17, 63  ;;  %v580_v2 = vld [vmem:[%s752_s3] ss:$0 sm:$0xff] (!%p175_p2) }
   0xd   : > { %s755_s17 = smov (!%p206_p3, %s502_s17), 63 }
   0xe   : > { %s503_s18 = sshll.u32 %s755_s17, 3 }
   0xf   : > { %s569_s23 = scalar_lea.vmem %s749_s0, %s503_s18  ;;  %s574_s26 = scalar_lea.vmem %s750_s1, %s503_s18 }
  0x10   : > { %v223_v1 = vld [vmem:[%s569_s23] sm:$0xff]  ;;  %v224_v3 = vld [vmem:[%s569_s23 + $0x8] sm:$0xff]  ;;  %v225_v7 = vld [vmem:[%s569_s23 + $0x10] sm:$0xff]  ;;  %s601_s5 = scalar_lea.vmem %s753_s4, %s503_s18 }
  0x11   : > { %v262_v4 = vmul.f32 %v564_v0, %v223_v1  ;;  %v333_v5 = vld [vmem:[%s574_s26] sm:$0xff]  ;;  %v263_v6 = vmul.f32 %v564_v0, %v224_v3  ;;  %v334_v8 = vld [vmem:[%s574_s26 + $0x8] sm:$0xff]  ;;  %v264_v9 = vmul.f32 %v564_v0, %v225_v7  ;;  %v226_v10 = vld [vmem:[%s569_s23 + $0x18] sm:$0xff] }
  0x12   : > { %v227_v11 = vld [vmem:[%s569_s23 + $0x20] sm:$0xff]  ;;  %v335_v14 = vld [vmem:[%s574_s26 + $0x10] sm:$0xff]  ;;  %v265_v15 = vmul.f32 %v564_v0, %v226_v10  ;;  %v336_v16 = vld [vmem:[%s574_s26 + $0x18] sm:$0xff] }
  0x13   : > { %v301_v12 = vadd.f32 %v580_v2, %v262_v4  ;;  %v302_v13 = vadd.f32 %v580_v2, %v263_v6  ;;  %v266_v17 = vmul.f32 %v564_v0, %v227_v11  ;;  %v228_v18 = vld [vmem:[%s569_s23 + $0x28] sm:$0xff]  ;;  %v303_v19 = vadd.f32 %v580_v2, %v264_v9  ;;  %v337_v20 = vld [vmem:[%s574_s26 + $0x20] sm:$0xff]  ;;  %v229_v22 = vld [vmem:[%s569_s23 + $0x30] sm:$0xff] }
  0x14   : > { %v267_v21 = vmul.f32 %v564_v0, %v228_v18  ;;  %v230_v23 = vld [vmem:[%s569_s23 + $0x38] sm:$0xff]  ;;  %v304_v26 = vadd.f32 %v580_v2, %v265_v15  ;;  %v338_v28 = vld [vmem:[%s574_s26 + $0x28] sm:$0xff]  ;;  %v231_v29 = vld [vmem:[%s569_s23 + $0x40] sm:$0xff]  ;;  %v268_v32 = vmul.f32 %v564_v0, %v229_v22 }
  0x15   : > { %v365_v24 = vadd.f32 %v333_v5, %v301_v12  ;;  %v366_v25 = vadd.f32 %v334_v8, %v302_v13  ;;  %v305_v27 = vadd.f32 %v580_v2, %v266_v17  ;;  %v367_v30 = vadd.f32 %v335_v14, %v303_v19  ;;  %v339_v33 = vld [vmem:[%s574_s26 + $0x30] sm:$0xff]  ;;  %v232_v35 = vld [vmem:[%s569_s23 + $0x48] sm:$0xff]  ;;  %v340_v39 = vld [vmem:[%s574_s26 + $0x38] sm:$0xff] }
  0x16   : > { %v306_v31 = vadd.f32 %v580_v2, %v267_v21  ;;  %v269_v34 = vmul.f32 %v564_v0, %v230_v23  ;;  %v233_v36 = vld [vmem:[%s569_s23 + $0x50] sm:$0xff]  ;;  %v368_v37 = vadd.f32 %v336_v16, %v304_v26  ;;  %v270_v40 = vmul.f32 %v564_v0, %v231_v29  ;;  %v341_v41 = vld [vmem:[%s574_s26 + $0x40] sm:$0xff]  ;;  %v234_v43 = vld [vmem:[%s569_s23 + $0x58] sm:$0xff] }
  0x17   : > { %397 = vst [vmem:[%s601_s5] sm:$0xff] %v365_v24  ;;  %398 = vst [vmem:[%s601_s5 + $0x8] sm:$0xff] %v366_v25  ;;  %v369_v38 = vadd.f32 %v337_v20, %v305_v27  ;;  %v271_v42 = vmul.f32 %v564_v0, %v232_v35  ;;  %v307_v45 = vadd.f32 %v580_v2, %v268_v32  ;;  %v342_v47 = vld [vmem:[%s574_s26 + $0x48] sm:$0xff]  ;;  %v235_v49 = vld [vmem:[%s569_s23 + $0x60] sm:$0xff] }
  0x18   : > { %399 = vst [vmem:[%s601_s5 + $0x10] sm:$0xff] %v367_v30  ;;  %v370_v44 = vadd.f32 %v338_v28, %v306_v31  ;;  %v308_v46 = vadd.f32 %v580_v2, %v269_v34  ;;  %v272_v48 = vmul.f32 %v564_v0, %v233_v36  ;;  %v236_v50 = vld [vmem:[%s569_s23 + $0x68] sm:$0xff]  ;;  %400 = vst [vmem:[%s601_s5 + $0x18] sm:$0xff] %v368_v37  ;;  %v343_v53 = vld [vmem:[%s574_s26 + $0x50] sm:$0xff] }
  0x19   : > { %401 = vst [vmem:[%s601_s5 + $0x20] sm:$0xff] %v369_v38  ;;  %v309_v51 = vadd.f32 %v580_v2, %v270_v40  ;;  %v310_v52 = vadd.f32 %v580_v2, %v271_v42  ;;  %v273_v54 = vmul.f32 %v564_v0, %v234_v43  ;;  %v344_v55 = vld [vmem:[%s574_s26 + $0x58] sm:$0xff]  ;;  %v274_v56 = vmul.f32 %v564_v0, %v235_v49  ;;  %v237_v57 = vld [vmem:[%s569_s23 + $0x70] sm:$0xff]  ;;  %v345_v61 = vld [vmem:[%s574_s26 + $0x60] sm:$0xff] }
  0x1a   : > { %402 = vst [vmem:[%s601_s5 + $0x28] sm:$0xff] %v370_v44  ;;  %v371_v58 = vadd.f32 %v339_v33, %v307_v45  ;;  %v372_v59 = vadd.f32 %v340_v39, %v308_v46  ;;  %v311_v60 = vadd.f32 %v580_v2, %v272_v48  ;;  %v275_v62 = vmul.f32 %v564_v0, %v236_v50  ;;  %v238_v63 = vld [vmem:[%s569_s23 + $0x78] sm:$0xff]  ;;  %v239_v1 = vld [vmem:[%s569_s23 + $0x80] sm:$0xff]  ;;  %v346_v7 = vld [vmem:[%s574_s26 + $0x68] sm:$0xff] }
  0x1b   : > { %v373_v3 = vadd.f32 %v341_v41, %v309_v51  ;;  %v374_v4 = vadd.f32 %v342_v47, %v310_v52  ;;  %v312_v5 = vadd.f32 %v580_v2, %v273_v54  ;;  %v313_v6 = vadd.f32 %v580_v2, %v274_v56  ;;  %v240_v8 = vld [vmem:[%s569_s23 + $0x88] sm:$0xff]  ;;  %v347_v12 = vld [vmem:[%s574_s26 + $0x70] sm:$0xff]  ;;  %v242_v15 = vld [vmem:[%s569_s23 + $0x98] sm:$0xff] }
  0x1c   : > { %403 = vst [vmem:[%s601_s5 + $0x30] sm:$0xff] %v371_v58  ;;  %404 = vst [vmem:[%s601_s5 + $0x38] sm:$0xff] %v372_v59  ;;  %v375_v9 = vadd.f32 %v343_v53, %v311_v60  ;;  %v314_v10 = vadd.f32 %v580_v2, %v275_v62  ;;  %v276_v11 = vmul.f32 %v564_v0, %v237_v57  ;;  %v241_v14 = vld [vmem:[%s569_s23 + $0x90] sm:$0xff]  ;;  %v348_v18 = vld [vmem:[%s574_s26 + $0x78] sm:$0xff] }
  0x1d   : > { %v277_v13 = vmul.f32 %v564_v0, %v238_v63  ;;  %405 = vst [vmem:[%s601_s5 + $0x40] sm:$0xff] %v373_v3  ;;  %406 = vst [vmem:[%s601_s5 + $0x48] sm:$0xff] %v374_v4  ;;  %v376_v16 = vadd.f32 %v344_v55, %v312_v5  ;;  %v377_v17 = vadd.f32 %v345_v61, %v313_v6  ;;  %v349_v20 = vld [vmem:[%s574_s26 + $0x80] sm:$0xff]  ;;  %v350_v26 = vld [vmem:[%s574_s26 + $0x88] sm:$0xff] }
  0x1e   : > { %v278_v19 = vmul.f32 %v564_v0, %v239_v1  ;;  %v279_v21 = vmul.f32 %v564_v0, %v240_v8  ;;  %v243_v22 = vld [vmem:[%s569_s23 + $0xa0] sm:$0xff]  ;;  %407 = vst [vmem:[%s601_s5 + $0x50] sm:$0xff] %v375_v9  ;;  %v378_v23 = vadd.f32 %v346_v7, %v314_v10  ;;  %v315_v24 = vadd.f32 %v580_v2, %v276_v11  ;;  %v351_v28 = vld [vmem:[%s574_s26 + $0x90] sm:$0xff]  ;;  %v244_v29 = vld [vmem:[%s569_s23 + $0xa8] sm:$0xff] }
  0x1f   : > { %v316_v25 = vadd.f32 %v580_v2, %v277_v13  ;;  %v280_v27 = vmul.f32 %v564_v0, %v241_v14  ;;  %408 = vst [vmem:[%s601_s5 + $0x58] sm:$0xff] %v376_v16  ;;  %409 = vst [vmem:[%s601_s5 + $0x60] sm:$0xff] %v377_v17  ;;  %v281_v32 = vmul.f32 %v564_v0, %v242_v15  ;;  %v352_v33 = vld [vmem:[%s574_s26 + $0x98] sm:$0xff]  ;;  %v245_v35 = vld [vmem:[%s569_s23 + $0xb0] sm:$0xff] }
  0x20   : > { %v317_v30 = vadd.f32 %v580_v2, %v278_v19  ;;  %v318_v31 = vadd.f32 %v580_v2, %v279_v21  ;;  %v282_v34 = vmul.f32 %v564_v0, %v243_v22  ;;  %v246_v36 = vld [vmem:[%s569_s23 + $0xb8] sm:$0xff]  ;;  %410 = vst [vmem:[%s601_s5 + $0x68] sm:$0xff] %v378_v23  ;;  %v379_v37 = vadd.f32 %v347_v12, %v315_v24  ;;  %v353_v40 = vld [vmem:[%s574_s26 + $0xa0] sm:$0xff]  ;;  %v248_v43 = vld [vmem:[%s569_s23 + $0xc8] sm:$0xff] }
  0x21   : > { %v380_v38 = vadd.f32 %v348_v18, %v316_v25  ;;  %v319_v39 = vadd.f32 %v580_v2, %v280_v27  ;;  %v283_v41 = vmul.f32 %v564_v0, %v244_v29  ;;  %v247_v42 = vld [vmem:[%s569_s23 + $0xc0] sm:$0xff]  ;;  %v320_v46 = vadd.f32 %v580_v2, %v281_v32  ;;  %v354_v48 = vld [vmem:[%s574_s26 + $0xa8] sm:$0xff]  ;;  %v249_v49 = vld [vmem:[%s569_s23 + $0xd0] sm:$0xff] }
  0x22   : > { %v381_v44 = vadd.f32 %v349_v20, %v317_v30  ;;  %v382_v45 = vadd.f32 %v350_v26, %v318_v31  ;;  %v321_v47 = vadd.f32 %v580_v2, %v282_v34  ;;  %411 = vst [vmem:[%s601_s5 + $0x70] sm:$0xff] %v379_v37  ;;  %v284_v52 = vmul.f32 %v564_v0, %v245_v35  ;;  %v250_v54 = vld [vmem:[%s569_s23 + $0xd8] sm:$0xff]  ;;  %v251_v55 = vld [vmem:[%s569_s23 + $0xe0] sm:$0xff]  ;;  %v355_v58 = vld [vmem:[%s574_s26 + $0xb0] sm:$0xff] }
  0x23   : > { %412 = vst [vmem:[%s601_s5 + $0x78] sm:$0xff] %v380_v38  ;;  %v383_v50 = vadd.f32 %v351_v28, %v319_v39  ;;  %v322_v51 = vadd.f32 %v580_v2, %v283_v41  ;;  %v285_v53 = vmul.f32 %v564_v0, %v246_v36  ;;  %v384_v56 = vadd.f32 %v352_v33, %v320_v46  ;;  %v356_v59 = vld [vmem:[%s574_s26 + $0xb8] sm:$0xff]  ;;  %v252_v62 = vld [vmem:[%s569_s23 + $0xe8] sm:$0xff]  ;;  %v357_v4 = vld [vmem:[%s574_s26 + $0xc0] sm:$0xff] }
  0x24   : > { %413 = vst [vmem:[%s601_s5 + $0x80] sm:$0xff] %v381_v44  ;;  %414 = vst [vmem:[%s601_s5 + $0x88] sm:$0xff] %v382_v45  ;;  %v385_v57 = vadd.f32 %v353_v40, %v321_v47  ;;  %v286_v60 = vmul.f32 %v564_v0, %v247_v42  ;;  %v287_v61 = vmul.f32 %v564_v0, %v248_v43  ;;  %v358_v5 = vld [vmem:[%s574_s26 + $0xc8] sm:$0xff]  ;;  %v359_v9 = vld [vmem:[%s574_s26 + $0xd0] sm:$0xff] }
  0x25   : > { %415 = vst [vmem:[%s601_s5 + $0x90] sm:$0xff] %v383_v50  ;;  %v386_v63 = vadd.f32 %v354_v48, %v322_v51  ;;  %v323_v1 = vadd.f32 %v580_v2, %v284_v52  ;;  %v324_v3 = vadd.f32 %v580_v2, %v285_v53  ;;  %v288_v6 = vmul.f32 %v564_v0, %v249_v49  ;;  %v253_v12 = vld [vmem:[%s569_s23 + $0xf0] sm:$0xff]  ;;  %v254_v13 = vld [vmem:[%s569_s23 + $0xf8] sm:$0xff]  ;;  %v361_v18 = vld [vmem:[%s574_s26 + $0xe0] sm:$0xff] }
  0x26   : > { %416 = vst [vmem:[%s601_s5 + $0x98] sm:$0xff] %v384_v56  ;;  %417 = vst [vmem:[%s601_s5 + $0xa0] sm:$0xff] %v385_v57  ;;  %v325_v7 = vadd.f32 %v580_v2, %v286_v60  ;;  %v326_v8 = vadd.f32 %v580_v2, %v287_v61  ;;  %v289_v10 = vmul.f32 %v564_v0, %v250_v54  ;;  %v360_v17 = vld [vmem:[%s574_s26 + $0xd8] sm:$0xff]  ;;  %v362_v24 = vld [vmem:[%s574_s26 + $0xe8] sm:$0xff] }
  0x27   : > { %v290_v11 = vmul.f32 %v564_v0, %v251_v55  ;;  %418 = vst [vmem:[%s601_s5 + $0xa8] sm:$0xff] %v386_v63  ;;  %v387_v14 = vadd.f32 %v355_v58, %v323_v1  ;;  %v388_v15 = vadd.f32 %v356_v59, %v324_v3  ;;  %v327_v16 = vadd.f32 %v580_v2, %v288_v6  ;;  %v363_v31 = vld [vmem:[%s574_s26 + $0xf0] sm:$0xff]  ;;  %v364_v32 = vld [vmem:[%s574_s26 + $0xf8] sm:$0xff] }
  0x28   : > { %v291_v19 = vmul.f32 %v564_v0, %v252_v62  ;;  %v389_v20 = vadd.f32 %v357_v4, %v325_v7  ;;  %v390_v21 = vadd.f32 %v358_v5, %v326_v8  ;;  %v328_v22 = vadd.f32 %v580_v2, %v289_v10 }
  0x29   : > { %v329_v23 = vadd.f32 %v580_v2, %v290_v11  ;;  %419 = vst [vmem:[%s601_s5 + $0xb0] sm:$0xff] %v387_v14  ;;  %420 = vst [vmem:[%s601_s5 + $0xb8] sm:$0xff] %v388_v15  ;;  %v391_v25 = vadd.f32 %v359_v9, %v327_v16  ;;  %v292_v27 = vmul.f32 %v564_v0, %v253_v12 }
  0x2a   : > { %v330_v26 = vadd.f32 %v580_v2, %v291_v19  ;;  %v293_v28 = vmul.f32 %v564_v0, %v254_v13  ;;  %421 = vst [vmem:[%s601_s5 + $0xc0] sm:$0xff] %v389_v20  ;;  %422 = vst [vmem:[%s601_s5 + $0xc8] sm:$0xff] %v390_v21  ;;  %v392_v29 = vadd.f32 %v360_v17, %v328_v22 }
  0x2b   : > { %v393_v30 = vadd.f32 %v361_v18, %v329_v23  ;;  %423 = vst [vmem:[%s601_s5 + $0xd0] sm:$0xff] %v391_v25  ;;  %v331_v34 = vadd.f32 %v580_v2, %v292_v27 }
  0x2c   : > { %v394_v33 = vadd.f32 %v362_v24, %v330_v26  ;;  %v332_v35 = vadd.f32 %v580_v2, %v293_v28  ;;  %424 = vst [vmem:[%s601_s5 + $0xd8] sm:$0xff] %v392_v29 }
  0x2d   : > { %425 = vst [vmem:[%s601_s5 + $0xe0] sm:$0xff] %v393_v30  ;;  %v395_v36 = vadd.f32 %v363_v31, %v331_v34 }
  0x2e   : > { %426 = vst [vmem:[%s601_s5 + $0xe8] sm:$0xff] %v394_v33  ;;  %v396_v37 = vadd.f32 %v364_v32, %v332_v35 }
  0x2f   : > { %427 = vst [vmem:[%s601_s5 + $0xf0] sm:$0xff] %v395_v36 }
  0x30   : > { %428 = vst [vmem:[%s601_s5 + $0xf8] sm:$0xff] %v396_v37 }
  0x31 PF: > { %s14_s15 = sadd.s32 1, %s526_s15  }
  0x32   : > { %p11_p4 = scmp.ge.s32.totalorder %s14_s15, 4  }
  0x34   :  { %13 = sbr.rel (!%p11_p4) target bundleno = 1 (0x1), region = 69 }

// kernel: decoder2_forward.74
= control target key start
LH: loop header
LB: loop body
LE: loop exit
PB: predicated region body
PF: predicated region fallthrough
CT: control target
= control target key end

     0   :  { %s1438_s15 = smov 0   ;;  %s1440_s16 = smov 0   ;;  %s1692_s0 = inlined_call_operand.vmem [shape: f32[2,729,32], index: 0, kind: input, shape index: {}]   ;;  %s1693_s1 = inlined_call_operand.vmem [shape: f32[9,32,64], index: 1, kind: input, shape index: {}]   ;;  %s1694_s2 = inlined_call_operand.vmem [shape: f32[1,64], index: 2, kind: input, shape index: {}]   ;;  %s1695_s3 = inlined_call_operand.vmem [shape: f32[2,25,25,64], index: 3, kind: output, shape index: {0}]   ;;  %s1696_s4 = inlined_call_operand.vmem [shape: f32[2,2,64], index: 4, kind: output, shape index: {1}]  }
   0x1   :  { %s1442_s17 = smov 0   ;;  %s1444_s18 = smov 0  }
   0x2   :  { %s1446_s19 = smov 0  }
   0x3 LB: > { %s24_s20 = sadd.s32 1, %s1402_s17  ;;  %s27_s21 = sadd.s32 1, %s1406_s18  ;;  %s1410_s19 = sphi %s1446_s19, %s15_s19   ;;  %s1406_s18 = sphi %s1444_s18, %s1700_s18   ;;  %s1402_s17 = sphi %s1442_s17, %s1699_s17   ;;  %s1398_s16 = sphi %s1440_s16, %s1698_s16   ;;  %s1394_s15 = sphi %s1438_s15, %s1697_s15  }
   0x4   : > { %p25_p0 = scmp.ge.s32.totalorder %s24_s20, 25  ;;  %p1098_p1 = scmp.ge.s32.totalorder %s1410_s19, 1 }
   0x5   : > { %p179_p2 = scmp.lt.s32.totalorder %s1410_s19, 51 }
   0x6   : > { %s1702_s20 = smov (%p25_p0, %s24_s20), 0  ;;  %s1704_s21 = smov (!%p25_p0, %s27_s21), %s1406_s18 }
   0x7   : > { %p180_p3 = pnand %p1098_p1, %p179_p2  ;;  %p29_p4 = scmp.ge.s32.totalorder %s1704_s21, 2 }
   0x8   : > { %p213_p5 = scmp.lt.s32.totalorder (!%p180_p3), %s1398_s16, 1  ;;  %p220_p6 = scmp.lt.s32.totalorder (!%p180_p3), %s1394_s15, 24 }
   0x9   : > { %s1706_s21 = smov (%p29_p4, %s1704_s21), 0  ;;  %183 = sbr.rel (%p180_p3) target bundleno = 331 (0x14b), region = 32 }
   0xa   : > { %p1103_p7 = scmp.ne.s32.totalorder (!%p180_p3), %s1394_s15, 0 }
  0x10   : > { %s1708_s16 = smov (!%p213_p5, %s1398_s16), 1  ;;  %vm236_vm0 = vcmask (!%p1103_p7), 517120   ;;  %v1412_v0 = vmov (!%p1103_p7), 0.0  }
  0x11   : > { %s221_s22 = scalar_select %p220_p6, %s1394_s15, 24 }
  0x12   : > { %s1329_s23 = smul.u32 736, %s1708_s16  ;;  %s1102_s24 = sshll.u32 %s1708_s16, 1 }
  0x13   : > { %s1100_s25 = sshll.u32 %s221_s22, 2  ;;  %s1330_s26 = smul.u32 100, %s1708_s16 }
  0x14   : > { %s217_s29 = scalar_lea.vmem %s1692_s0, %s1329_s23  ;;  %s1478_s6 = scalar_lea.vmem %s1696_s4, %s1102_s24 }
  0x15   : > { %s224_s7 = sadd.s32 %s1330_s26, %s1100_s25  ;;  %235 = sbr.rel (%p1103_p7) target bundleno = 28 (0x1c), region = 36  ;;  %237 = vst.msk [vmem:[%s1478_s6] sm:$0x3] (!%p1103_p7), %vm236_vm0, %v1412_v0 }
  0x16   : > { %s1101_s8 = sshll.u32 %s224_s7, 3 }
  0x17   : > { %s1483_s11 = scalar_lea.vmem %s1695_s3, %s1101_s8 }
  0x1c PF: > { %v1108_v1 = vld [vmem:[%s1693_s1 + $0x20] sm:$0xff]  ;;  %v1109_v2 = vld [vmem:[%s1693_s1 + $0x28] sm:$0xff]  ;;  %s238_s24 = smul.u32 27, %s1394_s15  ;;  %v1110_v6 = vld [vmem:[%s1693_s1 + $0x30] sm:$0xff]  ;;  %vm267_vm1 = vcmask 261120   ;;  %vm909_vm2 = vcmask 523264  }
  0x1d   : > { %v1140_v3 = vld [vmem:[%s1693_s1 + $0x80] sm:$0xff]  ;;  %v265_v4 = vpack.c.bf16 %v1109_v2, %v1108_v1  ;;  %v1141_v5 = vld [vmem:[%s1693_s1 + $0x88] sm:$0xff]  ;;  %v1111_v7 = vld [vmem:[%s1693_s1 + $0x38] sm:$0xff]  ;;  %vm913_vm3 = vcmask 516096  }
  0x1e   : > { %v540_v8 = vpack.c.bf16 %v1141_v5, %v1140_v3  ;;  %v266_v9 = vpack.c.bf16 %v1111_v7, %v1110_v6  ;;  %v1142_v10 = vld [vmem:[%s1693_s1 + $0x90] sm:$0xff]  ;;  %v1143_v11 = vld [vmem:[%s1693_s1 + $0x98] sm:$0xff]  ;;  %s1512_s10 = scalar_lea.vmem %s217_s29, %s238_s24  ;;  %v1150_v12 = vld [vmem:[%s1693_s1 + $0xa0] sm:$0xff] }
  0x1f   : > { %1225 = vmatprep.subr.bf16.mxu1 %v265_v4  ;;  %v541_v13 = vpack.c.bf16 %v1143_v11, %v1142_v10  ;;  %v1104_v14 = vld [vmem:[%s1512_s10 + $0x1] sm:$0xff]  ;;  %v1105_v15 = vld [vmem:[%s1512_s10 + $0x9] sm:$0xff]  ;;  %v1106_v19 = vld [vmem:[%s1512_s10 + $0x11] sm:$0xff] }
  0x20   : > { %v1136_v16 = vld [vmem:[%s1512_s10 + $0x1c] sm:$0xff]  ;;  %1257 = vmatprep.subr.bf16.mxu0 %v540_v8  ;;  %1226 = vmatpush3.bf16.msra.mxu1 %v265_v4  ;;  %v258_v17 = vpack.c.bf16 %v1105_v15, %v1104_v14  ;;  %v1137_v18 = vld [vmem:[%s1512_s10 + $0x24] sm:$0xff]  ;;  %v1107_v20 = vld [vmem:[%s1512_s10 + $0x19] sm:$0x1] }
  0x21   : > { %1258 = vmatpush3.bf16.msra.mxu0 %v540_v8  ;;  %1227 = vmatprep.subr.bf16.mxu1 %v266_v9  ;;  %v533_v21 = vpack.c.bf16 %v1137_v18, %v1136_v16  ;;  %v1138_v22 = vld [vmem:[%s1512_s10 + $0x2c] sm:$0xff]  ;;  %v1139_v23 = vld [vmem:[%s1512_s10 + $0x34] sm:$0x1]  ;;  %v246_v26 = vld [vmem:[%s1693_s1] sm:$0xff]  ;;  %v259_v29 = vpack.c.bf16 %v1107_v20, %v1106_v19 }
  0x22   : > { %v1151_v24 = vld [vmem:[%s1693_s1 + $0xa8] sm:$0xff]  ;;  %1259 = vmatprep.subr.bf16.mxu0 %v541_v13  ;;  %1229 = vmatprep.mubr.msk.bf16.mxu1 %vm267_vm1, %v258_v17  ;;  %v1152_v28 = vld [vmem:[%s1693_s1 + $0xb0] sm:$0xff]  ;;  %v1153_v31 = vld [vmem:[%s1693_s1 + $0xb8] sm:$0xff]  ;;  %v534_v34 = vpack.c.bf16 %v1139_v23, %v1138_v22 }
  0x23   : > { %v614_v25 = vpack.c.bf16 %v1151_v24, %v1150_v12  ;;  %v247_v27 = vld [vmem:[%s1693_s1 + $0x8] sm:$0xff]  ;;  %1261 = vmatprep.mubr.msk.bf16.mxu0 %vm267_vm1, %v533_v21  ;;  %v248_v32 = vld [vmem:[%s1693_s1 + $0x10] sm:$0xff]  ;;  %v249_v33 = vld [vmem:[%s1693_s1 + $0x18] sm:$0xff]  ;;  %v615_v40 = vpack.c.bf16 %v1153_v31, %v1152_v28 }
  0x24   : > { %v250_v30 = vpack.c.bf16 %v247_v27, %v246_v26  ;;  %1228 = vmatpush3.bf16.msra.mxu1 %v266_v9  ;;  %v240_v35 = vld [vmem:[%s1512_s10] sm:$0xff]  ;;  %v241_v36 = vld [vmem:[%s1512_s10 + $0x8] sm:$0xff]  ;;  %v251_v38 = vpack.c.bf16 %v249_v33, %v248_v32  ;;  %v242_v49 = vld [vmem:[%s1512_s10 + $0x10] sm:$0xff] }
  0x25   : > { %v1146_v37 = vld [vmem:[%s1512_s10 + $0x1d] sm:$0xff]  ;;  %1260 = vmatpush3.bf16.msra.mxu0 %v541_v13  ;;  %v1147_v39 = vld [vmem:[%s1512_s10 + $0x25] sm:$0xff]  ;;  %v244_v41 = vpack.c.bf16 %v241_v36, %v240_v35  ;;  %v243_v50 = vld [vmem:[%s1512_s10 + $0x18] sm:$0x1] }
  0x26   : > { %1233 = vmatprep.subr.bf16.mxu1 %v250_v30  ;;  %1265 = vmatprep.subr.bf16.mxu0 %v614_v25  ;;  %v1160_v42 = vld [vmem:[%s1693_s1 + $0xc0] sm:$0xff]  ;;  %v607_v43 = vpack.c.bf16 %v1147_v39, %v1146_v37  ;;  %v1161_v44 = vld [vmem:[%s1693_s1 + $0xc8] sm:$0xff]  ;;  %v1149_v52 = vld [vmem:[%s1512_s10 + $0x35] sm:$0x1]  ;;  %v245_v56 = vpack.c.bf16 %v243_v50, %v242_v49 }
  0x27   : > { %1230 = vmatmul.mubr.msk.bf16.vlgmr.msra.gmra.mrb[0].mxu1 %vm267_vm1, %v259_v29  ;;  %v1120_v45 = vld [vmem:[%s1693_s1 + $0x40] sm:$0xff]  ;;  %v1121_v46 = vld [vmem:[%s1693_s1 + $0x48] sm:$0xff]  ;;  %v689_v48 = vpack.c.bf16 %v1161_v44, %v1160_v42  ;;  %v1162_v53 = vld [vmem:[%s1693_s1 + $0xd0] sm:$0xff] }
  0x28   : > { %1262 = vmatmul.mubr.msk.bf16.vlgmr.msra.gmra.mrb[0].mxu0 %vm267_vm1, %v534_v34  ;;  %1234 = vmatpush3.bf16.msra.mxu1 %v250_v30  ;;  %v391_v47 = vpack.c.bf16 %v1121_v46, %v1120_v45  ;;  %v1148_v51 = vld [vmem:[%s1512_s10 + $0x2d] sm:$0xff]  ;;  %v1123_v55 = vld [vmem:[%s1693_s1 + $0x58] sm:$0xff]  ;;  %v1116_v58 = vld [vmem:[%s1512_s10 + $0x2] sm:$0xff] }
  0x29   : > { %1266 = vmatpush3.bf16.msra.mxu0 %v614_v25  ;;  %1235 = vmatprep.subr.bf16.mxu1 %v251_v38  ;;  %v1122_v54 = vld [vmem:[%s1693_s1 + $0x50] sm:$0xff]  ;;  %v1163_v57 = vld [vmem:[%s1693_s1 + $0xd8] sm:$0xff]  ;;  %v608_v60 = vpack.c.bf16 %v1149_v52, %v1148_v51  ;;  %v1130_v2 = vld [vmem:[%s1693_s1 + $0x60] sm:$0xff] }
  0x2a   : > { %1267 = vmatprep.subr.bf16.mxu0 %v615_v40  ;;  %1237 = vmatprep.mubr.msk.bf16.mxu1 %vm267_vm1, %v244_v41  ;;  %v1117_v59 = vld [vmem:[%s1512_s10 + $0xa] sm:$0xff]  ;;  %v1156_v61 = vld [vmem:[%s1512_s10 + $0x36] sm:$0xff]  ;;  %v1157_v62 = vld [vmem:[%s1512_s10 + $0x3e] sm:$0xff]  ;;  %v392_v63 = vpack.c.bf16 %v1123_v55, %v1122_v54  ;;  %v690_v0 = vpack.c.bf16 %v1163_v57, %v1162_v53 }
  0x2b   : > { %1269 = vmatprep.mubr.msk.bf16.mxu0 %vm267_vm1, %v607_v43  ;;  %v384_v1 = vpack.c.bf16 %v1117_v59, %v1116_v58  ;;  %v1131_v3 = vld [vmem:[%s1693_s1 + $0x68] sm:$0xff]  ;;  %v682_v4 = vpack.c.bf16 %v1157_v62, %v1156_v61  ;;  %v1170_v5 = vld [vmem:[%s1693_s1 + $0xe0] sm:$0xff]  ;;  %v1118_v9 = vld [vmem:[%s1512_s10 + $0x12] sm:$0xff] }
  0x2c   : > { %1236 = vmatpush3.bf16.msra.mxu1 %v251_v38  ;;  %v1171_v6 = vld [vmem:[%s1693_s1 + $0xe8] sm:$0xff]  ;;  %v466_v7 = vpack.c.bf16 %v1131_v3, %v1130_v2  ;;  %v1119_v10 = vld [vmem:[%s1512_s10 + $0x1a] sm:$0x1]  ;;  %v1172_v13 = vld [vmem:[%s1693_s1 + $0xf0] sm:$0xff] }
  0x2d   : > { %1268 = vmatpush3.bf16.msra.mxu0 %v615_v40  ;;  %1241 = vmatprep.subr.bf16.mxu1 %v391_v47  ;;  %v763_v8 = vpack.c.bf16 %v1171_v6, %v1170_v5  ;;  %v1158_v11 = vld [vmem:[%s1512_s10 + $0x46] sm:$0xff]  ;;  %v1159_v12 = vld [vmem:[%s1512_s10 + $0x4e] sm:$0x1]  ;;  %v1132_v14 = vld [vmem:[%s1693_s1 + $0x70] sm:$0xff]  ;;  %v385_v16 = vpack.c.bf16 %v1119_v10, %v1118_v9 }
  0x2e   : > { %1273 = vmatprep.subr.bf16.mxu0 %v689_v48  ;;  %v1133_v15 = vld [vmem:[%s1693_s1 + $0x78] sm:$0xff]  ;;  %v1127_v19 = vld [vmem:[%s1512_s10 + $0x23] sm:$0xff]  ;;  %v683_v20 = vpack.c.bf16 %v1159_v12, %v1158_v11  ;;  %v1128_v30 = vld [vmem:[%s1512_s10 + $0x2b] sm:$0xff] }
  0x2f   : > { %v1173_v17 = vld [vmem:[%s1693_s1 + $0xf8] sm:$0xff]  ;;  %v467_v23 = vpack.c.bf16 %v1133_v15, %v1132_v14  ;;  %v1180_v27 = vld [vmem:[%s1693_s1 + $0x100] sm:$0xff]  ;;  %v1181_v28 = vld [vmem:[%s1693_s1 + $0x108] sm:$0xff] }
  0x30   : > { %v1126_v18 = vld [vmem:[%s1512_s10 + $0x1b] sm:$0xff]  ;;  %v764_v24 = vpack.c.bf16 %v1173_v17, %v1172_v13  ;;  %v837_v29 = vpack.c.bf16 %v1181_v28, %v1180_v27  ;;  %v1129_v31 = vld [vmem:[%s1512_s10 + $0x33] sm:$0x1]  ;;  %v1168_v32 = vld [vmem:[%s1512_s10 + $0x47] sm:$0xff] }
  0x31   : > { %v1166_v21 = vld [vmem:[%s1512_s10 + $0x37] sm:$0xff]  ;;  %v1167_v22 = vld [vmem:[%s1512_s10 + $0x3f] sm:$0xff]  ;;  %v459_v25 = vpack.c.bf16 %v1127_v19, %v1126_v18  ;;  %v1169_v33 = vld [vmem:[%s1512_s10 + $0x4f] sm:$0x1]  ;;  %v460_v36 = vpack.c.bf16 %v1129_v31, %v1128_v30 }
  0x32   : > { %v756_v26 = vpack.c.bf16 %v1167_v22, %v1166_v21  ;;  %v1176_v34 = vld [vmem:[%s1512_s10 + $0x38] sm:$0xff]  ;;  %v1177_v35 = vld [vmem:[%s1512_s10 + $0x40] sm:$0xff]  ;;  %v1182_v37 = vld [vmem:[%s1693_s1 + $0x110] sm:$0xff]  ;;  %v757_v39 = vpack.c.bf16 %v1169_v33, %v1168_v32 }
  0x33   : > { %1238 = vmatmul.mubr.msk.bf16.vlgmr.msra.gmra.mrb[0].mxu1 %vm267_vm1, %v245_v56  ;;  %v1183_v38 = vld [vmem:[%s1693_s1 + $0x118] sm:$0xff]  ;;  %v830_v40 = vpack.c.bf16 %v1177_v35, %v1176_v34  ;;  %v1178_v42 = vld [vmem:[%s1512_s10 + $0x48] sm:$0xff]  ;;  %v1179_v43 = vld [vmem:[%s1512_s10 + $0x50] sm:$0x1] }
  0x34   : > { %1270 = vmatmul.mubr.msk.bf16.vlgmr.msra.gmra.mrb[0].mxu0 %vm267_vm1, %v608_v60  ;;  %1242 = vmatpush3.bf16.msra.mxu1 %v391_v47  ;;  %v838_v41 = vpack.c.bf16 %v1183_v38, %v1182_v37  ;;  %v831_v44 = vpack.c.bf16 %v1179_v43, %v1178_v42  ;;  %v1186_v50 = vld [vmem:[%s1694_s2] ss:$0 sm:$0xff]  ;;  %v931_v28 = vld [vmem:[%s1478_s6 + $0x1] sm:$0x1] }
  0x35   : > { %1274 = vmatpush3.bf16.msra.mxu0 %v689_v48  ;;  %1243 = vmatprep.subr.bf16.mxu1 %v392_v63 }
  0x36   : > { %1275 = vmatprep.subr.bf16.mxu0 %v690_v0  ;;  %1245 = vmatprep.mubr.msk.bf16.mxu1 %vm267_vm1, %v384_v1 }
  0x37   : > { %1277 = vmatprep.mubr.msk.bf16.mxu0 %vm267_vm1, %v682_v4 }
  0x38   : > { %1244 = vmatpush3.bf16.msra.mxu1 %v392_v63 }
  0x39   : > { %1276 = vmatpush3.bf16.msra.mxu0 %v690_v0  ;;  %1249 = vmatprep.subr.bf16.mxu1 %v466_v7 }
  0x3a   : > { %1281 = vmatprep.subr.bf16.mxu0 %v763_v8 }
  0x3f   : > { %1246 = vmatmul.mubr.msk.bf16.vlgmr.msra.gmra.mrb[0].mxu1 %vm267_vm1, %v385_v16 }
  0x40   : > { %1278 = vmatmul.mubr.msk.bf16.vlgmr.msra.gmra.mrb[0].mxu0 %vm267_vm1, %v683_v20  ;;  %1250 = vmatpush3.bf16.msra.mxu1 %v466_v7 }
  0x41   : > { %1282 = vmatpush3.bf16.msra.mxu0 %v763_v8  ;;  %1251 = vmatprep.subr.bf16.mxu1 %v467_v23 }
  0x42   : > { %1283 = vmatprep.subr.bf16.mxu0 %v764_v24  ;;  %1253 = vmatprep.mubr.msk.bf16.mxu1 %vm267_vm1, %v459_v25  ;;  %v915_v25 = vld [vmem:[%s1478_s6] sm:$0x1] }
  0x43   : > { %1285 = vmatprep.mubr.msk.bf16.mxu0 %vm267_vm1, %v756_v26 }
  0x44   : > { %1252 = vmatpush3.bf16.msra.mxu1 %v467_v23 }
  0x45   : > { %1284 = vmatpush3.bf16.msra.mxu0 %v764_v24 }
  0x46   : > { %1289 = vmatprep.subr.bf16.mxu0 %v837_v29 }
  0x4b   : > { %1254 = vmatmul.mubr.msk.bf16.vlgmr.msra.gmra.mrb[0].mxu1 %vm267_vm1, %v460_v36 }
  0x4c   : > { %1286 = vmatmul.mubr.msk.bf16.vlgmr.msra.gmra.mrb[0].mxu0 %vm267_vm1, %v757_v39 }
  0x4d   : > { %1290 = vmatpush3.bf16.msra.mxu0 %v837_v29  ;;  %1293 = vmatprep.mubr.msk.bf16.mxu0 %vm267_vm1, %v830_v40 }
  0x4e   : > { %1291 = vmatprep.subr.bf16.mxu0 %v838_v41 }
  0x51   : > { %1292 = vmatpush3.bf16.msra.mxu0 %v838_v41 }
  0x58   : > { %1294 = vmatmul.mubr.msk.bf16.vlgmr.msra.gmra.mrb[0].mxu0 %vm267_vm1, %v831_v44 }
 0x11e   : > { %v1255_v45 = vpop.f32.mrb[0].mxu1 }
 0x11f   : > { %v508_v46 = vpop.f32.mrb[1].mxu1 }
 0x120   : > { %v1256_v47 = vpop.f32.mrb[2].mxu1 }
 0x121   : > { %v511_v48 = vpop.f32.mrb[3].mxu1 }
 0x12b   : > { %v1295_v49 = vpop.f32.mrb[0].mxu0 }
 0x12c   : > { %v1297_v51 = vadd.f32 %v1295_v49, %v1255_v45  ;;  %v879_v52 = vpop.f32.mrb[1].mxu0 }
 0x12d   : > { %v1298_v53 = vadd.f32 %v879_v52, %v508_v46  ;;  %v1296_v54 = vpop.f32.mrb[2].mxu0 }
 0x12e   : > { %v907_v55 = vadd.f32 %v1297_v51, %v1186_v50  ;;  %v1299_v56 = vadd.f32 %v1296_v54, %v1256_v47  ;;  %v882_v57 = vpop.f32.mrb[3].mxu0 }
 0x12f   : > { %v905_v58 = vadd.f32 %v1298_v53, %v1186_v50  ;;  %v1300_v59 = vadd.f32 %v882_v57, %v511_v48 }
 0x130   : > { %912 = vst.msk [vmem:[%s1483_s11 + $0x10] sm:$0xff] %vm909_vm2, %v907_v55  ;;  %v908_v60 = vadd.f32 %v1299_v56, %v1186_v50  ;;  %v934_v63 = vmul.f32 %v907_v55, %v907_v55  ;;  %v919_v4 = vsel %vm909_vm2, %v907_v55, 0.0 }
 0x131   : > { %910 = vst.msk [vmem:[%s1483_s11] sm:$0xff] %vm909_vm2, %v905_v58  ;;  %v932_v61 = vmul.f32 %v905_v58, %v905_v58  ;;  %v906_v62 = vadd.f32 %v1300_v59, %v1186_v50  ;;  %v916_v0 = vsel %vm909_vm2, %v905_v58, 0.0 }
 0x132   : > { %914 = vst.msk [vmem:[%s1483_s11 + $0x18] sm:$0x1] %vm913_vm3, %v908_v60  ;;  %v935_v6 = vmul.f32 %v908_v60, %v908_v60  ;;  %v939_v10 = vsel %vm909_vm2, %v934_v63, 0.0  ;;  %v921_v11 = vsel %vm913_vm3, %v908_v60, 0.0 }
 0x133   : > { %911 = vst.msk [vmem:[%s1483_s11 + $0x8] sm:$0xff] %vm909_vm2, %v906_v62  ;;  %v917_v1 = vsel %vm909_vm2, %v906_v62, 0.0  ;;  %v933_v2 = vmul.f32 %v906_v62, %v906_v62  ;;  %v936_v5 = vsel %vm909_vm2, %v932_v61, 0.0 }
 0x134   : > { %v918_v3 = vadd.f32 %v917_v1, %v916_v0  ;;  %v941_v14 = vsel %vm913_vm3, %v935_v6, 0.0 }
 0x135   : > { %v937_v7 = vsel %vm909_vm2, %v933_v2, 0.0 }
 0x136   : > { %v920_v8 = vadd.f32 %v919_v4, %v918_v3  ;;  %v938_v9 = vadd.f32 %v937_v7, %v936_v5 }
 0x138   : > { %v922_v12 = vadd.f32 %v921_v11, %v920_v8  ;;  %v940_v13 = vadd.f32 %v939_v10, %v938_v9 }
 0x13a   : > { %v923_v15 = vrot.slane %v922_v12, 4  ;;  %v942_v16 = vadd.f32 %v941_v14, %v940_v13 }
 0x13c   : > { %v924_v17 = vadd.f32 %v923_v15, %v922_v12  ;;  %v943_v18 = vrot.slane %v942_v16, 4 }
 0x13e   : > { %v925_v19 = vrot.slane %v924_v17, 2  ;;  %v944_v20 = vadd.f32 %v943_v18, %v942_v16 }
 0x140   : > { %v926_v21 = vadd.f32 %v925_v19, %v924_v17  ;;  %v945_v22 = vrot.slane %v944_v20, 2 }
 0x142   : > { %v927_v23 = vrot.slane %v926_v21, 1  ;;  %v946_v24 = vadd.f32 %v945_v22, %v944_v20 }
 0x144   : > { %v928_v26 = vadd.f32 %v927_v23, %v926_v21  ;;  %v947_v27 = vrot.slane %v946_v24, 1 }
 0x146   : > { %v929_v29 = vadd.f32 %v928_v26, %v915_v25  ;;  %v948_v30 = vadd.f32 %v947_v27, %v946_v24 }
 0x148   : > { %930 = vst.msk [vmem:[%s1478_s6] sm:$0x1] %vm913_vm3, %v929_v29  ;;  %v949_v31 = vadd.f32 %v948_v30, %v931_v28 }
 0x14a   : > { %950 = vst.msk [vmem:[%s1478_s6 + $0x1] sm:$0x1] %vm913_vm3, %v949_v31 }
 0x14b PF: > { %s15_s19 = sadd.s32 1, %s1410_s19   ;;  %s1697_s15 = smov %s1402_s17 }
 0x14c   : > { %p12_p8 = scmp.ge.s32.totalorder %s15_s19, 52   ;;  %s1698_s16 = smov %s1406_s18 }
 0x14d   : > { %s1699_s17 = smov %s1702_s20  ;;  %s1700_s18 = smov %s1706_s21 }
 0x14e   :  { %14 = sbr.rel (!%p12_p8) target bundleno = 3 (0x3), region = 95 }

// kernel: decoder2_forward.75
= control target key start
LH: loop header
LB: loop body
LE: loop exit
PB: predicated region body
PF: predicated region fallthrough
CT: control target
= control target key end

     0   :  { %s741_s12 = smov 0   ;;  %s1041_s0 = inlined_call_operand.vmem [shape: f32[768,128], index: 0, kind: input, shape index: {}]   ;;  %s1042_s1 = inlined_call_operand.vmem [shape: f32[1,128], index: 1, kind: input, shape index: {}]   ;;  %s1043_s2 = inlined_call_operand.vmem [shape: f32[1,128], index: 2, kind: input, shape index: {}]   ;;  %s1044_s3 = inlined_call_operand.vmem [shape: f32[768,128], index: 3, kind: output, shape index: {}]  }
   0x1 LB: > { %s564_s13 = sadd.s32 4294967295, %s719_s12   ;;  %p568_p0 = scmp.ge.s32.totalorder %s719_s12, 1  ;;  %s719_s12 = sphi %s741_s12, %s13_s12  }
   0x2   : > { %p138_p1 = scmp.lt.s32.totalorder %s719_s12, 4 }
   0x4   : > { %p139_p2 = pnand %p568_p0, %p138_p1 }
   0x5   : > { %s569_s14 = sshll.u32 (!%p139_p2), %s564_s13, 5  ;;  %v755_v0 = vld [vmem:[%s1042_s1] ss:$0 sm:$0xff] (!%p139_p2) }
   0x6   : > { %142 = sbr.rel (%p139_p2) target bundleno = 109 (0x6d), region = 32  ;;  %p163_p3 = scmp.lt.s32.totalorder (!%p139_p2), %s569_s14, 95  ;;  %v767_v1 = vld [vmem:[%s1043_s2] ss:$0 sm:$0xff] (!%p139_p2) }
   0xd   : > { %s1046_s14 = smov (!%p163_p3, %s569_s14), 95 }
   0xe   : > { %s570_s15 = sshll.u32 %s1046_s14, 3 }
   0xf   : > { %s762_s20 = scalar_lea.vmem %s1041_s0, %s570_s15  ;;  %s912_s25 = scalar_lea.vmem %s1044_s3, %s570_s15 }
  0x10   : > { %v174_v2 = vld [vmem:[%s762_s20] sm:$0xff]  ;;  %v175_v3 = vld [vmem:[%s762_s20 + $0x8] sm:$0xff]  ;;  %v176_v4 = vld [vmem:[%s762_s20 + $0x10] sm:$0xff] }
  0x11   : > { %v213_v5 = vmul.f32 %v755_v0, %v174_v2  ;;  %v214_v6 = vmul.f32 %v755_v0, %v175_v3  ;;  %v215_v7 = vmul.f32 %v755_v0, %v176_v4  ;;  %v177_v8 = vld [vmem:[%s762_s20 + $0x18] sm:$0xff]  ;;  %v178_v9 = vld [vmem:[%s762_s20 + $0x20] sm:$0xff]  ;;  %v179_v10 = vld [vmem:[%s762_s20 + $0x28] sm:$0xff] }
  0x12   : > { %v216_v11 = vmul.f32 %v755_v0, %v177_v8  ;;  %v217_v12 = vmul.f32 %v755_v0, %v178_v9  ;;  %v218_v13 = vmul.f32 %v755_v0, %v179_v10  ;;  %v180_v14 = vld [vmem:[%s762_s20 + $0x30] sm:$0xff]  ;;  %v181_v15 = vld [vmem:[%s762_s20 + $0x38] sm:$0xff]  ;;  %v182_v24 = vld [vmem:[%s762_s20 + $0x40] sm:$0xff] }
  0x13   : > { %v784_v16 = vadd.f32 %v767_v1, %v213_v5  ;;  %v787_v17 = vadd.f32 %v767_v1, %v214_v6  ;;  %v790_v18 = vadd.f32 %v767_v1, %v215_v7  ;;  %v219_v19 = vmul.f32 %v755_v0, %v180_v14  ;;  %v183_v29 = vld [vmem:[%s762_s20 + $0x48] sm:$0xff]  ;;  %v184_v34 = vld [vmem:[%s762_s20 + $0x50] sm:$0xff]  ;;  %v185_v35 = vld [vmem:[%s762_s20 + $0x58] sm:$0xff] }
  0x14   : > { %v794_v20 = vadd.f32 %v767_v1, %v216_v11  ;;  %v797_v21 = vadd.f32 %v767_v1, %v217_v12  ;;  %v800_v22 = vadd.f32 %v767_v1, %v218_v13  ;;  %v220_v23 = vmul.f32 %v755_v0, %v181_v15  ;;  %v186_v50 = vld [vmem:[%s762_s20 + $0x60] sm:$0xff]  ;;  %v187_v51 = vld [vmem:[%s762_s20 + $0x68] sm:$0xff]  ;;  %v188_v58 = vld [vmem:[%s762_s20 + $0x70] sm:$0xff] }
  0x15   : > { %v284_v25 = vsub.f32 0.0, %v784_v16  ;;  %v285_v26 = vsub.f32 0.0, %v787_v17  ;;  %v286_v27 = vsub.f32 0.0, %v790_v18  ;;  %v808_v28 = vadd.f32 %v767_v1, %v219_v19  ;;  %v189_v62 = vld [vmem:[%s762_s20 + $0x78] sm:$0xff]  ;;  %v190_v7 = vld [vmem:[%s762_s20 + $0x80] sm:$0xff]  ;;  %v191_v8 = vld [vmem:[%s762_s20 + $0x88] sm:$0xff] }
  0x16   : > { %v287_v30 = vsub.f32 0.0, %v794_v20  ;;  %v288_v31 = vsub.f32 0.0, %v797_v21  ;;  %v289_v32 = vsub.f32 0.0, %v800_v22  ;;  %v815_v33 = vadd.f32 %v767_v1, %v220_v23 }
  0x17   : > { %v316_v36 = vmul.f32 1.442695, %v284_v25  ;;  %v318_v37 = vmul.f32 1.442695, %v285_v26  ;;  %v320_v38 = vmul.f32 1.442695, %v286_v27  ;;  %v221_v39 = vmul.f32 %v755_v0, %v182_v24 }
  0x18   : > { %v322_v40 = vmul.f32 1.442695, %v287_v30  ;;  %v324_v41 = vmul.f32 1.442695, %v288_v31  ;;  %v326_v42 = vmul.f32 1.442695, %v289_v32  ;;  %v222_v43 = vmul.f32 %v755_v0, %v183_v29 }
  0x19   : > { %585 = vpow2.f32 %v316_v36  ;;  %v290_v44 = vsub.f32 0.0, %v808_v28  ;;  %v291_v45 = vsub.f32 0.0, %v815_v33  ;;  %v824_v46 = vadd.f32 %v767_v1, %v221_v39  ;;  %v192_v31 = vld [vmem:[%s762_s20 + $0x90] sm:$0xff]  ;;  %v193_v36 = vld [vmem:[%s762_s20 + $0x98] sm:$0xff] }
  0x1a   : > { %587 = vpow2.f32 %v318_v37  ;;  %v827_v47 = vadd.f32 %v767_v1, %v222_v43  ;;  %v223_v48 = vmul.f32 %v755_v0, %v184_v34  ;;  %v224_v49 = vmul.f32 %v755_v0, %v185_v35 }
  0x1b   : > { %589 = vpow2.f32 %v320_v38  ;;  %v328_v52 = vmul.f32 1.442695, %v290_v44  ;;  %v330_v53 = vmul.f32 1.442695, %v291_v45  ;;  %v292_v54 = vsub.f32 0.0, %v824_v46  ;;  %v194_v45 = vld [vmem:[%s762_s20 + $0xa0] sm:$0xff] }
  0x1c   : > { %591 = vpow2.f32 %v322_v40  ;;  %v293_v55 = vsub.f32 0.0, %v827_v47  ;;  %v836_v56 = vadd.f32 %v767_v1, %v223_v48  ;;  %v839_v57 = vadd.f32 %v767_v1, %v224_v49 }
  0x1d   : > { %593 = vpow2.f32 %v324_v41  ;;  %v332_v59 = vmul.f32 1.442695, %v292_v54  ;;  %v225_v60 = vmul.f32 %v755_v0, %v186_v50  ;;  %v226_v61 = vmul.f32 %v755_v0, %v187_v51 }
  0x1e   : > { %595 = vpow2.f32 %v326_v42  ;;  %v334_v63 = vmul.f32 1.442695, %v293_v55  ;;  %v294_v2 = vsub.f32 0.0, %v836_v56  ;;  %v295_v3 = vsub.f32 0.0, %v839_v57 }
  0x1f   : > { %597 = vpow2.f32 %v328_v52  ;;  %v848_v4 = vadd.f32 %v767_v1, %v225_v60  ;;  %v851_v5 = vadd.f32 %v767_v1, %v226_v61  ;;  %v227_v6 = vmul.f32 %v755_v0, %v188_v58  ;;  %v195_v52 = vld [vmem:[%s762_s20 + $0xa8] sm:$0xff] }
  0x20   : > { %599 = vpow2.f32 %v330_v53  ;;  %v336_v9 = vmul.f32 1.442695, %v294_v2  ;;  %v338_v10 = vmul.f32 1.442695, %v295_v3  ;;  %v228_v11 = vmul.f32 %v755_v0, %v189_v62 }
  0x21   : > { %601 = vpow2.f32 %v332_v59  ;;  %v296_v12 = vsub.f32 0.0, %v848_v4  ;;  %v297_v13 = vsub.f32 0.0, %v851_v5  ;;  %v860_v14 = vadd.f32 %v767_v1, %v227_v6 }
  0x22   : > { %603 = vpow2.f32 %v334_v63  ;;  %v863_v15 = vadd.f32 %v767_v1, %v228_v11  ;;  %v229_v19 = vmul.f32 %v755_v0, %v190_v7  ;;  %v230_v23 = vmul.f32 %v755_v0, %v191_v8  ;;  %v196_v11 = vld [vmem:[%s762_s20 + $0xb0] sm:$0xff] }
  0x23   : > { %v586_v24 = vpop.eup %585  ;;  %605 = vpow2.f32 %v336_v9  ;;  %v340_v25 = vmul.f32 1.442695, %v296_v12  ;;  %v298_v26 = vsub.f32 0.0, %v860_v14  ;;  %v876_v39 = vmul.f32 1.442695, %v297_v13 }
  0x24   : > { %v588_v27 = vpop.eup %587  ;;  %v380_v29 = vadd.f32 1.0, %v586_v24  ;;  %607 = vpow2.f32 %v338_v10  ;;  %v869_v30 = vadd.f32 %v767_v1, %v229_v19  ;;  %v873_v35 = vadd.f32 %v767_v1, %v230_v23  ;;  %v197_v24 = vld [vmem:[%s762_s20 + $0xb8] sm:$0xff] }
  0x25   : > { %v590_v32 = vpop.eup %589  ;;  %v381_v34 = vadd.f32 1.0, %v588_v27  ;;  %609 = vpow2.f32 %v340_v25  ;;  %v299_v40 = vsub.f32 0.0, %v863_v15  ;;  %v879_v43 = vmul.f32 1.442695, %v298_v26 }
  0x26   : > { %v592_v37 = vpop.eup %591  ;;  %611 = vrcp.f32 %v380_v29  ;;  %v382_v38 = vadd.f32 1.0, %v590_v32  ;;  %v231_v44 = vmul.f32 %v755_v0, %v192_v31  ;;  %v300_v50 = vsub.f32 0.0, %v869_v30 }
  0x27   : > { %v594_v41 = vpop.eup %593  ;;  %613 = vrcp.f32 %v381_v34  ;;  %v383_v42 = vadd.f32 1.0, %v592_v37  ;;  %v232_v51 = vmul.f32 %v755_v0, %v193_v36  ;;  %v301_v55 = vsub.f32 0.0, %v873_v35  ;;  %v198_v37 = vld [vmem:[%s762_s20 + $0xc0] sm:$0xff] }
  0x28   : > { %v596_v48 = vpop.eup %595  ;;  %615 = vrcp.f32 %v382_v38  ;;  %v384_v49 = vadd.f32 1.0, %v594_v41  ;;  %v888_v58 = vadd.f32 %v767_v1, %v231_v44  ;;  %v233_v62 = vmul.f32 %v755_v0, %v194_v45  ;;  %v199_v44 = vld [vmem:[%s762_s20 + $0xc8] sm:$0xff] }
  0x29   : > { %v598_v53 = vpop.eup %597  ;;  %617 = vrcp.f32 %v383_v42  ;;  %v385_v54 = vadd.f32 1.0, %v596_v48  ;;  %v891_v61 = vadd.f32 %v767_v1, %v232_v51  ;;  %v234_v6 = vmul.f32 %v755_v0, %v195_v52 }
  0x2a   : > { %v600_v59 = vpop.eup %599  ;;  %619 = vrcp.f32 %v384_v49  ;;  %v386_v60 = vadd.f32 1.0, %v598_v53  ;;  %v302_v3 = vsub.f32 0.0, %v888_v58  ;;  %v346_v9 = vmul.f32 1.442695, %v299_v40 }
  0x2b   : > { %v602_v63 = vpop.eup %601  ;;  %621 = vrcp.f32 %v385_v54  ;;  %v387_v2 = vadd.f32 1.0, %v600_v59  ;;  %v303_v10 = vsub.f32 0.0, %v891_v61  ;;  %v348_v19 = vmul.f32 1.442695, %v300_v50 }
  0x2c   : > { %v604_v7 = vpop.eup %603  ;;  %623 = vrcp.f32 %v386_v60  ;;  %v388_v8 = vadd.f32 1.0, %v602_v63  ;;  %v899_v23 = vadd.f32 %v767_v1, %v233_v62  ;;  %v350_v27 = vmul.f32 1.442695, %v301_v55 }
  0x2d   : > { %v606_v12 = vpop.eup %605  ;;  %625 = vrcp.f32 %v387_v2  ;;  %v389_v13 = vadd.f32 1.0, %v604_v7  ;;  %v352_v29 = vmul.f32 1.442695, %v302_v3  ;;  %v903_v34 = vadd.f32 %v767_v1, %v234_v6 }
  0x2e   : > { %v608_v25 = vpop.eup %607  ;;  %627 = vrcp.f32 %v388_v8  ;;  %v390_v26 = vadd.f32 1.0, %v606_v12  ;;  %v235_v36 = vmul.f32 %v755_v0, %v196_v11  ;;  %v354_v41 = vmul.f32 1.442695, %v303_v10 }
  0x2f   : > { %v610_v31 = vpop.eup %609  ;;  %629 = vrcp.f32 %v389_v13  ;;  %v391_v32 = vadd.f32 1.0, %v608_v25  ;;  %v236_v42 = vmul.f32 %v755_v0, %v197_v24  ;;  %v304_v49 = vsub.f32 0.0, %v899_v23 }
  0x30   : > { %v612_v38 = vpop.eup %611  ;;  %631 = vrcp.f32 %v390_v26  ;;  %v392_v40 = vadd.f32 1.0, %v610_v31  ;;  %v919_v50 = vadd.f32 %v767_v1, %v235_v36  ;;  %v237_v54 = vmul.f32 %v755_v0, %v198_v37  ;;  %v200_v31 = vld [vmem:[%s762_s20 + $0xd0] sm:$0xff] }
  0x31   : > { %v614_v45 = vpop.eup %613  ;;  %v444_v48 = vmul.f32 %v612_v38, %v784_v16  ;;  %633 = vrcp.f32 %v391_v32  ;;  %v923_v53 = vadd.f32 %v767_v1, %v236_v42  ;;  %v305_v59 = vsub.f32 0.0, %v903_v34  ;;  %v201_v32 = vld [vmem:[%s762_s20 + $0xd8] sm:$0xff] }
  0x32   : > { %v616_v51 = vpop.eup %615  ;;  %v445_v52 = vmul.f32 %v614_v45, %v787_v17  ;;  %635 = vrcp.f32 %v392_v40  ;;  %v238_v60 = vmul.f32 %v755_v0, %v199_v44  ;;  %v306_v63 = vsub.f32 0.0, %v919_v50 }
  0x33   : > { %v618_v55 = vpop.eup %617  ;;  %476 = vst [vmem:[%s912_s25] sm:$0xff] %v444_v48  ;;  %v446_v16 = vmul.f32 %v616_v51, %v790_v18  ;;  %637 = vpow2.f32 %v876_v39  ;;  %v936_v2 = vadd.f32 %v767_v1, %v237_v54  ;;  %v307_v3 = vsub.f32 0.0, %v923_v53  ;;  %v204_v48 = vld [vmem:[%s762_s20 + $0xf0] sm:$0xff] }
  0x34   : > { %v620_v62 = vpop.eup %619  ;;  %477 = vst [vmem:[%s912_s25 + $0x8] sm:$0xff] %v445_v52  ;;  %v447_v17 = vmul.f32 %v618_v55, %v794_v20  ;;  %639 = vpow2.f32 %v879_v43  ;;  %v942_v6 = vadd.f32 %v767_v1, %v238_v60  ;;  %v356_v7 = vmul.f32 1.442695, %v304_v49  ;;  %v205_v52 = vld [vmem:[%s762_s20 + $0xf8] sm:$0xff] }
  0x35   : > { %v622_v18 = vpop.eup %621  ;;  %478 = vst [vmem:[%s912_s25 + $0x10] sm:$0xff] %v446_v16  ;;  %v448_v39 = vmul.f32 %v620_v62, %v797_v21  ;;  %641 = vpow2.f32 %v346_v9  ;;  %v308_v8 = vsub.f32 0.0, %v936_v2  ;;  %v358_v9 = vmul.f32 1.442695, %v305_v59 }
  0x36   : > { %v624_v20 = vpop.eup %623  ;;  %479 = vst [vmem:[%s912_s25 + $0x18] sm:$0xff] %v447_v17  ;;  %v449_v43 = vmul.f32 %v622_v18, %v800_v22  ;;  %643 = vpow2.f32 %v348_v19  ;;  %v309_v11 = vsub.f32 0.0, %v942_v6  ;;  %v360_v13 = vmul.f32 1.442695, %v306_v63 }
  0x37   : > { %v626_v10 = vpop.eup %625  ;;  %480 = vst [vmem:[%s912_s25 + $0x20] sm:$0xff] %v448_v39  ;;  %v450_v21 = vmul.f32 %v624_v20, %v808_v28  ;;  %645 = vpow2.f32 %v350_v27  ;;  %v362_v28 = vmul.f32 1.442695, %v307_v3  ;;  %v364_v27 = vmul.f32 1.442695, %v308_v8 }
  0x38   : > { %v628_v12 = vpop.eup %627  ;;  %481 = vst [vmem:[%s912_s25 + $0x28] sm:$0xff] %v449_v43  ;;  %v451_v22 = vmul.f32 %v626_v10, %v815_v33  ;;  %647 = vpow2.f32 %v352_v29  ;;  %v240_v45 = vmul.f32 %v755_v0, %v201_v32  ;;  %v243_v62 = vmul.f32 %v755_v0, %v204_v48 }
  0x39   : > { %v630_v19 = vpop.eup %629  ;;  %482 = vst [vmem:[%s912_s25 + $0x30] sm:$0xff] %v450_v21  ;;  %v452_v24 = vmul.f32 %v628_v12, %v824_v46  ;;  %649 = vpow2.f32 %v354_v41  ;;  %v366_v46 = vmul.f32 1.442695, %v309_v11  ;;  %v203_v41 = vld [vmem:[%s762_s20 + $0xe8] sm:$0xff]  ;;  %v244_v39 = vmul.f32 %v755_v0, %v205_v52 }
  0x3a   : > { %v632_v25 = vpop.eup %631  ;;  %483 = vst [vmem:[%s912_s25 + $0x38] sm:$0xff] %v451_v22  ;;  %v453_v26 = vmul.f32 %v630_v19, %v827_v47  ;;  %651 = vpow2.f32 %v356_v7  ;;  %v202_v47 = vld [vmem:[%s762_s20 + $0xe0] sm:$0xff]  ;;  %v242_v55 = vmul.f32 %v755_v0, %v203_v41  ;;  %v979_v18 = vadd.f32 %v767_v1, %v240_v45 }
  0x3b   : > { %v634_v33 = vpop.eup %633  ;;  %484 = vst [vmem:[%s912_s25 + $0x40] sm:$0xff] %v452_v24  ;;  %v454_v29 = vmul.f32 %v632_v25, %v836_v56  ;;  %653 = vpow2.f32 %v358_v9  ;;  %v239_v56 = vmul.f32 %v755_v0, %v200_v31  ;;  %v241_v51 = vmul.f32 %v755_v0, %v202_v47 }
  0x3c   : > { %v636_v36 = vpop.eup %635  ;;  %485 = vst [vmem:[%s912_s25 + $0x48] sm:$0xff] %v453_v26  ;;  %v455_v37 = vmul.f32 %v634_v33, %v839_v57  ;;  %655 = vpow2.f32 %v360_v13  ;;  %v986_v10 = vadd.f32 %v767_v1, %v242_v55  ;;  %v990_v12 = vadd.f32 %v767_v1, %v243_v62 }
  0x3d   : > { %v638_v38 = vpop.eup %637  ;;  %486 = vst [vmem:[%s912_s25 + $0x50] sm:$0xff] %v454_v29  ;;  %v456_v40 = vmul.f32 %v636_v36, %v848_v4  ;;  %657 = vpow2.f32 %v362_v28  ;;  %v975_v60 = vadd.f32 %v767_v1, %v239_v56  ;;  %v983_v43 = vadd.f32 %v767_v1, %v241_v51 }
  0x3e   : > { %v640_v42 = vpop.eup %639  ;;  %487 = vst [vmem:[%s912_s25 + $0x58] sm:$0xff] %v455_v37  ;;  %v393_v44 = vadd.f32 1.0, %v638_v38  ;;  %659 = vpow2.f32 %v364_v27  ;;  %v311_v13 = vsub.f32 0.0, %v979_v18  ;;  %v994_v19 = vadd.f32 %v767_v1, %v244_v39 }
  0x3f   : > { %v642_v57 = vpop.eup %641  ;;  %488 = vst [vmem:[%s912_s25 + $0x60] sm:$0xff] %v456_v40  ;;  %v394_v49 = vadd.f32 1.0, %v640_v42  ;;  %661 = vpow2.f32 %v366_v46  ;;  %v310_v11 = vsub.f32 0.0, %v975_v60  ;;  %v312_v25 = vsub.f32 0.0, %v983_v43 }
  0x40   : > { %v644_v54 = vpop.eup %643  ;;  %663 = vrcp.f32 %v393_v44  ;;  %v395_v4 = vadd.f32 1.0, %v642_v57  ;;  %v313_v31 = vsub.f32 0.0, %v986_v10  ;;  %v314_v32 = vsub.f32 0.0, %v990_v12 }
  0x41   : > { %v646_v16 = vpop.eup %645  ;;  %665 = vrcp.f32 %v394_v49  ;;  %v396_v59 = vadd.f32 1.0, %v644_v54  ;;  %v368_v46 = vmul.f32 1.442695, %v310_v11  ;;  %v370_v37 = vmul.f32 1.442695, %v311_v13 }
  0x42   : > { %v648_v17 = vpop.eup %647  ;;  %667 = vrcp.f32 %v395_v4  ;;  %v397_v63 = vadd.f32 1.0, %v646_v16  ;;  %v315_v47 = vsub.f32 0.0, %v994_v19  ;;  %v372_v56 = vmul.f32 1.442695, %v312_v25 }
  0x43   : > { %v650_v3 = vpop.eup %649  ;;  %669 = vrcp.f32 %v396_v59  ;;  %v398_v20 = vadd.f32 1.0, %v648_v17  ;;  %v374_v44 = vmul.f32 1.442695, %v313_v31  ;;  %v376_v57 = vmul.f32 1.442695, %v314_v32 }
  0x44   : > { %v652_v7 = vpop.eup %651  ;;  %671 = vrcp.f32 %v397_v63  ;;  %v399_v8 = vadd.f32 1.0, %v650_v3  ;;  %v378_v51 = vmul.f32 1.442695, %v315_v47 }
  0x45   : > { %v654_v21 = vpop.eup %653  ;;  %673 = vrcp.f32 %v398_v20  ;;  %v400_v9 = vadd.f32 1.0, %v652_v7 }
  0x46   : > { %v656_v0 = vpop.eup %655  ;;  %675 = vrcp.f32 %v399_v8  ;;  %v401_v22 = vadd.f32 1.0, %v654_v21 }
  0x47   : > { %v658_v24 = vpop.eup %657  ;;  %677 = vrcp.f32 %v400_v9  ;;  %v402_v28 = vadd.f32 1.0, %v656_v0 }
  0x48   : > { %v660_v26 = vpop.eup %659  ;;  %679 = vrcp.f32 %v401_v22  ;;  %v403_v27 = vadd.f32 1.0, %v658_v24 }
  0x49   : > { %v662_v33 = vpop.eup %661  ;;  %681 = vrcp.f32 %v402_v28  ;;  %v404_v29 = vadd.f32 1.0, %v660_v26 }
  0x4a   : > { %v664_v36 = vpop.eup %663  ;;  %683 = vrcp.f32 %v403_v27  ;;  %v405_v1 = vadd.f32 1.0, %v662_v33 }
  0x4b   : > { %v666_v38 = vpop.eup %665  ;;  %v457_v40 = vmul.f32 %v664_v36, %v851_v5  ;;  %685 = vrcp.f32 %v404_v29 }
  0x4c   : > { %v668_v41 = vpop.eup %667  ;;  %v458_v42 = vmul.f32 %v666_v38, %v860_v14  ;;  %687 = vrcp.f32 %v405_v1 }
  0x4d   : > { %v670_v45 = vpop.eup %669  ;;  %489 = vst [vmem:[%s912_s25 + $0x68] sm:$0xff] %v457_v40  ;;  %v459_v48 = vmul.f32 %v668_v41, %v863_v15  ;;  %689 = vpow2.f32 %v368_v46 }
  0x4e   : > { %v672_v49 = vpop.eup %671  ;;  %490 = vst [vmem:[%s912_s25 + $0x70] sm:$0xff] %v458_v42  ;;  %v460_v5 = vmul.f32 %v670_v45, %v869_v30  ;;  %691 = vpow2.f32 %v370_v37 }
  0x4f   : > { %v674_v52 = vpop.eup %673  ;;  %491 = vst [vmem:[%s912_s25 + $0x78] sm:$0xff] %v459_v48  ;;  %v461_v14 = vmul.f32 %v672_v49, %v873_v35  ;;  %693 = vpow2.f32 %v372_v56 }
  0x50   : > { %v676_v54 = vpop.eup %675  ;;  %492 = vst [vmem:[%s912_s25 + $0x80] sm:$0xff] %v460_v5  ;;  %v462_v15 = vmul.f32 %v674_v52, %v888_v58  ;;  %695 = vpow2.f32 %v374_v44 }
  0x51   : > { %v678_v4 = vpop.eup %677  ;;  %493 = vst [vmem:[%s912_s25 + $0x88] sm:$0xff] %v461_v14  ;;  %v463_v30 = vmul.f32 %v676_v54, %v891_v61  ;;  %697 = vpow2.f32 %v376_v57 }
  0x52   : > { %v680_v55 = vpop.eup %679  ;;  %494 = vst [vmem:[%s912_s25 + $0x90] sm:$0xff] %v462_v15  ;;  %v464_v16 = vmul.f32 %v678_v4, %v899_v23  ;;  %699 = vpow2.f32 %v378_v51 }
  0x53   : > { %v682_v35 = vpop.eup %681  ;;  %495 = vst [vmem:[%s912_s25 + $0x98] sm:$0xff] %v463_v30  ;;  %v465_v59 = vmul.f32 %v680_v55, %v903_v34 }
  0x54   : > { %v684_v58 = vpop.eup %683  ;;  %496 = vst [vmem:[%s912_s25 + $0xa0] sm:$0xff] %v464_v16  ;;  %v466_v62 = vmul.f32 %v682_v35, %v919_v50 }
  0x55   : > { %v686_v17 = vpop.eup %685  ;;  %497 = vst [vmem:[%s912_s25 + $0xa8] sm:$0xff] %v465_v59  ;;  %v467_v61 = vmul.f32 %v684_v58, %v923_v53 }
  0x56   : > { %v688_v63 = vpop.eup %687  ;;  %498 = vst [vmem:[%s912_s25 + $0xb0] sm:$0xff] %v466_v62  ;;  %v468_v39 = vmul.f32 %v686_v17, %v936_v2 }
  0x57   : > { %v690_v23 = vpop.eup %689  ;;  %499 = vst [vmem:[%s912_s25 + $0xb8] sm:$0xff] %v467_v61  ;;  %v469_v3 = vmul.f32 %v688_v63, %v942_v6 }
  0x58   : > { %v692_v20 = vpop.eup %691  ;;  %500 = vst [vmem:[%s912_s25 + $0xc0] sm:$0xff] %v468_v39  ;;  %v406_v34 = vadd.f32 1.0, %v690_v23 }
  0x59   : > { %v694_v7 = vpop.eup %693  ;;  %501 = vst [vmem:[%s912_s25 + $0xc8] sm:$0xff] %v469_v3  ;;  %v407_v8 = vadd.f32 1.0, %v692_v20 }
  0x5a   : > { %v696_v21 = vpop.eup %695  ;;  %701 = vrcp.f32 %v406_v34  ;;  %v408_v50 = vadd.f32 1.0, %v694_v7 }
  0x5b   : > { %v698_v9 = vpop.eup %697  ;;  %703 = vrcp.f32 %v407_v8  ;;  %v409_v53 = vadd.f32 1.0, %v696_v21 }
  0x5c   : > { %v700_v11 = vpop.eup %699  ;;  %705 = vrcp.f32 %v408_v50  ;;  %v410_v2 = vadd.f32 1.0, %v698_v9 }
  0x5d   : > { %707 = vrcp.f32 %v409_v53  ;;  %v411_v6 = vadd.f32 1.0, %v700_v11 }
  0x5e   : > { %709 = vrcp.f32 %v410_v2 }
  0x5f   : > { %711 = vrcp.f32 %v411_v6 }
  0x64   : > { %v702_v0 = vpop.eup %701 }
  0x65   : > { %v704_v22 = vpop.eup %703  ;;  %v470_v13 = vmul.f32 %v702_v0, %v975_v60 }
  0x66   : > { %v706_v24 = vpop.eup %705  ;;  %v471_v28 = vmul.f32 %v704_v22, %v979_v18 }
  0x67   : > { %v708_v25 = vpop.eup %707  ;;  %502 = vst [vmem:[%s912_s25 + $0xd0] sm:$0xff] %v470_v13  ;;  %v472_v26 = vmul.f32 %v706_v24, %v983_v43 }
  0x68   : > { %v710_v27 = vpop.eup %709  ;;  %503 = vst [vmem:[%s912_s25 + $0xd8] sm:$0xff] %v471_v28  ;;  %v473_v31 = vmul.f32 %v708_v25, %v986_v10 }
  0x69   : > { %v712_v33 = vpop.eup %711  ;;  %504 = vst [vmem:[%s912_s25 + $0xe0] sm:$0xff] %v472_v26  ;;  %v474_v29 = vmul.f32 %v710_v27, %v990_v12 }
  0x6a   : > { %505 = vst [vmem:[%s912_s25 + $0xe8] sm:$0xff] %v473_v31  ;;  %v475_v46 = vmul.f32 %v712_v33, %v994_v19 }
  0x6b   : > { %506 = vst [vmem:[%s912_s25 + $0xf0] sm:$0xff] %v474_v29 }
  0x6c   : > { %507 = vst [vmem:[%s912_s25 + $0xf8] sm:$0xff] %v475_v46 }
  0x6d PF: > { %s13_s12 = sadd.s32 1, %s719_s12  }
  0x6e   : > { %p10_p4 = scmp.ge.s32.totalorder %s13_s12, 5  }
  0x70   :  { %12 = sbr.rel (!%p10_p4) target bundleno = 1 (0x1), region = 62 }

</bundles_post_ra>
